<compile_context>
chip_gen: v6e
topology: v6e:2x2x1
jax: 0.10.0
libtpu: 0.0.40
codegen_flags: <defaults>
</compile_context>

<pallas_src>
import numpy as np
import jax
import jax.numpy as jnp
from jax.experimental import pallas as pl
from jax.experimental.pallas import tpu as pltpu


# ---------------- geometry / layout constants ----------------
KH = KW = 5            # conv kernel size (all three convs)
OP = 128               # padded channel / feature lane width
K1 = 32                # conv1 im2col contraction: 25 taps padded to 32 lanes
NP1 = 196              # pool1 output positions (14 x 14)
P1R = 200              # pool1 positions rounded up to a sublane multiple
M1R = 4 * P1R          # conv1 im2col rows: 4 pool-window slots x 200 = 800
W2 = 14                # conv2 input canvas width (pool1 output is 14 x 14)
C2R = 144              # conv2 output rows computed (valid rows are 0..135)
T2 = 72                # conv2 row tile (f32 acc = 9 vregs); 2 * T2 == C2R
BUF2 = 208             # conv2 input canvas rows incl. shifted-read tail (>=204)
M3 = 32                # conv3 input canvas rows (25 real 5x5 positions)


def _conv1_im2col_indices():
    """(800, 25) gather indices into the flattened zero-padded 32x32 image.

    Row q*200 + p (q in [0,4), p = io*14 + jo in [0,196)) holds the 25 conv1
    taps for output position (2*io + q//2, 2*jo + q%2).  With this ordering
    AvgPool2d(2,2) is just 0.25 * sum of the four 200-row blocks.  Rows with
    p >= 196 gather index 0 (a zero pad pixel) and only feed discarded work.
    """
    idx = np.zeros((M1R, KH * KW), np.int32)
    p = np.arange(NP1)
    io, jo = p // 14, p % 14
    for q in range(4):
        i = 2 * io + q // 2                    # conv1 output row (0..27)
        j = 2 * jo + q % 2                     # conv1 output col (0..27)
        for di in range(KH):
            for dj in range(KW):
                idx[q * P1R + p, di * KW + dj] = (i + di) * 32 + (j + dj)
    return jnp.asarray(idx)


_IM2COL_IDX = _conv1_im2col_indices()


def _pool2_matrix():
    """(32, 144) selection matrix: 2x2 average pool of the 10x10 conv2 output
    (stored on a 14-wide canvas) onto the 25-row (5x5) conv3 canvas."""
    m = np.zeros((M3, C2R), np.float32)
    for io in range(5):
        for jo in range(5):
            r = io * 5 + jo
            for di in range(2):
                for dj in range(2):
                    m[r, (2 * io + di) * W2 + (2 * jo + dj)] = 0.25
    return jnp.asarray(m, jnp.bfloat16)


# ----------------------- fused Pallas kernel -----------------------

def _lenet_kernel(xc_ref, w1_ref, b1_ref, w2_ref, b2_ref, w3_ref, b3_ref,
                  p2_ref, fw1_ref, fb1_ref, fw2_ref, fb2_ref,
                  out_ref,
                  cv2_ref, act2_ref, cv3_ref):
    f32, bf16 = jnp.float32, jnp.bfloat16

    # ---- conv1 (1->6, pad=2) + tanh: ONE im2col matmul ----
    a1 = jnp.dot(xc_ref[0], w1_ref[...], preferred_element_type=f32)  # (800,128)
    act1 = jnp.tanh(a1 + b1_ref[...])

    # ---- avgpool1 (2x2): four 8-aligned row-block adds on the VPU ----
    pool1 = 0.25 * (act1[0:P1R] + act1[P1R:2 * P1R]
                    + act1[2 * P1R:3 * P1R] + act1[3 * P1R:4 * P1R])
    cv2_ref[0:P1R, :] = pool1.astype(bf16)
    # Finite tail so shifted reads (which only feed discarded rows) stay clean.
    cv2_ref[P1R:BUF2, :] = jnp.zeros((BUF2 - P1R, OP), bf16)

    # ---- conv2 (6->16) + tanh: 25 shifted dots per 72-row tile, register acc ----
    for t in range(C2R // T2):
        r0 = t * T2
        acc = None
        for di in range(KH):
            for dj in range(KW):
                s = r0 + di * W2 + dj
                c = jnp.dot(cv2_ref[s:s + T2, :], w2_ref[di * KW + dj],
                            preferred_element_type=f32)
                acc = c if acc is None else acc + c
        act2_ref[r0:r0 + T2, :] = jnp.tanh(acc + b2_ref[...]).astype(bf16)

    # ---- avgpool2 (2x2) + re-layout onto the 5x5 conv3 canvas: tiny matmul ----
    cv3_ref[...] = jnp.dot(p2_ref[...], act2_ref[...],
                           preferred_element_type=f32).astype(bf16)

    # ---- conv3 (16->120, 5x5 -> 1x1) + tanh: 25 single-push dots ----
    acc3 = None
    for k in range(KH * KW):
        c = jnp.dot(cv3_ref[k:k + 8, :], w3_ref[k], preferred_element_type=f32)
        acc3 = c if acc3 is None else acc3 + c
    feat = jnp.tanh(acc3 + b3_ref[...]).astype(bf16)           # row 0 valid

    # ---- classifier: Linear(120,84) -> Linear(84,10), no activation ----
    h1 = jnp.dot(feat, fw1_ref[...], preferred_element_type=f32) + fb1_ref[...]
    h2 = jnp.dot(h1.astype(bf16), fw2_ref[...],
                 preferred_element_type=f32) + fb2_ref[...]
    out_ref[0, :, :] = h2[0:1, :]


# ----------------------- host-side parameter prep -----------------------

def prepare_lenet_params(params):
    """One-time re-layout of PyTorch-style params into padded bf16 operands."""
    def conv_w_slab(w):                        # (O, C, 5, 5) -> (25, 128, 128)
        o, c, kh, kw = w.shape
        wt = jnp.transpose(w, (2, 3, 1, 0)).reshape(kh * kw, c, o)
        return jnp.pad(wt, ((0, 0), (0, OP - c), (0, OP - o))).astype(jnp.bfloat16)

    def conv1_w(w):                            # (6, 1, 5, 5) -> (32, 128)
        o = w.shape[0]
        wt = jnp.transpose(w, (2, 3, 1, 0)).reshape(KH * KW, o)
        return jnp.pad(wt, ((0, K1 - KH * KW), (0, OP - o))).astype(jnp.bfloat16)

    def fc_w(w):               # torch Linear weight (out, in) -> (in_pad, out_pad)
        o, i = w.shape
        return jnp.pad(w.T, ((0, OP - i), (0, OP - o))).astype(jnp.bfloat16)

    def bias(b):
        return jnp.pad(b, (0, OP - b.shape[0])).reshape(1, OP).astype(jnp.float32)

    return {
        "w1": conv1_w(params["c1_w"]), "b1": bias(params["c1_b"]),
        "w2": conv_w_slab(params["c2_w"]), "b2": bias(params["c2_b"]),
        "w3": conv_w_slab(params["c3_w"]), "b3": bias(params["c3_b"]),
        "fw1": fc_w(params["fc1_w"]), "fb1": bias(params["fc1_b"]),
        "fw2": fc_w(params["fc2_w"]), "fb2": bias(params["fc2_b"]),
        "p2": _pool2_matrix(),
    }


# ----------------------- forward pass -----------------------

def lenet_forward(prep, x):
    n = x.shape[0]
    # conv1 im2col built host-side with one gather (layout plumbing, no FLOPs).
    xp = jnp.pad(x[:, 0], ((0, 0), (2, 2), (2, 2))).reshape(n, 32 * 32)
    xc = jnp.take(xp, _IM2COL_IDX, axis=1)                       # (n, 800, 25)
    xc = jnp.pad(xc, ((0, 0), (0, 0), (0, K1 - KH * KW))).astype(jnp.bfloat16)

    macs = n * (M1R * K1 * OP + 25 * C2R * OP * OP + M3 * C2R * OP
                + 25 * 8 * OP * OP + 2 * 8 * OP * OP)
    bytes_acc = int(xc.size * 2 + prep["w1"].size * 2 + prep["w2"].size * 2
                    + prep["w3"].size * 2 + prep["p2"].size * 2
                    + prep["fw1"].size * 2 + prep["fw2"].size * 2
                    + 5 * OP * 4 + n * OP * 4)
    cost = pl.CostEstimate(flops=2 * macs,
                           transcendentals=n * (M1R + C2R + 8) * OP,
                           bytes_accessed=bytes_acc)

    full2d = lambda i: (0, 0)
    full3d = lambda i: (0, 0, 0)
    out = pl.pallas_call(
        _lenet_kernel,
        out_shape=jax.ShapeDtypeStruct((n, 1, OP), jnp.float32),
        grid=(n,),
        in_specs=[
            pl.BlockSpec((1, M1R, K1), lambda i: (i, 0, 0)),     # conv1 im2col
            pl.BlockSpec((K1, OP), full2d),                      # conv1 weights
            pl.BlockSpec((1, OP), full2d),                       # conv1 bias
            pl.BlockSpec((25, OP, OP), full3d),                  # conv2 weights
            pl.BlockSpec((1, OP), full2d),
            pl.BlockSpec((25, OP, OP), full3d),                  # conv3 weights
            pl.BlockSpec((1, OP), full2d),
            pl.BlockSpec((M3, C2R), full2d),                     # pool2 selection
            pl.BlockSpec((OP, OP), full2d),                      # fc1 weights
            pl.BlockSpec((1, OP), full2d),
            pl.BlockSpec((OP, OP), full2d),                      # fc2 weights
            pl.BlockSpec((1, OP), full2d),
        ],
        out_specs=pl.BlockSpec((1, 1, OP), lambda i: (i, 0, 0)),
        scratch_shapes=[
            pltpu.VMEM((BUF2, OP), jnp.bfloat16),    # conv2 input canvas
            pltpu.VMEM((C2R, OP), jnp.bfloat16),     # conv2 tanh output
            pltpu.VMEM((M3, OP), jnp.bfloat16),      # conv3 input canvas
        ],
        compiler_params=pltpu.CompilerParams(
            dimension_semantics=("parallel",),
            vmem_limit_bytes=32 * 1024 * 1024),
        cost_estimate=cost,
    )(xc, prep["w1"], prep["b1"], prep["w2"], prep["b2"], prep["w3"],
      prep["b3"], prep["p2"], prep["fw1"], prep["fb1"], prep["fw2"],
      prep["fb2"])
    return out.reshape(n, OP)[:, :10]


# ----------------------- parameters & reference -----------------------

def init_lenet_params(key):
    def u(k, shape, fan_in):
        bound = 1.0 / np.sqrt(fan_in)
        return jax.random.uniform(k, shape, jnp.float32, -bound, bound)

    ks = jax.random.split(key, 10)
    return {
        "c1_w": u(ks[0], (6, 1, 5, 5), 25), "c1_b": u(ks[1], (6,), 25),
        "c2_w": u(ks[2], (16, 6, 5, 5), 150), "c2_b": u(ks[3], (16,), 150),
        "c3_w": u(ks[4], (120, 16, 5, 5), 400), "c3_b": u(ks[5], (120,), 400),
        "fc1_w": u(ks[6], (84, 120), 120), "fc1_b": u(ks[7], (84,), 120),
        "fc2_w": u(ks[8], (10, 84), 84), "fc2_b": u(ks[9], (10,), 84),
    }


def lenet_reference(params, x):
    """Pure-JAX f32 reference matching the PyTorch module."""
    def conv(h, w, b, pad):
        y = jax.lax.conv_general_dilated(
            h, w, (1, 1), [(pad, pad), (pad, pad)],
            dimension_numbers=("NCHW", "OIHW", "NCHW"))
        return y + b.reshape(1, -1, 1, 1)

    def pool(h):
        nb, c, hh, ww = h.shape
        return h.reshape(nb, c, hh // 2, 2, ww // 2, 2).mean(axis=(3, 5))

    h = jnp.tanh(conv(x, params["c1_w"], params["c1_b"], 2))
    h = pool(h)
    h = jnp.tanh(conv(h, params["c2_w"], params["c2_b"], 0))
    h = pool(h)
    h = jnp.tanh(conv(h, params["c3_w"], params["c3_b"], 0))
    h = h.reshape(h.shape[0], -1)
    h = h @ params["fc1_w"].T + params["fc1_b"]
    h = h @ params["fc2_w"].T + params["fc2_b"]
    return h


if __name__ == "__main__":
    key = jax.random.PRNGKey(0)
    k_x, k_p = jax.random.split(key)
    # LeNet's forward geometry requires 28x28 single-channel input.
    x = jax.random.normal(k_x, (2, 1, 28, 28), dtype=jnp.float32)
    params = init_lenet_params(k_p)
    prep = prepare_lenet_params(params)

    out = jax.jit(lenet_forward)(prep, x)
    out = jax.block_until_ready(out)
    assert out.shape == (2, 10), out.shape

    ref = lenet_reference(params, x)
    err = float(jnp.max(jnp.abs(out - ref)))
    assert err < 0.1, f"mismatch vs reference: max abs err {err}"
    print("KERNEL_OK")
</pallas_src>

<mosaic_0001>
module attributes {stable_mosaic.version = 11 : i64} {
  func.func @_lenet_kernel(%arg0: i32, %arg1: memref<1x800x32xbf16, #tpu.memory_space<vmem>>, %arg2: memref<32x128xbf16, #tpu.memory_space<vmem>>, %arg3: memref<1x128xf32, #tpu.memory_space<vmem>>, %arg4: memref<25x128x128xbf16, #tpu.memory_space<vmem>>, %arg5: memref<1x128xf32, #tpu.memory_space<vmem>>, %arg6: memref<25x128x128xbf16, #tpu.memory_space<vmem>>, %arg7: memref<1x128xf32, #tpu.memory_space<vmem>>, %arg8: memref<32x144xbf16, #tpu.memory_space<vmem>>, %arg9: memref<128x128xbf16, #tpu.memory_space<vmem>>, %arg10: memref<1x128xf32, #tpu.memory_space<vmem>>, %arg11: memref<128x128xbf16, #tpu.memory_space<vmem>>, %arg12: memref<1x128xf32, #tpu.memory_space<vmem>>, %arg13: memref<1x1x128xf32, #tpu.memory_space<vmem>>, %arg14: memref<208x128xbf16, #tpu.memory_space<vmem>>, %arg15: memref<144x128xbf16, #tpu.memory_space<vmem>>, %arg16: memref<32x128xbf16, #tpu.memory_space<vmem>>) attributes {dimension_semantics = [#tpu.dimension_semantics<parallel>], iteration_bounds = array<i64: 2>, scalar_prefetch = 0 : i64, scratch_operands = 3 : i64, tpu.core_type = #tpu.core_type<tc>, window_params = [{transform_indices = @transform_0, window_bounds = array<i64: 1, 800, 32>}, {pipeline_mode = #tpu.pipeline_mode<synchronous>, transform_indices = @transform_1, window_bounds = array<i64: 32, 128>}, {pipeline_mode = #tpu.pipeline_mode<synchronous>, transform_indices = @transform_2, window_bounds = array<i64: 1, 128>}, {pipeline_mode = #tpu.pipeline_mode<synchronous>, transform_indices = @transform_3, window_bounds = array<i64: 25, 128, 128>}, {pipeline_mode = #tpu.pipeline_mode<synchronous>, transform_indices = @transform_4, window_bounds = array<i64: 1, 128>}, {pipeline_mode = #tpu.pipeline_mode<synchronous>, transform_indices = @transform_5, window_bounds = array<i64: 25, 128, 128>}, {pipeline_mode = #tpu.pipeline_mode<synchronous>, transform_indices = @transform_6, window_bounds = array<i64: 1, 128>}, {pipeline_mode = #tpu.pipeline_mode<synchronous>, transform_indices = @transform_7, window_bounds = array<i64: 32, 144>}, {pipeline_mode = #tpu.pipeline_mode<synchronous>, transform_indices = @transform_8, window_bounds = array<i64: 128, 128>}, {pipeline_mode = #tpu.pipeline_mode<synchronous>, transform_indices = @transform_9, window_bounds = array<i64: 1, 128>}, {pipeline_mode = #tpu.pipeline_mode<synchronous>, transform_indices = @transform_10, window_bounds = array<i64: 128, 128>}, {pipeline_mode = #tpu.pipeline_mode<synchronous>, transform_indices = @transform_11, window_bounds = array<i64: 1, 128>}, {transform_indices = @transform_12, window_bounds = array<i64: 1, 1, 128>}]} {
    %c0 = arith.constant 0 : index
    %c0_0 = arith.constant 0 : index
    %c0_1 = arith.constant 0 : index
    %0 = vector.load %arg1[%c0, %c0_0, %c0_1] : memref<1x800x32xbf16, #tpu.memory_space<vmem>>, vector<1x800x32xbf16>
    %1 = vector.shape_cast %0 : vector<1x800x32xbf16> to vector<800x32xbf16>
    %c0_2 = arith.constant 0 : index
    %c0_3 = arith.constant 0 : index
    %2 = vector.load %arg2[%c0_2, %c0_3] : memref<32x128xbf16, #tpu.memory_space<vmem>>, vector<32x128xbf16>
    %cst = arith.constant dense<0.000000e+00> : vector<800x128xf32>
    %3 = tpu.matmul %1, %2, %cst {dimension_numbers = #tpu.dot_dimension_numbers<[1], [0], [0], [1], [0, 0, 1, 1], [], []>} : vector<800x32xbf16>, vector<32x128xbf16>, vector<800x128xf32> -> vector<800x128xf32>
    %c0_4 = arith.constant 0 : index
    %c0_5 = arith.constant 0 : index
    %4 = vector.load %arg3[%c0_4, %c0_5] : memref<1x128xf32, #tpu.memory_space<vmem>>, vector<1x128xf32>
    %5 = vector.broadcast %4 : vector<1x128xf32> to vector<800x128xf32>
    %6 = arith.addf %3, %5 : vector<800x128xf32>
    %7 = math.tanh %6 : vector<800x128xf32>
    %8 = vector.extract_strided_slice %7 {offsets = [0, 0], sizes = [200, 128], strides = [1, 1]} : vector<800x128xf32> to vector<200x128xf32>
    %9 = vector.extract_strided_slice %7 {offsets = [200, 0], sizes = [200, 128], strides = [1, 1]} : vector<800x128xf32> to vector<200x128xf32>
    %10 = arith.addf %8, %9 : vector<200x128xf32>
    %11 = vector.extract_strided_slice %7 {offsets = [400, 0], sizes = [200, 128], strides = [1, 1]} : vector<800x128xf32> to vector<200x128xf32>
    %12 = arith.addf %10, %11 : vector<200x128xf32>
    %13 = vector.extract_strided_slice %7 {offsets = [600, 0], sizes = [200, 128], strides = [1, 1]} : vector<800x128xf32> to vector<200x128xf32>
    %14 = arith.addf %12, %13 : vector<200x128xf32>
    %cst_6 = arith.constant 2.500000e-01 : f32
    %15 = vector.broadcast %cst_6 : f32 to vector<200x128xf32>
    %16 = arith.mulf %15, %14 : vector<200x128xf32>
    %17 = arith.truncf %16 : vector<200x128xf32> to vector<200x128xbf16>
    %c0_7 = arith.constant 0 : index
    %c0_8 = arith.constant 0 : index
    %18 = vector.load %arg14[%c0_7, %c0_8] : memref<208x128xbf16, #tpu.memory_space<vmem>>, vector<200x128xbf16>
    tpu.vector_store %arg14[%c0_7, %c0_8], %17 {strides = array<i32>} : memref<208x128xbf16, #tpu.memory_space<vmem>>, vector<200x128xbf16>,
    %cst_9 = arith.constant 0.000000e+00 : bf16
    %19 = vector.broadcast %cst_9 : bf16 to vector<8x128xbf16>
    %c200 = arith.constant 200 : index
    %c0_10 = arith.constant 0 : index
    %20 = vector.load %arg14[%c200, %c0_10] : memref<208x128xbf16, #tpu.memory_space<vmem>>, vector<8x128xbf16>
    tpu.vector_store %arg14[%c200, %c0_10], %19 {strides = array<i32>} : memref<208x128xbf16, #tpu.memory_space<vmem>>, vector<8x128xbf16>,
    %c0_11 = arith.constant 0 : index
    %c0_12 = arith.constant 0 : index
    %21 = vector.load %arg14[%c0_11, %c0_12] : memref<208x128xbf16, #tpu.memory_space<vmem>>, vector<72x128xbf16>
    %c0_13 = arith.constant 0 : index
    %c0_14 = arith.constant 0 : index
    %c0_15 = arith.constant 0 : index
    %22 = vector.load %arg4[%c0_13, %c0_14, %c0_15] : memref<25x128x128xbf16, #tpu.memory_space<vmem>>, vector<1x128x128xbf16>
    %23 = vector.shape_cast %22 : vector<1x128x128xbf16> to vector<128x128xbf16>
    %cst_16 = arith.constant dense<0.000000e+00> : vector<72x128xf32>
    %24 = tpu.matmul %21, %23, %cst_16 {dimension_numbers = #tpu.dot_dimension_numbers<[1], [0], [0], [1], [0, 0, 1, 1], [], []>} : vector<72x128xbf16>, vector<128x128xbf16>, vector<72x128xf32> -> vector<72x128xf32>
    %c1 = arith.constant 1 : index
    %c0_17 = arith.constant 0 : index
    %25 = vector.load %arg14[%c1, %c0_17] : memref<208x128xbf16, #tpu.memory_space<vmem>>, vector<72x128xbf16>
    %c1_18 = arith.constant 1 : index
    %c0_19 = arith.constant 0 : index
    %c0_20 = arith.constant 0 : index
    %26 = vector.load %arg4[%c1_18, %c0_19, %c0_20] : memref<25x128x128xbf16, #tpu.memory_space<vmem>>, vector<1x128x128xbf16>
    %27 = vector.shape_cast %26 : vector<1x128x128xbf16> to vector<128x128xbf16>
    %cst_21 = arith.constant dense<0.000000e+00> : vector<72x128xf32>
    %28 = tpu.matmul %25, %27, %cst_21 {dimension_numbers = #tpu.dot_dimension_numbers<[1], [0], [0], [1], [0, 0, 1, 1], [], []>} : vector<72x128xbf16>, vector<128x128xbf16>, vector<72x128xf32> -> vector<72x128xf32>
    %29 = arith.addf %24, %28 : vector<72x128xf32>
    %c2 = arith.constant 2 : index
    %c0_22 = arith.constant 0 : index
    %30 = vector.load %arg14[%c2, %c0_22] : memref<208x128xbf16, #tpu.memory_space<vmem>>, vector<72x128xbf16>
    %c2_23 = arith.constant 2 : index
    %c0_24 = arith.constant 0 : index
    %c0_25 = arith.constant 0 : index
    %31 = vector.load %arg4[%c2_23, %c0_24, %c0_25] : memref<25x128x128xbf16, #tpu.memory_space<vmem>>, vector<1x128x128xbf16>
    %32 = vector.shape_cast %31 : vector<1x128x128xbf16> to vector<128x128xbf16>
    %cst_26 = arith.constant dense<0.000000e+00> : vector<72x128xf32>
    %33 = tpu.matmul %30, %32, %cst_26 {dimension_numbers = #tpu.dot_dimension_numbers<[1], [0], [0], [1], [0, 0, 1, 1], [], []>} : vector<72x128xbf16>, vector<128x128xbf16>, vector<72x128xf32> -> vector<72x128xf32>
    %34 = arith.addf %29, %33 : vector<72x128xf32>
    %c3 = arith.constant 3 : index
    %c0_27 = arith.constant 0 : index
    %35 = vector.load %arg14[%c3, %c0_27] : memref<208x128xbf16, #tpu.memory_space<vmem>>, vector<72x128xbf16>
    %c3_28 = arith.constant 3 : index
    %c0_29 = arith.constant 0 : index
    %c0_30 = arith.constant 0 : index
    %36 = vector.load %arg4[%c3_28, %c0_29, %c0_30] : memref<25x128x128xbf16, #tpu.memory_space<vmem>>, vector<1x128x128xbf16>
    %37 = vector.shape_cast %36 : vector<1x128x128xbf16> to vector<128x128xbf16>
    %cst_31 = arith.constant dense<0.000000e+00> : vector<72x128xf32>
    %38 = tpu.matmul %35, %37, %cst_31 {dimension_numbers = #tpu.dot_dimension_numbers<[1], [0], [0], [1], [0, 0, 1, 1], [], []>} : vector<72x128xbf16>, vector<128x128xbf16>, vector<72x128xf32> -> vector<72x128xf32>
    %39 = arith.addf %34, %38 : vector<72x128xf32>
    %c4 = arith.constant 4 : index
    %c0_32 = arith.constant 0 : index
    %40 = vector.load %arg14[%c4, %c0_32] : memref<208x128xbf16, #tpu.memory_space<vmem>>, vector<72x128xbf16>
    %c4_33 = arith.constant 4 : index
    %c0_34 = arith.constant 0 : index
    %c0_35 = arith.constant 0 : index
    %41 = vector.load %arg4[%c4_33, %c0_34, %c0_35] : memref<25x128x128xbf16, #tpu.memory_space<vmem>>, vector<1x128x128xbf16>
    %42 = vector.shape_cast %41 : vector<1x128x128xbf16> to vector<128x128xbf16>
    %cst_36 = arith.constant dense<0.000000e+00> : vector<72x128xf32>
    %43 = tpu.matmul %40, %42, %cst_36 {dimension_numbers = #tpu.dot_dimension_numbers<[1], [0], [0], [1], [0, 0, 1, 1], [], []>} : vector<72x128xbf16>, vector<128x128xbf16>, vector<72x128xf32> -> vector<72x128xf32>
    %44 = arith.addf %39, %43 : vector<72x128xf32>
    %c14 = arith.constant 14 : index
    %c0_37 = arith.constant 0 : index
    %45 = vector.load %arg14[%c14, %c0_37] : memref<208x128xbf16, #tpu.memory_space<vmem>>, vector<72x128xbf16>
    %c5 = arith.constant 5 : index
    %c0_38 = arith.constant 0 : index
    %c0_39 = arith.constant 0 : index
    %46 = vector.load %arg4[%c5, %c0_38, %c0_39] : memref<25x128x128xbf16, #tpu.memory_space<vmem>>, vector<1x128x128xbf16>
    %47 = vector.shape_cast %46 : vector<1x128x128xbf16> to vector<128x128xbf16>
    %cst_40 = arith.constant dense<0.000000e+00> : vector<72x128xf32>
    %48 = tpu.matmul %45, %47, %cst_40 {dimension_numbers = #tpu.dot_dimension_numbers<[1], [0], [0], [1], [0, 0, 1, 1], [], []>} : vector<72x128xbf16>, vector<128x128xbf16>, vector<72x128xf32> -> vector<72x128xf32>
    %49 = arith.addf %44, %48 : vector<72x128xf32>
    %c15 = arith.constant 15 : index
    %c0_41 = arith.constant 0 : index
    %50 = vector.load %arg14[%c15, %c0_41] : memref<208x128xbf16, #tpu.memory_space<vmem>>, vector<72x128xbf16>
    %c6 = arith.constant 6 : index
    %c0_42 = arith.constant 0 : index
    %c0_43 = arith.constant 0 : index
    %51 = vector.load %arg4[%c6, %c0_42, %c0_43] : memref<25x128x128xbf16, #tpu.memory_space<vmem>>, vector<1x128x128xbf16>
    %52 = vector.shape_cast %51 : vector<1x128x128xbf16> to vector<128x128xbf16>
    %cst_44 = arith.constant dense<0.000000e+00> : vector<72x128xf32>
    %53 = tpu.matmul %50, %52, %cst_44 {dimension_numbers = #tpu.dot_dimension_numbers<[1], [0], [0], [1], [0, 0, 1, 1], [], []>} : vector<72x128xbf16>, vector<128x128xbf16>, vector<72x128xf32> -> vector<72x128xf32>
    %54 = arith.addf %49, %53 : vector<72x128xf32>
    %c16 = arith.constant 16 : index
    %c0_45 = arith.constant 0 : index
    %55 = vector.load %arg14[%c16, %c0_45] : memref<208x128xbf16, #tpu.memory_space<vmem>>, vector<72x128xbf16>
    %c7 = arith.constant 7 : index
    %c0_46 = arith.constant 0 : index
    %c0_47 = arith.constant 0 : index
    %56 = vector.load %arg4[%c7, %c0_46, %c0_47] : memref<25x128x128xbf16, #tpu.memory_space<vmem>>, vector<1x128x128xbf16>
    %57 = vector.shape_cast %56 : vector<1x128x128xbf16> to vector<128x128xbf16>
    %cst_48 = arith.constant dense<0.000000e+00> : vector<72x128xf32>
    %58 = tpu.matmul %55, %57, %cst_48 {dimension_numbers = #tpu.dot_dimension_numbers<[1], [0], [0], [1], [0, 0, 1, 1], [], []>} : vector<72x128xbf16>, vector<128x128xbf16>, vector<72x128xf32> -> vector<72x128xf32>
    %59 = arith.addf %54, %58 : vector<72x128xf32>
    %c17 = arith.constant 17 : index
    %c0_49 = arith.constant 0 : index
    %60 = vector.load %arg14[%c17, %c0_49] : memref<208x128xbf16, #tpu.memory_space<vmem>>, vector<72x128xbf16>
    %c8 = arith.constant 8 : index
    %c0_50 = arith.constant 0 : index
    %c0_51 = arith.constant 0 : index
    %61 = vector.load %arg4[%c8, %c0_50, %c0_51] : memref<25x128x128xbf16, #tpu.memory_space<vmem>>, vector<1x128x128xbf16>
    %62 = vector.shape_cast %61 : vector<1x128x128xbf16> to vector<128x128xbf16>
    %cst_52 = arith.constant dense<0.000000e+00> : vector<72x128xf32>
    %63 = tpu.matmul %60, %62, %cst_52 {dimension_numbers = #tpu.dot_dimension_numbers<[1], [0], [0], [1], [0, 0, 1, 1], [], []>} : vector<72x128xbf16>, vector<128x128xbf16>, vector<72x128xf32> -> vector<72x128xf32>
    %64 = arith.addf %59, %63 : vector<72x128xf32>
    %c18 = arith.constant 18 : index
    %c0_53 = arith.constant 0 : index
    %65 = vector.load %arg14[%c18, %c0_53] : memref<208x128xbf16, #tpu.memory_space<vmem>>, vector<72x128xbf16>
    %c9 = arith.constant 9 : index
    %c0_54 = arith.constant 0 : index
    %c0_55 = arith.constant 0 : index
    %66 = vector.load %arg4[%c9, %c0_54, %c0_55] : memref<25x128x128xbf16, #tpu.memory_space<vmem>>, vector<1x128x128xbf16>
    %67 = vector.shape_cast %66 : vector<1x128x128xbf16> to vector<128x128xbf16>
    %cst_56 = arith.constant dense<0.000000e+00> : vector<72x128xf32>
    %68 = tpu.matmul %65, %67, %cst_56 {dimension_numbers = #tpu.dot_dimension_numbers<[1], [0], [0], [1], [0, 0, 1, 1], [], []>} : vector<72x128xbf16>, vector<128x128xbf16>, vector<72x128xf32> -> vector<72x128xf32>
    %69 = arith.addf %64, %68 : vector<72x128xf32>
    %c28 = arith.constant 28 : index
    %c0_57 = arith.constant 0 : index
    %70 = vector.load %arg14[%c28, %c0_57] : memref<208x128xbf16, #tpu.memory_space<vmem>>, vector<72x128xbf16>
    %c10 = arith.constant 10 : index
    %c0_58 = arith.constant 0 : index
    %c0_59 = arith.constant 0 : index
    %71 = vector.load %arg4[%c10, %c0_58, %c0_59] : memref<25x128x128xbf16, #tpu.memory_space<vmem>>, vector<1x128x128xbf16>
    %72 = vector.shape_cast %71 : vector<1x128x128xbf16> to vector<128x128xbf16>
    %cst_60 = arith.constant dense<0.000000e+00> : vector<72x128xf32>
    %73 = tpu.matmul %70, %72, %cst_60 {dimension_numbers = #tpu.dot_dimension_numbers<[1], [0], [0], [1], [0, 0, 1, 1], [], []>} : vector<72x128xbf16>, vector<128x128xbf16>, vector<72x128xf32> -> vector<72x128xf32>
    %74 = arith.addf %69, %73 : vector<72x128xf32>
    %c29 = arith.constant 29 : index
    %c0_61 = arith.constant 0 : index
    %75 = vector.load %arg14[%c29, %c0_61] : memref<208x128xbf16, #tpu.memory_space<vmem>>, vector<72x128xbf16>
    %c11 = arith.constant 11 : index
    %c0_62 = arith.constant 0 : index
    %c0_63 = arith.constant 0 : index
    %76 = vector.load %arg4[%c11, %c0_62, %c0_63] : memref<25x128x128xbf16, #tpu.memory_space<vmem>>, vector<1x128x128xbf16>
    %77 = vector.shape_cast %76 : vector<1x128x128xbf16> to vector<128x128xbf16>
    %cst_64 = arith.constant dense<0.000000e+00> : vector<72x128xf32>
    %78 = tpu.matmul %75, %77, %cst_64 {dimension_numbers = #tpu.dot_dimension_numbers<[1], [0], [0], [1], [0, 0, 1, 1], [], []>} : vector<72x128xbf16>, vector<128x128xbf16>, vector<72x128xf32> -> vector<72x128xf32>
    %79 = arith.addf %74, %78 : vector<72x128xf32>
    %c30 = arith.constant 30 : index
    %c0_65 = arith.constant 0 : index
    %80 = vector.load %arg14[%c30, %c0_65] : memref<208x128xbf16, #tpu.memory_space<vmem>>, vector<72x128xbf16>
    %c12 = arith.constant 12 : index
    %c0_66 = arith.constant 0 : index
    %c0_67 = arith.constant 0 : index
    %81 = vector.load %arg4[%c12, %c0_66, %c0_67] : memref<25x128x128xbf16, #tpu.memory_space<vmem>>, vector<1x128x128xbf16>
    %82 = vector.shape_cast %81 : vector<1x128x128xbf16> to vector<128x128xbf16>
    %cst_68 = arith.constant dense<0.000000e+00> : vector<72x128xf32>
    %83 = tpu.matmul %80, %82, %cst_68 {dimension_numbers = #tpu.dot_dimension_numbers<[1], [0], [0], [1], [0, 0, 1, 1], [], []>} : vector<72x128xbf16>, vector<128x128xbf16>, vector<72x128xf32> -> vector<72x128xf32>
    %84 = arith.addf %79, %83 : vector<72x128xf32>
    %c31 = arith.constant 31 : index
    %c0_69 = arith.constant 0 : index
    %85 = vector.load %arg14[%c31, %c0_69] : memref<208x128xbf16, #tpu.memory_space<vmem>>, vector<72x128xbf16>
    %c13 = arith.constant 13 : index
    %c0_70 = arith.constant 0 : index
    %c0_71 = arith.constant 0 : index
    %86 = vector.load %arg4[%c13, %c0_70, %c0_71] : memref<25x128x128xbf16, #tpu.memory_space<vmem>>, vector<1x128x128xbf16>
    %87 = vector.shape_cast %86 : vector<1x128x128xbf16> to vector<128x128xbf16>
    %cst_72 = arith.constant dense<0.000000e+00> : vector<72x128xf32>
    %88 = tpu.matmul %85, %87, %cst_72 {dimension_numbers = #tpu.dot_dimension_numbers<[1], [0], [0], [1], [0, 0, 1, 1], [], []>} : vector<72x128xbf16>, vector<128x128xbf16>, vector<72x128xf32> -> vector<72x128xf32>
    %89 = arith.addf %84, %88 : vector<72x128xf32>
    %c32 = arith.constant 32 : index
    %c0_73 = arith.constant 0 : index
    %90 = vector.load %arg14[%c32, %c0_73] : memref<208x128xbf16, #tpu.memory_space<vmem>>, vector<72x128xbf16>
    %c14_74 = arith.constant 14 : index
    %c0_75 = arith.constant 0 : index
    %c0_76 = arith.constant 0 : index
    %91 = vector.load %arg4[%c14_74, %c0_75, %c0_76] : memref<25x128x128xbf16, #tpu.memory_space<vmem>>, vector<1x128x128xbf16>
    %92 = vector.shape_cast %91 : vector<1x128x128xbf16> to vector<128x128xbf16>
    %cst_77 = arith.constant dense<0.000000e+00> : vector<72x128xf32>
    %93 = tpu.matmul %90, %92, %cst_77 {dimension_numbers = #tpu.dot_dimension_numbers<[1], [0], [0], [1], [0, 0, 1, 1], [], []>} : vector<72x128xbf16>, vector<128x128xbf16>, vector<72x128xf32> -> vector<72x128xf32>
    %94 = arith.addf %89, %93 : vector<72x128xf32>
    %c42 = arith.constant 42 : index
    %c0_78 = arith.constant 0 : index
    %95 = vector.load %arg14[%c42, %c0_78] : memref<208x128xbf16, #tpu.memory_space<vmem>>, vector<72x128xbf16>
    %c15_79 = arith.constant 15 : index
    %c0_80 = arith.constant 0 : index
    %c0_81 = arith.constant 0 : index
    %96 = vector.load %arg4[%c15_79, %c0_80, %c0_81] : memref<25x128x128xbf16, #tpu.memory_space<vmem>>, vector<1x128x128xbf16>
    %97 = vector.shape_cast %96 : vector<1x128x128xbf16> to vector<128x128xbf16>
    %cst_82 = arith.constant dense<0.000000e+00> : vector<72x128xf32>
    %98 = tpu.matmul %95, %97, %cst_82 {dimension_numbers = #tpu.dot_dimension_numbers<[1], [0], [0], [1], [0, 0, 1, 1], [], []>} : vector<72x128xbf16>, vector<128x128xbf16>, vector<72x128xf32> -> vector<72x128xf32>
    %99 = arith.addf %94, %98 : vector<72x128xf32>
    %c43 = arith.constant 43 : index
    %c0_83 = arith.constant 0 : index
    %100 = vector.load %arg14[%c43, %c0_83] : memref<208x128xbf16, #tpu.memory_space<vmem>>, vector<72x128xbf16>
    %c16_84 = arith.constant 16 : index
    %c0_85 = arith.constant 0 : index
    %c0_86 = arith.constant 0 : index
    %101 = vector.load %arg4[%c16_84, %c0_85, %c0_86] : memref<25x128x128xbf16, #tpu.memory_space<vmem>>, vector<1x128x128xbf16>
    %102 = vector.shape_cast %101 : vector<1x128x128xbf16> to vector<128x128xbf16>
    %cst_87 = arith.constant dense<0.000000e+00> : vector<72x128xf32>
    %103 = tpu.matmul %100, %102, %cst_87 {dimension_numbers = #tpu.dot_dimension_numbers<[1], [0], [0], [1], [0, 0, 1, 1], [], []>} : vector<72x128xbf16>, vector<128x128xbf16>, vector<72x128xf32> -> vector<72x128xf32>
    %104 = arith.addf %99, %103 : vector<72x128xf32>
    %c44 = arith.constant 44 : index
    %c0_88 = arith.constant 0 : index
    %105 = vector.load %arg14[%c44, %c0_88] : memref<208x128xbf16, #tpu.memory_space<vmem>>, vector<72x128xbf16>
    %c17_89 = arith.constant 17 : index
    %c0_90 = arith.constant 0 : index
    %c0_91 = arith.constant 0 : index
    %106 = vector.load %arg4[%c17_89, %c0_90, %c0_91] : memref<25x128x128xbf16, #tpu.memory_space<vmem>>, vector<1x128x128xbf16>
    %107 = vector.shape_cast %106 : vector<1x128x128xbf16> to vector<128x128xbf16>
    %cst_92 = arith.constant dense<0.000000e+00> : vector<72x128xf32>
    %108 = tpu.matmul %105, %107, %cst_92 {dimension_numbers = #tpu.dot_dimension_numbers<[1], [0], [0], [1], [0, 0, 1, 1], [], []>} : vector<72x128xbf16>, vector<128x128xbf16>, vector<72x128xf32> -> vector<72x128xf32>
    %109 = arith.addf %104, %108 : vector<72x128xf32>
    %c45 = arith.constant 45 : index
    %c0_93 = arith.constant 0 : index
    %110 = vector.load %arg14[%c45, %c0_93] : memref<208x128xbf16, #tpu.memory_space<vmem>>, vector<72x128xbf16>
    %c18_94 = arith.constant 18 : index
    %c0_95 = arith.constant 0 : index
    %c0_96 = arith.constant 0 : index
    %111 = vector.load %arg4[%c18_94, %c0_95, %c0_96] : memref<25x128x128xbf16, #tpu.memory_space<vmem>>, vector<1x128x128xbf16>
    %112 = vector.shape_cast %111 : vector<1x128x128xbf16> to vector<128x128xbf16>
    %cst_97 = arith.constant dense<0.000000e+00> : vector<72x128xf32>
    %113 = tpu.matmul %110, %112, %cst_97 {dimension_numbers = #tpu.dot_dimension_numbers<[1], [0], [0], [1], [0, 0, 1, 1], [], []>} : vector<72x128xbf16>, vector<128x128xbf16>, vector<72x128xf32> -> vector<72x128xf32>
    %114 = arith.addf %109, %113 : vector<72x128xf32>
    %c46 = arith.constant 46 : index
    %c0_98 = arith.constant 0 : index
    %115 = vector.load %arg14[%c46, %c0_98] : memref<208x128xbf16, #tpu.memory_space<vmem>>, vector<72x128xbf16>
    %c19 = arith.constant 19 : index
    %c0_99 = arith.constant 0 : index
    %c0_100 = arith.constant 0 : index
    %116 = vector.load %arg4[%c19, %c0_99, %c0_100] : memref<25x128x128xbf16, #tpu.memory_space<vmem>>, vector<1x128x128xbf16>
    %117 = vector.shape_cast %116 : vector<1x128x128xbf16> to vector<128x128xbf16>
    %cst_101 = arith.constant dense<0.000000e+00> : vector<72x128xf32>
    %118 = tpu.matmul %115, %117, %cst_101 {dimension_numbers = #tpu.dot_dimension_numbers<[1], [0], [0], [1], [0, 0, 1, 1], [], []>} : vector<72x128xbf16>, vector<128x128xbf16>, vector<72x128xf32> -> vector<72x128xf32>
    %119 = arith.addf %114, %118 : vector<72x128xf32>
    %c56 = arith.constant 56 : index
    %c0_102 = arith.constant 0 : index
    %120 = vector.load %arg14[%c56, %c0_102] : memref<208x128xbf16, #tpu.memory_space<vmem>>, vector<72x128xbf16>
    %c20 = arith.constant 20 : index
    %c0_103 = arith.constant 0 : index
    %c0_104 = arith.constant 0 : index
    %121 = vector.load %arg4[%c20, %c0_103, %c0_104] : memref<25x128x128xbf16, #tpu.memory_space<vmem>>, vector<1x128x128xbf16>
    %122 = vector.shape_cast %121 : vector<1x128x128xbf16> to vector<128x128xbf16>
    %cst_105 = arith.constant dense<0.000000e+00> : vector<72x128xf32>
    %123 = tpu.matmul %120, %122, %cst_105 {dimension_numbers = #tpu.dot_dimension_numbers<[1], [0], [0], [1], [0, 0, 1, 1], [], []>} : vector<72x128xbf16>, vector<128x128xbf16>, vector<72x128xf32> -> vector<72x128xf32>
    %124 = arith.addf %119, %123 : vector<72x128xf32>
    %c57 = arith.constant 57 : index
    %c0_106 = arith.constant 0 : index
    %125 = vector.load %arg14[%c57, %c0_106] : memref<208x128xbf16, #tpu.memory_space<vmem>>, vector<72x128xbf16>
    %c21 = arith.constant 21 : index
    %c0_107 = arith.constant 0 : index
    %c0_108 = arith.constant 0 : index
    %126 = vector.load %arg4[%c21, %c0_107, %c0_108] : memref<25x128x128xbf16, #tpu.memory_space<vmem>>, vector<1x128x128xbf16>
    %127 = vector.shape_cast %126 : vector<1x128x128xbf16> to vector<128x128xbf16>
    %cst_109 = arith.constant dense<0.000000e+00> : vector<72x128xf32>
    %128 = tpu.matmul %125, %127, %cst_109 {dimension_numbers = #tpu.dot_dimension_numbers<[1], [0], [0], [1], [0, 0, 1, 1], [], []>} : vector<72x128xbf16>, vector<128x128xbf16>, vector<72x128xf32> -> vector<72x128xf32>
    %129 = arith.addf %124, %128 : vector<72x128xf32>
    %c58 = arith.constant 58 : index
    %c0_110 = arith.constant 0 : index
    %130 = vector.load %arg14[%c58, %c0_110] : memref<208x128xbf16, #tpu.memory_space<vmem>>, vector<72x128xbf16>
    %c22 = arith.constant 22 : index
    %c0_111 = arith.constant 0 : index
    %c0_112 = arith.constant 0 : index
    %131 = vector.load %arg4[%c22, %c0_111, %c0_112] : memref<25x128x128xbf16, #tpu.memory_space<vmem>>, vector<1x128x128xbf16>
    %132 = vector.shape_cast %131 : vector<1x128x128xbf16> to vector<128x128xbf16>
    %cst_113 = arith.constant dense<0.000000e+00> : vector<72x128xf32>
    %133 = tpu.matmul %130, %132, %cst_113 {dimension_numbers = #tpu.dot_dimension_numbers<[1], [0], [0], [1], [0, 0, 1, 1], [], []>} : vector<72x128xbf16>, vector<128x128xbf16>, vector<72x128xf32> -> vector<72x128xf32>
    %134 = arith.addf %129, %133 : vector<72x128xf32>
    %c59 = arith.constant 59 : index
    %c0_114 = arith.constant 0 : index
    %135 = vector.load %arg14[%c59, %c0_114] : memref<208x128xbf16, #tpu.memory_space<vmem>>, vector<72x128xbf16>
    %c23 = arith.constant 23 : index
    %c0_115 = arith.constant 0 : index
    %c0_116 = arith.constant 0 : index
    %136 = vector.load %arg4[%c23, %c0_115, %c0_116] : memref<25x128x128xbf16, #tpu.memory_space<vmem>>, vector<1x128x128xbf16>
    %137 = vector.shape_cast %136 : vector<1x128x128xbf16> to vector<128x128xbf16>
    %cst_117 = arith.constant dense<0.000000e+00> : vector<72x128xf32>
    %138 = tpu.matmul %135, %137, %cst_117 {dimension_numbers = #tpu.dot_dimension_numbers<[1], [0], [0], [1], [0, 0, 1, 1], [], []>} : vector<72x128xbf16>, vector<128x128xbf16>, vector<72x128xf32> -> vector<72x128xf32>
    %139 = arith.addf %134, %138 : vector<72x128xf32>
    %c60 = arith.constant 60 : index
    %c0_118 = arith.constant 0 : index
    %140 = vector.load %arg14[%c60, %c0_118] : memref<208x128xbf16, #tpu.memory_space<vmem>>, vector<72x128xbf16>
    %c24 = arith.constant 24 : index
    %c0_119 = arith.constant 0 : index
    %c0_120 = arith.constant 0 : index
    %141 = vector.load %arg4[%c24, %c0_119, %c0_120] : memref<25x128x128xbf16, #tpu.memory_space<vmem>>, vector<1x128x128xbf16>
    %142 = vector.shape_cast %141 : vector<1x128x128xbf16> to vector<128x128xbf16>
    %cst_121 = arith.constant dense<0.000000e+00> : vector<72x128xf32>
    %143 = tpu.matmul %140, %142, %cst_121 {dimension_numbers = #tpu.dot_dimension_numbers<[1], [0], [0], [1], [0, 0, 1, 1], [], []>} : vector<72x128xbf16>, vector<128x128xbf16>, vector<72x128xf32> -> vector<72x128xf32>
    %144 = arith.addf %139, %143 : vector<72x128xf32>
    %c0_122 = arith.constant 0 : index
    %c0_123 = arith.constant 0 : index
    %145 = vector.load %arg5[%c0_122, %c0_123] : memref<1x128xf32, #tpu.memory_space<vmem>>, vector<1x128xf32>
    %146 = vector.broadcast %145 : vector<1x128xf32> to vector<72x128xf32>
    %147 = arith.addf %144, %146 : vector<72x128xf32>
    %148 = math.tanh %147 : vector<72x128xf32>
    %149 = arith.truncf %148 : vector<72x128xf32> to vector<72x128xbf16>
    %c0_124 = arith.constant 0 : index
    %c0_125 = arith.constant 0 : index
    %150 = vector.load %arg15[%c0_124, %c0_125] : memref<144x128xbf16, #tpu.memory_space<vmem>>, vector<72x128xbf16>
    tpu.vector_store %arg15[%c0_124, %c0_125], %149 {strides = array<i32>} : memref<144x128xbf16, #tpu.memory_space<vmem>>, vector<72x128xbf16>,
    %c72 = arith.constant 72 : index
    %c0_126 = arith.constant 0 : index
    %151 = vector.load %arg14[%c72, %c0_126] : memref<208x128xbf16, #tpu.memory_space<vmem>>, vector<72x128xbf16>
    %c0_127 = arith.constant 0 : index
    %c0_128 = arith.constant 0 : index
    %c0_129 = arith.constant 0 : index
    %152 = vector.load %arg4[%c0_127, %c0_128, %c0_129] : memref<25x128x128xbf16, #tpu.memory_space<vmem>>, vector<1x128x128xbf16>
    %153 = vector.shape_cast %152 : vector<1x128x128xbf16> to vector<128x128xbf16>
    %cst_130 = arith.constant dense<0.000000e+00> : vector<72x128xf32>
    %154 = tpu.matmul %151, %153, %cst_130 {dimension_numbers = #tpu.dot_dimension_numbers<[1], [0], [0], [1], [0, 0, 1, 1], [], []>} : vector<72x128xbf16>, vector<128x128xbf16>, vector<72x128xf32> -> vector<72x128xf32>
    %c73 = arith.constant 73 : index
    %c0_131 = arith.constant 0 : index
    %155 = vector.load %arg14[%c73, %c0_131] : memref<208x128xbf16, #tpu.memory_space<vmem>>, vector<72x128xbf16>
    %c1_132 = arith.constant 1 : index
    %c0_133 = arith.constant 0 : index
    %c0_134 = arith.constant 0 : index
    %156 = vector.load %arg4[%c1_132, %c0_133, %c0_134] : memref<25x128x128xbf16, #tpu.memory_space<vmem>>, vector<1x128x128xbf16>
    %157 = vector.shape_cast %156 : vector<1x128x128xbf16> to vector<128x128xbf16>
    %cst_135 = arith.constant dense<0.000000e+00> : vector<72x128xf32>
    %158 = tpu.matmul %155, %157, %cst_135 {dimension_numbers = #tpu.dot_dimension_numbers<[1], [0], [0], [1], [0, 0, 1, 1], [], []>} : vector<72x128xbf16>, vector<128x128xbf16>, vector<72x128xf32> -> vector<72x128xf32>
    %159 = arith.addf %154, %158 : vector<72x128xf32>
    %c74 = arith.constant 74 : index
    %c0_136 = arith.constant 0 : index
    %160 = vector.load %arg14[%c74, %c0_136] : memref<208x128xbf16, #tpu.memory_space<vmem>>, vector<72x128xbf16>
    %c2_137 = arith.constant 2 : index
    %c0_138 = arith.constant 0 : index
    %c0_139 = arith.constant 0 : index
    %161 = vector.load %arg4[%c2_137, %c0_138, %c0_139] : memref<25x128x128xbf16, #tpu.memory_space<vmem>>, vector<1x128x128xbf16>
    %162 = vector.shape_cast %161 : vector<1x128x128xbf16> to vector<128x128xbf16>
    %cst_140 = arith.constant dense<0.000000e+00> : vector<72x128xf32>
    %163 = tpu.matmul %160, %162, %cst_140 {dimension_numbers = #tpu.dot_dimension_numbers<[1], [0], [0], [1], [0, 0, 1, 1], [], []>} : vector<72x128xbf16>, vector<128x128xbf16>, vector<72x128xf32> -> vector<72x128xf32>
    %164 = arith.addf %159, %163 : vector<72x128xf32>
    %c75 = arith.constant 75 : index
    %c0_141 = arith.constant 0 : index
    %165 = vector.load %arg14[%c75, %c0_141] : memref<208x128xbf16, #tpu.memory_space<vmem>>, vector<72x128xbf16>
    %c3_142 = arith.constant 3 : index
    %c0_143 = arith.constant 0 : index
    %c0_144 = arith.constant 0 : index
    %166 = vector.load %arg4[%c3_142, %c0_143, %c0_144] : memref<25x128x128xbf16, #tpu.memory_space<vmem>>, vector<1x128x128xbf16>
    %167 = vector.shape_cast %166 : vector<1x128x128xbf16> to vector<128x128xbf16>
    %cst_145 = arith.constant dense<0.000000e+00> : vector<72x128xf32>
    %168 = tpu.matmul %165, %167, %cst_145 {dimension_numbers = #tpu.dot_dimension_numbers<[1], [0], [0], [1], [0, 0, 1, 1], [], []>} : vector<72x128xbf16>, vector<128x128xbf16>, vector<72x128xf32> -> vector<72x128xf32>
    %169 = arith.addf %164, %168 : vector<72x128xf32>
    %c76 = arith.constant 76 : index
    %c0_146 = arith.constant 0 : index
    %170 = vector.load %arg14[%c76, %c0_146] : memref<208x128xbf16, #tpu.memory_space<vmem>>, vector<72x128xbf16>
    %c4_147 = arith.constant 4 : index
    %c0_148 = arith.constant 0 : index
    %c0_149 = arith.constant 0 : index
    %171 = vector.load %arg4[%c4_147, %c0_148, %c0_149] : memref<25x128x128xbf16, #tpu.memory_space<vmem>>, vector<1x128x128xbf16>
    %172 = vector.shape_cast %171 : vector<1x128x128xbf16> to vector<128x128xbf16>
    %cst_150 = arith.constant dense<0.000000e+00> : vector<72x128xf32>
    %173 = tpu.matmul %170, %172, %cst_150 {dimension_numbers = #tpu.dot_dimension_numbers<[1], [0], [0], [1], [0, 0, 1, 1], [], []>} : vector<72x128xbf16>, vector<128x128xbf16>, vector<72x128xf32> -> vector<72x128xf32>
    %174 = arith.addf %169, %173 : vector<72x128xf32>
    %c86 = arith.constant 86 : index
    %c0_151 = arith.constant 0 : index
    %175 = vector.load %arg14[%c86, %c0_151] : memref<208x128xbf16, #tpu.memory_space<vmem>>, vector<72x128xbf16>
    %c5_152 = arith.constant 5 : index
    %c0_153 = arith.constant 0 : index
    %c0_154 = arith.constant 0 : index
    %176 = vector.load %arg4[%c5_152, %c0_153, %c0_154] : memref<25x128x128xbf16, #tpu.memory_space<vmem>>, vector<1x128x128xbf16>
    %177 = vector.shape_cast %176 : vector<1x128x128xbf16> to vector<128x128xbf16>
    %cst_155 = arith.constant dense<0.000000e+00> : vector<72x128xf32>
    %178 = tpu.matmul %175, %177, %cst_155 {dimension_numbers = #tpu.dot_dimension_numbers<[1], [0], [0], [1], [0, 0, 1, 1], [], []>} : vector<72x128xbf16>, vector<128x128xbf16>, vector<72x128xf32> -> vector<72x128xf32>
    %179 = arith.addf %174, %178 : vector<72x128xf32>
    %c87 = arith.constant 87 : index
    %c0_156 = arith.constant 0 : index
    %180 = vector.load %arg14[%c87, %c0_156] : memref<208x128xbf16, #tpu.memory_space<vmem>>, vector<72x128xbf16>
    %c6_157 = arith.constant 6 : index
    %c0_158 = arith.constant 0 : index
    %c0_159 = arith.constant 0 : index
    %181 = vector.load %arg4[%c6_157, %c0_158, %c0_159] : memref<25x128x128xbf16, #tpu.memory_space<vmem>>, vector<1x128x128xbf16>
    %182 = vector.shape_cast %181 : vector<1x128x128xbf16> to vector<128x128xbf16>
    %cst_160 = arith.constant dense<0.000000e+00> : vector<72x128xf32>
    %183 = tpu.matmul %180, %182, %cst_160 {dimension_numbers = #tpu.dot_dimension_numbers<[1], [0], [0], [1], [0, 0, 1, 1], [], []>} : vector<72x128xbf16>, vector<128x128xbf16>, vector<72x128xf32> -> vector<72x128xf32>
    %184 = arith.addf %179, %183 : vector<72x128xf32>
    %c88 = arith.constant 88 : index
    %c0_161 = arith.constant 0 : index
    %185 = vector.load %arg14[%c88, %c0_161] : memref<208x128xbf16, #tpu.memory_space<vmem>>, vector<72x128xbf16>
    %c7_162 = arith.constant 7 : index
    %c0_163 = arith.constant 0 : index
    %c0_164 = arith.constant 0 : index
    %186 = vector.load %arg4[%c7_162, %c0_163, %c0_164] : memref<25x128x128xbf16, #tpu.memory_space<vmem>>, vector<1x128x128xbf16>
    %187 = vector.shape_cast %186 : vector<1x128x128xbf16> to vector<128x128xbf16>
    %cst_165 = arith.constant dense<0.000000e+00> : vector<72x128xf32>
    %188 = tpu.matmul %185, %187, %cst_165 {dimension_numbers = #tpu.dot_dimension_numbers<[1], [0], [0], [1], [0, 0, 1, 1], [], []>} : vector<72x128xbf16>, vector<128x128xbf16>, vector<72x128xf32> -> vector<72x128xf32>
    %189 = arith.addf %184, %188 : vector<72x128xf32>
    %c89 = arith.constant 89 : index
    %c0_166 = arith.constant 0 : index
    %190 = vector.load %arg14[%c89, %c0_166] : memref<208x128xbf16, #tpu.memory_space<vmem>>, vector<72x128xbf16>
    %c8_167 = arith.constant 8 : index
    %c0_168 = arith.constant 0 : index
    %c0_169 = arith.constant 0 : index
    %191 = vector.load %arg4[%c8_167, %c0_168, %c0_169] : memref<25x128x128xbf16, #tpu.memory_space<vmem>>, vector<1x128x128xbf16>
    %192 = vector.shape_cast %191 : vector<1x128x128xbf16> to vector<128x128xbf16>
    %cst_170 = arith.constant dense<0.000000e+00> : vector<72x128xf32>
    %193 = tpu.matmul %190, %192, %cst_170 {dimension_numbers = #tpu.dot_dimension_numbers<[1], [0], [0], [1], [0, 0, 1, 1], [], []>} : vector<72x128xbf16>, vector<128x128xbf16>, vector<72x128xf32> -> vector<72x128xf32>
    %194 = arith.addf %189, %193 : vector<72x128xf32>
    %c90 = arith.constant 90 : index
    %c0_171 = arith.constant 0 : index
    %195 = vector.load %arg14[%c90, %c0_171] : memref<208x128xbf16, #tpu.memory_space<vmem>>, vector<72x128xbf16>
    %c9_172 = arith.constant 9 : index
    %c0_173 = arith.constant 0 : index
    %c0_174 = arith.constant 0 : index
    %196 = vector.load %arg4[%c9_172, %c0_173, %c0_174] : memref<25x128x128xbf16, #tpu.memory_space<vmem>>, vector<1x128x128xbf16>
    %197 = vector.shape_cast %196 : vector<1x128x128xbf16> to vector<128x128xbf16>
    %cst_175 = arith.constant dense<0.000000e+00> : vector<72x128xf32>
    %198 = tpu.matmul %195, %197, %cst_175 {dimension_numbers = #tpu.dot_dimension_numbers<[1], [0], [0], [1], [0, 0, 1, 1], [], []>} : vector<72x128xbf16>, vector<128x128xbf16>, vector<72x128xf32> -> vector<72x128xf32>
    %199 = arith.addf %194, %198 : vector<72x128xf32>
    %c100 = arith.constant 100 : index
    %c0_176 = arith.constant 0 : index
    %200 = vector.load %arg14[%c100, %c0_176] : memref<208x128xbf16, #tpu.memory_space<vmem>>, vector<72x128xbf16>
    %c10_177 = arith.constant 10 : index
    %c0_178 = arith.constant 0 : index
    %c0_179 = arith.constant 0 : index
    %201 = vector.load %arg4[%c10_177, %c0_178, %c0_179] : memref<25x128x128xbf16, #tpu.memory_space<vmem>>, vector<1x128x128xbf16>
    %202 = vector.shape_cast %201 : vector<1x128x128xbf16> to vector<128x128xbf16>
    %cst_180 = arith.constant dense<0.000000e+00> : vector<72x128xf32>
    %203 = tpu.matmul %200, %202, %cst_180 {dimension_numbers = #tpu.dot_dimension_numbers<[1], [0], [0], [1], [0, 0, 1, 1], [], []>} : vector<72x128xbf16>, vector<128x128xbf16>, vector<72x128xf32> -> vector<72x128xf32>
    %204 = arith.addf %199, %203 : vector<72x128xf32>
    %c101 = arith.constant 101 : index
    %c0_181 = arith.constant 0 : index
    %205 = vector.load %arg14[%c101, %c0_181] : memref<208x128xbf16, #tpu.memory_space<vmem>>, vector<72x128xbf16>
    %c11_182 = arith.constant 11 : index
    %c0_183 = arith.constant 0 : index
    %c0_184 = arith.constant 0 : index
    %206 = vector.load %arg4[%c11_182, %c0_183, %c0_184] : memref<25x128x128xbf16, #tpu.memory_space<vmem>>, vector<1x128x128xbf16>
    %207 = vector.shape_cast %206 : vector<1x128x128xbf16> to vector<128x128xbf16>
    %cst_185 = arith.constant dense<0.000000e+00> : vector<72x128xf32>
    %208 = tpu.matmul %205, %207, %cst_185 {dimension_numbers = #tpu.dot_dimension_numbers<[1], [0], [0], [1], [0, 0, 1, 1], [], []>} : vector<72x128xbf16>, vector<128x128xbf16>, vector<72x128xf32> -> vector<72x128xf32>
    %209 = arith.addf %204, %208 : vector<72x128xf32>
    %c102 = arith.constant 102 : index
    %c0_186 = arith.constant 0 : index
    %210 = vector.load %arg14[%c102, %c0_186] : memref<208x128xbf16, #tpu.memory_space<vmem>>, vector<72x128xbf16>
    %c12_187 = arith.constant 12 : index
    %c0_188 = arith.constant 0 : index
    %c0_189 = arith.constant 0 : index
    %211 = vector.load %arg4[%c12_187, %c0_188, %c0_189] : memref<25x128x128xbf16, #tpu.memory_space<vmem>>, vector<1x128x128xbf16>
    %212 = vector.shape_cast %211 : vector<1x128x128xbf16> to vector<128x128xbf16>
    %cst_190 = arith.constant dense<0.000000e+00> : vector<72x128xf32>
    %213 = tpu.matmul %210, %212, %cst_190 {dimension_numbers = #tpu.dot_dimension_numbers<[1], [0], [0], [1], [0, 0, 1, 1], [], []>} : vector<72x128xbf16>, vector<128x128xbf16>, vector<72x128xf32> -> vector<72x128xf32>
    %214 = arith.addf %209, %213 : vector<72x128xf32>
    %c103 = arith.constant 103 : index
    %c0_191 = arith.constant 0 : index
    %215 = vector.load %arg14[%c103, %c0_191] : memref<208x128xbf16, #tpu.memory_space<vmem>>, vector<72x128xbf16>
    %c13_192 = arith.constant 13 : index
    %c0_193 = arith.constant 0 : index
    %c0_194 = arith.constant 0 : index
    %216 = vector.load %arg4[%c13_192, %c0_193, %c0_194] : memref<25x128x128xbf16, #tpu.memory_space<vmem>>, vector<1x128x128xbf16>
    %217 = vector.shape_cast %216 : vector<1x128x128xbf16> to vector<128x128xbf16>
    %cst_195 = arith.constant dense<0.000000e+00> : vector<72x128xf32>
    %218 = tpu.matmul %215, %217, %cst_195 {dimension_numbers = #tpu.dot_dimension_numbers<[1], [0], [0], [1], [0, 0, 1, 1], [], []>} : vector<72x128xbf16>, vector<128x128xbf16>, vector<72x128xf32> -> vector<72x128xf32>
    %219 = arith.addf %214, %218 : vector<72x128xf32>
    %c104 = arith.constant 104 : index
    %c0_196 = arith.constant 0 : index
    %220 = vector.load %arg14[%c104, %c0_196] : memref<208x128xbf16, #tpu.memory_space<vmem>>, vector<72x128xbf16>
    %c14_197 = arith.constant 14 : index
    %c0_198 = arith.constant 0 : index
    %c0_199 = arith.constant 0 : index
    %221 = vector.load %arg4[%c14_197, %c0_198, %c0_199] : memref<25x128x128xbf16, #tpu.memory_space<vmem>>, vector<1x128x128xbf16>
    %222 = vector.shape_cast %221 : vector<1x128x128xbf16> to vector<128x128xbf16>
    %cst_200 = arith.constant dense<0.000000e+00> : vector<72x128xf32>
    %223 = tpu.matmul %220, %222, %cst_200 {dimension_numbers = #tpu.dot_dimension_numbers<[1], [0], [0], [1], [0, 0, 1, 1], [], []>} : vector<72x128xbf16>, vector<128x128xbf16>, vector<72x128xf32> -> vector<72x128xf32>
    %224 = arith.addf %219, %223 : vector<72x128xf32>
    %c114 = arith.constant 114 : index
    %c0_201 = arith.constant 0 : index
    %225 = vector.load %arg14[%c114, %c0_201] : memref<208x128xbf16, #tpu.memory_space<vmem>>, vector<72x128xbf16>
    %c15_202 = arith.constant 15 : index
    %c0_203 = arith.constant 0 : index
    %c0_204 = arith.constant 0 : index
    %226 = vector.load %arg4[%c15_202, %c0_203, %c0_204] : memref<25x128x128xbf16, #tpu.memory_space<vmem>>, vector<1x128x128xbf16>
    %227 = vector.shape_cast %226 : vector<1x128x128xbf16> to vector<128x128xbf16>
    %cst_205 = arith.constant dense<0.000000e+00> : vector<72x128xf32>
    %228 = tpu.matmul %225, %227, %cst_205 {dimension_numbers = #tpu.dot_dimension_numbers<[1], [0], [0], [1], [0, 0, 1, 1], [], []>} : vector<72x128xbf16>, vector<128x128xbf16>, vector<72x128xf32> -> vector<72x128xf32>
    %229 = arith.addf %224, %228 : vector<72x128xf32>
    %c115 = arith.constant 115 : index
    %c0_206 = arith.constant 0 : index
    %230 = vector.load %arg14[%c115, %c0_206] : memref<208x128xbf16, #tpu.memory_space<vmem>>, vector<72x128xbf16>
    %c16_207 = arith.constant 16 : index
    %c0_208 = arith.constant 0 : index
    %c0_209 = arith.constant 0 : index
    %231 = vector.load %arg4[%c16_207, %c0_208, %c0_209] : memref<25x128x128xbf16, #tpu.memory_space<vmem>>, vector<1x128x128xbf16>
    %232 = vector.shape_cast %231 : vector<1x128x128xbf16> to vector<128x128xbf16>
    %cst_210 = arith.constant dense<0.000000e+00> : vector<72x128xf32>
    %233 = tpu.matmul %230, %232, %cst_210 {dimension_numbers = #tpu.dot_dimension_numbers<[1], [0], [0], [1], [0, 0, 1, 1], [], []>} : vector<72x128xbf16>, vector<128x128xbf16>, vector<72x128xf32> -> vector<72x128xf32>
    %234 = arith.addf %229, %233 : vector<72x128xf32>
    %c116 = arith.constant 116 : index
    %c0_211 = arith.constant 0 : index
    %235 = vector.load %arg14[%c116, %c0_211] : memref<208x128xbf16, #tpu.memory_space<vmem>>, vector<72x128xbf16>
    %c17_212 = arith.constant 17 : index
    %c0_213 = arith.constant 0 : index
    %c0_214 = arith.constant 0 : index
    %236 = vector.load %arg4[%c17_212, %c0_213, %c0_214] : memref<25x128x128xbf16, #tpu.memory_space<vmem>>, vector<1x128x128xbf16>
    %237 = vector.shape_cast %236 : vector<1x128x128xbf16> to vector<128x128xbf16>
    %cst_215 = arith.constant dense<0.000000e+00> : vector<72x128xf32>
    %238 = tpu.matmul %235, %237, %cst_215 {dimension_numbers = #tpu.dot_dimension_numbers<[1], [0], [0], [1], [0, 0, 1, 1], [], []>} : vector<72x128xbf16>, vector<128x128xbf16>, vector<72x128xf32> -> vector<72x128xf32>
    %239 = arith.addf %234, %238 : vector<72x128xf32>
    %c117 = arith.constant 117 : index
    %c0_216 = arith.constant 0 : index
    %240 = vector.load %arg14[%c117, %c0_216] : memref<208x128xbf16, #tpu.memory_space<vmem>>, vector<72x128xbf16>
    %c18_217 = arith.constant 18 : index
    %c0_218 = arith.constant 0 : index
    %c0_219 = arith.constant 0 : index
    %241 = vector.load %arg4[%c18_217, %c0_218, %c0_219] : memref<25x128x128xbf16, #tpu.memory_space<vmem>>, vector<1x128x128xbf16>
    %242 = vector.shape_cast %241 : vector<1x128x128xbf16> to vector<128x128xbf16>
    %cst_220 = arith.constant dense<0.000000e+00> : vector<72x128xf32>
    %243 = tpu.matmul %240, %242, %cst_220 {dimension_numbers = #tpu.dot_dimension_numbers<[1], [0], [0], [1], [0, 0, 1, 1], [], []>} : vector<72x128xbf16>, vector<128x128xbf16>, vector<72x128xf32> -> vector<72x128xf32>
    %244 = arith.addf %239, %243 : vector<72x128xf32>
    %c118 = arith.constant 118 : index
    %c0_221 = arith.constant 0 : index
    %245 = vector.load %arg14[%c118, %c0_221] : memref<208x128xbf16, #tpu.memory_space<vmem>>, vector<72x128xbf16>
    %c19_222 = arith.constant 19 : index
    %c0_223 = arith.constant 0 : index
    %c0_224 = arith.constant 0 : index
    %246 = vector.load %arg4[%c19_222, %c0_223, %c0_224] : memref<25x128x128xbf16, #tpu.memory_space<vmem>>, vector<1x128x128xbf16>
    %247 = vector.shape_cast %246 : vector<1x128x128xbf16> to vector<128x128xbf16>
    %cst_225 = arith.constant dense<0.000000e+00> : vector<72x128xf32>
    %248 = tpu.matmul %245, %247, %cst_225 {dimension_numbers = #tpu.dot_dimension_numbers<[1], [0], [0], [1], [0, 0, 1, 1], [], []>} : vector<72x128xbf16>, vector<128x128xbf16>, vector<72x128xf32> -> vector<72x128xf32>
    %249 = arith.addf %244, %248 : vector<72x128xf32>
    %c128 = arith.constant 128 : index
    %c0_226 = arith.constant 0 : index
    %250 = vector.load %arg14[%c128, %c0_226] : memref<208x128xbf16, #tpu.memory_space<vmem>>, vector<72x128xbf16>
    %c20_227 = arith.constant 20 : index
    %c0_228 = arith.constant 0 : index
    %c0_229 = arith.constant 0 : index
    %251 = vector.load %arg4[%c20_227, %c0_228, %c0_229] : memref<25x128x128xbf16, #tpu.memory_space<vmem>>, vector<1x128x128xbf16>
    %252 = vector.shape_cast %251 : vector<1x128x128xbf16> to vector<128x128xbf16>
    %cst_230 = arith.constant dense<0.000000e+00> : vector<72x128xf32>
    %253 = tpu.matmul %250, %252, %cst_230 {dimension_numbers = #tpu.dot_dimension_numbers<[1], [0], [0], [1], [0, 0, 1, 1], [], []>} : vector<72x128xbf16>, vector<128x128xbf16>, vector<72x128xf32> -> vector<72x128xf32>
    %254 = arith.addf %249, %253 : vector<72x128xf32>
    %c129 = arith.constant 129 : index
    %c0_231 = arith.constant 0 : index
    %255 = vector.load %arg14[%c129, %c0_231] : memref<208x128xbf16, #tpu.memory_space<vmem>>, vector<72x128xbf16>
    %c21_232 = arith.constant 21 : index
    %c0_233 = arith.constant 0 : index
    %c0_234 = arith.constant 0 : index
    %256 = vector.load %arg4[%c21_232, %c0_233, %c0_234] : memref<25x128x128xbf16, #tpu.memory_space<vmem>>, vector<1x128x128xbf16>
    %257 = vector.shape_cast %256 : vector<1x128x128xbf16> to vector<128x128xbf16>
    %cst_235 = arith.constant dense<0.000000e+00> : vector<72x128xf32>
    %258 = tpu.matmul %255, %257, %cst_235 {dimension_numbers = #tpu.dot_dimension_numbers<[1], [0], [0], [1], [0, 0, 1, 1], [], []>} : vector<72x128xbf16>, vector<128x128xbf16>, vector<72x128xf32> -> vector<72x128xf32>
    %259 = arith.addf %254, %258 : vector<72x128xf32>
    %c130 = arith.constant 130 : index
    %c0_236 = arith.constant 0 : index
    %260 = vector.load %arg14[%c130, %c0_236] : memref<208x128xbf16, #tpu.memory_space<vmem>>, vector<72x128xbf16>
    %c22_237 = arith.constant 22 : index
    %c0_238 = arith.constant 0 : index
    %c0_239 = arith.constant 0 : index
    %261 = vector.load %arg4[%c22_237, %c0_238, %c0_239] : memref<25x128x128xbf16, #tpu.memory_space<vmem>>, vector<1x128x128xbf16>
    %262 = vector.shape_cast %261 : vector<1x128x128xbf16> to vector<128x128xbf16>
    %cst_240 = arith.constant dense<0.000000e+00> : vector<72x128xf32>
    %263 = tpu.matmul %260, %262, %cst_240 {dimension_numbers = #tpu.dot_dimension_numbers<[1], [0], [0], [1], [0, 0, 1, 1], [], []>} : vector<72x128xbf16>, vector<128x128xbf16>, vector<72x128xf32> -> vector<72x128xf32>
    %264 = arith.addf %259, %263 : vector<72x128xf32>
    %c131 = arith.constant 131 : index
    %c0_241 = arith.constant 0 : index
    %265 = vector.load %arg14[%c131, %c0_241] : memref<208x128xbf16, #tpu.memory_space<vmem>>, vector<72x128xbf16>
    %c23_242 = arith.constant 23 : index
    %c0_243 = arith.constant 0 : index
    %c0_244 = arith.constant 0 : index
    %266 = vector.load %arg4[%c23_242, %c0_243, %c0_244] : memref<25x128x128xbf16, #tpu.memory_space<vmem>>, vector<1x128x128xbf16>
    %267 = vector.shape_cast %266 : vector<1x128x128xbf16> to vector<128x128xbf16>
    %cst_245 = arith.constant dense<0.000000e+00> : vector<72x128xf32>
    %268 = tpu.matmul %265, %267, %cst_245 {dimension_numbers = #tpu.dot_dimension_numbers<[1], [0], [0], [1], [0, 0, 1, 1], [], []>} : vector<72x128xbf16>, vector<128x128xbf16>, vector<72x128xf32> -> vector<72x128xf32>
    %269 = arith.addf %264, %268 : vector<72x128xf32>
    %c132 = arith.constant 132 : index
    %c0_246 = arith.constant 0 : index
    %270 = vector.load %arg14[%c132, %c0_246] : memref<208x128xbf16, #tpu.memory_space<vmem>>, vector<72x128xbf16>
    %c24_247 = arith.constant 24 : index
    %c0_248 = arith.constant 0 : index
    %c0_249 = arith.constant 0 : index
    %271 = vector.load %arg4[%c24_247, %c0_248, %c0_249] : memref<25x128x128xbf16, #tpu.memory_space<vmem>>, vector<1x128x128xbf16>
    %272 = vector.shape_cast %271 : vector<1x128x128xbf16> to vector<128x128xbf16>
    %cst_250 = arith.constant dense<0.000000e+00> : vector<72x128xf32>
    %273 = tpu.matmul %270, %272, %cst_250 {dimension_numbers = #tpu.dot_dimension_numbers<[1], [0], [0], [1], [0, 0, 1, 1], [], []>} : vector<72x128xbf16>, vector<128x128xbf16>, vector<72x128xf32> -> vector<72x128xf32>
    %274 = arith.addf %269, %273 : vector<72x128xf32>
    %c0_251 = arith.constant 0 : index
    %c0_252 = arith.constant 0 : index
    %275 = vector.load %arg5[%c0_251, %c0_252] : memref<1x128xf32, #tpu.memory_space<vmem>>, vector<1x128xf32>
    %276 = vector.broadcast %275 : vector<1x128xf32> to vector<72x128xf32>
    %277 = arith.addf %274, %276 : vector<72x128xf32>
    %278 = math.tanh %277 : vector<72x128xf32>
    %279 = arith.truncf %278 : vector<72x128xf32> to vector<72x128xbf16>
    %c72_253 = arith.constant 72 : index
    %c0_254 = arith.constant 0 : index
    %280 = vector.load %arg15[%c72_253, %c0_254] : memref<144x128xbf16, #tpu.memory_space<vmem>>, vector<72x128xbf16>
    tpu.vector_store %arg15[%c72_253, %c0_254], %279 {strides = array<i32>} : memref<144x128xbf16, #tpu.memory_space<vmem>>, vector<72x128xbf16>,
    %c0_255 = arith.constant 0 : index
    %c0_256 = arith.constant 0 : index
    %281 = vector.load %arg8[%c0_255, %c0_256] : memref<32x144xbf16, #tpu.memory_space<vmem>>, vector<32x144xbf16>
    %c0_257 = arith.constant 0 : index
    %c0_258 = arith.constant 0 : index
    %282 = vector.load %arg15[%c0_257, %c0_258] : memref<144x128xbf16, #tpu.memory_space<vmem>>, vector<144x128xbf16>
    %cst_259 = arith.constant dense<0.000000e+00> : vector<32x128xf32>
    %283 = tpu.matmul %281, %282, %cst_259 {dimension_numbers = #tpu.dot_dimension_numbers<[1], [0], [0], [1], [0, 0, 1, 1], [], []>} : vector<32x144xbf16>, vector<144x128xbf16>, vector<32x128xf32> -> vector<32x128xf32>
    %284 = arith.truncf %283 : vector<32x128xf32> to vector<32x128xbf16>
    %c0_260 = arith.constant 0 : index
    %c0_261 = arith.constant 0 : index
    %285 = vector.load %arg16[%c0_260, %c0_261] : memref<32x128xbf16, #tpu.memory_space<vmem>>, vector<32x128xbf16>
    tpu.vector_store %arg16[%c0_260, %c0_261], %284 {strides = array<i32>} : memref<32x128xbf16, #tpu.memory_space<vmem>>, vector<32x128xbf16>,
    %c0_262 = arith.constant 0 : index
    %c0_263 = arith.constant 0 : index
    %286 = vector.load %arg16[%c0_262, %c0_263] : memref<32x128xbf16, #tpu.memory_space<vmem>>, vector<8x128xbf16>
    %c0_264 = arith.constant 0 : index
    %c0_265 = arith.constant 0 : index
    %c0_266 = arith.constant 0 : index
    %287 = vector.load %arg6[%c0_264, %c0_265, %c0_266] : memref<25x128x128xbf16, #tpu.memory_space<vmem>>, vector<1x128x128xbf16>
    %288 = vector.shape_cast %287 : vector<1x128x128xbf16> to vector<128x128xbf16>
    %cst_267 = arith.constant dense<0.000000e+00> : vector<8x128xf32>
    %289 = tpu.matmul %286, %288, %cst_267 {dimension_numbers = #tpu.dot_dimension_numbers<[1], [0], [0], [1], [0, 0, 1, 1], [], []>} : vector<8x128xbf16>, vector<128x128xbf16>, vector<8x128xf32> -> vector<8x128xf32>
    %c1_268 = arith.constant 1 : index
    %c0_269 = arith.constant 0 : index
    %290 = vector.load %arg16[%c1_268, %c0_269] : memref<32x128xbf16, #tpu.memory_space<vmem>>, vector<8x128xbf16>
    %c1_270 = arith.constant 1 : index
    %c0_271 = arith.constant 0 : index
    %c0_272 = arith.constant 0 : index
    %291 = vector.load %arg6[%c1_270, %c0_271, %c0_272] : memref<25x128x128xbf16, #tpu.memory_space<vmem>>, vector<1x128x128xbf16>
    %292 = vector.shape_cast %291 : vector<1x128x128xbf16> to vector<128x128xbf16>
    %cst_273 = arith.constant dense<0.000000e+00> : vector<8x128xf32>
    %293 = tpu.matmul %290, %292, %cst_273 {dimension_numbers = #tpu.dot_dimension_numbers<[1], [0], [0], [1], [0, 0, 1, 1], [], []>} : vector<8x128xbf16>, vector<128x128xbf16>, vector<8x128xf32> -> vector<8x128xf32>
    %294 = arith.addf %289, %293 : vector<8x128xf32>
    %c2_274 = arith.constant 2 : index
    %c0_275 = arith.constant 0 : index
    %295 = vector.load %arg16[%c2_274, %c0_275] : memref<32x128xbf16, #tpu.memory_space<vmem>>, vector<8x128xbf16>
    %c2_276 = arith.constant 2 : index
    %c0_277 = arith.constant 0 : index
    %c0_278 = arith.constant 0 : index
    %296 = vector.load %arg6[%c2_276, %c0_277, %c0_278] : memref<25x128x128xbf16, #tpu.memory_space<vmem>>, vector<1x128x128xbf16>
    %297 = vector.shape_cast %296 : vector<1x128x128xbf16> to vector<128x128xbf16>
    %cst_279 = arith.constant dense<0.000000e+00> : vector<8x128xf32>
    %298 = tpu.matmul %295, %297, %cst_279 {dimension_numbers = #tpu.dot_dimension_numbers<[1], [0], [0], [1], [0, 0, 1, 1], [], []>} : vector<8x128xbf16>, vector<128x128xbf16>, vector<8x128xf32> -> vector<8x128xf32>
    %299 = arith.addf %294, %298 : vector<8x128xf32>
    %c3_280 = arith.constant 3 : index
    %c0_281 = arith.constant 0 : index
    %300 = vector.load %arg16[%c3_280, %c0_281] : memref<32x128xbf16, #tpu.memory_space<vmem>>, vector<8x128xbf16>
    %c3_282 = arith.constant 3 : index
    %c0_283 = arith.constant 0 : index
    %c0_284 = arith.constant 0 : index
    %301 = vector.load %arg6[%c3_282, %c0_283, %c0_284] : memref<25x128x128xbf16, #tpu.memory_space<vmem>>, vector<1x128x128xbf16>
    %302 = vector.shape_cast %301 : vector<1x128x128xbf16> to vector<128x128xbf16>
    %cst_285 = arith.constant dense<0.000000e+00> : vector<8x128xf32>
    %303 = tpu.matmul %300, %302, %cst_285 {dimension_numbers = #tpu.dot_dimension_numbers<[1], [0], [0], [1], [0, 0, 1, 1], [], []>} : vector<8x128xbf16>, vector<128x128xbf16>, vector<8x128xf32> -> vector<8x128xf32>
    %304 = arith.addf %299, %303 : vector<8x128xf32>
    %c4_286 = arith.constant 4 : index
    %c0_287 = arith.constant 0 : index
    %305 = vector.load %arg16[%c4_286, %c0_287] : memref<32x128xbf16, #tpu.memory_space<vmem>>, vector<8x128xbf16>
    %c4_288 = arith.constant 4 : index
    %c0_289 = arith.constant 0 : index
    %c0_290 = arith.constant 0 : index
    %306 = vector.load %arg6[%c4_288, %c0_289, %c0_290] : memref<25x128x128xbf16, #tpu.memory_space<vmem>>, vector<1x128x128xbf16>
    %307 = vector.shape_cast %306 : vector<1x128x128xbf16> to vector<128x128xbf16>
    %cst_291 = arith.constant dense<0.000000e+00> : vector<8x128xf32>
    %308 = tpu.matmul %305, %307, %cst_291 {dimension_numbers = #tpu.dot_dimension_numbers<[1], [0], [0], [1], [0, 0, 1, 1], [], []>} : vector<8x128xbf16>, vector<128x128xbf16>, vector<8x128xf32> -> vector<8x128xf32>
    %309 = arith.addf %304, %308 : vector<8x128xf32>
    %c5_292 = arith.constant 5 : index
    %c0_293 = arith.constant 0 : index
    %310 = vector.load %arg16[%c5_292, %c0_293] : memref<32x128xbf16, #tpu.memory_space<vmem>>, vector<8x128xbf16>
    %c5_294 = arith.constant 5 : index
    %c0_295 = arith.constant 0 : index
    %c0_296 = arith.constant 0 : index
    %311 = vector.load %arg6[%c5_294, %c0_295, %c0_296] : memref<25x128x128xbf16, #tpu.memory_space<vmem>>, vector<1x128x128xbf16>
    %312 = vector.shape_cast %311 : vector<1x128x128xbf16> to vector<128x128xbf16>
    %cst_297 = arith.constant dense<0.000000e+00> : vector<8x128xf32>
    %313 = tpu.matmul %310, %312, %cst_297 {dimension_numbers = #tpu.dot_dimension_numbers<[1], [0], [0], [1], [0, 0, 1, 1], [], []>} : vector<8x128xbf16>, vector<128x128xbf16>, vector<8x128xf32> -> vector<8x128xf32>
    %314 = arith.addf %309, %313 : vector<8x128xf32>
    %c6_298 = arith.constant 6 : index
    %c0_299 = arith.constant 0 : index
    %315 = vector.load %arg16[%c6_298, %c0_299] : memref<32x128xbf16, #tpu.memory_space<vmem>>, vector<8x128xbf16>
    %c6_300 = arith.constant 6 : index
    %c0_301 = arith.constant 0 : index
    %c0_302 = arith.constant 0 : index
    %316 = vector.load %arg6[%c6_300, %c0_301, %c0_302] : memref<25x128x128xbf16, #tpu.memory_space<vmem>>, vector<1x128x128xbf16>
    %317 = vector.shape_cast %316 : vector<1x128x128xbf16> to vector<128x128xbf16>
    %cst_303 = arith.constant dense<0.000000e+00> : vector<8x128xf32>
    %318 = tpu.matmul %315, %317, %cst_303 {dimension_numbers = #tpu.dot_dimension_numbers<[1], [0], [0], [1], [0, 0, 1, 1], [], []>} : vector<8x128xbf16>, vector<128x128xbf16>, vector<8x128xf32> -> vector<8x128xf32>
    %319 = arith.addf %314, %318 : vector<8x128xf32>
    %c7_304 = arith.constant 7 : index
    %c0_305 = arith.constant 0 : index
    %320 = vector.load %arg16[%c7_304, %c0_305] : memref<32x128xbf16, #tpu.memory_space<vmem>>, vector<8x128xbf16>
    %c7_306 = arith.constant 7 : index
    %c0_307 = arith.constant 0 : index
    %c0_308 = arith.constant 0 : index
    %321 = vector.load %arg6[%c7_306, %c0_307, %c0_308] : memref<25x128x128xbf16, #tpu.memory_space<vmem>>, vector<1x128x128xbf16>
    %322 = vector.shape_cast %321 : vector<1x128x128xbf16> to vector<128x128xbf16>
    %cst_309 = arith.constant dense<0.000000e+00> : vector<8x128xf32>
    %323 = tpu.matmul %320, %322, %cst_309 {dimension_numbers = #tpu.dot_dimension_numbers<[1], [0], [0], [1], [0, 0, 1, 1], [], []>} : vector<8x128xbf16>, vector<128x128xbf16>, vector<8x128xf32> -> vector<8x128xf32>
    %324 = arith.addf %319, %323 : vector<8x128xf32>
    %c8_310 = arith.constant 8 : index
    %c0_311 = arith.constant 0 : index
    %325 = vector.load %arg16[%c8_310, %c0_311] : memref<32x128xbf16, #tpu.memory_space<vmem>>, vector<8x128xbf16>
    %c8_312 = arith.constant 8 : index
    %c0_313 = arith.constant 0 : index
    %c0_314 = arith.constant 0 : index
    %326 = vector.load %arg6[%c8_312, %c0_313, %c0_314] : memref<25x128x128xbf16, #tpu.memory_space<vmem>>, vector<1x128x128xbf16>
    %327 = vector.shape_cast %326 : vector<1x128x128xbf16> to vector<128x128xbf16>
    %cst_315 = arith.constant dense<0.000000e+00> : vector<8x128xf32>
    %328 = tpu.matmul %325, %327, %cst_315 {dimension_numbers = #tpu.dot_dimension_numbers<[1], [0], [0], [1], [0, 0, 1, 1], [], []>} : vector<8x128xbf16>, vector<128x128xbf16>, vector<8x128xf32> -> vector<8x128xf32>
    %329 = arith.addf %324, %328 : vector<8x128xf32>
    %c9_316 = arith.constant 9 : index
    %c0_317 = arith.constant 0 : index
    %330 = vector.load %arg16[%c9_316, %c0_317] : memref<32x128xbf16, #tpu.memory_space<vmem>>, vector<8x128xbf16>
    %c9_318 = arith.constant 9 : index
    %c0_319 = arith.constant 0 : index
    %c0_320 = arith.constant 0 : index
    %331 = vector.load %arg6[%c9_318, %c0_319, %c0_320] : memref<25x128x128xbf16, #tpu.memory_space<vmem>>, vector<1x128x128xbf16>
    %332 = vector.shape_cast %331 : vector<1x128x128xbf16> to vector<128x128xbf16>
    %cst_321 = arith.constant dense<0.000000e+00> : vector<8x128xf32>
    %333 = tpu.matmul %330, %332, %cst_321 {dimension_numbers = #tpu.dot_dimension_numbers<[1], [0], [0], [1], [0, 0, 1, 1], [], []>} : vector<8x128xbf16>, vector<128x128xbf16>, vector<8x128xf32> -> vector<8x128xf32>
    %334 = arith.addf %329, %333 : vector<8x128xf32>
    %c10_322 = arith.constant 10 : index
    %c0_323 = arith.constant 0 : index
    %335 = vector.load %arg16[%c10_322, %c0_323] : memref<32x128xbf16, #tpu.memory_space<vmem>>, vector<8x128xbf16>
    %c10_324 = arith.constant 10 : index
    %c0_325 = arith.constant 0 : index
    %c0_326 = arith.constant 0 : index
    %336 = vector.load %arg6[%c10_324, %c0_325, %c0_326] : memref<25x128x128xbf16, #tpu.memory_space<vmem>>, vector<1x128x128xbf16>
    %337 = vector.shape_cast %336 : vector<1x128x128xbf16> to vector<128x128xbf16>
    %cst_327 = arith.constant dense<0.000000e+00> : vector<8x128xf32>
    %338 = tpu.matmul %335, %337, %cst_327 {dimension_numbers = #tpu.dot_dimension_numbers<[1], [0], [0], [1], [0, 0, 1, 1], [], []>} : vector<8x128xbf16>, vector<128x128xbf16>, vector<8x128xf32> -> vector<8x128xf32>
    %339 = arith.addf %334, %338 : vector<8x128xf32>
    %c11_328 = arith.constant 11 : index
    %c0_329 = arith.constant 0 : index
    %340 = vector.load %arg16[%c11_328, %c0_329] : memref<32x128xbf16, #tpu.memory_space<vmem>>, vector<8x128xbf16>
    %c11_330 = arith.constant 11 : index
    %c0_331 = arith.constant 0 : index
    %c0_332 = arith.constant 0 : index
    %341 = vector.load %arg6[%c11_330, %c0_331, %c0_332] : memref<25x128x128xbf16, #tpu.memory_space<vmem>>, vector<1x128x128xbf16>
    %342 = vector.shape_cast %341 : vector<1x128x128xbf16> to vector<128x128xbf16>
    %cst_333 = arith.constant dense<0.000000e+00> : vector<8x128xf32>
    %343 = tpu.matmul %340, %342, %cst_333 {dimension_numbers = #tpu.dot_dimension_numbers<[1], [0], [0], [1], [0, 0, 1, 1], [], []>} : vector<8x128xbf16>, vector<128x128xbf16>, vector<8x128xf32> -> vector<8x128xf32>
    %344 = arith.addf %339, %343 : vector<8x128xf32>
    %c12_334 = arith.constant 12 : index
    %c0_335 = arith.constant 0 : index
    %345 = vector.load %arg16[%c12_334, %c0_335] : memref<32x128xbf16, #tpu.memory_space<vmem>>, vector<8x128xbf16>
    %c12_336 = arith.constant 12 : index
    %c0_337 = arith.constant 0 : index
    %c0_338 = arith.constant 0 : index
    %346 = vector.load %arg6[%c12_336, %c0_337, %c0_338] : memref<25x128x128xbf16, #tpu.memory_space<vmem>>, vector<1x128x128xbf16>
    %347 = vector.shape_cast %346 : vector<1x128x128xbf16> to vector<128x128xbf16>
    %cst_339 = arith.constant dense<0.000000e+00> : vector<8x128xf32>
    %348 = tpu.matmul %345, %347, %cst_339 {dimension_numbers = #tpu.dot_dimension_numbers<[1], [0], [0], [1], [0, 0, 1, 1], [], []>} : vector<8x128xbf16>, vector<128x128xbf16>, vector<8x128xf32> -> vector<8x128xf32>
    %349 = arith.addf %344, %348 : vector<8x128xf32>
    %c13_340 = arith.constant 13 : index
    %c0_341 = arith.constant 0 : index
    %350 = vector.load %arg16[%c13_340, %c0_341] : memref<32x128xbf16, #tpu.memory_space<vmem>>, vector<8x128xbf16>
    %c13_342 = arith.constant 13 : index
    %c0_343 = arith.constant 0 : index
    %c0_344 = arith.constant 0 : index
    %351 = vector.load %arg6[%c13_342, %c0_343, %c0_344] : memref<25x128x128xbf16, #tpu.memory_space<vmem>>, vector<1x128x128xbf16>
    %352 = vector.shape_cast %351 : vector<1x128x128xbf16> to vector<128x128xbf16>
    %cst_345 = arith.constant dense<0.000000e+00> : vector<8x128xf32>
    %353 = tpu.matmul %350, %352, %cst_345 {dimension_numbers = #tpu.dot_dimension_numbers<[1], [0], [0], [1], [0, 0, 1, 1], [], []>} : vector<8x128xbf16>, vector<128x128xbf16>, vector<8x128xf32> -> vector<8x128xf32>
    %354 = arith.addf %349, %353 : vector<8x128xf32>
    %c14_346 = arith.constant 14 : index
    %c0_347 = arith.constant 0 : index
    %355 = vector.load %arg16[%c14_346, %c0_347] : memref<32x128xbf16, #tpu.memory_space<vmem>>, vector<8x128xbf16>
    %c14_348 = arith.constant 14 : index
    %c0_349 = arith.constant 0 : index
    %c0_350 = arith.constant 0 : index
    %356 = vector.load %arg6[%c14_348, %c0_349, %c0_350] : memref<25x128x128xbf16, #tpu.memory_space<vmem>>, vector<1x128x128xbf16>
    %357 = vector.shape_cast %356 : vector<1x128x128xbf16> to vector<128x128xbf16>
    %cst_351 = arith.constant dense<0.000000e+00> : vector<8x128xf32>
    %358 = tpu.matmul %355, %357, %cst_351 {dimension_numbers = #tpu.dot_dimension_numbers<[1], [0], [0], [1], [0, 0, 1, 1], [], []>} : vector<8x128xbf16>, vector<128x128xbf16>, vector<8x128xf32> -> vector<8x128xf32>
    %359 = arith.addf %354, %358 : vector<8x128xf32>
    %c15_352 = arith.constant 15 : index
    %c0_353 = arith.constant 0 : index
    %360 = vector.load %arg16[%c15_352, %c0_353] : memref<32x128xbf16, #tpu.memory_space<vmem>>, vector<8x128xbf16>
    %c15_354 = arith.constant 15 : index
    %c0_355 = arith.constant 0 : index
    %c0_356 = arith.constant 0 : index
    %361 = vector.load %arg6[%c15_354, %c0_355, %c0_356] : memref<25x128x128xbf16, #tpu.memory_space<vmem>>, vector<1x128x128xbf16>
    %362 = vector.shape_cast %361 : vector<1x128x128xbf16> to vector<128x128xbf16>
    %cst_357 = arith.constant dense<0.000000e+00> : vector<8x128xf32>
    %363 = tpu.matmul %360, %362, %cst_357 {dimension_numbers = #tpu.dot_dimension_numbers<[1], [0], [0], [1], [0, 0, 1, 1], [], []>} : vector<8x128xbf16>, vector<128x128xbf16>, vector<8x128xf32> -> vector<8x128xf32>
    %364 = arith.addf %359, %363 : vector<8x128xf32>
    %c16_358 = arith.constant 16 : index
    %c0_359 = arith.constant 0 : index
    %365 = vector.load %arg16[%c16_358, %c0_359] : memref<32x128xbf16, #tpu.memory_space<vmem>>, vector<8x128xbf16>
    %c16_360 = arith.constant 16 : index
    %c0_361 = arith.constant 0 : index
    %c0_362 = arith.constant 0 : index
    %366 = vector.load %arg6[%c16_360, %c0_361, %c0_362] : memref<25x128x128xbf16, #tpu.memory_space<vmem>>, vector<1x128x128xbf16>
    %367 = vector.shape_cast %366 : vector<1x128x128xbf16> to vector<128x128xbf16>
    %cst_363 = arith.constant dense<0.000000e+00> : vector<8x128xf32>
    %368 = tpu.matmul %365, %367, %cst_363 {dimension_numbers = #tpu.dot_dimension_numbers<[1], [0], [0], [1], [0, 0, 1, 1], [], []>} : vector<8x128xbf16>, vector<128x128xbf16>, vector<8x128xf32> -> vector<8x128xf32>
    %369 = arith.addf %364, %368 : vector<8x128xf32>
    %c17_364 = arith.constant 17 : index
    %c0_365 = arith.constant 0 : index
    %370 = vector.load %arg16[%c17_364, %c0_365] : memref<32x128xbf16, #tpu.memory_space<vmem>>, vector<8x128xbf16>
    %c17_366 = arith.constant 17 : index
    %c0_367 = arith.constant 0 : index
    %c0_368 = arith.constant 0 : index
    %371 = vector.load %arg6[%c17_366, %c0_367, %c0_368] : memref<25x128x128xbf16, #tpu.memory_space<vmem>>, vector<1x128x128xbf16>
    %372 = vector.shape_cast %371 : vector<1x128x128xbf16> to vector<128x128xbf16>
    %cst_369 = arith.constant dense<0.000000e+00> : vector<8x128xf32>
    %373 = tpu.matmul %370, %372, %cst_369 {dimension_numbers = #tpu.dot_dimension_numbers<[1], [0], [0], [1], [0, 0, 1, 1], [], []>} : vector<8x128xbf16>, vector<128x128xbf16>, vector<8x128xf32> -> vector<8x128xf32>
    %374 = arith.addf %369, %373 : vector<8x128xf32>
    %c18_370 = arith.constant 18 : index
    %c0_371 = arith.constant 0 : index
    %375 = vector.load %arg16[%c18_370, %c0_371] : memref<32x128xbf16, #tpu.memory_space<vmem>>, vector<8x128xbf16>
    %c18_372 = arith.constant 18 : index
    %c0_373 = arith.constant 0 : index
    %c0_374 = arith.constant 0 : index
    %376 = vector.load %arg6[%c18_372, %c0_373, %c0_374] : memref<25x128x128xbf16, #tpu.memory_space<vmem>>, vector<1x128x128xbf16>
    %377 = vector.shape_cast %376 : vector<1x128x128xbf16> to vector<128x128xbf16>
    %cst_375 = arith.constant dense<0.000000e+00> : vector<8x128xf32>
    %378 = tpu.matmul %375, %377, %cst_375 {dimension_numbers = #tpu.dot_dimension_numbers<[1], [0], [0], [1], [0, 0, 1, 1], [], []>} : vector<8x128xbf16>, vector<128x128xbf16>, vector<8x128xf32> -> vector<8x128xf32>
    %379 = arith.addf %374, %378 : vector<8x128xf32>
    %c19_376 = arith.constant 19 : index
    %c0_377 = arith.constant 0 : index
    %380 = vector.load %arg16[%c19_376, %c0_377] : memref<32x128xbf16, #tpu.memory_space<vmem>>, vector<8x128xbf16>
    %c19_378 = arith.constant 19 : index
    %c0_379 = arith.constant 0 : index
    %c0_380 = arith.constant 0 : index
    %381 = vector.load %arg6[%c19_378, %c0_379, %c0_380] : memref<25x128x128xbf16, #tpu.memory_space<vmem>>, vector<1x128x128xbf16>
    %382 = vector.shape_cast %381 : vector<1x128x128xbf16> to vector<128x128xbf16>
    %cst_381 = arith.constant dense<0.000000e+00> : vector<8x128xf32>
    %383 = tpu.matmul %380, %382, %cst_381 {dimension_numbers = #tpu.dot_dimension_numbers<[1], [0], [0], [1], [0, 0, 1, 1], [], []>} : vector<8x128xbf16>, vector<128x128xbf16>, vector<8x128xf32> -> vector<8x128xf32>
    %384 = arith.addf %379, %383 : vector<8x128xf32>
    %c20_382 = arith.constant 20 : index
    %c0_383 = arith.constant 0 : index
    %385 = vector.load %arg16[%c20_382, %c0_383] : memref<32x128xbf16, #tpu.memory_space<vmem>>, vector<8x128xbf16>
    %c20_384 = arith.constant 20 : index
    %c0_385 = arith.constant 0 : index
    %c0_386 = arith.constant 0 : index
    %386 = vector.load %arg6[%c20_384, %c0_385, %c0_386] : memref<25x128x128xbf16, #tpu.memory_space<vmem>>, vector<1x128x128xbf16>
    %387 = vector.shape_cast %386 : vector<1x128x128xbf16> to vector<128x128xbf16>
    %cst_387 = arith.constant dense<0.000000e+00> : vector<8x128xf32>
    %388 = tpu.matmul %385, %387, %cst_387 {dimension_numbers = #tpu.dot_dimension_numbers<[1], [0], [0], [1], [0, 0, 1, 1], [], []>} : vector<8x128xbf16>, vector<128x128xbf16>, vector<8x128xf32> -> vector<8x128xf32>
    %389 = arith.addf %384, %388 : vector<8x128xf32>
    %c21_388 = arith.constant 21 : index
    %c0_389 = arith.constant 0 : index
    %390 = vector.load %arg16[%c21_388, %c0_389] : memref<32x128xbf16, #tpu.memory_space<vmem>>, vector<8x128xbf16>
    %c21_390 = arith.constant 21 : index
    %c0_391 = arith.constant 0 : index
    %c0_392 = arith.constant 0 : index
    %391 = vector.load %arg6[%c21_390, %c0_391, %c0_392] : memref<25x128x128xbf16, #tpu.memory_space<vmem>>, vector<1x128x128xbf16>
    %392 = vector.shape_cast %391 : vector<1x128x128xbf16> to vector<128x128xbf16>
    %cst_393 = arith.constant dense<0.000000e+00> : vector<8x128xf32>
    %393 = tpu.matmul %390, %392, %cst_393 {dimension_numbers = #tpu.dot_dimension_numbers<[1], [0], [0], [1], [0, 0, 1, 1], [], []>} : vector<8x128xbf16>, vector<128x128xbf16>, vector<8x128xf32> -> vector<8x128xf32>
    %394 = arith.addf %389, %393 : vector<8x128xf32>
    %c22_394 = arith.constant 22 : index
    %c0_395 = arith.constant 0 : index
    %395 = vector.load %arg16[%c22_394, %c0_395] : memref<32x128xbf16, #tpu.memory_space<vmem>>, vector<8x128xbf16>
    %c22_396 = arith.constant 22 : index
    %c0_397 = arith.constant 0 : index
    %c0_398 = arith.constant 0 : index
    %396 = vector.load %arg6[%c22_396, %c0_397, %c0_398] : memref<25x128x128xbf16, #tpu.memory_space<vmem>>, vector<1x128x128xbf16>
    %397 = vector.shape_cast %396 : vector<1x128x128xbf16> to vector<128x128xbf16>
    %cst_399 = arith.constant dense<0.000000e+00> : vector<8x128xf32>
    %398 = tpu.matmul %395, %397, %cst_399 {dimension_numbers = #tpu.dot_dimension_numbers<[1], [0], [0], [1], [0, 0, 1, 1], [], []>} : vector<8x128xbf16>, vector<128x128xbf16>, vector<8x128xf32> -> vector<8x128xf32>
    %399 = arith.addf %394, %398 : vector<8x128xf32>
    %c23_400 = arith.constant 23 : index
    %c0_401 = arith.constant 0 : index
    %400 = vector.load %arg16[%c23_400, %c0_401] : memref<32x128xbf16, #tpu.memory_space<vmem>>, vector<8x128xbf16>
    %c23_402 = arith.constant 23 : index
    %c0_403 = arith.constant 0 : index
    %c0_404 = arith.constant 0 : index
    %401 = vector.load %arg6[%c23_402, %c0_403, %c0_404] : memref<25x128x128xbf16, #tpu.memory_space<vmem>>, vector<1x128x128xbf16>
    %402 = vector.shape_cast %401 : vector<1x128x128xbf16> to vector<128x128xbf16>
    %cst_405 = arith.constant dense<0.000000e+00> : vector<8x128xf32>
    %403 = tpu.matmul %400, %402, %cst_405 {dimension_numbers = #tpu.dot_dimension_numbers<[1], [0], [0], [1], [0, 0, 1, 1], [], []>} : vector<8x128xbf16>, vector<128x128xbf16>, vector<8x128xf32> -> vector<8x128xf32>
    %404 = arith.addf %399, %403 : vector<8x128xf32>
    %c24_406 = arith.constant 24 : index
    %c0_407 = arith.constant 0 : index
    %405 = vector.load %arg16[%c24_406, %c0_407] : memref<32x128xbf16, #tpu.memory_space<vmem>>, vector<8x128xbf16>
    %c24_408 = arith.constant 24 : index
    %c0_409 = arith.constant 0 : index
    %c0_410 = arith.constant 0 : index
    %406 = vector.load %arg6[%c24_408, %c0_409, %c0_410] : memref<25x128x128xbf16, #tpu.memory_space<vmem>>, vector<1x128x128xbf16>
    %407 = vector.shape_cast %406 : vector<1x128x128xbf16> to vector<128x128xbf16>
    %cst_411 = arith.constant dense<0.000000e+00> : vector<8x128xf32>
    %408 = tpu.matmul %405, %407, %cst_411 {dimension_numbers = #tpu.dot_dimension_numbers<[1], [0], [0], [1], [0, 0, 1, 1], [], []>} : vector<8x128xbf16>, vector<128x128xbf16>, vector<8x128xf32> -> vector<8x128xf32>
    %409 = arith.addf %404, %408 : vector<8x128xf32>
    %c0_412 = arith.constant 0 : index
    %c0_413 = arith.constant 0 : index
    %410 = vector.load %arg7[%c0_412, %c0_413] : memref<1x128xf32, #tpu.memory_space<vmem>>, vector<1x128xf32>
    %411 = vector.broadcast %410 : vector<1x128xf32> to vector<8x128xf32>
    %412 = arith.addf %409, %411 : vector<8x128xf32>
    %413 = math.tanh %412 : vector<8x128xf32>
    %414 = arith.truncf %413 : vector<8x128xf32> to vector<8x128xbf16>
    %c0_414 = arith.constant 0 : index
    %c0_415 = arith.constant 0 : index
    %415 = vector.load %arg9[%c0_414, %c0_415] : memref<128x128xbf16, #tpu.memory_space<vmem>>, vector<128x128xbf16>
    %cst_416 = arith.constant dense<0.000000e+00> : vector<8x128xf32>
    %416 = tpu.matmul %414, %415, %cst_416 {dimension_numbers = #tpu.dot_dimension_numbers<[1], [0], [0], [1], [0, 0, 1, 1], [], []>} : vector<8x128xbf16>, vector<128x128xbf16>, vector<8x128xf32> -> vector<8x128xf32>
    %c0_417 = arith.constant 0 : index
    %c0_418 = arith.constant 0 : index
    %417 = vector.load %arg10[%c0_417, %c0_418] : memref<1x128xf32, #tpu.memory_space<vmem>>, vector<1x128xf32>
    %418 = vector.broadcast %417 : vector<1x128xf32> to vector<8x128xf32>
    %419 = arith.addf %416, %418 : vector<8x128xf32>
    %420 = arith.truncf %419 : vector<8x128xf32> to vector<8x128xbf16>
    %c0_419 = arith.constant 0 : index
    %c0_420 = arith.constant 0 : index
    %421 = vector.load %arg11[%c0_419, %c0_420] : memref<128x128xbf16, #tpu.memory_space<vmem>>, vector<128x128xbf16>
    %cst_421 = arith.constant dense<0.000000e+00> : vector<8x128xf32>
    %422 = tpu.matmul %420, %421, %cst_421 {dimension_numbers = #tpu.dot_dimension_numbers<[1], [0], [0], [1], [0, 0, 1, 1], [], []>} : vector<8x128xbf16>, vector<128x128xbf16>, vector<8x128xf32> -> vector<8x128xf32>
    %c0_422 = arith.constant 0 : index
    %c0_423 = arith.constant 0 : index
    %423 = vector.load %arg12[%c0_422, %c0_423] : memref<1x128xf32, #tpu.memory_space<vmem>>, vector<1x128xf32>
    %424 = vector.broadcast %423 : vector<1x128xf32> to vector<8x128xf32>
    %425 = arith.addf %422, %424 : vector<8x128xf32>
    %426 = vector.extract_strided_slice %425 {offsets = [0, 0], sizes = [1, 128], strides = [1, 1]} : vector<8x128xf32> to vector<1x128xf32>
    %c0_424 = arith.constant 0 : index
    %c0_425 = arith.constant 0 : index
    %c0_426 = arith.constant 0 : index
    %427 = vector.load %arg13[%c0_424, %c0_425, %c0_426] : memref<1x1x128xf32, #tpu.memory_space<vmem>>, vector<1x1x128xf32>
    %428 = vector.shape_cast %427 : vector<1x1x128xf32> to vector<1x128xf32>
    %429 = vector.shape_cast %426 : vector<1x128xf32> to vector<1x1x128xf32>
    tpu.vector_store %arg13[%c0_424, %c0_425, %c0_426], %429 {strides = array<i32>} : memref<1x1x128xf32, #tpu.memory_space<vmem>>, vector<1x1x128xf32>,
    return
  }
  func.func @transform_0(%arg0: i32) -> (i32, i32, i32) {
    %c0_i32 = arith.constant 0 : i32
    %c0_i32_0 = arith.constant 0 : i32
    %c0_i32_1 = arith.constant 0 : i32
    return %arg0, %c0_i32, %c0_i32_0 : i32, i32, i32
  }
  func.func @transform_1(%arg0: i32) -> (i32, i32) {
    %c0_i32 = arith.constant 0 : i32
    %c0_i32_0 = arith.constant 0 : i32
    %c0_i32_1 = arith.constant 0 : i32
    return %c0_i32, %c0_i32_0 : i32, i32
  }
  func.func @transform_2(%arg0: i32) -> (i32, i32) {
    %c0_i32 = arith.constant 0 : i32
    %c0_i32_0 = arith.constant 0 : i32
    %c0_i32_1 = arith.constant 0 : i32
    return %c0_i32, %c0_i32_0 : i32, i32
  }
  func.func @transform_3(%arg0: i32) -> (i32, i32, i32) {
    %c0_i32 = arith.constant 0 : i32
    %c0_i32_0 = arith.constant 0 : i32
    %c0_i32_1 = arith.constant 0 : i32
    %c0_i32_2 = arith.constant 0 : i32
    return %c0_i32, %c0_i32_0, %c0_i32_1 : i32, i32, i32
  }
  func.func @transform_4(%arg0: i32) -> (i32, i32) {
    %c0_i32 = arith.constant 0 : i32
    %c0_i32_0 = arith.constant 0 : i32
    %c0_i32_1 = arith.constant 0 : i32
    return %c0_i32, %c0_i32_0 : i32, i32
  }
  func.func @transform_5(%arg0: i32) -> (i32, i32, i32) {
    %c0_i32 = arith.constant 0 : i32
    %c0_i32_0 = arith.constant 0 : i32
    %c0_i32_1 = arith.constant 0 : i32
    %c0_i32_2 = arith.constant 0 : i32
    return %c0_i32, %c0_i32_0, %c0_i32_1 : i32, i32, i32
  }
  func.func @transform_6(%arg0: i32) -> (i32, i32) {
    %c0_i32 = arith.constant 0 : i32
    %c0_i32_0 = arith.constant 0 : i32
    %c0_i32_1 = arith.constant 0 : i32
    return %c0_i32, %c0_i32_0 : i32, i32
  }
  func.func @transform_7(%arg0: i32) -> (i32, i32) {
    %c0_i32 = arith.constant 0 : i32
    %c0_i32_0 = arith.constant 0 : i32
    %c0_i32_1 = arith.constant 0 : i32
    return %c0_i32, %c0_i32_0 : i32, i32
  }
  func.func @transform_8(%arg0: i32) -> (i32, i32) {
    %c0_i32 = arith.constant 0 : i32
    %c0_i32_0 = arith.constant 0 : i32
    %c0_i32_1 = arith.constant 0 : i32
    return %c0_i32, %c0_i32_0 : i32, i32
  }
  func.func @transform_9(%arg0: i32) -> (i32, i32) {
    %c0_i32 = arith.constant 0 : i32
    %c0_i32_0 = arith.constant 0 : i32
    %c0_i32_1 = arith.constant 0 : i32
    return %c0_i32, %c0_i32_0 : i32, i32
  }
  func.func @transform_10(%arg0: i32) -> (i32, i32) {
    %c0_i32 = arith.constant 0 : i32
    %c0_i32_0 = arith.constant 0 : i32
    %c0_i32_1 = arith.constant 0 : i32
    return %c0_i32, %c0_i32_0 : i32, i32
  }
  func.func @transform_11(%arg0: i32) -> (i32, i32) {
    %c0_i32 = arith.constant 0 : i32
    %c0_i32_0 = arith.constant 0 : i32
    %c0_i32_1 = arith.constant 0 : i32
    return %c0_i32, %c0_i32_0 : i32, i32
  }
  func.func @transform_12(%arg0: i32) -> (i32, i32, i32) {
    %c0_i32 = arith.constant 0 : i32
    %c0_i32_0 = arith.constant 0 : i32
    %c0_i32_1 = arith.constant 0 : i32
    return %arg0, %c0_i32, %c0_i32_0 : i32, i32, i32
  }
}

</mosaic_0001>

<bundles_post_ra>
// kernel: lenet_forward.1
= control target key start
LH: loop header
LB: loop body
LE: loop exit
PB: predicated region body
PF: predicated region fallthrough
CT: control target
= control target key end

     0   :  { %s27491_s0 = inlined_call_operand.vmem [shape: bf16[2,800,32], index: 0, kind: input, shape index: {}]   ;;  %s27492_s1 = inlined_call_operand.vmem [shape: bf16[32,128], index: 1, kind: input, shape index: {}]   ;;  %s27493_s2 = inlined_call_operand.vmem [shape: f32[1,128], index: 2, kind: input, shape index: {}]   ;;  %s27494_s3 = inlined_call_operand.vmem [shape: bf16[25,128,128], index: 3, kind: input, shape index: {}]   ;;  %s27495_s4 = inlined_call_operand.vmem [shape: f32[1,128], index: 4, kind: input, shape index: {}]   ;;  %s27496_s5 = inlined_call_operand.vmem [shape: bf16[25,128,128], index: 5, kind: input, shape index: {}]   ;;  %s27497_s6 = inlined_call_operand.vmem [shape: f32[1,128], index: 6, kind: input, shape index: {}]   ;;  %s27498_s7 = inlined_call_operand.vmem [shape: bf16[32,144], index: 7, kind: input, shape index: {}]   ;;  %s27499_s8 = inlined_call_operand.vmem [shape: bf16[128,128], index: 8, kind: input, shape index: {}]   ;;  %s27500_s9 = inlined_call_operand.vmem [shape: f32[1,128], index: 9, kind: input, shape index: {}]   ;;  %s27501_s10 = inlined_call_operand.vmem [shape: bf16[128,128], index: 10, kind: input, shape index: {}]   ;;  %s27502_s11 = inlined_call_operand.vmem [shape: f32[1,128], index: 11, kind: input, shape index: {}]   ;;  %s27503_s12 = inlined_call_operand.hbm [shape: f32[2,1,128], index: 12, kind: output, shape index: {}]  }
   0x1   :  { %27603 = sst [smem:[#allocation135_spill]] %s27491_s0 }
   0x2   :  { %27604 = sst [smem:[#allocation136_spill]] %s27492_s1 }
   0x3   :  { %17 = vsyncpa [#allocation6], 0 }
   0x4   :  { %19 = vsyncpa [#allocation6 + $0x1], 0  ;;  %s21151_s21 = smov 0   ;;  %s21153_s22 = smov 0  }
   0x5   :  { %s21155_s23 = smov 0   ;;  %s21157_s24 = smov 0  }
   0x6 LB: > { %s21172_s25 = sadd.s32 4294967295, %s21080_s24   ;;  %s14222_s26 = sadd.s32 4294967294, %s21080_s24   ;;  %s21080_s24 = sphi %s21157_s24, %s28044_s24   ;;  %s21076_s23 = sphi %s21155_s23, %s28043_s23   ;;  %s21072_s22 = sphi %s21153_s22, %s28042_s22   ;;  %s21068_s21 = sphi %s21151_s21, %s28041_s21  }
   0x7   : > { %s21176_s27 = sadd.s32 1, %s21080_s24   ;;  %s289_s28 = sadd.s32 1, %s21076_s23 }
   0x8   : > { %s286_s29 = ssub.s32 %s21080_s24, %s21176_s27  ;;  %p299_p0 = scmp.ne.s32.totalorder %s21076_s23, %s21072_s22 }
   0x9   : > { %p287_p1 = scmp.eq.s32.totalorder %s286_s29, 0  ;;  %p300_p2 = scmp.eq.s32.totalorder %s21172_s25, 1 }
   0xa   : > { %p305_p3 = scmp.ne.s32.totalorder %s21072_s22, %s21068_s21  ;;  %p306_p4 = scmp.eq.s32.totalorder %s14222_s26, 1 }
   0xb   : > { %s21187_s30 = scalar_select %p287_p1, %s21076_s23, %s289_s28  }
   0xc   : > { %p21189_p5 = por %p300_p2, %p299_p0  ;;  %p21193_p6 = por %p306_p4, %p305_p3 }
   0xd   : > { %p14225_p7 = scmp.ge.s32.totalorder %s21080_s24, 1  ;;  %p365_p8 = scmp.lt.s32.totalorder %s21080_s24, 3 }
   0xf   : > { %p366_p9 = pnand %p14225_p7, %p365_p8 }
  0x11   : > { %369 = sbr.rel (%p366_p9) target bundleno = 2966 (0xb96), region = 68 }
  0x16   : > { %s27607_s1 = sld [smem:[#allocation136_spill]]  ;;  %p406_p10 = scmp.lt.s32.totalorder %s21172_s25, 1  ;;  %vm785_vm0 = vcmask 261120   ;;  %vm21083_vm1 = vmmov 0   ;;  %vm1764_vm2 = vsmask.f32 7424 }
  0x17   : > { %s27608_s0 = sld [smem:[#allocation135_spill]]  ;;  %vm2622_vm3 = vcmask 1044480   ;;  %vm2076_vm4 = vcmask 1046528   ;;  %vm2241_vm5 = vsmask.f32 6400  ;;  %vm2426_vm6 = vcmask 1045504  }
  0x18   : > { %s407_s19 = scalar_select %p406_p10, %s21172_s25, 1  ;;  %vm2787_vm7 = vsmask.f32 4352  ;;  %vm3727_vm8 = vsmask.f32 5376  ;;  %vm10981_vm9 = vcmask 130048  }
  0x19   : > { %s404_s16 = sand.u32 1, %s21072_s22  }
  0x1a   : > { %s19876_s20 = smul.u32 400, %s407_s19  ;;  %s16308_s19 = sshll.u32 %s21172_s25, 4 }
  0x1b   : > { %s27450_s15 = scalar_lea.hbm %s27503_s12, %s16308_s19  ;;  %s14155_s17 = scalar_lea.sflag [#allocation6], %s404_s16 }
  0x1c   : > { %v19919_v0 = vld [vmem:[%s27607_s1 + $0x8] sm:$0xff]   ;;  %v19920_v1 = vld [vmem:[%s27607_s1] sm:$0xff]   ;;  %s21085_s25 = smov [#allocation5]  }
  0x1d   : > { %17432 = vmatprep.subr.bf16.mxu0 %v19919_v0  ;;  %s21210_s29 = scalar_lea.vmem %s27608_s0, %s19876_s20  ;;  %s405_s20 = scalar_lea.vmem [#allocation5], %s404_s16 }
  0x1e   : > { %17433 = vmatpush3.bf16.msra.mxu0 %v19919_v0  ;;  %v19921_v2 = vld [vmem:[%s21210_s29] sm:$0xff]   ;;  %v19922_v3 = vld [vmem:[%s21210_s29 + $0x8] sm:$0xff]   ;;  %v19923_v4 = vld [vmem:[%s21210_s29 + $0x10] sm:$0xff]   ;;  %s14167_s26 = sshll.u32 %s405_s20, 4  ;;  %s21024_s0 = sshll.u32 %s21085_s25, 4  ;;  %s27452_s26 = int_to_ptr.vmem [resolvable:$true] %s14167_s26  ;;  %s21025_s0 = int_to_ptr.vmem [resolvable:$false] %s21024_s0 }
  0x1f   : > { %17434 = vmatprep.subr.bf16.mxu0 %v19920_v1  ;;  %17436 = vmatprep.mubr.msk.bf16.mxu0 %vm785_vm0, %v19921_v2  ;;  %v19924_v5 = vld [vmem:[%s21210_s29 + $0x18] sm:$0xff]   ;;  %v19925_v6 = vld [vmem:[%s21210_s29 + $0x20] sm:$0xff]   ;;  %v19926_v7 = vld [vmem:[%s21210_s29 + $0x28] sm:$0xff]   ;;  %s21020_s18 = scalar_lea.vmem %s27452_s26, 16  ;;  %s21026_s28 = scalar_lea.vmem %s21025_s0, 32 }
  0x20   : > { %v19927_v8 = vld [vmem:[%s21210_s29 + $0x30] sm:$0xff]   ;;  %v19928_v9 = vld [vmem:[%s21210_s29 + $0x38] sm:$0xff]   ;;  %v19929_v10 = vld [vmem:[%s21210_s29 + $0x40] sm:$0xff]   ;;  %p21021_p11 = scmp.ne.s32.totalorder %s27452_s26, %s21020_s18  ;;  %p21027_p0 = scmp.lt.s32.totalorder %s27452_s26, %s21025_s0 }
  0x21   : > { %v19930_v11 = vld [vmem:[%s21210_s29 + $0x48] sm:$0xff]   ;;  %v19931_v12 = vld [vmem:[%s21210_s29 + $0x50] sm:$0xff]   ;;  %v19932_v13 = vld [vmem:[%s21210_s29 + $0x58] sm:$0xff]   ;;  %p21028_p1 = scmp.lt.s32.totalorder %s21026_s28, %s21020_s18 }
  0x22   : > { %17435 = vmatpush3.bf16.msra.mxu0 %v19920_v1  ;;  %v19933_v14 = vld [vmem:[%s21210_s29 + $0x60] sm:$0xff]   ;;  %v19934_v15 = vld [vmem:[%s21210_s29 + $0x68] sm:$0xff]   ;;  %v19935_v16 = vld [vmem:[%s21210_s29 + $0x70] sm:$0xff]   ;;  %p21022_p12 = pnand %p21021_p11, %p21189_p5 }
  0x23   : > { %v19936_v17 = vld [vmem:[%s21210_s29 + $0x78] sm:$0xff]   ;;  %v19937_v18 = vld [vmem:[%s21210_s29 + $0x80] sm:$0xff]   ;;  %v19938_v19 = vld [vmem:[%s21210_s29 + $0x88] sm:$0xff]   ;;  %p21029_p2 = por %p21028_p1, %p21027_p0 }
  0x24   : > { %v19939_v20 = vld [vmem:[%s21210_s29 + $0x90] sm:$0xff]   ;;  %v19940_v21 = vld [vmem:[%s21210_s29 + $0x98] sm:$0xff]   ;;  %v19941_v22 = vld [vmem:[%s21210_s29 + $0xa0] sm:$0xff]   ;;  %p21023_p13 = pneg %p21022_p12 }
  0x25   : > { %17437 = vmatmul.mubr.msk.bf16.vlgmr.msra.gmra.mxu0 %vm785_vm0, %v19922_v3  ;;  %v19942_v23 = vld [vmem:[%s21210_s29 + $0xa8] sm:$0xff]   ;;  %v19943_v24 = vld [vmem:[%s21210_s29 + $0xb0] sm:$0xff]   ;;  %v19944_v25 = vld [vmem:[%s21210_s29 + $0xb8] sm:$0xff]  }
  0x26   : > { %17440 = vmatprep.mubr.msk.bf16.mxu0 %vm785_vm0, %v19923_v4  ;;  %v19945_v26 = vld [vmem:[%s21210_s29 + $0xc0] sm:$0xff]   ;;  %v19946_v27 = vld [vmem:[%s21210_s29 + $0xc8] sm:$0xff]   ;;  %v19947_v28 = vld [vmem:[%s21210_s29 + $0xd0] sm:$0xff]   ;;  %p21030_p3 = pnand %p21029_p2, %p21023_p13 }
  0x27   : > { %v19948_v29 = vld [vmem:[%s21210_s29 + $0xd8] sm:$0xff]   ;;  %v19949_v30 = vld [vmem:[%s21210_s29 + $0xe0] sm:$0xff]   ;;  %v19950_v31 = vld [vmem:[%s21210_s29 + $0xe8] sm:$0xff]  }
  0x28   : > { %v19951_v32 = vld [vmem:[%s21210_s29 + $0xf0] sm:$0xff]   ;;  %v19952_v33 = vld [vmem:[%s21210_s29 + $0xf8] sm:$0xff]   ;;  %v19953_v34 = vld [vmem:[%s21210_s29 + $0x100] sm:$0xff]  }
  0x29   : > { %v19954_v35 = vld [vmem:[%s21210_s29 + $0x108] sm:$0xff]   ;;  %v19955_v36 = vld [vmem:[%s21210_s29 + $0x110] sm:$0xff]   ;;  %v19956_v37 = vld [vmem:[%s21210_s29 + $0x118] sm:$0xff]  }
  0x2a   : > { %v19957_v38 = vld [vmem:[%s21210_s29 + $0x120] sm:$0xff]   ;;  %v19958_v39 = vld [vmem:[%s21210_s29 + $0x128] sm:$0xff]   ;;  %v19959_v40 = vld [vmem:[%s21210_s29 + $0x130] sm:$0xff]  }
  0x2b   : > { %v19960_v41 = vld [vmem:[%s21210_s29 + $0x138] sm:$0xff]   ;;  %v19961_v42 = vld [vmem:[%s21210_s29 + $0x140] sm:$0xff]   ;;  %v19962_v43 = vld [vmem:[%s21210_s29 + $0x148] sm:$0xff]  }
  0x2c   : > { %v19963_v44 = vld [vmem:[%s21210_s29 + $0x150] sm:$0xff]   ;;  %v19964_v45 = vld [vmem:[%s21210_s29 + $0x158] sm:$0xff]   ;;  %v19965_v46 = vld [vmem:[%s21210_s29 + $0x160] sm:$0xff]  }
  0x2d   : > { %17441 = vmatmul.mubr.msk.bf16.gmra.mxu0 %vm785_vm0, %v19924_v5  ;;  %v19966_v47 = vld [vmem:[%s21210_s29 + $0x168] sm:$0xff]   ;;  %v19967_v48 = vld [vmem:[%s21210_s29 + $0x170] sm:$0xff]   ;;  %v19968_v49 = vld [vmem:[%s21210_s29 + $0x178] sm:$0xff]  }
  0x2e   : > { %17444 = vmatprep.mubr.msk.bf16.mxu0 %vm785_vm0, %v19925_v6  ;;  %v19969_v50 = vld [vmem:[%s21210_s29 + $0x180] sm:$0xff]   ;;  %v19970_v51 = vld [vmem:[%s21210_s29 + $0x188] sm:$0xff]   ;;  %v19972_v6 = vld [vmem:[%s27494_s3 + $0x78] sm:$0xff]  }
  0x35   : > { %17445 = vmatmul.mubr.msk.bf16.gmra.mxu0 %vm785_vm0, %v19926_v7  ;;  %v27504_v7 = vmov 0.0  }
  0x36   : > { %17448 = vmatprep.mubr.msk.bf16.mxu0 %vm785_vm0, %v19927_v8  ;;  %17716 = vmatprep.subr.bf16.mxu0 %v27504_v7 }
  0x37   : > { %17536 = vmatprep.subr.bf16.mxu1 %v27504_v7  ;;  %17552 = vmatprep.mubr.msk.bf16.mxu1 %vm21083_vm1, %v27504_v7 }
  0x38   : > { %17537 = vmatpush3.bf16.msra.mxu1 %v19972_v6 }
  0x39   : > { %17538 = vmatprep.subr.bf16.mxu1 %v27504_v7 }
  0x3d   : > { %17449 = vmatmul.mubr.msk.bf16.gmra.mxu0 %vm785_vm0, %v19928_v9  ;;  %v19971_v9 = vld [vmem:[%s27494_s3 + $0x178] sm:$0xff]  }
  0x3e   : > { %17452 = vmatprep.mubr.msk.bf16.mxu0 %vm785_vm0, %v19929_v10  ;;  %17717 = vmatpush3.bf16.msra.mxu0 %v19971_v9 }
  0x3f   : > { %17718 = vmatprep.subr.bf16.mxu0 %v27504_v7 }
  0x45   : > { %17453 = vmatmul.mubr.msk.bf16.gmra.mxu0 %vm785_vm0, %v19930_v11  ;;  %v19973_v11 = vld [vmem:[%s27494_s3 + $0x70] sm:$0xff]  }
  0x46   : > { %17456 = vmatprep.mubr.msk.bf16.mxu0 %vm785_vm0, %v19931_v12  ;;  %17539 = vmatpush3.bf16.msra.mxu1 %v19973_v11 }
  0x47   : > { %17540 = vmatprep.subr.bf16.mxu1 %v27504_v7 }
  0x4d   : > { %17457 = vmatmul.mubr.msk.bf16.gmra.mxu0 %vm785_vm0, %v19932_v13  ;;  %v19974_v13 = vld [vmem:[%s27494_s3 + $0x170] sm:$0xff]  }
  0x4e   : > { %17460 = vmatprep.mubr.msk.bf16.mxu0 %vm785_vm0, %v19933_v14  ;;  %17719 = vmatpush3.bf16.msra.mxu0 %v19974_v13 }
  0x4f   : > { %17720 = vmatprep.subr.bf16.mxu0 %v27504_v7 }
  0x55   : > { %17461 = vmatmul.mubr.msk.bf16.gmra.mxu0 %vm785_vm0, %v19934_v15  ;;  %v19975_v15 = vld [vmem:[%s27494_s3 + $0x68] sm:$0xff]  }
  0x56   : > { %17464 = vmatprep.mubr.msk.bf16.mxu0 %vm785_vm0, %v19935_v16  ;;  %17541 = vmatpush3.bf16.msra.mxu1 %v19975_v15 }
  0x57   : > { %17542 = vmatprep.subr.bf16.mxu1 %v27504_v7 }
  0x5d   : > { %17465 = vmatmul.mubr.msk.bf16.gmra.mxu0 %vm785_vm0, %v19936_v17  ;;  %v21380_v17 = vld [vmem:[%s27493_s2] ss:$0 sm:$0xff] }
  0x5e   : > { %17468 = vmatprep.mubr.msk.bf16.mxu0 %vm785_vm0, %v19937_v18 }
  0x65   : > { %17469 = vmatmul.mubr.msk.bf16.gmra.mxu0 %vm785_vm0, %v19938_v19  ;;  %v19976_v19 = vld [vmem:[%s27494_s3 + $0x168] sm:$0xff]  }
  0x66   : > { %17472 = vmatprep.mubr.msk.bf16.mxu0 %vm785_vm0, %v19939_v20  ;;  %v19977_v20 = vld [vmem:[%s27494_s3 + $0x60] sm:$0xff]   ;;  %17721 = vmatpush3.bf16.msra.mxu0 %v19976_v19 }
  0x67   : > { %17543 = vmatpush3.bf16.msra.mxu1 %v19977_v20  ;;  %17722 = vmatprep.subr.bf16.mxu0 %v27504_v7 }
  0x68   : > { %17544 = vmatprep.subr.bf16.mxu1 %v27504_v7 }
  0x6d   : > { %17473 = vmatmul.mubr.msk.bf16.gmra.mxu0 %vm785_vm0, %v19940_v21 }
  0x6e   : > { %17476 = vmatprep.mubr.msk.bf16.mxu0 %vm785_vm0, %v19941_v22 }
  0x75   : > { %17477 = vmatmul.mubr.msk.bf16.gmra.mxu0 %vm785_vm0, %v19942_v23 }
  0x76   : > { %17480 = vmatprep.mubr.msk.bf16.mxu0 %vm785_vm0, %v19943_v24  ;;  %v19978_v24 = vld [vmem:[%s27494_s3 + $0x160] sm:$0xff]  }
  0x77   : > { %17723 = vmatpush3.bf16.msra.mxu0 %v19978_v24 }
  0x78   : > { %17724 = vmatprep.subr.bf16.mxu0 %v27504_v7 }
  0x7d   : > { %17481 = vmatmul.mubr.msk.bf16.gmra.mxu0 %vm785_vm0, %v19944_v25  ;;  %v19979_v25 = vld [vmem:[%s27494_s3 + $0x58] sm:$0xff]  }
  0x7e   : > { %17484 = vmatprep.mubr.msk.bf16.mxu0 %vm785_vm0, %v19945_v26  ;;  %17545 = vmatpush3.bf16.msra.mxu1 %v19979_v25 }
  0x7f   : > { %17546 = vmatprep.subr.bf16.mxu1 %v27504_v7 }
  0x85   : > { %17485 = vmatmul.mubr.msk.bf16.gmra.mxu0 %vm785_vm0, %v19946_v27 }
  0x86   : > { %17488 = vmatprep.mubr.msk.bf16.mxu0 %vm785_vm0, %v19947_v28 }
  0x8d   : > { %17489 = vmatmul.mubr.msk.bf16.gmra.mxu0 %vm785_vm0, %v19948_v29  ;;  %v19980_v29 = vld [vmem:[%s27494_s3 + $0x158] sm:$0xff]  }
  0x8e   : > { %17492 = vmatprep.mubr.msk.bf16.mxu0 %vm785_vm0, %v19949_v30  ;;  %v19981_v30 = vld [vmem:[%s27494_s3 + $0x50] sm:$0xff]   ;;  %17725 = vmatpush3.bf16.msra.mxu0 %v19980_v29 }
  0x8f   : > { %17547 = vmatpush3.bf16.msra.mxu1 %v19981_v30  ;;  %17726 = vmatprep.subr.bf16.mxu0 %v27504_v7 }
  0x90   : > { %17548 = vmatprep.subr.bf16.mxu1 %v27504_v7 }
  0x95   : > { %17493 = vmatmul.mubr.msk.bf16.gmra.mxu0 %vm785_vm0, %v19950_v31 }
  0x96   : > { %17496 = vmatprep.mubr.msk.bf16.mxu0 %vm785_vm0, %v19951_v32 }
  0x9d   : > { %17497 = vmatmul.mubr.msk.bf16.gmra.mxu0 %vm785_vm0, %v19952_v33 }
  0x9e   : > { %17500 = vmatprep.mubr.msk.bf16.mxu0 %vm785_vm0, %v19953_v34 }
  0xa5   : > { %17501 = vmatmul.mubr.msk.bf16.gmra.mxu0 %vm785_vm0, %v19954_v35  ;;  %v19982_v35 = vld [vmem:[%s27494_s3 + $0x150] sm:$0xff]  }
  0xa6   : > { %17504 = vmatprep.mubr.msk.bf16.mxu0 %vm785_vm0, %v19955_v36  ;;  %17727 = vmatpush3.bf16.msra.mxu0 %v19982_v35 }
  0xa7   : > { %17728 = vmatprep.subr.bf16.mxu0 %v27504_v7 }
  0xad   : > { %17505 = vmatmul.mubr.msk.bf16.gmra.mxu0 %vm785_vm0, %v19956_v37  ;;  %v19983_v37 = vld [vmem:[%s27494_s3 + $0x48] sm:$0xff]  }
  0xae   : > { %17508 = vmatprep.mubr.msk.bf16.mxu0 %vm785_vm0, %v19957_v38  ;;  %17549 = vmatpush3.bf16.msra.mxu1 %v19983_v37 }
  0xaf   : > { %17550 = vmatprep.subr.bf16.mxu1 %v27504_v7 }
  0xb5   : > { %17509 = vmatmul.mubr.msk.bf16.gmra.mxu0 %vm785_vm0, %v19958_v39 }
  0xb6   : > { %17512 = vmatprep.mubr.msk.bf16.mxu0 %vm785_vm0, %v19959_v40 }
  0xbd   : > { %17513 = vmatmul.mubr.msk.bf16.gmra.mxu0 %vm785_vm0, %v19960_v41  ;;  %v19984_v41 = vld [vmem:[%s27494_s3 + $0x148] sm:$0xff]  }
  0xbe   : > { %17516 = vmatprep.mubr.msk.bf16.mxu0 %vm785_vm0, %v19961_v42  ;;  %v19985_v42 = vld [vmem:[%s27494_s3 + $0x40] sm:$0xff]   ;;  %17729 = vmatpush3.bf16.msra.mxu0 %v19984_v41 }
  0xbf   : > { %17551 = vmatpush3.bf16.msra.mxu1 %v19985_v42  ;;  %17730 = vmatprep.subr.bf16.mxu0 %v27504_v7 }
  0xc0   : > { %17572 = vmatprep.subr.bf16.mxu1 %v27504_v7 }
  0xc5   : > { %17517 = vmatmul.mubr.msk.bf16.gmra.mxu0 %vm785_vm0, %v19962_v43 }
  0xc6   : > { %17520 = vmatprep.mubr.msk.bf16.mxu0 %vm785_vm0, %v19963_v44 }
  0xcd   : > { %17521 = vmatmul.mubr.msk.bf16.gmra.mxu0 %vm785_vm0, %v19964_v45 }
  0xce   : > { %17524 = vmatprep.mubr.msk.bf16.mxu0 %vm785_vm0, %v19965_v46 }
  0xd5   : > { %17525 = vmatmul.mubr.msk.bf16.gmra.mxu0 %vm785_vm0, %v19966_v47  ;;  %v19986_v47 = vld [vmem:[%s27494_s3 + $0x140] sm:$0xff]  }
  0xd6   : > { %17528 = vmatprep.mubr.msk.bf16.mxu0 %vm785_vm0, %v19967_v48  ;;  %17731 = vmatpush3.bf16.msra.mxu0 %v19986_v47 }
  0xd7   : > { %17788 = vmatprep.subr.bf16.mxu0 %v27504_v7 }
  0xdd   : > { %17529 = vmatmul.mubr.msk.bf16.gmra.mxu0 %vm785_vm0, %v19968_v49 }
  0xde   : > { %17532 = vmatprep.mubr.msk.bf16.mxu0 %vm785_vm0, %v19969_v50 }
  0xe5   : > { %v17438_v52 = vpop.f32.mrf.mxu0  ;;  %17533 = vmatmul.mubr.msk.bf16.gmra.mxu0 %vm785_vm0, %v19970_v51 }
  0xe6   : > { %v979_v22 = vadd.f32 %v17438_v52, %v21380_v17  ;;  %17732 = vmatprep.mubr.msk.bf16.mxu0 %vm21083_vm1, %v27504_v7 }
  0xe7   : > { %v21312_v53 = vpop.f32.mrf.mxu0 }
  0xe8   : > { %20745 = vtanh.f32 %v979_v22 }
  0xe9   : > { %v21314_v54 = vpop.f32.mrf.mxu0 }
  0xea   : > { %v982_v31 = vadd.f32 %v21314_v54, %v21380_v17 }
  0xeb   : > { %v21316_v55 = vpop.f32.mrf.mxu0 }
  0xed   : > { %v21318_v56 = vpop.f32.mrf.mxu0 }
  0xee   : > { %v995_v33 = vadd.f32 %v21318_v56, %v21380_v17 }
  0xef   : > { %v21320_v57 = vpop.f32.mrf.mxu0 }
  0xf1   : > { %v21322_v58 = vpop.f32.mrf.mxu0 }
  0xf2   : > { %v998_v43 = vadd.f32 %v21322_v58, %v21380_v17 }
  0xf3   : > { %v21324_v59 = vpop.f32.mrf.mxu0 }
  0xf5   : > { %v21326_v60 = vpop.f32.mrf.mxu0  ;;  %v20746_v48 = vpop.eup %20745 }
  0xf6   : > { %v1011_v45 = vadd.f32 %v21326_v60, %v21380_v17 }
  0xf7   : > { %v21328_v61 = vpop.f32.mrf.mxu0 }
  0xf9   : > { %v21330_v62 = vpop.f32.mrf.mxu0 }
  0xfa   : > { %v1014_v58 = vadd.f32 %v21330_v62, %v21380_v17 }
  0xfb   : > { %v21332_v63 = vpop.f32.mrf.mxu0 }
  0xfd   : > { %v21334_v0 = vpop.f32.mrf.mxu0 }
  0xfe   : > { %v1027_v11 = vadd.f32 %v21334_v0, %v21380_v17 }
  0xff   : > { %v21336_v1 = vpop.f32.mrf.mxu0 }
 0x101   : > { %v21338_v2 = vpop.f32.mrf.mxu0 }
 0x102   : > { %v1030_v0 = vadd.f32 %v21338_v2, %v21380_v17 }
 0x103   : > { %v21340_v3 = vpop.f32.mrf.mxu0 }
 0x105   : > { %v21342_v4 = vpop.f32.mrf.mxu0 }
 0x107   : > { %v21344_v5 = vpop.f32.mrf.mxu0 }
 0x109   : > { %v21351_v8 = vpop.f32.mrf.mxu0 }
 0x10b   : > { %v21357_v10 = vpop.f32.mrf.mxu0 }
 0x10d   : > { %v21362_v12 = vpop.f32.mrf.mxu0 }
 0x10f   : > { %v21369_v14 = vpop.f32.mrf.mxu0 }
 0x111   : > { %v21374_v16 = vpop.f32.mrf.mxu0 }
 0x113   : > { %v21383_v18 = vpop.f32.mrf.mxu0 }
 0x115   : > { %v21391_v21 = vpop.f32.mrf.mxu0 }
 0x117   : > { %v21395_v23 = vpop.f32.mrf.mxu0 }
 0x119   : > { %v17463_v26 = vpop.f32.mrf.mxu0 }
 0x11a   : > { %v1078_v27 = vadd.f32 %v17463_v26, %v21380_v17 }
 0x11b   : > { %v21406_v28 = vpop.f32.mrf.mxu0 }
 0x11c   : > { %20747 = vtanh.f32 %v1078_v27 }
 0x11d   : > { %v21417_v32 = vpop.f32.mrf.mxu0  ;;  %20749 = vtanh.f32 %v982_v31  ;;  %v1043_v31 = vadd.f32 %v21342_v4, %v21380_v17  ;;  %v1046_v4 = vadd.f32 %v21351_v8, %v21380_v17 }
 0x11f   : > { %v1082_v34 = vpop.f32.mrf.mxu0 }
 0x120   : > { %v1083_v36 = vadd.f32 %v21380_v17, %v1082_v34 }
 0x121   : > { %v17467_v38 = vpop.f32.mrf.mxu0 }
 0x122   : > { %20751 = vtanh.f32 %v1083_v36  ;;  %v1094_v39 = vadd.f32 %v17467_v38, %v21380_v17 }
 0x123   : > { %20753 = vtanh.f32 %v995_v33  ;;  %v21432_v40 = vpop.f32.mrf.mxu0 }
 0x124   : > { %20755 = vtanh.f32 %v1094_v39 }
 0x125   : > { %v21443_v44 = vpop.f32.mrf.mxu0  ;;  %20757 = vtanh.f32 %v998_v43 }
 0x127   : > { %v1098_v46 = vpop.f32.mrf.mxu0 }
 0x128   : > { %v1099_v49 = vadd.f32 %v21380_v17, %v1098_v46  ;;  %v1059_v46 = vadd.f32 %v21362_v12, %v21380_v17  ;;  %v1062_v12 = vadd.f32 %v21374_v16, %v21380_v17 }
 0x129   : > { %v20748_v50 = vpop.eup %20747  ;;  %v17471_v51 = vpop.f32.mrf.mxu0 }
 0x12a   : > { %v21457_v52 = vadd.f32 %v20748_v50, %v20746_v48  ;;  %20759 = vtanh.f32 %v1099_v49  ;;  %v1110_v54 = vadd.f32 %v17471_v51, %v21380_v17  ;;  %v20750_v6 = vpop.eup %20749 }
 0x12b   : > { %20761 = vtanh.f32 %v1011_v45  ;;  %v21461_v56 = vpop.f32.mrf.mxu0 }
 0x12c   : > { %20763 = vtanh.f32 %v1110_v54 }
 0x12d   : > { %v21465_v60 = vpop.f32.mrf.mxu0  ;;  %20765 = vtanh.f32 %v1014_v58 }
 0x12f   : > { %v20752_v9 = vpop.eup %20751  ;;  %v1114_v13 = vpop.f32.mrf.mxu0 }
 0x130   : > { %v20754_v15 = vpop.eup %20753  ;;  %v21469_v19 = vadd.f32 %v20752_v9, %v20750_v6  ;;  %v1115_v20 = vadd.f32 %v21380_v17, %v1114_v13 }
 0x131   : > { %v20756_v22 = vpop.eup %20755  ;;  %v17475_v24 = vpop.f32.mrf.mxu0 }
 0x132   : > { %v21472_v25 = vadd.f32 %v20756_v22, %v20754_v15  ;;  %20767 = vtanh.f32 %v1115_v20  ;;  %v1126_v62 = vadd.f32 %v17475_v24, %v21380_v17  ;;  %v20758_v29 = vpop.eup %20757 }
 0x133   : > { %20769 = vtanh.f32 %v1027_v11  ;;  %v21475_v26 = vpop.f32.mrf.mxu0 }
 0x134   : > { %20771 = vtanh.f32 %v1126_v62 }
 0x135   : > { %v21479_v27 = vpop.f32.mrf.mxu0  ;;  %20773 = vtanh.f32 %v1030_v0 }
 0x137   : > { %v20760_v30 = vpop.eup %20759  ;;  %v1130_v33 = vpop.f32.mrf.mxu0 }
 0x138   : > { %v20762_v34 = vpop.eup %20761  ;;  %v21483_v35 = vadd.f32 %v20760_v30, %v20758_v29  ;;  %v1131_v36 = vadd.f32 %v21380_v17, %v1130_v33 }
 0x139   : > { %v20764_v37 = vpop.eup %20763  ;;  %v17479_v38 = vpop.f32.mrf.mxu0 }
 0x13a   : > { %v21486_v39 = vadd.f32 %v20764_v37, %v20762_v34  ;;  %20775 = vtanh.f32 %v1131_v36  ;;  %v1142_v2 = vadd.f32 %v17479_v38, %v21380_v17  ;;  %v20766_v43 = vpop.eup %20765 }
 0x13b   : > { %20777 = vtanh.f32 %v1043_v31  ;;  %v21489_v41 = vpop.f32.mrf.mxu0 }
 0x13c   : > { %20779 = vtanh.f32 %v1142_v2 }
 0x13d   : > { %v21493_v42 = vpop.f32.mrf.mxu0  ;;  %20781 = vtanh.f32 %v1046_v4 }
 0x13f   : > { %v20768_v45 = vpop.eup %20767  ;;  %v1146_v47 = vpop.f32.mrf.mxu0 }
 0x140   : > { %v20770_v48 = vpop.eup %20769  ;;  %v21497_v49 = vadd.f32 %v20768_v45, %v20766_v43  ;;  %v1147_v50 = vadd.f32 %v21380_v17, %v1146_v47 }
 0x141   : > { %v20772_v51 = vpop.eup %20771  ;;  %v17483_v54 = vpop.f32.mrf.mxu0 }
 0x142   : > { %v21500_v58 = vadd.f32 %v20772_v51, %v20770_v48  ;;  %20783 = vtanh.f32 %v1147_v50  ;;  %v1158_v8 = vadd.f32 %v17483_v54, %v21380_v17  ;;  %v20774_v11 = vpop.eup %20773  ;;  %v971_v50 = vadd.f32 %v21380_v17, %v21312_v53 }
 0x143   : > { %20785 = vtanh.f32 %v1059_v46  ;;  %v21503_v6 = vpop.f32.mrf.mxu0  ;;  %v974_v54 = vadd.f32 %v21380_v17, %v21316_v55  ;;  %v1006_v53 = vadd.f32 %v21380_v17, %v21332_v63  ;;  %v1019_v55 = vadd.f32 %v21380_v17, %v21336_v1 }
 0x144   : > { %20787 = vtanh.f32 %v1158_v8  ;;  %v1038_v63 = vadd.f32 %v21380_v17, %v21357_v10  ;;  %v1051_v1 = vadd.f32 %v21380_v17, %v21369_v14  ;;  %v1067_v10 = vadd.f32 %v21380_v17, %v21395_v23 }
 0x145   : > { %v21507_v9 = vpop.f32.mrf.mxu0  ;;  %20789 = vtanh.f32 %v1062_v12  ;;  %v987_v12 = vadd.f32 %v21380_v17, %v21320_v57  ;;  %v1022_v57 = vadd.f32 %v21380_v17, %v21340_v3  ;;  %v1054_v3 = vadd.f32 %v21380_v17, %v21383_v18 }
 0x146   : > { %v1070_v14 = vadd.f32 %v21380_v17, %v21406_v28  ;;  %v1091_v18 = vadd.f32 %v21417_v32, %v21380_v17  ;;  %v1107_v23 = vadd.f32 %v21443_v44, %v21380_v17  ;;  %v1102_v28 = vadd.f32 %v21380_v17, %v21461_v56 }
 0x147   : > { %v20776_v13 = vpop.eup %20775  ;;  %v1162_v15 = vpop.f32.mrf.mxu0  ;;  %v1118_v44 = vadd.f32 %v21380_v17, %v21475_v26  ;;  %v1139_v56 = vadd.f32 %v21479_v27, %v21380_v17  ;;  %v1155_v26 = vadd.f32 %v21493_v42, %v21380_v17  ;;  %v1150_v27 = vadd.f32 %v21380_v17, %v21503_v6 }
 0x148   : > { %v20778_v20 = vpop.eup %20777  ;;  %v21509_v22 = vadd.f32 %v20776_v13, %v20774_v11  ;;  %v1163_v24 = vadd.f32 %v21380_v17, %v1162_v15  ;;  %v990_v11 = vadd.f32 %v21380_v17, %v21324_v59  ;;  %v1003_v15 = vadd.f32 %v21380_v17, %v21328_v61 }
 0x149   : > { %v20780_v62 = vpop.eup %20779  ;;  %v21512_v0 = vpop.f32.mrf.mxu0  ;;  %v1035_v61 = vadd.f32 %v21380_v17, %v21344_v5  ;;  %v1075_v5 = vadd.f32 %v21391_v21, %v21380_v17  ;;  %v1086_v21 = vadd.f32 %v21380_v17, %v21432_v40  ;;  %v1123_v40 = vadd.f32 %v21465_v60, %v21380_v17 }
 0x14a   : > { %v21514_v29 = vadd.f32 %v20780_v62, %v20778_v20  ;;  %20791 = vtanh.f32 %v1163_v24  ;;  %v20782_v31 = vpop.eup %20781  ;;  %v1134_v60 = vadd.f32 %v21380_v17, %v21489_v41  ;;  %v1171_v41 = vadd.f32 %v21507_v9, %v21380_v17 }
 0x14b   : > { %v21516_v30 = vpop.f32.mrf.mxu0  ;;  %20793 = vtanh.f32 %v971_v50  ;;  %v1174_v42 = vadd.f32 %v21512_v0, %v21380_v17 }
 0x14c   : > { %27609 = vst [vmem:[#allocation8_spill] sm:$0xff] %v21514_v29  ;;  %20795 = vtanh.f32 %v974_v54  ;;  %v1166_v6 = vadd.f32 %v21380_v17, %v21516_v30 }
 0x14d   : > { %v21518_v16 = vpop.f32.mrf.mxu0  ;;  %20797 = vtanh.f32 %v987_v12 }
 0x14e   : > { %20799 = vtanh.f32 %v990_v11  ;;  %v1187_v9 = vadd.f32 %v21518_v16, %v21380_v17 }
 0x14f   : > { %v20784_v33 = vpop.eup %20783  ;;  %v21520_v34 = vpop.f32.mrf.mxu0  ;;  %20801 = vtanh.f32 %v1003_v15 }
 0x150   : > { %v20786_v36 = vpop.eup %20785  ;;  %v21522_v37 = vadd.f32 %v20784_v33, %v20782_v31  ;;  %20803 = vtanh.f32 %v1006_v53  ;;  %v1179_v0 = vadd.f32 %v21380_v17, %v21520_v34 }
 0x151   : > { %v20788_v38 = vpop.eup %20787  ;;  %v21524_v2 = vpop.f32.mrf.mxu0  ;;  %20805 = vtanh.f32 %v1019_v55 }
 0x152   : > { %27610 = vst [vmem:[#allocation9_spill] sm:$0xff] %v21522_v37  ;;  %v21526_v4 = vadd.f32 %v20788_v38, %v20786_v36  ;;  %v20790_v46 = vpop.eup %20789  ;;  %20807 = vtanh.f32 %v1022_v57  ;;  %v1190_v30 = vadd.f32 %v21524_v2, %v21380_v17  ;;  %v21671_v2 = vld [vmem:[%s27493_s2] ss:$0 sm:$0xff] }
 0x153   : > { %v21528_v43 = vpop.f32.mrf.mxu0  ;;  %20809 = vtanh.f32 %v1035_v61 }
 0x154   : > { %27611 = vst [vmem:[#allocation10_spill] sm:$0xff] %v21526_v4  ;;  %20811 = vtanh.f32 %v1038_v63  ;;  %v1182_v16 = vadd.f32 %v21380_v17, %v21528_v43 }
 0x155   : > { %v21530_v45 = vpop.f32.mrf.mxu0  ;;  %20813 = vtanh.f32 %v1051_v1 }
 0x156   : > { %20815 = vtanh.f32 %v1054_v3  ;;  %v1203_v34 = vadd.f32 %v21530_v45, %v21380_v17 }
 0x157   : > { %v20792_v47 = vpop.eup %20791  ;;  %v21532_v48 = vpop.f32.mrf.mxu0  ;;  %20817 = vtanh.f32 %v1075_v5 }
 0x158   : > { %v21536_v51 = vadd.f32 %v20792_v47, %v20790_v46  ;;  %v21586_v36 = vpop.eup %20793  ;;  %20819 = vtanh.f32 %v1067_v10 }
 0x159   : > { %v21540_v8 = vpop.f32.mrf.mxu0  ;;  %v21592_v46 = vpop.eup %20795  ;;  %20821 = vtanh.f32 %v1070_v14 }
 0x15a   : > { %27612 = vst [vmem:[#allocation11_spill] sm:$0xff] %v21536_v51  ;;  %v21596_v32 = vpop.eup %20797  ;;  %20823 = vtanh.f32 %v1091_v18  ;;  %v1206_v17 = vadd.f32 %v21671_v2, %v21540_v8 }
 0x15b   : > { %v21546_v13 = vpop.f32.mrf.mxu0  ;;  %v21602_v50 = vpop.eup %20799  ;;  %20825 = vtanh.f32 %v1086_v21 }
 0x15c   : > { %v21606_v54 = vpop.eup %20801  ;;  %20827 = vtanh.f32 %v1107_v23 }
 0x15d   : > { %v21552_v20 = vpop.f32.mrf.mxu0  ;;  %v21612_v11 = vpop.eup %20803  ;;  %20829 = vtanh.f32 %v1102_v28 }
 0x15e   : > { %v21616_v15 = vpop.eup %20805  ;;  %20831 = vtanh.f32 %v1123_v40  ;;  %v1219_v8 = vadd.f32 %v21671_v2, %v21552_v20 }
 0x15f   : > { %v21558_v59 = vpop.f32.mrf.mxu0  ;;  %v21622_v55 = vpop.eup %20807  ;;  %20833 = vtanh.f32 %v1118_v44  ;;  %v1195_v44 = vadd.f32 %v21671_v2, %v21532_v48  ;;  %v1198_v48 = vadd.f32 %v21671_v2, %v21546_v13 }
 0x160   : > { %v21626_v57 = vpop.eup %20809  ;;  %20835 = vtanh.f32 %v1139_v56 }
 0x161   : > { %v21564_v24 = vpop.f32.mrf.mxu0  ;;  %v21632_v63 = vpop.eup %20811  ;;  %20837 = vtanh.f32 %v1134_v60 }
 0x162   : > { %v21636_v1 = vpop.eup %20813  ;;  %20839 = vtanh.f32 %v1155_v26  ;;  %v1222_v20 = vadd.f32 %v21671_v2, %v21564_v24 }
 0x163   : > { %v21570_v62 = vpop.f32.mrf.mxu0  ;;  %v21642_v5 = vpop.eup %20815  ;;  %20841 = vtanh.f32 %v1150_v27 }
 0x164   : > { %v21646_v10 = vpop.eup %20817  ;;  %20843 = vtanh.f32 %v1171_v41 }
 0x165   : > { %v21576_v31 = vpop.f32.mrf.mxu0  ;;  %v21652_v18 = vpop.eup %20819  ;;  %20845 = vtanh.f32 %v1174_v42 }
 0x166   : > { %27613 = vst [vmem:[#allocation12_spill] sm:$0xff] %v21652_v18  ;;  %v21656_v21 = vpop.eup %20821  ;;  %20847 = vtanh.f32 %v1166_v6  ;;  %v1235_v24 = vadd.f32 %v21671_v2, %v21576_v31 }
 0x167   : > { %v21582_v33 = vpop.f32.mrf.mxu0  ;;  %v21662_v28 = vpop.eup %20823  ;;  %20849 = vtanh.f32 %v1187_v9 }
 0x168   : > { %v21666_v40 = vpop.eup %20825  ;;  %20851 = vtanh.f32 %v1179_v0 }
 0x169   : > { %v21590_v38 = vpop.f32.mrf.mxu0  ;;  %v21675_v56 = vpop.eup %20827  ;;  %20853 = vtanh.f32 %v1190_v30 }
 0x16a   : > { %v21678_v26 = vpop.eup %20829  ;;  %20855 = vtanh.f32 %v1182_v16 }
 0x16b   : > { %v21600_v47 = vpop.f32.mrf.mxu0  ;;  %v21684_v27 = vpop.eup %20831  ;;  %20857 = vtanh.f32 %v1203_v34  ;;  %v1211_v34 = vadd.f32 %v21671_v2, %v21558_v59  ;;  %v1214_v59 = vadd.f32 %v21671_v2, %v21570_v62 }
 0x16c   : > { %v21686_v41 = vpop.eup %20833  ;;  %20859 = vtanh.f32 %v1195_v44 }
 0x16d   : > { %v21610_v12 = vpop.f32.mrf.mxu0  ;;  %v21690_v6 = vpop.eup %20835 }
 0x16e   : > { %v21693_v0 = vpop.eup %20837 }
 0x16f   : > { %v21620_v53 = vpop.f32.mrf.mxu0  ;;  %v21697_v16 = vpop.eup %20839 }
 0x170   : > { %v21702_v44 = vpop.eup %20841 }
 0x171   : > { %v21630_v61 = vpop.f32.mrf.mxu0 }
 0x173   : > { %v21640_v3 = vpop.f32.mrf.mxu0 }
 0x175   : > { %v21650_v14 = vpop.f32.mrf.mxu0 }
 0x177   : > { %v21660_v23 = vpop.f32.mrf.mxu0 }
 0x179   : > { %v17511_v43 = vpop.f32.mrf.mxu0 }
 0x17a   : > { %v1270_v60 = vadd.f32 %v21671_v2, %v17511_v43 }
 0x17b   : > { %v21682_v45 = vpop.f32.mrf.mxu0 }
 0x17c   : > { %20861 = vtanh.f32 %v1270_v60  ;;  %v20844_v60 = vpop.eup %20843 }
 0x17d   : > { %v17514_v42 = vpop.f32.mrf.mxu0  ;;  %20863 = vtanh.f32 %v1206_v17 }
 0x17e   : > { %v1283_v9 = vadd.f32 %v21671_v2, %v17514_v42  ;;  %v20846_v42 = vpop.eup %20845 }
 0x17f   : > { %v1274_v30 = vpop.f32.mrf.mxu0  ;;  %v21707_v51 = vpop.eup %20847 }
 0x180   : > { %20865 = vtanh.f32 %v1283_v9  ;;  %v1275_v13 = vadd.f32 %v21671_v2, %v1274_v30  ;;  %27614 = vst [vmem:[#allocation13_spill] sm:$0xff] %v21707_v51  ;;  %v1230_v51 = vadd.f32 %v21671_v2, %v21600_v47 }
 0x181   : > { %20867 = vtanh.f32 %v1198_v48  ;;  %v17515_v43 = vpop.f32.mrf.mxu0  ;;  %v21712_v48 = vpop.eup %20849 }
 0x182   : > { %20869 = vtanh.f32 %v1275_v13  ;;  %v1286_v17 = vadd.f32 %v21671_v2, %v17515_v43  ;;  %v20852_v13 = vpop.eup %20851 }
 0x183   : > { %20871 = vtanh.f32 %v1219_v8  ;;  %v1277_v7 = vpop.f32.mrf.mxu0  ;;  %v21715_v43 = vpop.eup %20853 }
 0x184   : > { %20873 = vtanh.f32 %v1211_v34  ;;  %v1278_v9 = vadd.f32 %v21671_v2, %v1277_v7  ;;  %v20856_v4 = vpop.eup %20855  ;;  %v1227_v7 = vadd.f32 %v21671_v2, %v21582_v33  ;;  %v1238_v33 = vadd.f32 %v21671_v2, %v21590_v38 }
 0x185   : > { %20875 = vtanh.f32 %v1286_v17  ;;  %v17518_v30 = vpop.f32.mrf.mxu0  ;;  %v21722_v17 = vpop.eup %20857  ;;  %v1497_v38 = vadd.f32 %v20856_v4, %v21469_v19  ;;  %v1473_v19 = vadd.f32 %v21666_v40, %v21596_v32  ;;  %v1496_v4 = vadd.f32 %v20852_v13, %v21457_v52 }
 0x186   : > { %20877 = vtanh.f32 %v1278_v9  ;;  %v1299_v8 = vadd.f32 %v21671_v2, %v17518_v30  ;;  %v21724_v37 = vpop.eup %20859  ;;  %v1477_v32 = vadd.f32 %v21678_v26, %v21606_v54  ;;  %v1246_v54 = vadd.f32 %v21671_v2, %v21640_v3 }
 0x187   : > { %20879 = vtanh.f32 %v1222_v20  ;;  %v1290_v34 = vpop.f32.mrf.mxu0  ;;  %v1469_v20 = vadd.f32 %v21656_v21, %v21586_v36  ;;  %v1498_v52 = vadd.f32 %v21712_v48, %v1473_v19 }
 0x188   : > { %20881 = vtanh.f32 %v1214_v59  ;;  %v1291_v62 = vadd.f32 %v21671_v2, %v1290_v34  ;;  %v1470_v59 = vadd.f32 %v21646_v10, %v21592_v46 }
 0x189   : > { %20883 = vtanh.f32 %v1299_v8  ;;  %v17519_v9 = vpop.f32.mrf.mxu0  ;;  %v20862_v30 = vpop.eup %20861  ;;  %v1494_v8 = vadd.f32 %v20844_v60, %v1469_v20  ;;  %v1474_v60 = vadd.f32 %v21662_v28, %v21602_v50  ;;  %v1243_v50 = vadd.f32 %v21671_v2, %v21620_v53 }
 0x18a   : > { %20885 = vtanh.f32 %v1291_v62  ;;  %v1302_v31 = vadd.f32 %v21671_v2, %v17519_v9  ;;  %v21733_v29 = vpop.eup %20863  ;;  %v1251_v62 = vadd.f32 %v21671_v2, %v21610_v12  ;;  %v1254_v53 = vadd.f32 %v21671_v2, %v21630_v61 }
 0x18b   : > { %20887 = vtanh.f32 %v1235_v24  ;;  %v1293_v34 = vpop.f32.mrf.mxu0  ;;  %v1495_v24 = vadd.f32 %v20846_v42, %v1470_v59  ;;  %v1519_v9 = vadd.f32 %v20862_v30, %v1494_v8  ;;  %v1478_v8 = vadd.f32 %v21675_v56, %v21612_v11 }
 0x18c   : > { %20889 = vtanh.f32 %v1227_v7  ;;  %v1294_v36 = vadd.f32 %v21671_v2, %v1293_v34 }
 0x18d   : > { %v20866_v21 = vpop.eup %20865  ;;  %20891 = vtanh.f32 %v1302_v31  ;;  %v17522_v46 = vpop.f32.mrf.mxu0  ;;  %v1544_v59 = vmul.f32 0.25, %v1519_v9 }
 0x18e   : > { %v20868_v10 = vpop.eup %20867  ;;  %20893 = vtanh.f32 %v1294_v36  ;;  %v1315_v47 = vadd.f32 %v21671_v2, %v17522_v46  ;;  %v1522_v12 = vadd.f32 %v20866_v21, %v1497_v38 }
 0x18f   : > { %v20870_v18 = vpop.eup %20869  ;;  %20895 = vtanh.f32 %v1238_v33  ;;  %v1306_v7 = vpop.f32.mrf.mxu0  ;;  %v1501_v3 = vadd.f32 %v20868_v10, %v21483_v35 }
 0x190   : > { %v21744_v20 = vpop.eup %20871  ;;  %20897 = vtanh.f32 %v1230_v51  ;;  %v1520_v31 = vadd.f32 %v20870_v18, %v1495_v24  ;;  %v1307_v34 = vadd.f32 %v21671_v2, %v1306_v7  ;;  %v1547_v36 = vmul.f32 0.25, %v1522_v12 }
 0x191   : > { %v21747_v42 = vpop.eup %20873  ;;  %20899 = vtanh.f32 %v1251_v62  ;;  %v17523_v28 = vpop.f32.mrf.mxu0  ;;  %v1499_v24 = vadd.f32 %v21715_v43, %v1474_v60  ;;  %v1481_v43 = vadd.f32 %v21686_v41, %v21616_v15  ;;  %v1267_v12 = vadd.f32 %v21671_v2, %v21650_v14 }
 0x192   : > { %v20876_v30 = vpop.eup %20875  ;;  %v1545_v33 = vmul.f32 0.25, %v1520_v31  ;;  %20901 = vtanh.f32 %v1307_v34  ;;  %v1318_v51 = vadd.f32 %v21671_v2, %v17523_v28  ;;  %v21790_v28 = vadd.f32 %v21690_v6, %v21632_v63 }
 0x193   : > { %v20878_v18 = vpop.eup %20877  ;;  %20903 = vtanh.f32 %v1315_v47  ;;  %v1309_v40 = vpop.f32.mrf.mxu0  ;;  %v1523_v48 = vadd.f32 %v20876_v30, %v1498_v52  ;;  %v21773_v47 = vadd.f32 %v21684_v27, %v21622_v55  ;;  %v1500_v55 = vadd.f32 %v21724_v37, %v21472_v25 }
 0x194   : > { %v21760_v13 = vpop.eup %20879  ;;  %v16361_v21 = vpack.c.bf16 %v1545_v33, %v1544_v59  ;;  %v1521_v62 = vadd.f32 %v20878_v18, %v1496_v4  ;;  %20905 = vtanh.f32 %v1243_v50  ;;  %v1310_v11 = vadd.f32 %v21671_v2, %v1309_v40 }
 0x195   : > { %v21764_v46 = vpop.eup %20881  ;;  %v17526_v56 = vpop.f32.mrf.mxu0  ;;  %20907 = vtanh.f32 %v1318_v51  ;;  %v1548_v10 = vmul.f32 0.25, %v1523_v48  ;;  %v1502_v30 = vadd.f32 %v21722_v17, %v1477_v32  ;;  %v1503_v25 = vadd.f32 %v21733_v29, %v1478_v8 }
 0x196   : > { %v20884_v26 = vpop.eup %20883  ;;  %16362 = vst [vmem:[#allocation2] sm:$0xff] %v16361_v21   ;;  %v1546_v38 = vmul.f32 0.25, %v1521_v62  ;;  %v1331_v61 = vadd.f32 %v21671_v2, %v17526_v56  ;;  %20909 = vtanh.f32 %v1310_v11  ;;  %v1259_v33 = vadd.f32 %v21671_v2, %v21660_v23 }
 0x197   : > { %v20886_v9 = vpop.eup %20885  ;;  %v1322_v60 = vpop.f32.mrf.mxu0  ;;  %20911 = vtanh.f32 %v1254_v53  ;;  %v1526_v27 = vadd.f32 %v20884_v26, %v1501_v3  ;;  %v1262_v63 = vadd.f32 %v21671_v2, %v21682_v45  ;;  %v21813_v62 = vadd.f32 %v21693_v0, %v21626_v57 }
 0x198   : > { %v21778_v7 = vpop.eup %20887  ;;  %v16366_v31 = vpack.c.bf16 %v1547_v36, %v1546_v38  ;;  %v1524_v34 = vadd.f32 %v20886_v9, %v1499_v24  ;;  %20913 = vtanh.f32 %v1246_v54  ;;  %v1323_v15 = vadd.f32 %v21671_v2, %v1322_v60 }
 0x199   : > { %v21782_v19 = vpop.eup %20889  ;;  %v17527_v35 = vpop.f32.mrf.mxu0  ;;  %20915 = vtanh.f32 %v1331_v61  ;;  %v1551_v6 = vmul.f32 0.25, %v1526_v27  ;;  %v21817_v24 = vadd.f32 %v21697_v16, %v21642_v5  ;;  %v1506_v54 = vadd.f32 %v21744_v20, %v1481_v43 }
 0x19a   : > { %v20892_v41 = vpop.eup %20891  ;;  %16468 = vst [vmem:[#allocation2 + $0x8] sm:$0xff] %v16366_v31   ;;  %v1549_v4 = vmul.f32 0.25, %v1524_v34  ;;  %v1334_v50 = vadd.f32 %v21671_v2, %v17527_v35  ;;  %20917 = vtanh.f32 %v1323_v15  ;;  %v1504_v26 = vadd.f32 %v21747_v42, %v21486_v39 }
 0x19b   : > { %v20894_v14 = vpop.eup %20893  ;;  %v1325_v37 = vpop.f32.mrf.mxu0  ;;  %20919 = vtanh.f32 %v1267_v12  ;;  %v1527_v40 = vadd.f32 %v20892_v41, %v1502_v30  ;;  %v1505_v57 = vadd.f32 %v21764_v46, %v21497_v49  ;;  %v1507_v49 = vadd.f32 %v21760_v13, %v21773_v47 }
 0x19c   : > { %v21794_v59 = vpop.eup %20895  ;;  %v16371_v51 = vpack.c.bf16 %v1549_v4, %v1548_v10  ;;  %v1525_v18 = vadd.f32 %v20894_v14, %v1500_v55  ;;  %v1326_v17 = vadd.f32 %v21671_v2, %v1325_v37  ;;  %20921 = vtanh.f32 %v1334_v50 }
 0x19d   : > { %v21798_v52 = vpop.eup %20897  ;;  %v17530_v29 = vpop.f32.mrf.mxu0  ;;  %v1696_v8 = vld [vmem:[#allocation2] sm:$0xf]  ;;  %v21803_v32 = vld [vmem:[#allocation2 + $0x4] sm:$0xf]  ;;  %v1552_v0 = vmul.f32 0.25, %v1527_v40 }
 0x19e   : > { %v21805_v53 = vpop.eup %20899  ;;  %16469 = vst [vmem:[#allocation2 + $0x10] sm:$0xff] %v16371_v51   ;;  %v1550_v36 = vmul.f32 0.25, %v1525_v18  ;;  %v1347_v23 = vadd.f32 %v21671_v2, %v17530_v29  ;;  %v21809_v21 = vcombine.low %v1696_v8, %v21803_v32  ;;  %20923 = vtanh.f32 %v1326_v17  ;;  %v2570_v31 = vld [vmem:[#allocation2 + $0x4] sm:$0x8]  ;;  %v19992_v29 = vld [vmem:[%s27494_s3 + $0x38] sm:$0xff]  }
 0x19f   : > { %v20902_v45 = vpop.eup %20901  ;;  %v1338_v11 = vpop.f32.mrf.mxu0  ;;  %20925 = vtanh.f32 %v1259_v33 }
 0x1a0   : > { %v20904_v56 = vpop.eup %20903  ;;  %v16376_v48 = vpack.c.bf16 %v1551_v6, %v1550_v36  ;;  %v1528_v38 = vadd.f32 %v20902_v45, %v1503_v25  ;;  %20927 = vtanh.f32 %v1262_v63  ;;  %v1339_v5 = vadd.f32 %v21671_v2, %v1338_v11 }
 0x1a1   : > { %v17531_v16 = vpop.f32.mrf.mxu0  ;;  %v21825_v61 = vld [vmem:[#allocation2 + $0x8] sm:$0xff]   ;;  %v21827_v20 = vpop.eup %20905  ;;  %20929 = vtanh.f32 %v1347_v23  ;;  %v1768_v42 = vshll.u32 %v21809_v21, 16  ;;  %v1530_v46 = vadd.f32 %v20904_v56, %v1505_v57  ;;  %v1766_v15 = vshrl.u32 %v21809_v21, 16 }
 0x1a2   : > { %16470 = vst [vmem:[#allocation2 + $0x18] sm:$0xff] %v16376_v48   ;;  %v1553_v9 = vmul.f32 0.25, %v1528_v38  ;;  %v1350_v39 = vadd.f32 %v21671_v2, %v17531_v16  ;;  %v21831_v43 = vld [vmem:[#allocation2 + $0x8] sm:$0xf]  ;;  %v20908_v3 = vpop.eup %20907  ;;  %20931 = vtanh.f32 %v1339_v5  ;;  %v1773_v12 = vshll.u32 %v21825_v61, 16  ;;  %v19994_v5 = vld [vmem:[%s27494_s3 + $0x30] sm:$0xff]  }
 0x1a3   : > { %v1341_v60 = vpop.f32.mrf.mxu0  ;;  %v20910_v34 = vpop.eup %20909  ;;  %v21839_v35 = vcombine.low %v2570_v31, %v21831_v43  ;;  %v1770_v47 = vrot.slane %v1768_v42, 1  ;;  %v21847_v50 = vld [vmem:[#allocation2 + $0xc] sm:$0xf]  ;;  %v1508_v25 = vadd.f32 %v21782_v19, %v21500_v58  ;;  %v1555_v18 = vmul.f32 0.25, %v1530_v46 }
 0x1a4   : > { %v16381_v55 = vpack.c.bf16 %v1553_v9, %v1552_v0  ;;  %v1342_v27 = vadd.f32 %v21671_v2, %v1341_v60  ;;  %v21841_v41 = vpop.eup %20911  ;;  %v1529_v10 = vadd.f32 %v20910_v34, %v1504_v26  ;;  %20933 = vtanh.f32 %v1350_v39 }
 0x1a5   : > { %v17534_v13 = vpop.f32.mrf.mxu0  ;;  %v21845_v4 = vrot.slane %v1773_v12, 1  ;;  %v21849_v14 = vld [vmem:[#allocation2 + $0x10] sm:$0xf]  ;;  %v21851_v30 = vpop.eup %20913  ;;  %v1531_v63 = vadd.f32 %v20908_v3, %v1506_v54  ;;  %v1771_v17 = vor.u32 %v1770_v47, %v1766_v15  ;;  %v1509_v19 = vadd.f32 %v21798_v52, %v21509_v22  ;;  %v19996_v54 = vld [vmem:[%s27494_s3 + $0x1f8] sm:$0xff]   ;;  %v21886_v16 = vld [vmem:[#allocation2 + $0x14] sm:$0xf] }
 0x1a6   : > { %16471 = vst [vmem:[#allocation2 + $0x20] sm:$0xff] %v16381_v55   ;;  %20935 = vtanh.f32 %v1342_v27  ;;  %v1363_v37 = vadd.f32 %v21671_v2, %v17534_v13  ;;  %v21858_v33 = vcombine.low %v21847_v50, %v21849_v14  ;;  %v20916_v51 = vpop.eup %20915  ;;  %v1554_v6 = vmul.f32 0.25, %v1529_v10  ;;  %v21863_v8 = vld [vmem:[#allocation2 + $0x10] sm:$0xff]  }
 0x1a7   : > { %v1354_v40 = vpop.f32.mrf.mxu0  ;;  %v20918_v58 = vpop.eup %20917  ;;  %v2623_v23 = vrot.slane %v21839_v35, 3  ;;  %v1776_v38 = vsel %vm1764_vm2, %v1771_v17, %v21845_v4  ;;  %v1534_v52 = vadd.f32 %v20916_v51, %v1509_v19  ;;  %v1556_v39 = vmul.f32 0.25, %v1531_v63  ;;  %v19997_v51 = vld [vmem:[%s27494_s3 + $0x28] sm:$0xff]  }
 0x1a8   : > { %v1355_v36 = vadd.f32 %v21671_v2, %v1354_v40  ;;  %v2624_v45 = vrot.slane %v21858_v33, 3  ;;  %v21873_v11 = vpop.eup %20919  ;;  %v16386_v56 = vpack.c.bf16 %v1555_v18, %v1554_v6  ;;  %v1532_v26 = vadd.f32 %v20918_v58, %v1507_v49  ;;  %17553 = vmatmul.mubr.bf16.vlgmr.msra.gmra.mxu1 %v1776_v38  ;;  %v27616_v19 = vld [vmem:[#allocation12_spill] sm:$0xff] }
 0x1a9   : > { %20937 = vtanh.f32 %v1363_v37  ;;  %v17535_v48 = vpop.f32.mrf.mxu0  ;;  %v21877_v22 = vld [vmem:[#allocation2 + $0x18] sm:$0xf]  ;;  %v20922_v9 = vpop.eup %20921  ;;  %17573 = vmatpush3.bf16.msra.mxu1 %v19992_v29  ;;  %v1781_v49 = vshll.u32 %v21863_v8, 16  ;;  %v1489_v34 = vadd.f32 %v21702_v44, %v21636_v1  ;;  %v1510_v55 = vadd.f32 %v21778_v7, %v21813_v62 }
 0x1aa   : > { %20939 = vtanh.f32 %v1355_v36  ;;  %v1366_v57 = vadd.f32 %v21671_v2, %v17535_v48  ;;  %v2625_v0 = vsel %vm2622_vm3, %v2623_v23, %v2624_v45  ;;  %16472 = vst [vmem:[#allocation2 + $0x28] sm:$0xff] %v16386_v56   ;;  %v1557_v42 = vmul.f32 0.25, %v1532_v26  ;;  %v21893_v60 = vld [vmem:[#allocation2 + $0x18] sm:$0xff]   ;;  %v27617_v36 = vld [vmem:[#allocation13_spill] sm:$0xff]  ;;  %v27618_v56 = vld [vmem:[#allocation8_spill] sm:$0xff] }
 0x1ab   : > { %v1357_v3 = vpop.f32.mrf.mxu0  ;;  %17733 = vmatmul.mubr.bf16.vlgmr.msra.gmra.mxu0 %v2625_v0  ;;  %v21891_v46 = vcombine.low %v21886_v16, %v21877_v22  ;;  %v20924_v31 = vpop.eup %20923  ;;  %v27615_v15 = vmov 0.0   ;;  %v1777_v37 = vshrl.u32 %v21825_v61, 16  ;;  %v1783_v1 = vrot.slane %v1781_v49, 1  ;;  %v27619_v48 = vld [vmem:[#allocation9_spill] sm:$0xff] }
 0x1ac   : > { %20941 = vtanh.f32 %v1366_v57  ;;  %v1358_v27 = vadd.f32 %v21671_v2, %v1357_v3  ;;  %17556 = vmatprep.mubr.msk.bf16.mxu1 %vm21083_vm1, %v27615_v15  ;;  %17574 = vmatprep.subr.bf16.mxu1 %v27615_v15  ;;  %v21903_v10 = vpop.eup %20925  ;;  %v16391_v13 = vpack.c.bf16 %v1557_v42, %v1556_v39  ;;  %v1533_v47 = vadd.f32 %v20924_v31, %v1508_v25  ;;  %v19998_v2 = vld [vmem:[%s27494_s3 + $0x1f0] sm:$0xff]  }
 0x1ad   : > { %17736 = vmatprep.mubr.msk.bf16.mxu0 %vm21083_vm1, %v27615_v15  ;;  %17789 = vmatpush3.bf16.msra.mxu0 %v19996_v54  ;;  %v21913_v44 = vpop.eup %20927  ;;  %v1559_v7 = vmul.f32 0.25, %v1534_v52  ;;  %v1535_v62 = vadd.f32 %v20922_v9, %v1510_v55  ;;  %v2626_v25 = vrot.slane %v21891_v46, 3  ;;  %v21920_v18 = vld [vmem:[#allocation2 + $0x20] sm:$0xf]  ;;  %v1511_v6 = vadd.f32 %v21794_v59, %v21790_v28  ;;  %v21936_v59 = vld [vmem:[#allocation2 + $0x1c] sm:$0xf] }
 0x1ae   : > { %20943 = vtanh.f32 %v1358_v27  ;;  %17790 = vmatprep.subr.bf16.mxu0 %v27615_v15  ;;  %v20930_v63 = vpop.eup %20929  ;;  %16473 = vst [vmem:[#allocation2 + $0x30] sm:$0xff] %v16391_v13   ;;  %v1558_v40 = vmul.f32 0.25, %v1533_v47  ;;  %v1779_v17 = vor.u32 %v1777_v37, %v21845_v4  ;;  %17575 = vmatpush3.bf16.msra.mxu1 %v19994_v5  ;;  %v1789_v29 = vshll.u32 %v21893_v60, 16  ;;  %v21938_v4 = vld [vmem:[#allocation2 + $0x20] sm:$0xf] }
 0x1af   : > { %v20932_v58 = vpop.eup %20931  ;;  %v1493_v23 = vadd.f32 %v27617_v36, %v27616_v19  ;;  %v1514_v54 = vadd.f32 %v21805_v53, %v1489_v34  ;;  %v1512_v26 = vadd.f32 %v21827_v20, %v27618_v56  ;;  %v1513_v28 = vadd.f32 %v21851_v30, %v27619_v48  ;;  %17576 = vmatprep.subr.bf16.mxu1 %v27615_v15  ;;  %v1721_v38 = vld [vmem:[#allocation2 + $0x24] sm:$0x1]  ;;  %v20001_v20 = vld [vmem:[%s27494_s3 + $0x1e8] sm:$0xff]   ;;  %v2055_v30 = vld [vmem:[#allocation2] sm:$0xe] }
 0x1b0   : > { %v16396_v52 = vpack.c.bf16 %v1559_v7, %v1558_v40  ;;  %v1536_v57 = vadd.f32 %v20932_v58, %v1511_v6  ;;  %v1784_v0 = vsel %vm1764_vm2, %v1779_v17, %v1783_v1  ;;  %v21943_v53 = vcombine.low %v21936_v59, %v21920_v18  ;;  %v27620_v40 = vld [vmem:[#allocation10_spill] sm:$0xff]  ;;  %v27621_v58 = vld [vmem:[#allocation11_spill] sm:$0xff] }
 0x1b1   : > { %17791 = vmatpush3.bf16.msra.mxu0 %v19998_v2  ;;  %v20934_v5 = vpop.eup %20933  ;;  %v1560_v9 = vmul.f32 0.25, %v1535_v62  ;;  %v1538_v39 = vadd.f32 %v20930_v63, %v1513_v28  ;;  %17557 = vmatmul.mubr.bf16.gmra.mxu1 %v1784_v0  ;;  %v2627_v42 = vsel %vm2622_vm3, %v2624_v45, %v2626_v25  ;;  %v1785_v3 = vshrl.u32 %v21863_v8, 16  ;;  %v20003_v63 = vld [vmem:[%s27494_s3 + $0x1e0] sm:$0xff]  }
 0x1b2   : > { %17792 = vmatprep.subr.bf16.mxu0 %v27615_v15  ;;  %v1515_v34 = vadd.f32 %v21841_v41, %v21817_v24  ;;  %16474 = vst [vmem:[#allocation2 + $0x38] sm:$0xff] %v16396_v52   ;;  %v1561_v55 = vmul.f32 0.25, %v1536_v57  ;;  %17560 = vmatprep.mubr.msk.bf16.mxu1 %vm21083_vm1, %v27615_v15  ;;  %v21961_v27 = vrot.slane %v1789_v29, 1  ;;  %v21964_v45 = vcombine.low %v21938_v4, %v1721_v38  ;;  %v20002_v24 = vld [vmem:[%s27494_s3 + $0x20] sm:$0xff]   ;;  %v21972_v41 = vld [vmem:[#allocation2 + $0x28] sm:$0xf] }
 0x1b3   : > { %v20936_v31 = vpop.eup %20935  ;;  %17737 = vmatmul.mubr.bf16.gmra.mxu0 %v2627_v42  ;;  %v1518_v13 = vadd.f32 %v21873_v11, %v1493_v23  ;;  %17577 = vmatpush3.bf16.msra.mxu1 %v19997_v51  ;;  %v21975_v2 = vcombine.low %v2055_v30, %v21803_v32  ;;  %v1539_v62 = vadd.f32 %v20934_v5, %v1514_v54  ;;  %v2628_v51 = vrot.slane %v21943_v53, 3  ;;  %v2579_v54 = vld [vmem:[#allocation2 + $0x28] sm:$0x7]  ;;  %v20005_v52 = vld [vmem:[%s27494_s3 + $0x18] sm:$0xff]  }
 0x1b4   : > { %v1537_v47 = vadd.f32 %v20936_v31, %v1512_v26  ;;  %17740 = vmatprep.mubr.msk.bf16.mxu0 %vm21083_vm1, %v27615_v15  ;;  %v16401_v7 = vpack.c.bf16 %v1561_v55, %v1560_v9  ;;  %v1787_v11 = vor.u32 %v1785_v3, %v1783_v1  ;;  %17578 = vmatprep.subr.bf16.mxu1 %v27615_v15  ;;  %v1563_v36 = vmul.f32 0.25, %v1538_v39  ;;  %v21989_v1 = vld [vmem:[#allocation2 + $0x24] sm:$0xf]  ;;  %v20007_v9 = vld [vmem:[%s27494_s3 + $0x1d8] sm:$0xff]  }
 0x1b5   : > { %17793 = vmatpush3.bf16.msra.mxu0 %v20001_v20  ;;  %v1516_v17 = vadd.f32 %v21903_v10, %v27620_v40  ;;  %v1517_v19 = vadd.f32 %v21913_v44, %v27621_v58  ;;  %v2251_v26 = vrot.slane %v1773_v12, 2  ;;  %v1797_v10 = vshll.u32 %v21964_v45, 16 }
 0x1b6   : > { %v20938_v6 = vpop.eup %20937  ;;  %v1562_v23 = vmul.f32 0.25, %v1537_v47  ;;  %17794 = vmatprep.subr.bf16.mxu0 %v27615_v15  ;;  %16475 = vst [vmem:[#allocation2 + $0x40] sm:$0xff] %v16401_v7   ;;  %v1792_v48 = vsel %vm1764_vm2, %v1787_v11, %v21961_v27  ;;  %v21998_v44 = vcombine.low %v21989_v1, %v21972_v41  ;;  %v2077_v57 = vrot.slane %v21975_v2, 1  ;;  %v20009_v7 = vld [vmem:[%s27494_s3 + $0x1d0] sm:$0xff]  }
 0x1b7   : > { %v20940_v56 = vpop.eup %20939  ;;  %17579 = vmatpush3.bf16.msra.mxu1 %v20002_v24  ;;  %v2078_v12 = vrot.slane %v21825_v61, 1  ;;  %v1564_v20 = vmul.f32 0.25, %v1539_v62  ;;  %v2629_v30 = vsel %vm2622_vm3, %v2626_v25, %v2628_v51  ;;  %v14488_v5 = vcombine.low %v21989_v1, %v2579_v54 }
 0x1b8   : > { %v16406_v28 = vpack.c.bf16 %v1563_v36, %v1562_v23  ;;  %v1540_v38 = vadd.f32 %v20940_v56, %v1515_v34  ;;  %17580 = vmatprep.subr.bf16.mxu1 %v27615_v15  ;;  %v2080_v39 = vrot.slane %v21863_v8, 1  ;;  %v1542_v42 = vadd.f32 %v20938_v6, %v1517_v19 }
 0x1b9   : > { %v20942_v0 = vpop.eup %20941  ;;  %17795 = vmatpush3.bf16.msra.mxu0 %v20003_v63  ;;  %17561 = vmatmul.mubr.bf16.gmra.mxu1 %v1792_v48  ;;  %v22018_v25 = vsel %vm2076_vm4, %v2077_v57, %v2078_v12  ;;  %v2250_v47 = vrot.slane %v1777_v37, 1  ;;  %v1793_v24 = vshrl.u32 %v21893_v60, 16  ;;  %v2082_v11 = vrot.slane %v21893_v60, 1  ;;  %v20010_v57 = vld [vmem:[%s27494_s3 + $0x8] sm:$0xff]  }
 0x1ba   : > { %16476 = vst [vmem:[#allocation2 + $0x48] sm:$0xff] %v16406_v28   ;;  %v1565_v31 = vmul.f32 0.25, %v1540_v38  ;;  %v1543_v34 = vadd.f32 %v20942_v0, %v1518_v13  ;;  %17796 = vmatprep.subr.bf16.mxu0 %v27615_v15  ;;  %17564 = vmatprep.mubr.msk.bf16.mxu1 %vm21083_vm1, %v27615_v15  ;;  %v20008_v13 = vld [vmem:[%s27494_s3 + $0x10] sm:$0xff]   ;;  %v22032_v62 = vsel %vm2076_vm4, %v2078_v12, %v2080_v39  ;;  %v1799_v40 = vrot.slane %v1797_v10, 1 }
 0x1bb   : > { %v20944_v55 = vpop.eup %20943  ;;  %17741 = vmatmul.mubr.bf16.gmra.mxu0 %v2629_v30  ;;  %17581 = vmatpush3.bf16.msra.mxu1 %v20005_v52  ;;  %v2630_v58 = vrot.slane %v14488_v5, 3  ;;  %v22039_v19 = vsel %vm2076_vm4, %v2080_v39, %v2082_v11  ;;  %v27507_v36 = vrot.slane %v21964_v45, 1  ;;  %v1567_v23 = vmul.f32 0.25, %v1542_v42  ;;  %v2220_v39 = vld [vmem:[#allocation2 + $0x24] sm:$0x3] }
 0x1bc   : > { %v16411_v37 = vpack.c.bf16 %v1565_v31, %v1564_v20  ;;  %v1568_v63 = vmul.f32 0.25, %v1543_v34  ;;  %v1541_v6 = vadd.f32 %v20944_v55, %v1516_v17  ;;  %17744 = vmatprep.mubr.msk.bf16.mxu0 %vm21083_vm1, %v27615_v15  ;;  %17582 = vmatprep.subr.bf16.mxu1 %v27615_v15  ;;  %v2243_v17 = vshrl.u32 %v21975_v2, 16  ;;  %v2405_v42 = vld [vmem:[#allocation2] sm:$0xc] }
 0x1bd   : > { %17797 = vmatpush3.bf16.msra.mxu0 %v20007_v9  ;;  %v1795_v48 = vor.u32 %v1793_v24, %v21961_v27  ;;  %v22048_v10 = vsel %vm2076_vm4, %v2082_v11, %v27507_v36  ;;  %v2246_v28 = vshll.u32 %v21975_v2, 16  ;;  %v2252_v38 = vor.u32 %v2251_v26, %v2250_v47  ;;  %v20011_v27 = vld [vmem:[%s27494_s3 + $0x1c8] sm:$0xff]  }
 0x1be   : > { %16477 = vst [vmem:[#allocation2 + $0x50] sm:$0xff] %v16411_v37   ;;  %v16335_v54 = vpack.c.bf16 %v1568_v63, %v1568_v63  ;;  %v1566_v56 = vmul.f32 0.25, %v1541_v6  ;;  %17798 = vmatprep.subr.bf16.mxu0 %v27615_v15  ;;  %v2245_v12 = vrot.slane %v2243_v17, 1  ;;  %v2254_v2 = vrot.slane %v1785_v3, 1  ;;  %v20012_v3 = vld [vmem:[%s27494_s3] sm:$0xff]  }
 0x1bf   : > { %17583 = vmatpush3.bf16.msra.mxu1 %v20008_v13  ;;  %v1800_v0 = vsel %vm1764_vm2, %v1795_v48, %v1799_v40  ;;  %v2248_v20 = vrot.slane %v2246_v28, 2  ;;  %v2631_v26 = vsel %vm2622_vm3, %v2628_v51, %v2630_v58  ;;  %v2255_v30 = vrot.slane %v1781_v49, 2  ;;  %v20013_v49 = vld [vmem:[%s27494_s3 + $0x1c0] sm:$0xff]  }
 0x1c0   : > { %1694 = vst [vmem:[#allocation2 + $0x60] sm:$0xf] %v16335_v54  ;;  %v16416_v52 = vpack.c.bf16 %v1567_v23, %v1566_v56  ;;  %17584 = vmatprep.subr.bf16.mxu1 %v27615_v15  ;;  %v2258_v9 = vrot.slane %v1793_v24, 1  ;;  %v2259_v34 = vrot.slane %v1789_v29, 2  ;;  %v1801_v55 = vshrl.u32 %v21964_v45, 16 }
 0x1c1   : > { %17799 = vmatpush3.bf16.msra.mxu0 %v20009_v7  ;;  %17565 = vmatmul.mubr.bf16.gmra.mxu1 %v1800_v0  ;;  %v2249_v5 = vor.u32 %v2248_v20, %v2245_v12  ;;  %v2256_v51 = vor.u32 %v2255_v30, %v2254_v2  ;;  %v22089_v13 = vcombine.low %v21938_v4, %v2220_v39  ;;  %v2428_v23 = vrot.slane %v21825_v61, 2  ;;  %v20015_v0 = vld [vmem:[%s27494_s3 + $0xb0] sm:$0xff]   ;;  %v3122_v2 = vld [vmem:[#allocation2 + $0x8] sm:$0xf] }
 0x1c2   : > { %16478 = vst [vmem:[#allocation2 + $0x58] sm:$0xff] %v16416_v52   ;;  %17800 = vmatprep.subr.bf16.mxu0 %v27615_v15  ;;  %17568 = vmatprep.mubr.msk.bf16.mxu1 %vm21083_vm1, %v27615_v15  ;;  %v2260_v24 = vor.u32 %v2259_v34, %v2258_v9  ;;  %v14459_v7 = vcombine.low %v2405_v42, %v21803_v32  ;;  %v2430_v48 = vrot.slane %v21863_v8, 2  ;;  %v2800_v9 = vshll.u32 %v21858_v33, 16 }
 0x1c3   : > { %17745 = vmatmul.mubr.bf16.gmra.mxu0 %v2631_v26  ;;  %17585 = vmatpush3.bf16.msra.mxu1 %v20010_v57  ;;  %v22079_v31 = vsel %vm2241_vm5, %v2249_v5, %v2252_v38  ;;  %v22086_v47 = vsel %vm2241_vm5, %v2252_v38, %v2256_v51  ;;  %v1803_v11 = vor.u32 %v1801_v55, %v1799_v40  ;;  %v2263_v37 = vshrl.u32 %v22089_v13, 16  ;;  %v20017_v38 = vld [vmem:[%s27494_s3 + $0x278] sm:$0xff]  }
 0x1c4   : > { %17748 = vmatprep.mubr.msk.bf16.mxu0 %vm21083_vm1, %v27615_v15  ;;  %17586 = vmatprep.subr.bf16.mxu1 %v27615_v15  ;;  %v22094_v29 = vsel %vm2241_vm5, %v2256_v51, %v2260_v24  ;;  %v2266_v63 = vshll.u32 %v22089_v13, 16  ;;  %v2427_v40 = vrot.slane %v14459_v7, 2  ;;  %v14538_v28 = vcombine.low %v21831_v43, %v21847_v50  ;;  %v20018_v51 = vld [vmem:[%s27494_s3 + $0xa8] sm:$0xff]  }
 0x1c5   : > { %17801 = vmatpush3.bf16.msra.mxu0 %v20011_v27  ;;  %v2265_v32 = vrot.slane %v2263_v37, 1  ;;  %v22123_v52 = vsel %vm2426_vm6, %v2428_v23, %v2430_v48  ;;  %v2432_v57 = vrot.slane %v21893_v60, 2  ;;  %v27506_v12 = vrot.slane %v22089_v13, 2 }
 0x1c6   : > { %17802 = vmatprep.subr.bf16.mxu0 %v27615_v15  ;;  %v2268_v6 = vrot.slane %v2266_v63, 2  ;;  %v22107_v56 = vsel %vm2426_vm6, %v2427_v40, %v2428_v23  ;;  %v2789_v50 = vshrl.u32 %v21839_v35, 16  ;;  %v2792_v27 = vshll.u32 %v21839_v35, 16  ;;  %v22149_v35 = vld [vmem:[#allocation2 + $0xc] sm:$0xf]  ;;  %v20023_v23 = vld [vmem:[%s27494_s3 + $0x260] sm:$0xff]  }
 0x1c7   : > { %17587 = vmatpush3.bf16.msra.mxu1 %v20012_v3  ;;  %v22132_v43 = vsel %vm2426_vm6, %v2430_v48, %v2432_v57  ;;  %v22145_v20 = vsel %vm2426_vm6, %v2432_v57, %v27506_v12  ;;  %v2797_v5 = vshrl.u32 %v21858_v33, 16  ;;  %v2806_v3 = vshrl.u32 %v21891_v46, 16  ;;  %v20021_v33 = vld [vmem:[%s27494_s3 + $0x268] sm:$0xff]   ;;  %v22189_v48 = vld [vmem:[#allocation2 + $0x18] sm:$0xff]  }
 0x1c8   : > { %17608 = vmatprep.subr.bf16.mxu1 %v27615_v15  ;;  %v22104_v54 = vor.u32 %v2268_v6, %v2265_v32  ;;  %v2791_v26 = vrot.slane %v2789_v50, 3  ;;  %v2794_v30 = vrot.slane %v2792_v27, 4  ;;  %v2802_v42 = vrot.slane %v2800_v9, 4  ;;  %v20024_v50 = vld [vmem:[%s27494_s3 + $0x98] sm:$0xff]   ;;  %v22197_v27 = vld [vmem:[#allocation2 + $0x20] sm:$0xff]  }
 0x1c9   : > { %17803 = vmatpush3.bf16.msra.mxu0 %v20013_v49  ;;  %17569 = vmatmul.mubr.bf16.gmra.mxu1 %v1803_v11  ;;  %v2799_v39 = vrot.slane %v2797_v5, 3  ;;  %v2809_v49 = vshll.u32 %v21891_v46, 16  ;;  %v14539_v34 = vcombine.low %v21849_v14, %v21886_v16  ;;  %v14567_v55 = vcombine.low %v3122_v2, %v22149_v35  ;;  %v22172_v14 = vld [vmem:[#allocation2 + $0x10] sm:$0xff]  }
 0x1ca   : > { %17860 = vmatprep.subr.bf16.mxu0 %v27615_v15  ;;  %17588 = vmatprep.mubr.msk.bf16.mxu1 %vm21083_vm1, %v27615_v15  ;;  %v22114_v17 = vsel %vm2241_vm5, %v2260_v24, %v22104_v54  ;;  %v2808_v24 = vrot.slane %v2806_v3, 3  ;;  %v2815_v7 = vshrl.u32 %v21943_v53, 16  ;;  %v2795_v11 = vor.u32 %v2794_v30, %v2791_v26  ;;  %v22200_v26 = vld [vmem:[#allocation2 + $0x10] sm:$0xf]  ;;  %v22202_v30 = vld [vmem:[#allocation2 + $0x18] sm:$0xf] }
 0x1cb   : > { %17749 = vmatmul.mubr.bf16.gmra.mxu0 %v2630_v58  ;;  %v20014_v58 = vld [vmem:[%s27494_s3 + $0xb8] sm:$0xff]   ;;  %v2803_v37 = vor.u32 %v2802_v42, %v2799_v39  ;;  %v2811_v46 = vrot.slane %v2809_v49, 4  ;;  %v2818_v63 = vshll.u32 %v21943_v53, 16  ;;  %v2824_v40 = vshrl.u32 %v21998_v44, 16  ;;  %27623 = vst [vmem:[#allocation13_spill] sm:$0xff] %v22200_v26  ;;  %27624 = vst [vmem:[#allocation8_spill] sm:$0xff] %v22202_v30 }
 0x1cc   : > { %17804 = vmatprep.mubr.msk.bf16.mxu0 %vm21083_vm1, %v27615_v15  ;;  %v2817_v16 = vrot.slane %v2815_v7, 3  ;;  %v3182_v2 = vshll.u32 %v22172_v14, 16  ;;  %v3175_v9 = vshrl.u32 %v14567_v55, 16  ;;  %v20026_v39 = vld [vmem:[%s27494_s3 + $0x258] sm:$0xff]   ;;  %v22213_v42 = vld [vmem:[#allocation2 + $0x28] sm:$0x1f]  }
 0x1cd   : > { %v22180_v32 = vsel %vm2787_vm7, %v2795_v11, %v2803_v37  ;;  %v2812_v6 = vor.u32 %v2811_v46, %v2808_v24  ;;  %v2820_v53 = vrot.slane %v2818_v63, 4  ;;  %v2826_v57 = vrot.slane %v2824_v40, 3  ;;  %v22215_v49 = vld [vmem:[#allocation2 + $0x14] sm:$0xf]  ;;  %v22242_v63 = vld [vmem:[#allocation2 + $0x24] sm:$0xf] }
 0x1ce   : > { %27626 = vst [vmem:[#allocation10_spill] sm:$0xff] %v22215_v49  ;;  %v3186_v7 = vshrl.u32 %v22172_v14, 16  ;;  %v3190_v11 = vshll.u32 %v22189_v48, 16  ;;  %v22240_v46 = vcombine.low %v22215_v49, %v22202_v30  ;;  %27630 = vst [vmem:[#allocation16_spill] sm:$0xff] %v22242_v63  ;;  %v22253_v40 = vld [vmem:[#allocation2 + $0x18] sm:$0xf] }
 0x1d1   : > { %17589 = vmatmul.mubr.bf16.vlgmr.msra.gmra.mxu1 %v21809_v21  ;;  %v20019_v21 = vld [vmem:[%s27494_s3 + $0x270] sm:$0xff]  }
 0x1d2   : > { %17609 = vmatpush3.bf16.msra.mxu1 %v20014_v58  ;;  %17592 = vmatprep.mubr.msk.bf16.mxu1 %vm21083_vm1, %v27615_v15  ;;  %v2827_v58 = vshll.u32 %v21998_v44, 16  ;;  %v3511_v44 = vld [vmem:[#allocation2 + $0xc] sm:$0xc] }
 0x1d3   : > { %17805 = vmatmul.mubr.bf16.vlgmr.msra.gmra.mxu0 %v14538_v28  ;;  %17610 = vmatprep.subr.bf16.mxu1 %v27615_v15  ;;  %v22192_v28 = vsel %vm2787_vm7, %v2803_v37, %v2812_v6  ;;  %v22236_v37 = vcombine.low %v3511_v44, %v22200_v26 }
 0x1d4   : > { %17808 = vmatprep.mubr.msk.bf16.mxu0 %vm21083_vm1, %v27615_v15  ;;  %17861 = vmatpush3.bf16.msra.mxu0 %v20017_v38  ;;  %27622 = vst [vmem:[#allocation12_spill] sm:$0xff] %v22192_v28  ;;  %v2821_v38 = vor.u32 %v2820_v53, %v2817_v16  ;;  %v22244_v16 = vld [vmem:[#allocation2 + $0x28] sm:$0xf]  ;;  %v3906_v53 = vld [vmem:[#allocation2 + $0xc] sm:$0x8] }
 0x1d5   : > { %17862 = vmatprep.subr.bf16.mxu0 %v27615_v15  ;;  %27631 = vst [vmem:[#allocation17_spill] sm:$0xff] %v22244_v16 }
 0x1d6   : > { %17611 = vmatpush3.bf16.msra.mxu1 %v20015_v0  ;;  %v3177_v0 = vshll.u32 %v14567_v55, 16  ;;  %v22205_v5 = vsel %vm2787_vm7, %v2812_v6, %v2821_v38  ;;  %v22226_v55 = vld [vmem:[#allocation2 + $0x20] sm:$0xf]  ;;  %v3198_v6 = vshll.u32 %v22197_v27, 16 }
 0x1d7   : > { %17612 = vmatprep.subr.bf16.mxu1 %v27615_v15  ;;  %27625 = vst [vmem:[#allocation9_spill] sm:$0xff] %v22205_v5  ;;  %27629 = vst [vmem:[#allocation15_spill] sm:$0xff] %v22226_v55  ;;  %v22291_v5 = vld [vmem:[#allocation2 + $0x34] sm:$0xf] }
 0x1d8   : > { %17863 = vmatpush3.bf16.msra.mxu0 %v20019_v21  ;;  %v2829_v21 = vrot.slane %v2827_v58, 4  ;;  %v3179_v3 = vrot.slane %v3177_v0, 1  ;;  %v22257_v58 = vld [vmem:[#allocation2 + $0x24] sm:$0xff]   ;;  %v3200_v44 = vrot.slane %v3198_v6, 1  ;;  %v22284_v6 = vcombine.low %v3906_v53, %v22200_v26 }
 0x1d9   : > { %17593 = vmatmul.mubr.bf16.gmra.mxu1 %v21825_v61  ;;  %17864 = vmatprep.subr.bf16.mxu0 %v27615_v15  ;;  %v20022_v61 = vld [vmem:[%s27494_s3 + $0xa0] sm:$0xff]  }
 0x1da   : > { %17596 = vmatprep.mubr.msk.bf16.mxu1 %vm21083_vm1, %v27615_v15  ;;  %17613 = vmatpush3.bf16.msra.mxu1 %v20018_v51  ;;  %v14540_v51 = vcombine.low %v21877_v22, %v21936_v59  ;;  %v20027_v22 = vld [vmem:[%s27494_s3 + $0x90] sm:$0xff]   ;;  %v22224_v59 = vld [vmem:[#allocation2 + $0x1c] sm:$0xf]  ;;  %v3180_v24 = vor.u32 %v3179_v3, %v3175_v9  ;;  %v3202_v9 = vshrl.u32 %v22197_v27, 16  ;;  %v3206_v3 = vshll.u32 %v22213_v42, 16 }
 0x1db   : > { %17809 = vmatmul.mubr.bf16.gmra.mxu0 %v14539_v34  ;;  %17614 = vmatprep.subr.bf16.mxu1 %v27615_v15  ;;  %v22217_v34 = vor.u32 %v2829_v21, %v2826_v57  ;;  %27628 = vst [vmem:[#allocation14_spill] sm:$0xff] %v22224_v59  ;;  %v3192_v21 = vrot.slane %v3190_v11, 1  ;;  %v3520_v11 = vld [vmem:[#allocation2 + $0x30] sm:$0x3] }
 0x1dc   : > { %17812 = vmatprep.mubr.msk.bf16.mxu0 %vm21083_vm1, %v27615_v15  ;;  %17865 = vmatpush3.bf16.msra.mxu0 %v20021_v33  ;;  %v3184_v33 = vrot.slane %v3182_v2, 1  ;;  %v22268_v2 = vld [vmem:[#allocation2 + $0x2c] sm:$0xff]   ;;  %v3204_v12 = vor.u32 %v3202_v9, %v3200_v44  ;;  %v22286_v36 = vrot.slane %v3206_v3, 1 }
 0x1dd   : > { %17866 = vmatprep.subr.bf16.mxu0 %v27615_v15  ;;  %27627 = vst [vmem:[#allocation11_spill] sm:$0xff] %v22217_v34 }
 0x1de   : > { %17615 = vmatpush3.bf16.msra.mxu1 %v20022_v61  ;;  %v22248_v61 = vsel %vm2787_vm7, %v2821_v38, %v22217_v34  ;;  %v22260_v57 = vsel %vm1764_vm2, %v3180_v24, %v3184_v33  ;;  %v3188_v0 = vor.u32 %v3186_v7, %v3184_v33  ;;  %v3194_v38 = vshrl.u32 %v22189_v48, 16  ;;  %v4968_v34 = vld [vmem:[#allocation2 + $0x38] sm:$0x7] }
 0x1df   : > { %17616 = vmatprep.subr.bf16.mxu1 %v27615_v15  ;;  %27632 = vst [vmem:[#allocation18_spill] sm:$0xff] %v22248_v61  ;;  %27633 = vst [vmem:[#allocation19_spill] sm:$0xff] %v22260_v57  ;;  %v22278_v33 = vcombine.low %v22242_v63, %v22244_v16  ;;  %v3563_v57 = vrot.slane %v22236_v37, 2  ;;  %v22289_v61 = vld [vmem:[#allocation2 + $0x2c] sm:$0xf]  ;;  %v4644_v16 = vshrl.u32 %v22257_v58, 16 }
 0x1e0   : > { %17867 = vmatpush3.bf16.msra.mxu0 %v20023_v23  ;;  %v22255_v23 = vld [vmem:[#allocation2 + $0x1c] sm:$0xff]   ;;  %v22281_v24 = vsel %vm1764_vm2, %v3188_v0, %v3192_v21  ;;  %v3196_v7 = vor.u32 %v3194_v38, %v3192_v21  ;;  %27634 = vst [vmem:[#allocation20_spill] sm:$0xff] %v22289_v61  ;;  %v3564_v0 = vrot.slane %v22240_v46, 2  ;;  %v14541_v38 = vcombine.low %v21920_v18, %v21989_v1 }
 0x1e1   : > { %17597 = vmatmul.mubr.bf16.gmra.mxu1 %v21863_v8  ;;  %17868 = vmatprep.subr.bf16.mxu0 %v27615_v15  ;;  %v20028_v8 = vld [vmem:[%s27494_s3 + $0x250] sm:$0xff]   ;;  %v5174_v53 = vrot.slane %v22255_v23, 3  ;;  %v5176_v1 = vrot.slane %v22257_v58, 3  ;;  %v27518_v63 = vshll.u32 %v22257_v58, 16 }
 0x1e2   : > { %17600 = vmatprep.mubr.msk.bf16.mxu1 %vm21083_vm1, %v27615_v15  ;;  %17617 = vmatpush3.bf16.msra.mxu1 %v20024_v50  ;;  %v22266_v50 = vcombine.low %v22224_v59, %v22226_v55  ;;  %v22294_v28 = vsel %vm1764_vm2, %v3196_v7, %v3200_v44  ;;  %v22307_v44 = vsel %vm1764_vm2, %v3204_v12, %v22286_v36  ;;  %v3706_v12 = vld [vmem:[#allocation2 + $0x30] sm:$0x7]  ;;  %v4646_v59 = vrot.slane %v4644_v16, 1 }
 0x1e3   : > { %17813 = vmatmul.mubr.bf16.gmra.mxu0 %v14540_v51  ;;  %17618 = vmatprep.subr.bf16.mxu1 %v27615_v15  ;;  %v5152_v51 = vld [vmem:[#allocation2 + $0x14] sm:$0x8]  ;;  %v22313_v3 = vsel %vm2426_vm6, %v3563_v57, %v3564_v0  ;;  %v14625_v7 = vcombine.low %v22289_v61, %v3520_v11  ;;  %v22325_v57 = vcombine.low %v22291_v5, %v4968_v34  ;;  %v3927_v34 = vrot.slane %v22284_v6, 3 }
 0x1e4   : > { %17816 = vmatprep.mubr.msk.bf16.mxu0 %vm21083_vm1, %v27615_v15  ;;  %17869 = vmatpush3.bf16.msra.mxu0 %v20026_v39  ;;  %v20030_v39 = vld [vmem:[%s27494_s3 + $0x88] sm:$0xff]   ;;  %v14858_v21 = vcombine.low %v5152_v51, %v22253_v40  ;;  %v3566_v9 = vrot.slane %v22266_v50, 2  ;;  %v4649_v30 = vrot.slane %v27518_v63, 2 }
 0x1e5   : > { %17870 = vmatprep.subr.bf16.mxu0 %v27615_v15 }
 0x1e6   : > { %17619 = vmatpush3.bf16.msra.mxu1 %v20027_v22  ;;  %v20033_v22 = vld [vmem:[%s27494_s3 + $0x248] sm:$0xff]   ;;  %v5173_v18 = vrot.slane %v14858_v21, 3  ;;  %v22320_v51 = vsel %vm2426_vm6, %v3564_v0, %v3566_v9  ;;  %v20034_v21 = vld [vmem:[%s27494_s3 + $0x80] sm:$0xff]   ;;  %v22336_v0 = vsel %vm2622_vm3, %v5174_v53, %v5176_v1 }
 0x1e7   : > { %17620 = vmatprep.subr.bf16.mxu1 %v27615_v15  ;;  %27635 = vst [vmem:[#allocation21_spill] sm:$0xff] %v22320_v51  ;;  %27637 = vst [vmem:[#allocation23_spill] sm:$0xff] %v22336_v0  ;;  %v3928_v0 = vrot.slane %v22240_v46, 3 }
 0x1e8   : > { %17871 = vmatpush3.bf16.msra.mxu0 %v20028_v8  ;;  %v3568_v8 = vrot.slane %v22278_v33, 2 }
 0x1e9   : > { %17601 = vmatmul.mubr.bf16.gmra.mxu1 %v21893_v60  ;;  %17872 = vmatprep.subr.bf16.mxu0 %v27615_v15  ;;  %v5178_v60 = vrot.slane %v22268_v2, 3 }
 0x1ea   : > { %17604 = vmatprep.mubr.msk.bf16.mxu1 %vm21083_vm1, %v27615_v15  ;;  %17621 = vmatpush3.bf16.msra.mxu1 %v20030_v39  ;;  %v22339_v51 = vsel %vm2426_vm6, %v3566_v9, %v3568_v8  ;;  %v20035_v39 = vld [vmem:[%s27494_s3 + $0x240] sm:$0xff]   ;;  %v22355_v9 = vcombine.low %v22289_v61, %v3706_v12  ;;  %v4638_v61 = vshll.u32 %v22255_v23, 16 }
 0x1eb   : > { %17817 = vmatmul.mubr.bf16.gmra.mxu0 %v14541_v38  ;;  %v22333_v38 = vsel %vm2622_vm3, %v5173_v18, %v5174_v53  ;;  %27638 = vst [vmem:[#allocation24_spill] sm:$0xff] %v22339_v51  ;;  %17622 = vmatprep.subr.bf16.mxu1 %v27615_v15  ;;  %v22347_v11 = vsel %vm2622_vm3, %v5176_v1, %v5178_v60  ;;  %v22349_v18 = vrot.slane %v14625_v7, 2  ;;  %v27510_v53 = vrot.slane %v22325_v57, 3 }
 0x1ec   : > { %17820 = vmatprep.mubr.msk.bf16.mxu0 %vm21083_vm1, %v27615_v15  ;;  %27636 = vst [vmem:[#allocation22_spill] sm:$0xff] %v22333_v38  ;;  %17873 = vmatpush3.bf16.msra.mxu0 %v20033_v22  ;;  %27639 = vst [vmem:[#allocation25_spill] sm:$0xff] %v22347_v11  ;;  %v3930_v22 = vrot.slane %v22266_v50, 3  ;;  %v22368_v7 = vsel %vm2622_vm3, %v3927_v34, %v3928_v0  ;;  %v14384_v11 = vcombine.low %v21938_v4, %v21938_v4 }
 0x1ed   : > { %17874 = vmatprep.subr.bf16.mxu0 %v27615_v15  ;;  %27640 = vst [vmem:[#allocation26_spill] sm:$0xff] %v22355_v9  ;;  %v22360_v51 = vsel %vm2426_vm6, %v3568_v8, %v22349_v18  ;;  %v22365_v1 = vsel %vm2622_vm3, %v5178_v60, %v27510_v53  ;;  %27641 = vst [vmem:[#allocation27_spill] sm:$0xff] %v22368_v7  ;;  %v14542_v38 = vcombine.low %v21972_v41, %v21972_v41  ;;  %v3347_v8 = vld [vmem:[#allocation2 + $0x8] sm:$0xe] }
 0x1ee   : > { %17623 = vmatpush3.bf16.msra.mxu1 %v20034_v21  ;;  %v22373_v12 = vsel %vm2622_vm3, %v3928_v0, %v3930_v22  ;;  %v3932_v60 = vrot.slane %v22278_v33, 3  ;;  %v27509_v34 = vrot.slane %v22355_v9, 3  ;;  %v14596_v41 = vcombine.low %v3347_v8, %v22149_v35  ;;  %v4410_v0 = vld [vmem:[#allocation2 + $0x14] sm:$0xe] }
 0x1ef   : > { %27642 = vst [vmem:[#allocation28_spill] sm:$0xff] %v22373_v12  ;;  %17644 = vmatprep.subr.bf16.mxu1 %v27615_v15 }
 0x1f0   : > { %17875 = vmatpush3.bf16.msra.mxu0 %v20035_v39  ;;  %v22384_v4 = vsel %vm2622_vm3, %v3930_v22, %v3932_v60  ;;  %v22392_v21 = vsel %vm2622_vm3, %v3932_v60, %v27509_v34  ;;  %v3369_v39 = vrot.slane %v22172_v14, 1  ;;  %v22401_v22 = vcombine.low %v4410_v0, %v22253_v40  ;;  %v4605_v34 = vld [vmem:[#allocation2 + $0x38] sm:$0x3] }
 0x1f1   : > { %17605 = vmatmul.mubr.bf16.gmra.mxu1 %v14384_v11  ;;  %17932 = vmatprep.subr.bf16.mxu0 %v27615_v15  ;;  %27643 = vst [vmem:[#allocation29_spill] sm:$0xff] %v22384_v4  ;;  %27644 = vst [vmem:[#allocation30_spill] sm:$0xff] %v22392_v21  ;;  %v20040_v11 = vld [vmem:[%s27494_s3 + $0xf8] sm:$0xff]   ;;  %v3368_v8 = vrot.slane %v14596_v41, 1  ;;  %v20041_v41 = vld [vmem:[%s27494_s3 + $0xf0] sm:$0xff]  }
 0x1f2   : > { %17624 = vmatprep.mubr.msk.bf16.mxu1 %vm21083_vm1, %v27615_v15  ;;  %v4627_v0 = vshrl.u32 %v22401_v22, 16  ;;  %v22776_v21 = vld [vmem:[#allocation2 + $0x3c] sm:$0xf] }
 0x1f3   : > { %17821 = vmatmul.mubr.bf16.gmra.mxu0 %v14542_v38  ;;  %v20043_v38 = vld [vmem:[%s27494_s3 + $0x2f8] sm:$0xff]   ;;  %v3370_v14 = vsel %vm2076_vm4, %v3368_v8, %v3369_v39  ;;  %v27514_v8 = vshrl.u32 %v22255_v23, 16  ;;  %27699 = vst [vmem:[#allocation71_spill] sm:$0xff] %v22776_v21 }
 0x1f4   : > { %17876 = vmatprep.mubr.msk.bf16.mxu0 %vm21083_vm1, %v27615_v15  ;;  %v4629_v60 = vrot.slane %v4627_v0, 1 }
 0x1f5   : > { %v4637_v53 = vrot.slane %v27514_v8, 1 }
 0x1f9   : > { %17625 = vmatmul.mubr.bf16.vlgmr.msra.gmra.mxu1 %v22018_v25  ;;  %v4630_v25 = vshll.u32 %v22401_v22, 16 }
 0x1fa   : > { %17645 = vmatpush3.bf16.msra.mxu1 %v20040_v11  ;;  %17628 = vmatprep.mubr.msk.bf16.mxu1 %vm21083_vm1, %v27615_v15  ;;  %v3371_v11 = vrot.slane %v22189_v48, 1  ;;  %v20044_v48 = vld [vmem:[%s27494_s3 + $0xe8] sm:$0xff]  }
 0x1fb   : > { %17877 = vmatmul.mubr.bf16.vlgmr.msra.gmra.mxu0 %v3370_v14  ;;  %17646 = vmatprep.subr.bf16.mxu1 %v27615_v15  ;;  %v20045_v14 = vld [vmem:[%s27494_s3 + $0x2f0] sm:$0xff]   ;;  %v4632_v35 = vrot.slane %v4630_v25, 2  ;;  %v20047_v25 = vld [vmem:[%s27494_s3 + $0x2e8] sm:$0xff]  }
 0x1fc   : > { %17880 = vmatprep.mubr.msk.bf16.mxu0 %vm21083_vm1, %v27615_v15  ;;  %17933 = vmatpush3.bf16.msra.mxu0 %v20043_v38  ;;  %v4640_v38 = vrot.slane %v4638_v61, 2  ;;  %v3372_v0 = vsel %vm2076_vm4, %v3369_v39, %v3371_v11  ;;  %v20048_v39 = vld [vmem:[%s27494_s3 + $0xe0] sm:$0xff]  }
 0x1fd   : > { %17934 = vmatprep.subr.bf16.mxu0 %v27615_v15  ;;  %v4633_v8 = vor.u32 %v4632_v35, %v4629_v60  ;;  %v20049_v35 = vld [vmem:[%s27494_s3 + $0x2e0] sm:$0xff]  }
 0x1fe   : > { %17647 = vmatpush3.bf16.msra.mxu1 %v20041_v41  ;;  %v22444_v41 = vcombine.low %v22291_v5, %v4605_v34  ;;  %v4641_v55 = vor.u32 %v4640_v38, %v4637_v53  ;;  %v4653_v5 = vshrl.u32 %v22268_v2, 16  ;;  %v4650_v34 = vor.u32 %v4649_v30, %v4646_v59 }
 0x1ff   : > { %17648 = vmatprep.subr.bf16.mxu1 %v27615_v15  ;;  %v3373_v38 = vrot.slane %v22197_v27, 1  ;;  %v20052_v27 = vld [vmem:[%s27494_s3 + $0x2d8] sm:$0xff]  }
 0x200   : > { %17935 = vmatpush3.bf16.msra.mxu0 %v20045_v14  ;;  %v22459_v53 = vsel %vm2241_vm5, %v4633_v8, %v4641_v55  ;;  %v4655_v14 = vrot.slane %v4653_v5, 1  ;;  %v22472_v8 = vsel %vm2241_vm5, %v4641_v55, %v4650_v34  ;;  %v4662_v30 = vshrl.u32 %v22444_v41, 16 }
 0x201   : > { %17629 = vmatmul.mubr.bf16.gmra.mxu1 %v22032_v62  ;;  %17936 = vmatprep.subr.bf16.mxu0 %v27615_v15  ;;  %v4804_v62 = vld [vmem:[#allocation2 + $0x14] sm:$0xc]  ;;  %27645 = vst [vmem:[#allocation31_spill] sm:$0xff] %v22459_v53  ;;  %27646 = vst [vmem:[#allocation32_spill] sm:$0xff] %v22472_v8 }
 0x202   : > { %17632 = vmatprep.mubr.msk.bf16.mxu1 %vm21083_vm1, %v27615_v15  ;;  %17649 = vmatpush3.bf16.msra.mxu1 %v20044_v48  ;;  %v22466_v60 = vcombine.low %v4804_v62, %v22253_v40  ;;  %v4656_v48 = vshll.u32 %v22268_v2, 16  ;;  %v20050_v40 = vld [vmem:[%s27494_s3 + $0xd8] sm:$0xff]  }
 0x203   : > { %17881 = vmatmul.mubr.bf16.gmra.mxu0 %v3372_v0  ;;  %17650 = vmatprep.subr.bf16.mxu1 %v27615_v15  ;;  %v4665_v0 = vshll.u32 %v22444_v41, 16 }
 0x204   : > { %17884 = vmatprep.mubr.msk.bf16.mxu0 %vm21083_vm1, %v27615_v15  ;;  %17937 = vmatpush3.bf16.msra.mxu0 %v20047_v25  ;;  %v4658_v59 = vrot.slane %v4656_v48, 2  ;;  %v4664_v25 = vrot.slane %v4662_v30, 1  ;;  %v4990_v62 = vshrl.u32 %v22466_v60, 16  ;;  %v4993_v63 = vshll.u32 %v22466_v60, 16 }
 0x205   : > { %17938 = vmatprep.subr.bf16.mxu0 %v27615_v15  ;;  %v4667_v2 = vrot.slane %v4665_v0, 2 }
 0x206   : > { %17651 = vmatpush3.bf16.msra.mxu1 %v20048_v39  ;;  %v4659_v55 = vor.u32 %v4658_v59, %v4655_v14  ;;  %v3374_v39 = vsel %vm2076_vm4, %v3371_v11, %v3373_v38  ;;  %v4992_v14 = vrot.slane %v4990_v62, 2  ;;  %v4995_v11 = vrot.slane %v4993_v63, 3 }
 0x207   : > { %17652 = vmatprep.subr.bf16.mxu1 %v27615_v15  ;;  %v22493_v30 = vor.u32 %v4667_v2, %v4664_v25  ;;  %v27649_v59 = vshrl.u32 %v22255_v23, 16  ;;  %v5001_v25 = vrot.slane %v4644_v16, 2  ;;  %v3375_v2 = vrot.slane %v22213_v42, 1 }
 0x208   : > { %17939 = vmatpush3.bf16.msra.mxu0 %v20049_v35  ;;  %v22491_v35 = vsel %vm2241_vm5, %v4650_v34, %v4659_v55  ;;  %v20054_v34 = vld [vmem:[%s27494_s3 + $0x2d0] sm:$0xff]   ;;  %v4996_v63 = vor.u32 %v4995_v11, %v4992_v14  ;;  %v27651_v62 = vshll.u32 %v22257_v58, 16  ;;  %v5006_v42 = vrot.slane %v4656_v48, 3  ;;  %v20056_v14 = vld [vmem:[%s27494_s3 + $0x2c8] sm:$0xff]   ;;  %v20057_v48 = vld [vmem:[%s27494_s3 + $0xc0] sm:$0xff]  }
 0x209   : > { %17633 = vmatmul.mubr.bf16.gmra.mxu1 %v22039_v19  ;;  %17940 = vmatprep.subr.bf16.mxu0 %v27615_v15  ;;  %27647 = vst [vmem:[#allocation33_spill] sm:$0xff] %v22491_v35  ;;  %27648 = vst [vmem:[#allocation34_spill] sm:$0xff] %v22493_v30  ;;  %v20053_v19 = vld [vmem:[%s27494_s3 + $0xd0] sm:$0xff]   ;;  %v4997_v0 = vrot.slane %v27649_v59, 2  ;;  %v5005_v35 = vrot.slane %v4653_v5, 2  ;;  %v5013_v58 = vshll.u32 %v22325_v57, 16  ;;  %v3376_v5 = vsel %vm2076_vm4, %v3373_v38, %v3375_v2 }
 0x20a   : > { %17636 = vmatprep.mubr.msk.bf16.mxu1 %vm21083_vm1, %v27615_v15  ;;  %17653 = vmatpush3.bf16.msra.mxu1 %v20050_v40  ;;  %v22508_v40 = vsel %vm2241_vm5, %v4659_v55, %v22493_v30  ;;  %v5002_v59 = vrot.slane %v27651_v62, 3  ;;  %v5724_v55 = vld [vmem:[#allocation2 + $0x1c] sm:$0xe]  ;;  %v5010_v30 = vshrl.u32 %v22325_v57, 16  ;;  %v3729_v38 = vshrl.u32 %v22236_v37, 16 }
 0x20b   : > { %17885 = vmatmul.mubr.bf16.gmra.mxu0 %v3374_v39  ;;  %v4998_v39 = vrot.slane %v4638_v61, 3  ;;  %17654 = vmatprep.subr.bf16.mxu1 %v27615_v15  ;;  %27650 = vst [vmem:[#allocation35_spill] sm:$0xff] %v22508_v40  ;;  %v20055_v61 = vld [vmem:[%s27494_s3 + $0xc8] sm:$0xff]   ;;  %v5015_v62 = vrot.slane %v5013_v58, 3  ;;  %v22704_v40 = vld [vmem:[#allocation2 + $0x3c] sm:$0xf] }
 0x20c   : > { %17888 = vmatprep.mubr.msk.bf16.mxu0 %vm21083_vm1, %v27615_v15  ;;  %17941 = vmatpush3.bf16.msra.mxu0 %v20052_v27  ;;  %v22515_v27 = vld [vmem:[#allocation2 + $0x20] sm:$0xf]  ;;  %v5003_v11 = vor.u32 %v5002_v59, %v5001_v25  ;;  %v22545_v25 = vld [vmem:[#allocation2 + $0x2c] sm:$0xff]   ;;  %27683 = vst [vmem:[#allocation60_spill] sm:$0xff] %v22704_v40 }
 0x20d   : > { %17942 = vmatprep.subr.bf16.mxu0 %v27615_v15  ;;  %v4999_v23 = vor.u32 %v4998_v39, %v4997_v0  ;;  %v22537_v0 = vcombine.low %v5724_v55, %v22515_v27  ;;  %v5007_v39 = vor.u32 %v5006_v42, %v5005_v35  ;;  %v3732_v35 = vshll.u32 %v22236_v37, 16  ;;  %v22555_v55 = vld [vmem:[#allocation2 + $0x34] sm:$0xff]  }
 0x20e   : > { %17655 = vmatpush3.bf16.msra.mxu1 %v20053_v19  ;;  %v22534_v19 = vld [vmem:[#allocation2 + $0x24] sm:$0xff]  }
 0x20f   : > { %v22520_v16 = vsel %vm3727_vm8, %v4996_v63, %v4999_v23  ;;  %17656 = vmatprep.subr.bf16.mxu1 %v27615_v15  ;;  %27653 = vst [vmem:[#allocation37_spill] sm:$0xff] %v22537_v0  ;;  %v22548_v63 = vsel %vm3727_vm8, %v4999_v23, %v5003_v11  ;;  %v22558_v42 = vsel %vm3727_vm8, %v5003_v11, %v5007_v39  ;;  %v5508_v23 = vld [vmem:[#allocation2 + $0x40] sm:$0x1]  ;;  %v5746_v37 = vrot.slane %v22534_v19, 1 }
 0x210   : > { %27652 = vst [vmem:[#allocation36_spill] sm:$0xff] %v22520_v16  ;;  %17943 = vmatpush3.bf16.msra.mxu0 %v20054_v34  ;;  %v5012_v34 = vrot.slane %v5010_v30, 2  ;;  %27654 = vst [vmem:[#allocation38_spill] sm:$0xff] %v22548_v63  ;;  %v27521_v30 = vshrl.u32 %v22240_v46, 16 }
 0x211   : > { %17637 = vmatmul.mubr.bf16.gmra.mxu1 %v22048_v10  ;;  %17944 = vmatprep.subr.bf16.mxu0 %v27615_v15  ;;  %v20058_v10 = vld [vmem:[%s27494_s3 + $0x2c0] sm:$0xff]   ;;  %27655 = vst [vmem:[#allocation39_spill] sm:$0xff] %v22558_v42 }
 0x212   : > { %17640 = vmatprep.mubr.msk.bf16.mxu1 %vm21083_vm1, %v27615_v15  ;;  %17657 = vmatpush3.bf16.msra.mxu1 %v20055_v61  ;;  %v22561_v58 = vor.u32 %v5015_v62, %v5012_v34  ;;  %v5745_v61 = vrot.slane %v22537_v0, 1  ;;  %v5748_v34 = vrot.slane %v22545_v25, 1  ;;  %v27660_v62 = vrot.slane %v21964_v45, 1  ;;  %v20075_v0 = vld [vmem:[%s27494_s3 + $0x110] sm:$0xff]  }
 0x213   : > { %17889 = vmatmul.mubr.bf16.gmra.mxu0 %v3376_v5  ;;  %17658 = vmatprep.subr.bf16.mxu1 %v27615_v15  ;;  %v5507_v5 = vld [vmem:[#allocation2 + $0x3c] sm:$0xf]  ;;  %v3739_v42 = vrot.slane %v27521_v30, 2  ;;  %v3734_v45 = vrot.slane %v3732_v35, 3 }
 0x214   : > { %17892 = vmatprep.mubr.msk.bf16.mxu0 %vm21083_vm1, %v27615_v15  ;;  %17945 = vmatpush3.bf16.msra.mxu0 %v20056_v14  ;;  %27656 = vst [vmem:[#allocation40_spill] sm:$0xff] %v22561_v58  ;;  %v22568_v59 = vsel %vm3727_vm8, %v5007_v39, %v22561_v58  ;;  %v22570_v11 = vcombine.low %v5507_v5, %v5508_v23  ;;  %v27661_v39 = vshll.u32 %v22240_v46, 16  ;;  %v5750_v23 = vrot.slane %v22555_v55, 1  ;;  %v6072_v30 = vld [vmem:[#allocation2 + $0x1c] sm:$0xc] }
 0x215   : > { %17946 = vmatprep.subr.bf16.mxu0 %v27615_v15  ;;  %27657 = vst [vmem:[#allocation41_spill] sm:$0xff] %v22568_v59  ;;  %v22573_v14 = vsel %vm2076_vm4, %v5745_v61, %v5746_v37  ;;  %v20061_v35 = vld [vmem:[%s27494_s3 + $0x138] sm:$0xff]   ;;  %v5888_v61 = vld [vmem:[#allocation2 + $0x40] sm:$0x3]  ;;  %v22697_v59 = vld [vmem:[#allocation2 + $0x34] sm:$0xf] }
 0x216   : > { %17659 = vmatpush3.bf16.msra.mxu1 %v20057_v48  ;;  %27658 = vst [vmem:[#allocation42_spill] sm:$0xff] %v22570_v11  ;;  %27659 = vst [vmem:[#allocation43_spill] sm:$0xff] %v22573_v14  ;;  %v3742_v58 = vrot.slane %v27661_v39, 3  ;;  %v22585_v48 = vsel %vm2076_vm4, %v5746_v37, %v5748_v34  ;;  %v22595_v39 = vsel %vm2076_vm4, %v5748_v34, %v5750_v23  ;;  %v27522_v37 = vrot.slane %v22570_v11, 1  ;;  %v20064_v34 = vld [vmem:[%s27494_s3 + $0x378] sm:$0xff]  }
 0x217   : > { %17680 = vmatprep.subr.bf16.mxu1 %v27615_v15  ;;  %27662 = vst [vmem:[#allocation44_spill] sm:$0xff] %v22585_v48  ;;  %27663 = vst [vmem:[#allocation45_spill] sm:$0xff] %v22595_v39  ;;  %v22778_v11 = vld [vmem:[#allocation2 + $0x50] sm:$0xf] }
 0x218   : > { %17947 = vmatpush3.bf16.msra.mxu0 %v20058_v10  ;;  %v3731_v10 = vrot.slane %v3729_v38, 2  ;;  %v3743_v48 = vor.u32 %v3742_v58, %v3739_v42  ;;  %v14991_v38 = vcombine.low %v6072_v30, %v22515_v27  ;;  %v6094_v42 = vrot.slane %v22534_v19, 2  ;;  %v20062_v30 = vld [vmem:[%s27494_s3 + $0x130] sm:$0xff]   ;;  %27681 = vst [vmem:[#allocation58_spill] sm:$0xff] %v22697_v59  ;;  %27700 = vst [vmem:[#allocation72_spill] sm:$0xff] %v22778_v11 }
 0x219   : > { %17641 = vmatmul.mubr.bf16.gmra.mxu1 %v27660_v62  ;;  %18004 = vmatprep.subr.bf16.mxu0 %v27615_v15  ;;  %v27665_v58 = vshrl.u32 %v22266_v50, 16  ;;  %v6096_v19 = vrot.slane %v22545_v25, 2  ;;  %v20066_v25 = vld [vmem:[%s27494_s3 + $0x370] sm:$0xff]  }
 0x21a   : > { %17660 = vmatprep.mubr.msk.bf16.mxu1 %vm21083_vm1, %v27615_v15  ;;  %v3735_v62 = vor.u32 %v3734_v45, %v3731_v10  ;;  %v6093_v39 = vrot.slane %v14991_v38, 2  ;;  %v22620_v10 = vcombine.low %v5507_v5, %v5888_v61  ;;  %v27523_v38 = vshrl.u32 %v22278_v33, 16  ;;  %v6664_v61 = vld [vmem:[#allocation2 + $0x24] sm:$0xe] }
 0x21b   : > { %17893 = vmatmul.mubr.bf16.gmra.mxu0 %v3375_v2  ;;  %v22601_v2 = vsel %vm2076_vm4, %v5750_v23, %v27522_v37  ;;  %v3748_v14 = vrot.slane %v27665_v58, 2  ;;  %v27666_v23 = vshll.u32 %v22266_v50, 16  ;;  %v22634_v5 = vsel %vm2426_vm6, %v6094_v42, %v6096_v19 }
 0x21c   : > { %17948 = vmatprep.mubr.msk.bf16.mxu0 %vm21083_vm1, %v27615_v15  ;;  %27664 = vst [vmem:[#allocation46_spill] sm:$0xff] %v22601_v2  ;;  %v3744_v27 = vsel %vm3727_vm8, %v3735_v62, %v3743_v48  ;;  %27667 = vst [vmem:[#allocation47_spill] sm:$0xff] %v22620_v10  ;;  %v22623_v45 = vsel %vm2426_vm6, %v6093_v39, %v6094_v42  ;;  %v22631_v62 = vld [vmem:[#allocation2 + $0x2c] sm:$0xff]   ;;  %v6098_v39 = vrot.slane %v22555_v55, 2  ;;  %v3757_v58 = vrot.slane %v27523_v38, 2 }
 0x21d   : > { %v3751_v37 = vrot.slane %v27666_v23, 3  ;;  %27668 = vst [vmem:[#allocation48_spill] sm:$0xff] %v22623_v45  ;;  %27669 = vst [vmem:[#allocation49_spill] sm:$0xff] %v22631_v62  ;;  %v20065_v42 = vld [vmem:[%s27494_s3 + $0x128] sm:$0xff]   ;;  %v22648_v23 = vld [vmem:[#allocation2 + $0x34] sm:$0xff]   ;;  %v27673_v55 = vshll.u32 %v22278_v33, 16 }
 0x21e   : > { %27670 = vst [vmem:[#allocation50_spill] sm:$0xff] %v22634_v5  ;;  %27671 = vst [vmem:[#allocation51_spill] sm:$0xff] %v22648_v23  ;;  %v22661_v5 = vsel %vm2426_vm6, %v6096_v19, %v6098_v39  ;;  %v27676_v38 = vrot.slane %v22620_v10, 2  ;;  %v6827_v45 = vld [vmem:[#allocation2 + $0x48] sm:$0x3]  ;;  %v27685_v16 = vshll.u32 %v22631_v62, 16 }
 0x21f   : > { %27674 = vst [vmem:[#allocation53_spill] sm:$0xff] %v22661_v5 }
 0x220   : > { %v6856_v10 = vrot.slane %v27685_v16, 2 }
 0x221   : > { %17661 = vmatmul.mubr.bf16.vlgmr.msra.gmra.mxu1 %v22079_v31  ;;  %v6308_v31 = vld [vmem:[#allocation2 + $0x28] sm:$0xf] }
 0x222   : > { %17681 = vmatpush3.bf16.msra.mxu1 %v20061_v35  ;;  %17664 = vmatprep.mubr.msk.bf16.mxu1 %vm21083_vm1, %v27615_v15  ;;  %v22642_v35 = vor.u32 %v3751_v37, %v3748_v14  ;;  %v3760_v14 = vrot.slane %v27673_v55, 3  ;;  %v20068_v37 = vld [vmem:[%s27494_s3 + $0x368] sm:$0xff]   ;;  %v22672_v55 = vsel %vm2426_vm6, %v6098_v39, %v27676_v38  ;;  %v6315_v38 = vld [vmem:[#allocation2 + $0x44] sm:$0xf]  ;;  %v27679_v39 = vshrl.u32 %v22631_v62, 16 }
 0x223   : > { %17949 = vmatmul.mubr.bf16.vlgmr.msra.gmra.mxu0 %v3744_v27  ;;  %17682 = vmatprep.subr.bf16.mxu1 %v27615_v15  ;;  %v22650_v27 = vcombine.low %v6664_v61, %v6308_v31  ;;  %v3764_v31 = vshrl.u32 %v22355_v9, 16  ;;  %v3767_v61 = vshll.u32 %v22355_v9, 16  ;;  %27677 = vst [vmem:[#allocation55_spill] sm:$0xff] %v22672_v55  ;;  %v22695_v55 = vld [vmem:[#allocation2 + $0x30] sm:$0xf]  ;;  %v22714_v63 = vcombine.low %v6315_v38, %v6827_v45 }
 0x224   : > { %17952 = vmatprep.mubr.msk.bf16.mxu0 %vm21083_vm1, %v27615_v15  ;;  %18005 = vmatpush3.bf16.msra.mxu0 %v20064_v34  ;;  %v22667_v34 = vld [vmem:[#allocation2 + $0x3c] sm:$0xff]   ;;  %v3753_v19 = vsel %vm3727_vm8, %v3743_v48, %v22642_v35  ;;  %v7173_v48 = vld [vmem:[#allocation2 + $0x28] sm:$0x8]  ;;  %v6855_v5 = vrot.slane %v27679_v39, 1  ;;  %27680 = vst [vmem:[#allocation57_spill] sm:$0xff] %v22695_v55  ;;  %v22707_v53 = vor.u32 %v3760_v14, %v3757_v58  ;;  %v27688_v38 = vshrl.u32 %v22648_v23, 16 }
 0x225   : > { %18006 = vmatprep.subr.bf16.mxu0 %v27615_v15  ;;  %27672 = vst [vmem:[#allocation52_spill] sm:$0xff] %v22650_v27  ;;  %27675 = vst [vmem:[#allocation54_spill] sm:$0xff] %v22667_v34  ;;  %v6848_v2 = vshrl.u32 %v22650_v27, 16  ;;  %v6851_v39 = vshll.u32 %v22650_v27, 16  ;;  %v3766_v49 = vrot.slane %v3764_v31, 2  ;;  %v3769_v27 = vrot.slane %v3767_v61, 3 }
 0x226   : > { %17683 = vmatpush3.bf16.msra.mxu1 %v20062_v30  ;;  %v20069_v30 = vld [vmem:[%s27494_s3 + $0x120] sm:$0xff]   ;;  %27684 = vst [vmem:[#allocation61_spill] sm:$0xff] %v22714_v63  ;;  %v6857_v45 = vor.u32 %v6856_v10, %v6855_v5  ;;  %v22733_v16 = vcombine.low %v22695_v55, %v22697_v59  ;;  %v22735_v31 = vld [vmem:[#allocation2 + $0x38] sm:$0xf]  ;;  %v27690_v61 = vshll.u32 %v22648_v23, 16  ;;  %v3762_v10 = vsel %vm3727_vm8, %v22642_v35, %v22707_v53 }
 0x227   : > { %17684 = vmatprep.subr.bf16.mxu1 %v27615_v15  ;;  %v6850_v8 = vrot.slane %v6848_v2, 1  ;;  %v20074_v2 = vld [vmem:[%s27494_s3 + $0x358] sm:$0xff]   ;;  %v22721_v58 = vld [vmem:[#allocation2 + $0x40] sm:$0xf]  ;;  %v6853_v14 = vrot.slane %v6851_v39, 2  ;;  %27689 = vst [vmem:[#allocation64_spill] sm:$0xff] %v22735_v31  ;;  %v3770_v7 = vor.u32 %v3769_v27, %v3766_v49 }
 0x228   : > { %18007 = vmatpush3.bf16.msra.mxu0 %v20066_v25  ;;  %v22688_v25 = vld [vmem:[#allocation2 + $0x2c] sm:$0xf]  ;;  %27686 = vst [vmem:[#allocation62_spill] sm:$0xff] %v22721_v58  ;;  %v22726_v9 = vld [vmem:[#allocation2 + $0x44] sm:$0xf]  ;;  %v27691_v39 = vshrl.u32 %v22667_v34, 16 }
 0x229   : > { %17665 = vmatmul.mubr.bf16.gmra.mxu1 %v22086_v47  ;;  %18008 = vmatprep.subr.bf16.mxu0 %v27615_v15  ;;  %v20070_v47 = vld [vmem:[%s27494_s3 + $0x360] sm:$0xff]   ;;  %27678 = vst [vmem:[#allocation56_spill] sm:$0xff] %v22688_v25  ;;  %v22724_v26 = vcombine.low %v7173_v48, %v22688_v25  ;;  %27687 = vst [vmem:[#allocation63_spill] sm:$0xff] %v22726_v9  ;;  %v6860_v48 = vrot.slane %v27690_v61, 2  ;;  %v22761_v35 = vld [vmem:[#allocation2 + $0x48] sm:$0xf] }
 0x22a   : > { %17668 = vmatprep.mubr.msk.bf16.mxu1 %vm21083_vm1, %v27615_v15  ;;  %17685 = vmatpush3.bf16.msra.mxu1 %v20065_v42  ;;  %v22702_v42 = vld [vmem:[#allocation2 + $0x38] sm:$0xf]  ;;  %v6863_v62 = vrot.slane %v27691_v39, 1  ;;  %27695 = vst [vmem:[#allocation67_spill] sm:$0xff] %v22761_v35  ;;  %v22763_v61 = vld [vmem:[#allocation2 + $0x34] sm:$0xf] }
 0x22b   : > { %17953 = vmatmul.mubr.bf16.gmra.mxu0 %v3753_v19  ;;  %17686 = vmatprep.subr.bf16.mxu1 %v27615_v15  ;;  %27682 = vst [vmem:[#allocation59_spill] sm:$0xff] %v22702_v42  ;;  %v20072_v19 = vld [vmem:[%s27494_s3 + $0x118] sm:$0xff]   ;;  %v22748_v5 = vcombine.low %v22702_v42, %v22704_v40  ;;  %27696 = vst [vmem:[#allocation68_spill] sm:$0xff] %v22763_v61  ;;  %v22765_v39 = vld [vmem:[#allocation2 + $0x48] sm:$0xf] }
 0x22c   : > { %17956 = vmatprep.mubr.msk.bf16.mxu0 %vm21083_vm1, %v27615_v15  ;;  %18009 = vmatpush3.bf16.msra.mxu0 %v20068_v37  ;;  %v6859_v37 = vrot.slane %v27688_v38, 1  ;;  %v6868_v38 = vshrl.u32 %v22714_v63, 16  ;;  %27697 = vst [vmem:[#allocation69_spill] sm:$0xff] %v22765_v39  ;;  %v7944_v49 = vld [vmem:[#allocation2 + $0x2c] sm:$0xe] }
 0x22d   : > { %18010 = vmatprep.subr.bf16.mxu0 %v27615_v15  ;;  %v8301_v55 = vld [vmem:[#allocation2 + $0x54] sm:$0x7] }
 0x22e   : > { %17687 = vmatpush3.bf16.msra.mxu1 %v20069_v30  ;;  %v6854_v30 = vor.u32 %v6853_v14, %v6850_v8  ;;  %v27693_v8 = vshll.u32 %v22667_v34, 16  ;;  %v6871_v34 = vshll.u32 %v22714_v63, 16  ;;  %v6870_v12 = vrot.slane %v6868_v38, 1  ;;  %v8662_v38 = vld [vmem:[#allocation2 + $0x54] sm:$0xf] }
 0x22f   : > { %17688 = vmatprep.subr.bf16.mxu1 %v27615_v15  ;;  %v7225_v63 = vrot.slane %v22733_v16, 3 }
 0x230   : > { %18011 = vmatpush3.bf16.msra.mxu0 %v20070_v47  ;;  %v22750_v47 = vld [vmem:[#allocation2 + $0x40] sm:$0xf]  ;;  %v6864_v14 = vrot.slane %v27693_v8, 2  ;;  %v22768_v23 = vsel %vm2241_vm5, %v6854_v30, %v6857_v45  ;;  %v6861_v8 = vor.u32 %v6860_v48, %v6859_v37  ;;  %v22784_v37 = vld [vmem:[#allocation2 + $0x44] sm:$0xf]  ;;  %v6873_v48 = vrot.slane %v6871_v34, 2 }
 0x231   : > { %17669 = vmatmul.mubr.bf16.gmra.mxu1 %v22094_v29  ;;  %18012 = vmatprep.subr.bf16.mxu0 %v27615_v15  ;;  %27692 = vst [vmem:[#allocation65_spill] sm:$0xff] %v22750_v47  ;;  %v22759_v29 = vcombine.low %v22721_v58, %v22726_v9  ;;  %27698 = vst [vmem:[#allocation70_spill] sm:$0xff] %v22768_v23  ;;  %v7224_v23 = vrot.slane %v22724_v26, 3  ;;  %v20077_v34 = vld [vmem:[%s27494_s3 + $0x108] sm:$0xff]   ;;  %v27713_v58 = vshll.u32 %v22240_v46, 16 }
 0x232   : > { %17672 = vmatprep.mubr.msk.bf16.mxu1 %vm21083_vm1, %v27615_v15  ;;  %17689 = vmatpush3.bf16.msra.mxu1 %v20072_v19  ;;  %v6865_v4 = vor.u32 %v6864_v14, %v6863_v62  ;;  %v20076_v19 = vld [vmem:[%s27494_s3 + $0x350] sm:$0xff]   ;;  %27701 = vst [vmem:[#allocation73_spill] sm:$0xff] %v22784_v37  ;;  %v22787_v30 = vsel %vm2241_vm5, %v6857_v45, %v6861_v8  ;;  %v7227_v14 = vrot.slane %v22748_v5, 3 }
 0x233   : > { %17957 = vmatmul.mubr.bf16.gmra.mxu0 %v3762_v10  ;;  %27694 = vst [vmem:[#allocation66_spill] sm:$0xff] %v22759_v29  ;;  %v7182_v10 = vld [vmem:[#allocation2 + $0x4c] sm:$0x7]  ;;  %17690 = vmatprep.subr.bf16.mxu1 %v27615_v15  ;;  %27702 = vst [vmem:[#allocation74_spill] sm:$0xff] %v22787_v30  ;;  %v22801_v45 = vor.u32 %v6873_v48, %v6870_v12  ;;  %v22804_v30 = vsel %vm2622_vm3, %v7224_v23, %v7225_v63  ;;  %v7229_v27 = vrot.slane %v22759_v29, 3 }
 0x234   : > { %17960 = vmatprep.mubr.msk.bf16.mxu0 %vm21083_vm1, %v27615_v15  ;;  %18013 = vmatpush3.bf16.msra.mxu0 %v20074_v2  ;;  %v22793_v62 = vsel %vm2241_vm5, %v6861_v8, %v6865_v4  ;;  %27705 = vst [vmem:[#allocation77_spill] sm:$0xff] %v22804_v30  ;;  %v22809_v8 = vld [vmem:[#allocation2 + $0x4c] sm:$0xf]  ;;  %v22812_v2 = vsel %vm2622_vm3, %v7225_v63, %v7227_v14  ;;  %v4095_v63 = vshll.u32 %v22284_v6, 16  ;;  %v4100_v40 = vrot.slane %v27713_v58, 4 }
 0x235   : > { %18014 = vmatprep.subr.bf16.mxu0 %v27615_v15  ;;  %27703 = vst [vmem:[#allocation75_spill] sm:$0xff] %v22793_v62  ;;  %27704 = vst [vmem:[#allocation76_spill] sm:$0xff] %v22801_v45  ;;  %v15143_v12 = vcombine.low %v22761_v35, %v7182_v10  ;;  %v20078_v23 = vld [vmem:[%s27494_s3 + $0x348] sm:$0xff]   ;;  %v22826_v48 = vsel %vm2622_vm3, %v7227_v14, %v7229_v27  ;;  %v3771_v10 = vsel %vm3727_vm8, %v22707_v53, %v3770_v7  ;;  %v20079_v53 = vld [vmem:[%s27494_s3 + $0x100] sm:$0xff]  }
 0x236   : > { %17691 = vmatpush3.bf16.msra.mxu1 %v20075_v0  ;;  %27706 = vst [vmem:[#allocation78_spill] sm:$0xff] %v22809_v8  ;;  %27707 = vst [vmem:[#allocation79_spill] sm:$0xff] %v22812_v2  ;;  %v22823_v0 = vsel %vm2241_vm5, %v6865_v4, %v22801_v45  ;;  %v22837_v62 = vcombine.low %v22778_v11, %v8662_v38  ;;  %v20289_v4 = vld [vmem:[#allocation2 + $0x3c] sm:$0xff]   ;;  %v4097_v58 = vrot.slane %v4095_v63, 4 }
 0x237   : > { %17692 = vmatprep.subr.bf16.mxu1 %v27615_v15  ;;  %27708 = vst [vmem:[#allocation80_spill] sm:$0xff] %v22823_v0  ;;  %27709 = vst [vmem:[#allocation81_spill] sm:$0xff] %v22826_v48  ;;  %v20085_v63 = vld [vmem:[%s27494_s3 + $0x3f8] sm:$0xff]   ;;  %v22902_v9 = vcombine.low %v22735_v31, %v22776_v21  ;;  %v22909_v25 = vcombine.low %v22750_v47, %v22784_v37  ;;  %v20164_v0 = vld [vmem:[%s27494_s3 + $0x3a8] sm:$0xff]  }
 0x238   : > { %18015 = vmatpush3.bf16.msra.mxu0 %v20076_v19  ;;  %v22834_v19 = vrot.slane %v15143_v12, 3  ;;  %v20286_v12 = vld [vmem:[#allocation2 + $0x34] sm:$0xff]  }
 0x239   : > { %17673 = vmatmul.mubr.bf16.gmra.mxu1 %v22114_v17  ;;  %18016 = vmatprep.subr.bf16.mxu0 %v27615_v15  ;;  %v7721_v17 = vld [vmem:[#allocation2 + $0x30] sm:$0xf]  ;;  %v7965_v59 = vrot.slane %v20286_v12, 1  ;;  %v27716_v12 = vshrl.u32 %v22266_v50, 16  ;;  %27720 = vst [vmem:[#allocation87_spill] sm:$0xff] %v22902_v9  ;;  %27722 = vst [vmem:[#allocation89_spill] sm:$0xff] %v22909_v25 }
 0x23a   : > { %27710 = vst [vmem:[#allocation82_spill] sm:$0xff] %v22834_v19  ;;  %17676 = vmatprep.mubr.msk.bf16.mxu1 %vm21083_vm1, %v27615_v15  ;;  %17693 = vmatpush3.bf16.msra.mxu1 %v20077_v34  ;;  %v22852_v14 = vsel %vm2622_vm3, %v7229_v27, %v22834_v19  ;;  %v20080_v34 = vld [vmem:[%s27494_s3 + $0x340] sm:$0xff]   ;;  %v4092_v27 = vshrl.u32 %v22284_v6, 16  ;;  %v15251_v42 = vcombine.low %v7944_v49, %v7721_v17  ;;  %v20984_v6 = vld [vmem:[#allocation2 + $0x2c] sm:$0xf] }
 0x23b   : > { %17961 = vmatmul.mubr.bf16.gmra.mxu0 %v3771_v10  ;;  %27711 = vst [vmem:[#allocation83_spill] sm:$0xff] %v22852_v14  ;;  %17694 = vmatprep.subr.bf16.mxu1 %v27615_v15  ;;  %v4070_v10 = vld [vmem:[#allocation2 + $0x30] sm:$0xf]  ;;  %v22930_v19 = vcombine.low %v22778_v11, %v8301_v55 }
 0x23c   : > { %17964 = vmatprep.mubr.msk.bf16.mxu0 %vm21083_vm1, %v27615_v15  ;;  %18017 = vmatpush3.bf16.msra.mxu0 %v20078_v23  ;;  %v27712_v23 = vshrl.u32 %v22240_v46, 16  ;;  %v7964_v35 = vrot.slane %v15251_v42, 1  ;;  %v4094_v46 = vrot.slane %v4092_v27, 3  ;;  %v27717_v42 = vshll.u32 %v22266_v50, 16  ;;  %v20087_v55 = vld [vmem:[%s27494_s3 + $0x3f0] sm:$0xff]  }
 0x23d   : > { %18018 = vmatprep.subr.bf16.mxu0 %v27615_v15  ;;  %27726 = vst [vmem:[#allocation92_spill] sm:$0xff] %v22930_v19  ;;  %v8360_v37 = vshll.u32 %v22930_v19, 16 }
 0x23e   : > { %v4099_v38 = vrot.slane %v27712_v23, 3  ;;  %17695 = vmatpush3.bf16.msra.mxu1 %v20079_v53  ;;  %v14700_v53 = vcombine.low %v20984_v6, %v4070_v10  ;;  %v20293_v23 = vld [vmem:[#allocation2 + $0x44] sm:$0xff]   ;;  %v22881_v17 = vsel %vm2076_vm4, %v7964_v35, %v7965_v59  ;;  %v4103_v10 = vrot.slane %v27716_v12, 3 }
 0x23f   : > { %17752 = vmatprep.subr.bf16.mxu1 %v27615_v15  ;;  %27715 = vst [vmem:[#allocation85_spill] sm:$0xff] %v22881_v17  ;;  %v4104_v6 = vrot.slane %v27717_v42, 4  ;;  %v27719_v35 = vshrl.u32 %v22278_v33, 16  ;;  %v7969_v12 = vrot.slane %v20293_v23, 1  ;;  %v4098_v50 = vor.u32 %v4097_v58, %v4094_v46  ;;  %v8499_v42 = vld [vmem:[#allocation2 + $0x30] sm:$0x8] }
 0x240   : > { %18019 = vmatpush3.bf16.msra.mxu0 %v20080_v34  ;;  %v8107_v34 = vld [vmem:[#allocation2 + $0x30] sm:$0xc]  ;;  %v22876_v49 = vor.u32 %v4100_v40, %v4099_v38  ;;  %v7967_v40 = vrot.slane %v20289_v4, 1  ;;  %v4112_v17 = vshrl.u32 %v14700_v53, 16  ;;  %v4115_v4 = vshll.u32 %v14700_v53, 16 }
 0x241   : > { %17677 = vmatmul.mubr.bf16.gmra.mxu1 %v22104_v54  ;;  %18076 = vmatprep.subr.bf16.mxu0 %v27615_v15  ;;  %v22878_v54 = vld [vmem:[#allocation2 + $0x4c] sm:$0x1f]   ;;  %v22891_v27 = vcombine.low %v8107_v34, %v22763_v61  ;;  %v22898_v38 = vrot.slane %v27719_v35, 3  ;;  %v22920_v46 = vcombine.low %v22765_v39, %v22809_v8 }
 0x242   : > { %17696 = vmatprep.mubr.msk.bf16.mxu1 %vm21083_vm1, %v27615_v15  ;;  %27714 = vst [vmem:[#allocation84_spill] sm:$0xff] %v22878_v54  ;;  %v22905_v34 = vsel %vm2076_vm4, %v7965_v59, %v7967_v40  ;;  %v22912_v35 = vsel %vm2076_vm4, %v7967_v40, %v7969_v12  ;;  %v4102_v23 = vsel %vm2787_vm7, %v4098_v50, %v22876_v49  ;;  %v20084_v58 = vld [vmem:[%s27494_s3 + $0x1b0] sm:$0xff]   ;;  %v27725_v40 = vshll.u32 %v22278_v33, 16  ;;  %v20086_v8 = vld [vmem:[%s27494_s3 + $0x1a8] sm:$0xff]  }
 0x243   : > { %17965 = vmatmul.mubr.bf16.gmra.mxu0 %v3770_v7  ;;  %v20083_v7 = vld [vmem:[%s27494_s3 + $0x1b8] sm:$0xff]   ;;  %27718 = vst [vmem:[#allocation86_spill] sm:$0xff] %v22891_v27  ;;  %27721 = vst [vmem:[#allocation88_spill] sm:$0xff] %v22905_v34  ;;  %v8322_v59 = vshrl.u32 %v22891_v27, 16  ;;  %v8325_v53 = vshll.u32 %v22891_v27, 16  ;;  %v27727_v50 = vrot.slane %v22878_v54, 1 }
 0x244   : > { %18020 = vmatprep.mubr.msk.bf16.mxu0 %vm21083_vm1, %v27615_v15  ;;  %27723 = vst [vmem:[#allocation90_spill] sm:$0xff] %v22912_v35  ;;  %27724 = vst [vmem:[#allocation91_spill] sm:$0xff] %v22920_v46  ;;  %v8330_v34 = vshrl.u32 %v22902_v9, 16  ;;  %v27790_v27 = vld [vmem:[#allocation42_spill] sm:$0xff] }
 0x245   : > { %v22935_v35 = vsel %vm2076_vm4, %v7969_v12, %v27727_v50  ;;  %v8327_v33 = vrot.slane %v8325_v53, 3  ;;  %v22949_v12 = vrot.slane %v4112_v17, 3  ;;  %v22952_v50 = vcombine.low %v8499_v42, %v22763_v61 }
 0x246   : > { %27728 = vst [vmem:[#allocation93_spill] sm:$0xff] %v22935_v35  ;;  %v8332_v54 = vrot.slane %v8330_v34, 2  ;;  %v8342_v53 = vshll.u32 %v22909_v25, 16  ;;  %v8351_v17 = vshll.u32 %v22920_v46, 16  ;;  %v8357_v42 = vshrl.u32 %v22930_v19, 16 }
 0x247   : > { %27729 = vst [vmem:[#allocation94_spill] sm:$0xff] %v22952_v50  ;;  %v8683_v47 = vshrl.u32 %v22952_v50, 16  ;;  %v8686_v2 = vshll.u32 %v22952_v50, 16  ;;  %v8690_v61 = vrot.slane %v8330_v34, 3 }
 0x248   : > { %v8344_v14 = vrot.slane %v8342_v53, 3  ;;  %v8359_v48 = vrot.slane %v8357_v42, 2 }
 0x249   : > { %17697 = vmatmul.mubr.bf16.vlgmr.msra.gmra.mxu1 %v22107_v56  ;;  %v4108_v56 = vrot.slane %v27725_v40, 4  ;;  %v8333_v40 = vshll.u32 %v22902_v9, 16  ;;  %v8685_v31 = vrot.slane %v8683_v47, 3  ;;  %v20090_v47 = vld [vmem:[%s27494_s3 + $0x3e0] sm:$0xff]  }
 0x24a   : > { %17753 = vmatpush3.bf16.msra.mxu1 %v20083_v7  ;;  %17700 = vmatprep.mubr.msk.bf16.mxu1 %vm21083_vm1, %v27615_v15  ;;  %v22941_v7 = vor.u32 %v4104_v6, %v4103_v10  ;;  %v8339_v10 = vshrl.u32 %v22909_v25, 16  ;;  %v22956_v6 = vrot.slane %v4115_v4, 4 }
 0x24b   : > { %18021 = vmatmul.mubr.bf16.vlgmr.msra.gmra.mxu0 %v4102_v23  ;;  %17754 = vmatprep.subr.bf16.mxu1 %v27615_v15  ;;  %v8324_v23 = vrot.slane %v8322_v59, 2  ;;  %v8335_v59 = vrot.slane %v8333_v40, 3 }
 0x24c   : > { %18024 = vmatprep.mubr.msk.bf16.mxu0 %vm21083_vm1, %v27615_v15  ;;  %18077 = vmatpush3.bf16.msra.mxu0 %v20085_v63  ;;  %v8348_v63 = vshrl.u32 %v22920_v46, 16  ;;  %v8341_v11 = vrot.slane %v8339_v10, 2  ;;  %v8694_v34 = vrot.slane %v8339_v10, 3  ;;  %v8699_v10 = vrot.slane %v8351_v17, 4  ;;  %v20170_v46 = vld [vmem:[%s27494_s3 + $0x398] sm:$0xff]  }
 0x24d   : > { %18078 = vmatprep.subr.bf16.mxu0 %v27615_v15  ;;  %v8328_v35 = vor.u32 %v8327_v33, %v8324_v23  ;;  %v8336_v4 = vor.u32 %v8335_v59, %v8332_v54  ;;  %v20088_v23 = vld [vmem:[%s27494_s3 + $0x3e8] sm:$0xff]   ;;  %v8353_v33 = vrot.slane %v8351_v17, 3  ;;  %v9000_v54 = vld [vmem:[#allocation2 + $0x38] sm:$0xe]  ;;  %v22976_v59 = vld [vmem:[#allocation2 + $0x3c] sm:$0xf] }
 0x24e   : > { %17755 = vmatpush3.bf16.msra.mxu1 %v20084_v58  ;;  %v8350_v39 = vrot.slane %v8348_v63, 2  ;;  %v4106_v58 = vsel %vm2787_vm7, %v22876_v49, %v22941_v7  ;;  %v8345_v49 = vor.u32 %v8344_v14, %v8341_v11  ;;  %v8688_v14 = vrot.slane %v8686_v2, 4  ;;  %v20093_v17 = vld [vmem:[%s27494_s3 + $0x3d8] sm:$0xff]  }
 0x24f   : > { %17756 = vmatprep.subr.bf16.mxu1 %v27615_v15  ;;  %v22979_v21 = vsel %vm3727_vm8, %v8328_v35, %v8336_v4  ;;  %v20089_v35 = vld [vmem:[%s27494_s3 + $0x1a0] sm:$0xff]  }
 0x250   : > { %18079 = vmatpush3.bf16.msra.mxu0 %v20087_v55  ;;  %27730 = vst [vmem:[#allocation95_spill] sm:$0xff] %v22979_v21  ;;  %v8362_v55 = vrot.slane %v8360_v37, 3  ;;  %v8354_v42 = vor.u32 %v8353_v33, %v8350_v39  ;;  %v22990_v11 = vsel %vm3727_vm8, %v8336_v4, %v8345_v49  ;;  %v23014_v4 = vld [vmem:[#allocation2 + $0x48] sm:$0xff]   ;;  %v9392_v33 = vld [vmem:[#allocation2 + $0x38] sm:$0xc] }
 0x251   : > { %17701 = vmatmul.mubr.bf16.gmra.mxu1 %v22123_v52  ;;  %18080 = vmatprep.subr.bf16.mxu0 %v27615_v15  ;;  %v8691_v52 = vrot.slane %v8333_v40, 4  ;;  %27731 = vst [vmem:[#allocation96_spill] sm:$0xff] %v22990_v11  ;;  %v23012_v40 = vcombine.low %v9000_v54, %v22976_v59  ;;  %v8703_v54 = vshrl.u32 %v22837_v62, 16 }
 0x252   : > { %17704 = vmatprep.mubr.msk.bf16.mxu1 %vm21083_vm1, %v27615_v15  ;;  %17757 = vmatpush3.bf16.msra.mxu1 %v20086_v8  ;;  %v22992_v37 = vor.u32 %v8362_v55, %v8359_v48  ;;  %v23002_v39 = vsel %vm3727_vm8, %v8345_v49, %v8354_v42  ;;  %v23005_v48 = vld [vmem:[#allocation2 + $0x40] sm:$0xff]   ;;  %v20091_v49 = vld [vmem:[%s27494_s3 + $0x198] sm:$0xff]  }
 0x253   : > { %18025 = vmatmul.mubr.bf16.gmra.mxu0 %v4106_v58  ;;  %v22995_v58 = vor.u32 %v4108_v56, %v22898_v38  ;;  %17758 = vmatprep.subr.bf16.mxu1 %v27615_v15  ;;  %27733 = vst [vmem:[#allocation98_spill] sm:$0xff] %v23002_v39  ;;  %v8692_v8 = vor.u32 %v8691_v52, %v8690_v61  ;;  %v8695_v56 = vrot.slane %v8342_v53, 4  ;;  %27735 = vst [vmem:[#allocation100_spill] sm:$0xff] %v23012_v40  ;;  %v9008_v55 = vld [vmem:[#allocation2 + $0x58] sm:$0xf] }
 0x254   : > { %18028 = vmatprep.mubr.msk.bf16.mxu0 %vm21083_vm1, %v27615_v15  ;;  %27732 = vst [vmem:[#allocation97_spill] sm:$0xff] %v22992_v37  ;;  %18081 = vmatpush3.bf16.msra.mxu0 %v20088_v23  ;;  %v23009_v2 = vsel %vm3727_vm8, %v8354_v42, %v22992_v37  ;;  %v8689_v38 = vor.u32 %v8688_v14, %v8685_v31  ;;  %v23016_v23 = vld [vmem:[#allocation2 + $0x50] sm:$0xff]   ;;  %v8698_v61 = vrot.slane %v8348_v63, 3  ;;  %v9194_v42 = vld [vmem:[#allocation2 + $0x5c] sm:$0x3]  ;;  %v8706_v14 = vshll.u32 %v22837_v62, 16 }
 0x255   : > { %18082 = vmatprep.subr.bf16.mxu0 %v27615_v15  ;;  %27734 = vst [vmem:[#allocation99_spill] sm:$0xff] %v23009_v2  ;;  %v8696_v53 = vor.u32 %v8695_v56, %v8694_v34  ;;  %v4110_v52 = vsel %vm2787_vm7, %v22941_v7, %v22995_v58  ;;  %v23031_v63 = vor.u32 %v22956_v6, %v22949_v12  ;;  %v8705_v34 = vrot.slane %v8703_v54, 3  ;;  %v9009_v12 = vld [vmem:[#allocation2 + $0x5c] sm:$0x1] }
 0x256   : > { %17759 = vmatpush3.bf16.msra.mxu1 %v20089_v35  ;;  %v23022_v31 = vsel %vm2787_vm7, %v8689_v38, %v8692_v8  ;;  %v8700_v35 = vor.u32 %v8699_v10, %v8698_v61  ;;  %v23040_v7 = vcombine.low %v9392_v33, %v22976_v59  ;;  %v8708_v62 = vrot.slane %v8706_v14, 4  ;;  %v9555_v33 = vld [vmem:[#allocation2 + $0x5c] sm:$0x7]  ;;  %v10084_v14 = vld [vmem:[#allocation2 + $0x44] sm:$0xf] }
 0x257   : > { %27736 = vst [vmem:[#allocation101_spill] sm:$0xff] %v23022_v31  ;;  %17760 = vmatprep.subr.bf16.mxu1 %v27615_v15  ;;  %v27559_v38 = vmov 0   ;;  %v9052_v56 = vrot.slane %v23005_v48, 1  ;;  %v9054_v61 = vrot.slane %v23014_v4, 1  ;;  %v9056_v10 = vrot.slane %v23016_v23, 1  ;;  %v27777_v39 = vld [vmem:[#allocation11_spill] sm:$0xff] }
 0x258   : > { %18083 = vmatpush3.bf16.msra.mxu0 %v20090_v47  ;;  %27737 = vst [vmem:[#allocation102_spill] sm:$0xff] %v23040_v7  ;;  %v23043_v47 = vsel %vm2787_vm7, %v8692_v8, %v8696_v53  ;;  %v23048_v6 = vsel %vm2787_vm7, %v8696_v53, %v8700_v35  ;;  %1695 = vst [vmem:[#allocation2 + $0x64] sm:$0xf] %v27559_v38  ;;  %v20094_v8 = vld [vmem:[%s27494_s3 + $0x190] sm:$0xff]   ;;  %v23066_v54 = vor.u32 %v8708_v62, %v8705_v34  ;;  %v10307_v38 = vld [vmem:[#allocation2 + $0x40] sm:$0xe] }
 0x259   : > { %17705 = vmatmul.mubr.bf16.gmra.mxu1 %v22132_v43  ;;  %18084 = vmatprep.subr.bf16.mxu0 %v27615_v15  ;;  %27738 = vst [vmem:[#allocation103_spill] sm:$0xff] %v23043_v47  ;;  %27739 = vst [vmem:[#allocation104_spill] sm:$0xff] %v23048_v6  ;;  %v9051_v43 = vrot.slane %v23012_v40, 1  ;;  %v20095_v53 = vld [vmem:[%s27494_s3 + $0x3d0] sm:$0xff]   ;;  %v23073_v6 = vsel %vm2076_vm4, %v9052_v56, %v9054_v61  ;;  %v15413_v47 = vcombine.low %v9008_v55, %v9009_v12  ;;  %v9738_v31 = vld [vmem:[#allocation2 + $0x38] sm:$0x8] }
 0x25a   : > { %17708 = vmatprep.mubr.msk.bf16.mxu1 %vm21083_vm1, %v27615_v15  ;;  %17761 = vmatpush3.bf16.msra.mxu1 %v20091_v49  ;;  %v23064_v49 = vcombine.low %v9008_v55, %v9194_v42  ;;  %27741 = vst [vmem:[#allocation106_spill] sm:$0xff] %v23066_v54  ;;  %27743 = vst [vmem:[#allocation108_spill] sm:$0xff] %v23073_v6  ;;  %v4119_v42 = vsel %vm2787_vm7, %v22995_v58, %v23031_v63  ;;  %v20096_v34 = vld [vmem:[%s27494_s3 + $0x188] sm:$0xff]   ;;  %v10091_v12 = vld [vmem:[#allocation2 + $0x60] sm:$0xf]  ;;  %v9413_v58 = vrot.slane %v23005_v48, 2 }
 0x25b   : > { %18029 = vmatmul.mubr.bf16.gmra.mxu0 %v4110_v52  ;;  %17762 = vmatprep.subr.bf16.mxu1 %v27615_v15  ;;  %v23069_v52 = vsel %vm2076_vm4, %v9051_v43, %v9052_v56  ;;  %v23084_v62 = vcombine.low %v9008_v55, %v9555_v33  ;;  %v23088_v43 = vsel %vm2787_vm7, %v8700_v35, %v23066_v54  ;;  %v9412_v56 = vrot.slane %v23040_v7, 2  ;;  %v10083_v55 = vld [vmem:[#allocation2 + $0x40] sm:$0xf]  ;;  %v20097_v35 = vld [vmem:[%s27494_s3 + $0x3c8] sm:$0xff]   ;;  %v5499_v7 = vld [vmem:[#allocation2 + $0x1c] sm:$0xf] }
 0x25c   : > { %18032 = vmatprep.mubr.msk.bf16.mxu0 %vm21083_vm1, %v27615_v15  ;;  %18085 = vmatpush3.bf16.msra.mxu0 %v20093_v17  ;;  %27740 = vst [vmem:[#allocation105_spill] sm:$0xff] %v23064_v49  ;;  %27742 = vst [vmem:[#allocation107_spill] sm:$0xff] %v23069_v52  ;;  %v23076_v17 = vsel %vm2076_vm4, %v9054_v61, %v9056_v10  ;;  %v23091_v61 = vld [vmem:[#allocation2 + $0x48] sm:$0xff]   ;;  %v9415_v6 = vrot.slane %v23014_v4, 2  ;;  %v9417_v52 = vrot.slane %v23016_v23, 2  ;;  %v9761_v54 = vrot.slane %v23014_v4, 3 }
 0x25d   : > { %18086 = vmatprep.subr.bf16.mxu0 %v27615_v15  ;;  %27744 = vst [vmem:[#allocation109_spill] sm:$0xff] %v23076_v17  ;;  %27745 = vst [vmem:[#allocation110_spill] sm:$0xff] %v23084_v62  ;;  %v23093_v17 = vrot.slane %v15413_v47, 1  ;;  %v15513_v33 = vcombine.low %v9738_v31, %v22976_v59  ;;  %v9759_v47 = vrot.slane %v23005_v48, 3  ;;  %v9763_v48 = vrot.slane %v23016_v23, 3  ;;  %v23125_v4 = vld [vmem:[#allocation2 + $0x58] sm:$0xff]  }
 0x25e   : > { %27746 = vst [vmem:[#allocation111_spill] sm:$0xff] %v23088_v43  ;;  %17763 = vmatpush3.bf16.msra.mxu1 %v20094_v8  ;;  %v23108_v43 = vld [vmem:[#allocation2 + $0x50] sm:$0xff]   ;;  %v23115_v8 = vsel %vm2426_vm6, %v9412_v56, %v9413_v58  ;;  %v23118_v59 = vsel %vm2426_vm6, %v9413_v58, %v9415_v6  ;;  %v23128_v31 = vsel %vm2426_vm6, %v9415_v6, %v9417_v52  ;;  %v20098_v23 = vld [vmem:[%s27494_s3 + $0x180] sm:$0xff]  }
 0x25f   : > { %27747 = vst [vmem:[#allocation112_spill] sm:$0xff] %v23093_v17  ;;  %17764 = vmatprep.subr.bf16.mxu1 %v27615_v15  ;;  %v23112_v37 = vsel %vm2076_vm4, %v9056_v10, %v23093_v17  ;;  %v10470_v2 = vld [vmem:[#allocation2 + $0x64] sm:$0x3]  ;;  %27749 = vst [vmem:[#allocation114_spill] sm:$0xff] %v23115_v8  ;;  %v9758_v10 = vrot.slane %v15513_v33, 3  ;;  %v23144_v6 = vsel %vm2622_vm3, %v9761_v54, %v9763_v48 }
 0x260   : > { %18087 = vmatpush3.bf16.msra.mxu0 %v20095_v53  ;;  %v10092_v53 = vld [vmem:[#allocation2 + $0x64] sm:$0x1]  ;;  %27748 = vst [vmem:[#allocation113_spill] sm:$0xff] %v23112_v37  ;;  %27750 = vst [vmem:[#allocation115_spill] sm:$0xff] %v23118_v59 }
 0x261   : > { %17709 = vmatmul.mubr.bf16.gmra.mxu1 %v22145_v20  ;;  %18088 = vmatprep.subr.bf16.mxu0 %v27615_v15  ;;  %v23123_v20 = vcombine.low %v10307_v38, %v10084_v14  ;;  %27752 = vst [vmem:[#allocation117_spill] sm:$0xff] %v23128_v31  ;;  %v23141_v38 = vsel %vm2622_vm3, %v9759_v47, %v9761_v54  ;;  %27756 = vst [vmem:[#allocation120_spill] sm:$0xff] %v23144_v6  ;;  %v20099_v58 = vld [vmem:[%s27494_s3 + $0x3c0] sm:$0xff]   ;;  %v10146_v6 = vshrl.u32 %v23091_v61, 16 }
 0x262   : > { %17712 = vmatprep.mubr.msk.bf16.mxu1 %vm21083_vm1, %v27615_v15  ;;  %17765 = vmatpush3.bf16.msra.mxu1 %v20096_v34  ;;  %27755 = vst [vmem:[#allocation119_spill] sm:$0xff] %v23141_v38  ;;  %v27563_v34 = vrot.slane %v23084_v62, 3  ;;  %v23151_v33 = vcombine.low %v10091_v12, %v10092_v53  ;;  %v10150_v38 = vshll.u32 %v23108_v43, 16  ;;  %v10158_v53 = vshll.u32 %v23125_v4, 16  ;;  %v27782_v62 = vld [vmem:[#allocation24_spill] sm:$0xff] }
 0x263   : > { %18033 = vmatmul.mubr.bf16.gmra.mxu0 %v4119_v42  ;;  %27751 = vst [vmem:[#allocation116_spill] sm:$0xff] %v23123_v20  ;;  %v27753_v42 = vrot.slane %v23064_v49, 2  ;;  %17766 = vmatprep.subr.bf16.mxu1 %v27615_v15 }
 0x264   : > { %18036 = vmatprep.mubr.msk.bf16.mxu0 %vm21083_vm1, %v27615_v15  ;;  %18089 = vmatpush3.bf16.msra.mxu0 %v20097_v35  ;;  %27757 = vst [vmem:[#allocation121_spill] sm:$0xff] %v23151_v33  ;;  %v23160_v54 = vsel %vm2622_vm3, %v9763_v48, %v27563_v34  ;;  %v10142_v35 = vshll.u32 %v23091_v61, 16  ;;  %v10152_v48 = vrot.slane %v10150_v38, 1  ;;  %v10154_v34 = vshrl.u32 %v23108_v43, 16 }
 0x265   : > { %v23138_v56 = vsel %vm2426_vm6, %v9417_v52, %v27753_v42  ;;  %v23154_v52 = vsel %vm2622_vm3, %v9758_v10, %v9759_v47  ;;  %v15567_v42 = vcombine.low %v10083_v55, %v10084_v14  ;;  %18090 = vmatprep.subr.bf16.mxu0 %v27615_v15  ;;  %27759 = vst [vmem:[#allocation123_spill] sm:$0xff] %v23160_v54  ;;  %v10498_v54 = vrot.slane %v10146_v6, 1 }
 0x266   : > { %27754 = vst [vmem:[#allocation118_spill] sm:$0xff] %v23138_v56  ;;  %27758 = vst [vmem:[#allocation122_spill] sm:$0xff] %v23154_v52  ;;  %v23166_v56 = vld [vmem:[#allocation2 + $0x1c] sm:$0xff]   ;;  %v23169_v14 = vcombine.low %v10091_v12, %v10470_v2  ;;  %17767 = vmatpush3.bf16.msra.mxu1 %v20098_v23  ;;  %v10144_v52 = vrot.slane %v10142_v35, 1  ;;  %v10166_v31 = vshll.u32 %v23151_v33, 16  ;;  %v27761_v2 = vrot.slane %v22089_v13, 2 }
 0x267   : > { %v10137_v55 = vshll.u32 %v15567_v42, 16  ;;  %v10135_v10 = vshrl.u32 %v15567_v42, 16  ;;  %17824 = vmatprep.subr.bf16.mxu1 %v27615_v15  ;;  %v10156_v23 = vor.u32 %v10154_v34, %v10152_v48  ;;  %v10162_v43 = vshrl.u32 %v23125_v4, 16 }
 0x268   : > { %27760 = vst [vmem:[#allocation124_spill] sm:$0xff] %v23169_v14  ;;  %18091 = vmatpush3.bf16.msra.mxu0 %v20099_v58  ;;  %v23175_v59 = vpop.f32.mrf.mxu1  ;;  %v10148_v12 = vor.u32 %v10146_v6, %v10144_v52  ;;  %v10491_v58 = vshrl.u32 %v23123_v20, 16  ;;  %v10160_v47 = vrot.slane %v10158_v53, 1  ;;  %v23187_v8 = vrot.slane %v10166_v31, 1 }
 0x269   : > { %v10139_v61 = vrot.slane %v10137_v55, 1  ;;  %17713 = vmatmul.mubr.bf16.gmra.mxu1 %v27761_v2  ;;  %18148 = vmatprep.subr.bf16.mxu0 %v27615_v15  ;;  %v10494_v13 = vshll.u32 %v23123_v20, 16  ;;  %v10499_v17 = vrot.slane %v10142_v35, 2  ;;  %v10502_v37 = vrot.slane %v10154_v34, 1  ;;  %v20105_v34 = vld [vmem:[%s27494_s3 + $0x478] sm:$0xff]  }
 0x26a   : > { %17768 = vmatprep.mubr.msk.bf16.mxu1 %vm21083_vm1, %v27615_v15  ;;  %27762 = vst [vmem:[#allocation125_spill] sm:$0xff] %v23187_v8  ;;  %v17554_v2 = vpop.f32.mrf.mxu1  ;;  %v23193_v4 = vsel %vm1764_vm2, %v10148_v12, %v10152_v48  ;;  %v10493_v6 = vrot.slane %v10491_v58, 1  ;;  %v10164_v31 = vor.u32 %v10162_v43, %v10160_v47  ;;  %v10503_v12 = vrot.slane %v10150_v38, 2 }
 0x26b   : > { %v23182_v42 = vpop.f32.mrf.mxu0  ;;  %18037 = vmatmul.mubr.bf16.gmra.mxu0 %v23031_v63  ;;  %v10140_v55 = vor.u32 %v10139_v61, %v10135_v10  ;;  %27763 = vst [vmem:[#allocation126_spill] sm:$0xff] %v23193_v4  ;;  %v23199_v10 = vsel %vm1764_vm2, %v10156_v23, %v10160_v47  ;;  %v20102_v2 = vld [vmem:[%s27494_s3 + $0x238] sm:$0xff]   ;;  %v10496_v20 = vrot.slane %v10494_v13, 2  ;;  %v10500_v48 = vor.u32 %v10499_v17, %v10498_v54  ;;  %v20103_v54 = vld [vmem:[%s27494_s3 + $0x230] sm:$0xff]  }
 0x26c   : > { %18092 = vmatprep.mubr.msk.bf16.mxu0 %vm21083_vm1, %v27615_v15  ;;  %27765 = vst [vmem:[#allocation128_spill] sm:$0xff] %v23199_v10  ;;  %v23201_v61 = vpop.f32.mrf.mxu1  ;;  %v10506_v58 = vrot.slane %v10162_v43, 1  ;;  %v10507_v47 = vrot.slane %v10158_v53, 2  ;;  %v10511_v23 = vshrl.u32 %v23169_v14, 16  ;;  %v10504_v17 = vor.u32 %v10503_v12, %v10502_v37 }
 0x26d   : > { %v17734_v63 = vpop.f32.mrf.mxu0  ;;  %v23196_v33 = vsel %vm1764_vm2, %v10140_v55, %v10144_v52  ;;  %v23213_v52 = vsel %vm1764_vm2, %v10164_v31, %v23187_v8  ;;  %v10514_v55 = vshll.u32 %v23169_v14, 16  ;;  %v10497_v13 = vor.u32 %v10496_v20, %v10493_v6 }
 0x26e   : > { %27764 = vst [vmem:[#allocation127_spill] sm:$0xff] %v23196_v33  ;;  %27766 = vst [vmem:[#allocation129_spill] sm:$0xff] %v23213_v52  ;;  %v17555_v63 = vpop.f32.mrf.mxu1  ;;  %v10508_v43 = vor.u32 %v10507_v47, %v10506_v58  ;;  %v10513_v10 = vrot.slane %v10511_v23, 1  ;;  %v27767_v53 = vrot.slane %v23166_v56, 1  ;;  %v27768_v31 = vrot.slane %v22401_v22, 1  ;;  %v23244_v22 = vld [vmem:[#allocation2 + $0x24] sm:$0xff]  }
 0x26f   : > { %v23206_v35 = vpop.f32.mrf.mxu0  ;;  %v10516_v4 = vrot.slane %v10514_v55, 2  ;;  %v23229_v37 = vsel %vm2241_vm5, %v10497_v13, %v10500_v48  ;;  %v23232_v20 = vsel %vm2241_vm5, %v10500_v48, %v10504_v17  ;;  %v4465_v48 = vrot.slane %v23244_v22, 1  ;;  %v20107_v47 = vld [vmem:[%s27494_s3 + $0x470] sm:$0xff]   ;;  %v20106_v13 = vld [vmem:[%s27494_s3 + $0x228] sm:$0xff]  }
 0x270   : > { %v4464_v63 = vsel %vm2076_vm4, %v27768_v31, %v27767_v53  ;;  %27769 = vst [vmem:[#allocation130_spill] sm:$0xff] %v23229_v37  ;;  %27770 = vst [vmem:[#allocation131_spill] sm:$0xff] %v23232_v20  ;;  %v23237_v12 = vsel %vm2241_vm5, %v10504_v17, %v10508_v43  ;;  %v20110_v31 = vld [vmem:[%s27494_s3 + $0x220] sm:$0xff]   ;;  %v20988_v20 = vld [vmem:[#allocation2 + $0x34] sm:$0xf] }
 0x271   : > { %v17735_v38 = vpop.f32.mrf.mxu0  ;;  %v23220_v33 = vpop.f32.mrf.mxu1  ;;  %17769 = vmatmul.mubr.bf16.vlgmr.msra.gmra.mxu1 %v22180_v32  ;;  %27771 = vst [vmem:[#allocation132_spill] sm:$0xff] %v23237_v12  ;;  %v23239_v32 = vor.u32 %v10516_v4, %v10513_v10 }
 0x272   : > { %17825 = vmatpush3.bf16.msra.mxu1 %v20102_v2  ;;  %17772 = vmatprep.mubr.msk.bf16.mxu1 %vm21083_vm1, %v27615_v15 }
 0x273   : > { %v23234_v6 = vpop.f32.mrf.mxu0  ;;  %18093 = vmatmul.mubr.bf16.vlgmr.msra.gmra.mxu0 %v4464_v63  ;;  %27772 = vst [vmem:[#allocation133_spill] sm:$0xff] %v23239_v32  ;;  %v17558_v58 = vpop.f32.mrf.mxu1  ;;  %17826 = vmatprep.subr.bf16.mxu1 %v27615_v15  ;;  %v23254_v4 = vsel %vm2241_vm5, %v10508_v43, %v23239_v32  ;;  %v27774_v43 = vld [vmem:[#allocation12_spill] sm:$0xff] }
 0x274   : > { %18096 = vmatprep.mubr.msk.bf16.mxu0 %vm21083_vm1, %v27615_v15  ;;  %18149 = vmatpush3.bf16.msra.mxu0 %v20105_v34  ;;  %27773 = vst [vmem:[#allocation134_spill] sm:$0xff] %v23254_v4  ;;  %v20109_v34 = vld [vmem:[%s27494_s3 + $0x468] sm:$0xff]  }
 0x275   : > { %v17738_v2 = vpop.f32.mrf.mxu0  ;;  %v23256_v10 = vpop.f32.mrf.mxu1  ;;  %18150 = vmatprep.subr.bf16.mxu0 %v27615_v15  ;;  %v27775_v4 = vld [vmem:[#allocation9_spill] sm:$0xff] }
 0x276   : > { %17827 = vmatpush3.bf16.msra.mxu1 %v20103_v54  ;;  %v4466_v54 = vsel %vm2076_vm4, %v27767_v53, %v4465_v48 }
 0x277   : > { %v23259_v23 = vpop.f32.mrf.mxu0  ;;  %v17559_v55 = vpop.f32.mrf.mxu1  ;;  %17828 = vmatprep.subr.bf16.mxu1 %v27615_v15 }
 0x278   : > { %18151 = vmatpush3.bf16.msra.mxu0 %v20107_v47  ;;  %v23284_v47 = vld [vmem:[#allocation2 + $0x2c] sm:$0xff]   ;;  %v20111_v55 = vld [vmem:[%s27494_s3 + $0x460] sm:$0xff]  }
 0x279   : > { %v17739_v17 = vpop.f32.mrf.mxu0  ;;  %v23268_v38 = vpop.f32.mrf.mxu1  ;;  %17773 = vmatmul.mubr.bf16.gmra.mxu1 %v27774_v43  ;;  %18152 = vmatprep.subr.bf16.mxu0 %v27615_v15  ;;  %v4467_v2 = vrot.slane %v23284_v47, 1  ;;  %v4419_v43 = vld [vmem:[#allocation2 + $0x38] sm:$0x1] }
 0x27a   : > { %17776 = vmatprep.mubr.msk.bf16.mxu1 %vm21083_vm1, %v27615_v15  ;;  %17829 = vmatpush3.bf16.msra.mxu1 %v20106_v13  ;;  %v14758_v37 = vcombine.low %v20988_v20, %v4419_v43  ;;  %v20116_v20 = vld [vmem:[%s27494_s3 + $0x450] sm:$0xff]  }
 0x27b   : > { %v23278_v63 = vpop.f32.mrf.mxu0  ;;  %18097 = vmatmul.mubr.bf16.gmra.mxu0 %v4466_v54  ;;  %v17562_v58 = vpop.f32.mrf.mxu1  ;;  %17830 = vmatprep.subr.bf16.mxu1 %v27615_v15  ;;  %v20112_v54 = vld [vmem:[%s27494_s3 + $0x218] sm:$0xff]   ;;  %v4468_v12 = vsel %vm2076_vm4, %v4465_v48, %v4467_v2 }
 0x27c   : > { %18100 = vmatprep.mubr.msk.bf16.mxu0 %vm21083_vm1, %v27615_v15  ;;  %18153 = vmatpush3.bf16.msra.mxu0 %v20109_v34 }
 0x27d   : > { %v17742_v17 = vpop.f32.mrf.mxu0  ;;  %v23291_v53 = vpop.f32.mrf.mxu1  ;;  %18154 = vmatprep.subr.bf16.mxu0 %v27615_v15 }
 0x27e   : > { %17831 = vmatpush3.bf16.msra.mxu1 %v20110_v31  ;;  %v20114_v17 = vld [vmem:[%s27494_s3 + $0x458] sm:$0xff]  }
 0x27f   : > { %v23294_v13 = vpop.f32.mrf.mxu0  ;;  %v17563_v58 = vpop.f32.mrf.mxu1  ;;  %17832 = vmatprep.subr.bf16.mxu1 %v27615_v15 }
 0x280   : > { %18155 = vmatpush3.bf16.msra.mxu0 %v20111_v55  ;;  %v20117_v55 = vld [vmem:[%s27494_s3 + $0x208] sm:$0xff]  }
 0x281   : > { %v17743_v32 = vpop.f32.mrf.mxu0  ;;  %v23303_v34 = vpop.f32.mrf.mxu1  ;;  %17777 = vmatmul.mubr.bf16.gmra.mxu1 %v27775_v4  ;;  %18156 = vmatprep.subr.bf16.mxu0 %v27615_v15  ;;  %v4469_v4 = vrot.slane %v14758_v37, 1  ;;  %v27776_v37 = vld [vmem:[#allocation18_spill] sm:$0xff] }
 0x282   : > { %17780 = vmatprep.mubr.msk.bf16.mxu1 %vm21083_vm1, %v27615_v15  ;;  %v20115_v32 = vld [vmem:[%s27494_s3 + $0x210] sm:$0xff]   ;;  %17833 = vmatpush3.bf16.msra.mxu1 %v20112_v54 }
 0x283   : > { %v23308_v58 = vpop.f32.mrf.mxu0  ;;  %18101 = vmatmul.mubr.bf16.gmra.mxu0 %v4468_v12  ;;  %v17566_v31 = vpop.f32.mrf.mxu1  ;;  %17834 = vmatprep.subr.bf16.mxu1 %v27615_v15  ;;  %v4470_v8 = vsel %vm2076_vm4, %v4467_v2, %v4469_v4  ;;  %v20120_v2 = vld [vmem:[%s27494_s3 + $0x440] sm:$0xff]  }
 0x284   : > { %18104 = vmatprep.mubr.msk.bf16.mxu0 %vm21083_vm1, %v27615_v15  ;;  %18157 = vmatpush3.bf16.msra.mxu0 %v20114_v17  ;;  %v20118_v31 = vld [vmem:[%s27494_s3 + $0x448] sm:$0xff]  }
 0x285   : > { %v17746_v48 = vpop.f32.mrf.mxu0  ;;  %v23321_v12 = vpop.f32.mrf.mxu1  ;;  %18158 = vmatprep.subr.bf16.mxu0 %v27615_v15 }
 0x286   : > { %17835 = vmatpush3.bf16.msra.mxu1 %v20115_v32  ;;  %v20119_v32 = vld [vmem:[%s27494_s3 + $0x200] sm:$0xff]  }
 0x287   : > { %v23327_v43 = vpop.f32.mrf.mxu0  ;;  %v17567_v54 = vpop.f32.mrf.mxu1  ;;  %17836 = vmatprep.subr.bf16.mxu1 %v27615_v15 }
 0x288   : > { %18159 = vmatpush3.bf16.msra.mxu0 %v20116_v20 }
 0x289   : > { %v17747_v17 = vpop.f32.mrf.mxu0  ;;  %v23333_v48 = vpop.f32.mrf.mxu1  ;;  %17781 = vmatmul.mubr.bf16.gmra.mxu1 %v27776_v37  ;;  %18160 = vmatprep.subr.bf16.mxu0 %v27615_v15 }
 0x28a   : > { %17784 = vmatprep.mubr.msk.bf16.mxu1 %vm21083_vm1, %v27615_v15  ;;  %17837 = vmatpush3.bf16.msra.mxu1 %v20117_v55 }
 0x28b   : > { %v23338_v52 = vpop.f32.mrf.mxu0  ;;  %18105 = vmatmul.mubr.bf16.gmra.mxu0 %v4470_v8  ;;  %v17570_v20 = vpop.f32.mrf.mxu1  ;;  %17838 = vmatprep.subr.bf16.mxu1 %v27615_v15 }
 0x28c   : > { %18108 = vmatprep.mubr.msk.bf16.mxu0 %vm21083_vm1, %v27615_v15  ;;  %18161 = vmatpush3.bf16.msra.mxu0 %v20118_v31  ;;  %v4826_v20 = vrot.slane %v23166_v56, 2 }
 0x28d   : > { %v17750_v54 = vpop.f32.mrf.mxu0  ;;  %v1926_v8 = vpop.f32.mrf.mxu1  ;;  %18162 = vmatprep.subr.bf16.mxu0 %v27615_v15 }
 0x28e   : > { %17839 = vmatpush3.bf16.msra.mxu1 %v20119_v32 }
 0x28f   : > { %v2754_v17 = vpop.f32.mrf.mxu0  ;;  %v17571_v37 = vpop.f32.mrf.mxu1  ;;  %17896 = vmatprep.subr.bf16.mxu1 %v27615_v15 }
 0x290   : > { %18163 = vmatpush3.bf16.msra.mxu0 %v20120_v2 }
 0x291   : > { %v17751_v55 = vpop.f32.mrf.mxu0  ;;  %v2017_v14 = vpop.f32.mrf.mxu1  ;;  %17785 = vmatmul.mubr.bf16.gmra.mxu1 %v27777_v39  ;;  %18220 = vmatprep.subr.bf16.mxu0 %v27615_v15  ;;  %v20122_v39 = vld [vmem:[%s27494_s3 + $0x2b8] sm:$0xff]  }
 0x292   : > { %v23357_v31 = vadd.f32 %v2017_v14, %v23175_v59  ;;  %17840 = vmatprep.mubr.msk.bf16.mxu1 %vm21083_vm1, %v27615_v15  ;;  %v4825_v14 = vrot.slane %v22466_v60, 2  ;;  %v20123_v55 = vld [vmem:[%s27494_s3 + $0x2b0] sm:$0xff]  }
 0x293   : > { %v23359_v54 = vpop.f32.mrf.mxu0  ;;  %18109 = vmatmul.mubr.bf16.gmra.mxu0 %v4469_v4  ;;  %v17590_v32 = vpop.f32.mrf.mxu1  ;;  %v20124_v4 = vld [vmem:[%s27494_s3 + $0x4f8] sm:$0xff]  }
 0x294   : > { %18164 = vmatprep.mubr.msk.bf16.mxu0 %vm21083_vm1, %v27615_v15 }
 0x295   : > { %v17806_v56 = vpop.f32.mrf.mxu0  ;;  %v2020_v2 = vpop.f32.mrf.mxu1 }
 0x296   : > { %v23369_v8 = vadd.f32 %v2020_v2, %v23201_v61  ;;  %v27778_v56 = vld [vmem:[#allocation19_spill] sm:$0xff]  ;;  %v4827_v61 = vsel %vm2426_vm6, %v4825_v14, %v4826_v20 }
 0x297   : > { %v23371_v59 = vpop.f32.mrf.mxu0  ;;  %v17591_v17 = vpop.f32.mrf.mxu1 }
 0x298   : > { %v4828_v17 = vrot.slane %v23244_v22, 2  ;;  %v20125_v22 = vld [vmem:[%s27494_s3 + $0x2a8] sm:$0xff]  }
 0x299   : > { %v17807_v37 = vpop.f32.mrf.mxu0  ;;  %v2025_v32 = vpop.f32.mrf.mxu1  ;;  %17841 = vmatmul.mubr.bf16.vlgmr.msra.gmra.mxu1 %v27778_v56 }
 0x29a   : > { %v23383_v2 = vadd.f32 %v2025_v32, %v23220_v33  ;;  %17897 = vmatpush3.bf16.msra.mxu1 %v20122_v39  ;;  %17844 = vmatprep.mubr.msk.bf16.mxu1 %vm21083_vm1, %v27615_v15  ;;  %v20126_v37 = vld [vmem:[%s27494_s3 + $0x4f0] sm:$0xff]  }
 0x29b   : > { %v23385_v11 = vpop.f32.mrf.mxu0  ;;  %18165 = vmatmul.mubr.bf16.vlgmr.msra.gmra.mxu0 %v4827_v61  ;;  %v17594_v60 = vpop.f32.mrf.mxu1  ;;  %17898 = vmatprep.subr.bf16.mxu1 %v27615_v15 }
 0x29c   : > { %18168 = vmatprep.mubr.msk.bf16.mxu0 %vm21083_vm1, %v27615_v15  ;;  %18221 = vmatpush3.bf16.msra.mxu0 %v20124_v4  ;;  %v20127_v4 = vld [vmem:[%s27494_s3 + $0x4e8] sm:$0xff]  }
 0x29d   : > { %v17810_v14 = vpop.f32.mrf.mxu0  ;;  %v2028_v33 = vpop.f32.mrf.mxu1  ;;  %18222 = vmatprep.subr.bf16.mxu0 %v27615_v15 }
 0x29e   : > { %v23398_v39 = vadd.f32 %v2028_v33, %v23256_v10  ;;  %17899 = vmatpush3.bf16.msra.mxu1 %v20123_v55  ;;  %v4829_v10 = vsel %vm2426_vm6, %v4826_v20, %v4828_v17  ;;  %v20128_v55 = vld [vmem:[%s27494_s3 + $0x2a0] sm:$0xff]  }
 0x29f   : > { %v23400_v32 = vpop.f32.mrf.mxu0  ;;  %v17595_v56 = vpop.f32.mrf.mxu1  ;;  %17900 = vmatprep.subr.bf16.mxu1 %v27615_v15  ;;  %v20129_v20 = vld [vmem:[%s27494_s3 + $0x4e0] sm:$0xff]  }
 0x2a0   : > { %18223 = vmatpush3.bf16.msra.mxu0 %v20126_v37 }
 0x2a1   : > { %v17811_v61 = vpop.f32.mrf.mxu0  ;;  %v2033_v60 = vpop.f32.mrf.mxu1  ;;  %17845 = vmatmul.mubr.bf16.gmra.mxu1 %v22281_v24  ;;  %18224 = vmatprep.subr.bf16.mxu0 %v27615_v15  ;;  %v4830_v24 = vrot.slane %v23284_v47, 2  ;;  %v20130_v47 = vld [vmem:[%s27494_s3 + $0x298] sm:$0xff]  }
 0x2a2   : > { %v23416_v14 = vadd.f32 %v2033_v60, %v23268_v38  ;;  %17848 = vmatprep.mubr.msk.bf16.mxu1 %vm21083_vm1, %v27615_v15  ;;  %17901 = vmatpush3.bf16.msra.mxu1 %v20125_v22 }
 0x2a3   : > { %v23418_v33 = vpop.f32.mrf.mxu0  ;;  %18169 = vmatmul.mubr.bf16.gmra.mxu0 %v4829_v10  ;;  %v17598_v37 = vpop.f32.mrf.mxu1  ;;  %17902 = vmatprep.subr.bf16.mxu1 %v27615_v15  ;;  %v20132_v10 = vld [vmem:[%s27494_s3 + $0x4d8] sm:$0xff]  }
 0x2a4   : > { %18172 = vmatprep.mubr.msk.bf16.mxu0 %vm21083_vm1, %v27615_v15  ;;  %18225 = vmatpush3.bf16.msra.mxu0 %v20127_v4 }
 0x2a5   : > { %v17814_v56 = vpop.f32.mrf.mxu0  ;;  %v2036_v38 = vpop.f32.mrf.mxu1  ;;  %18226 = vmatprep.subr.bf16.mxu0 %v27615_v15 }
 0x2a6   : > { %v23431_v61 = vadd.f32 %v2036_v38, %v23291_v53  ;;  %17903 = vmatpush3.bf16.msra.mxu1 %v20128_v55  ;;  %v4831_v53 = vsel %vm2426_vm6, %v4828_v17, %v4830_v24  ;;  %v20133_v55 = vld [vmem:[%s27494_s3 + $0x290] sm:$0xff]  }
 0x2a7   : > { %v23433_v22 = vpop.f32.mrf.mxu0  ;;  %v17599_v60 = vpop.f32.mrf.mxu1  ;;  %17904 = vmatprep.subr.bf16.mxu1 %v27615_v15 }
 0x2a8   : > { %18227 = vmatpush3.bf16.msra.mxu0 %v20129_v20  ;;  %v4832_v60 = vrot.slane %v22444_v41, 2 }
 0x2a9   : > { %v17815_v37 = vpop.f32.mrf.mxu0  ;;  %v2041_v4 = vpop.f32.mrf.mxu1  ;;  %17849 = vmatmul.mubr.bf16.gmra.mxu1 %v22294_v28  ;;  %18228 = vmatprep.subr.bf16.mxu0 %v27615_v15  ;;  %v20134_v28 = vld [vmem:[%s27494_s3 + $0x4d0] sm:$0xff]  }
 0x2aa   : > { %v23446_v56 = vadd.f32 %v2041_v4, %v23303_v34  ;;  %17852 = vmatprep.mubr.msk.bf16.mxu1 %vm21083_vm1, %v27615_v15  ;;  %17905 = vmatpush3.bf16.msra.mxu1 %v20130_v47  ;;  %v20135_v47 = vld [vmem:[%s27494_s3 + $0x288] sm:$0xff]  }
 0x2ab   : > { %v23448_v38 = vpop.f32.mrf.mxu0  ;;  %18173 = vmatmul.mubr.bf16.gmra.mxu0 %v4831_v53  ;;  %v17602_v20 = vpop.f32.mrf.mxu1  ;;  %17906 = vmatprep.subr.bf16.mxu1 %v27615_v15 }
 0x2ac   : > { %18176 = vmatprep.mubr.msk.bf16.mxu0 %vm21083_vm1, %v27615_v15  ;;  %18229 = vmatpush3.bf16.msra.mxu0 %v20132_v10  ;;  %v20136_v10 = vld [vmem:[%s27494_s3 + $0x4c8] sm:$0xff]  }
 0x2ad   : > { %v17818_v34 = vpop.f32.mrf.mxu0  ;;  %v2044_v17 = vpop.f32.mrf.mxu1  ;;  %18230 = vmatprep.subr.bf16.mxu0 %v27615_v15 }
 0x2ae   : > { %v23467_v37 = vadd.f32 %v2044_v17, %v23321_v12  ;;  %17907 = vmatpush3.bf16.msra.mxu1 %v20133_v55  ;;  %v4833_v34 = vsel %vm2426_vm6, %v4830_v24, %v4832_v60 }
 0x2af   : > { %v23469_v4 = vpop.f32.mrf.mxu0  ;;  %v17603_v53 = vpop.f32.mrf.mxu1  ;;  %17908 = vmatprep.subr.bf16.mxu1 %v27615_v15 }
 0x2b0   : > { %18231 = vmatpush3.bf16.msra.mxu0 %v20134_v28  ;;  %v20989_v53 = vld [vmem:[#allocation2 + $0x28] sm:$0x1f]  }
 0x2b1   : > { %v17819_v20 = vpop.f32.mrf.mxu0  ;;  %v2049_v41 = vpop.f32.mrf.mxu1  ;;  %17853 = vmatmul.mubr.bf16.gmra.mxu1 %v22307_v44  ;;  %18232 = vmatprep.subr.bf16.mxu0 %v27615_v15  ;;  %v20137_v44 = vld [vmem:[%s27494_s3 + $0x280] sm:$0xff]  }
 0x2b2   : > { %v23479_v12 = vadd.f32 %v2049_v41, %v23333_v48  ;;  %17856 = vmatprep.mubr.msk.bf16.mxu1 %vm21083_vm1, %v27615_v15  ;;  %17909 = vmatpush3.bf16.msra.mxu1 %v20135_v47  ;;  %v20138_v48 = vld [vmem:[%s27494_s3 + $0x4c0] sm:$0xff]   ;;  %v3210_v20 = vshrl.u32 %v20989_v53, 16 }
 0x2b3   : > { %v23481_v17 = vpop.f32.mrf.mxu0  ;;  %18177 = vmatmul.mubr.bf16.gmra.mxu0 %v4833_v34  ;;  %v17606_v55 = vpop.f32.mrf.mxu1  ;;  %17910 = vmatprep.subr.bf16.mxu1 %v27615_v15 }
 0x2b4   : > { %18180 = vmatprep.mubr.msk.bf16.mxu0 %vm21083_vm1, %v27615_v15  ;;  %18233 = vmatpush3.bf16.msra.mxu0 %v20136_v10  ;;  %v3212_v34 = vor.u32 %v3210_v20, %v22286_v36 }
 0x2b5   : > { %v17822_v24 = vpop.f32.mrf.mxu0  ;;  %v2052_v28 = vpop.f32.mrf.mxu1  ;;  %18234 = vmatprep.subr.bf16.mxu0 %v27615_v15 }
 0x2b6   : > { %17911 = vmatpush3.bf16.msra.mxu1 %v20137_v44 }
 0x2b7   : > { %v3110_v47 = vpop.f32.mrf.mxu0  ;;  %v17607_v41 = vpop.f32.mrf.mxu1  ;;  %17968 = vmatprep.subr.bf16.mxu1 %v27615_v15 }
 0x2b8   : > { %18235 = vmatpush3.bf16.msra.mxu0 %v20138_v48  ;;  %v20142_v41 = vld [vmem:[%s27494_s3 + $0x578] sm:$0xff]  }
 0x2b9   : > { %v17823_v55 = vpop.f32.mrf.mxu0  ;;  %v2173_v10 = vpop.f32.mrf.mxu1  ;;  %17857 = vmatmul.mubr.bf16.gmra.mxu1 %v3212_v34  ;;  %18292 = vmatprep.subr.bf16.mxu0 %v27615_v15 }
 0x2ba   : > { %v23499_v24 = vadd.f32 %v2173_v10, %v23357_v31  ;;  %17912 = vmatprep.mubr.msk.bf16.mxu1 %vm21083_vm1, %v27615_v15  ;;  %v20140_v31 = vld [vmem:[%s27494_s3 + $0x338] sm:$0xff]  }
 0x2bb   : > { %v23501_v28 = vpop.f32.mrf.mxu0  ;;  %18181 = vmatmul.mubr.bf16.gmra.mxu0 %v4832_v60  ;;  %v17626_v53 = vpop.f32.mrf.mxu1  ;;  %v27779_v10 = vld [vmem:[#allocation22_spill] sm:$0xff] }
 0x2bc   : > { %18236 = vmatprep.mubr.msk.bf16.mxu0 %vm21083_vm1, %v27615_v15  ;;  %v20141_v53 = vld [vmem:[%s27494_s3 + $0x330] sm:$0xff]  }
 0x2bd   : > { %v17878_v36 = vpop.f32.mrf.mxu0  ;;  %v2176_v44 = vpop.f32.mrf.mxu1 }
 0x2be   : > { %v23508_v48 = vadd.f32 %v2176_v44, %v23369_v8 }
 0x2bf   : > { %v23510_v20 = vpop.f32.mrf.mxu0  ;;  %v17627_v47 = vpop.f32.mrf.mxu1 }
 0x2c1   : > { %v17879_v60 = vpop.f32.mrf.mxu0  ;;  %v2181_v34 = vpop.f32.mrf.mxu1  ;;  %17913 = vmatmul.mubr.bf16.vlgmr.msra.gmra.mxu1 %v22313_v3  ;;  %v20144_v3 = vld [vmem:[%s27494_s3 + $0x570] sm:$0xff]  }
 0x2c2   : > { %v23520_v55 = vadd.f32 %v2181_v34, %v23383_v2  ;;  %17969 = vmatpush3.bf16.msra.mxu1 %v20140_v31  ;;  %17916 = vmatprep.mubr.msk.bf16.mxu1 %vm21083_vm1, %v27615_v15 }
 0x2c3   : > { %v23522_v8 = vpop.f32.mrf.mxu0  ;;  %18237 = vmatmul.mubr.bf16.vlgmr.msra.gmra.mxu0 %v27779_v10  ;;  %v17630_v36 = vpop.f32.mrf.mxu1  ;;  %17970 = vmatprep.subr.bf16.mxu1 %v27615_v15  ;;  %v20145_v10 = vld [vmem:[%s27494_s3 + $0x568] sm:$0xff]  }
 0x2c4   : > { %18240 = vmatprep.mubr.msk.bf16.mxu0 %vm21083_vm1, %v27615_v15  ;;  %18293 = vmatpush3.bf16.msra.mxu0 %v20142_v41  ;;  %v20143_v41 = vld [vmem:[%s27494_s3 + $0x328] sm:$0xff]  }
 0x2c5   : > { %v17882_v44 = vpop.f32.mrf.mxu0  ;;  %v2184_v2 = vpop.f32.mrf.mxu1  ;;  %18294 = vmatprep.subr.bf16.mxu0 %v27615_v15 }
 0x2c6   : > { %v23538_v31 = vadd.f32 %v2184_v2, %v23398_v39  ;;  %17971 = vmatpush3.bf16.msra.mxu1 %v20141_v53  ;;  %v27780_v44 = vld [vmem:[#allocation21_spill] sm:$0xff]  ;;  %v27781_v2 = vld [vmem:[#allocation23_spill] sm:$0xff] }
 0x2c7   : > { %v23540_v47 = vpop.f32.mrf.mxu0  ;;  %v17631_v60 = vpop.f32.mrf.mxu1  ;;  %17972 = vmatprep.subr.bf16.mxu1 %v27615_v15 }
 0x2c8   : > { %18295 = vmatpush3.bf16.msra.mxu0 %v20144_v3  ;;  %v20146_v60 = vld [vmem:[%s27494_s3 + $0x320] sm:$0xff]  }
 0x2c9   : > { %v17883_v34 = vpop.f32.mrf.mxu0  ;;  %v2189_v36 = vpop.f32.mrf.mxu1  ;;  %17917 = vmatmul.mubr.bf16.gmra.mxu1 %v27780_v44  ;;  %18296 = vmatprep.subr.bf16.mxu0 %v27615_v15 }
 0x2ca   : > { %v23552_v39 = vadd.f32 %v2189_v36, %v23416_v14  ;;  %17920 = vmatprep.mubr.msk.bf16.mxu1 %vm21083_vm1, %v27615_v15  ;;  %17973 = vmatpush3.bf16.msra.mxu1 %v20143_v41  ;;  %v20147_v14 = vld [vmem:[%s27494_s3 + $0x560] sm:$0xff]  }
 0x2cb   : > { %v23554_v53 = vpop.f32.mrf.mxu0  ;;  %18241 = vmatmul.mubr.bf16.gmra.mxu0 %v27781_v2  ;;  %v17634_v3 = vpop.f32.mrf.mxu1  ;;  %17974 = vmatprep.subr.bf16.mxu1 %v27615_v15 }
 0x2cc   : > { %18244 = vmatprep.mubr.msk.bf16.mxu0 %vm21083_vm1, %v27615_v15  ;;  %18297 = vmatpush3.bf16.msra.mxu0 %v20145_v10  ;;  %v20149_v3 = vld [vmem:[%s27494_s3 + $0x318] sm:$0xff]  }
 0x2cd   : > { %v17886_v34 = vpop.f32.mrf.mxu0  ;;  %v2192_v36 = vpop.f32.mrf.mxu1  ;;  %18298 = vmatprep.subr.bf16.mxu0 %v27615_v15  ;;  %v20151_v10 = vld [vmem:[%s27494_s3 + $0x558] sm:$0xff]  }
 0x2ce   : > { %v23570_v41 = vadd.f32 %v2192_v36, %v23431_v61  ;;  %17975 = vmatpush3.bf16.msra.mxu1 %v20146_v60  ;;  %v27783_v36 = vld [vmem:[#allocation25_spill] sm:$0xff] }
 0x2cf   : > { %v23572_v44 = vpop.f32.mrf.mxu0  ;;  %v17635_v2 = vpop.f32.mrf.mxu1  ;;  %17976 = vmatprep.subr.bf16.mxu1 %v27615_v15 }
 0x2d0   : > { %18299 = vmatpush3.bf16.msra.mxu0 %v20147_v14 }
 0x2d1   : > { %v17887_v34 = vpop.f32.mrf.mxu0  ;;  %v2197_v21 = vpop.f32.mrf.mxu1  ;;  %17921 = vmatmul.mubr.bf16.gmra.mxu1 %v27782_v62  ;;  %18300 = vmatprep.subr.bf16.mxu0 %v27615_v15  ;;  %v20152_v62 = vld [vmem:[%s27494_s3 + $0x310] sm:$0xff]  }
 0x2d2   : > { %v23584_v61 = vadd.f32 %v2197_v21, %v23446_v56  ;;  %17924 = vmatprep.mubr.msk.bf16.mxu1 %vm21083_vm1, %v27615_v15  ;;  %17977 = vmatpush3.bf16.msra.mxu1 %v20149_v3  ;;  %v20153_v21 = vld [vmem:[%s27494_s3 + $0x550] sm:$0xff]  }
 0x2d3   : > { %v23586_v60 = vpop.f32.mrf.mxu0  ;;  %18245 = vmatmul.mubr.bf16.gmra.mxu0 %v27783_v36  ;;  %v17638_v14 = vpop.f32.mrf.mxu1  ;;  %17978 = vmatprep.subr.bf16.mxu1 %v27615_v15 }
 0x2d4   : > { %18248 = vmatprep.mubr.msk.bf16.mxu0 %vm21083_vm1, %v27615_v15  ;;  %18301 = vmatpush3.bf16.msra.mxu0 %v20151_v10  ;;  %v20154_v10 = vld [vmem:[%s27494_s3 + $0x308] sm:$0xff]  }
 0x2d5   : > { %v17890_v2 = vpop.f32.mrf.mxu0  ;;  %v2200_v56 = vpop.f32.mrf.mxu1  ;;  %18302 = vmatprep.subr.bf16.mxu0 %v27615_v15 }
 0x2d6   : > { %v23602_v3 = vadd.f32 %v2200_v56, %v23467_v37  ;;  %17979 = vmatpush3.bf16.msra.mxu1 %v20152_v62  ;;  %v20155_v2 = vld [vmem:[%s27494_s3 + $0x548] sm:$0xff]   ;;  %v20990_v37 = vld [vmem:[#allocation2 + $0x20] sm:$0xf] }
 0x2d7   : > { %v23604_v34 = vpop.f32.mrf.mxu0  ;;  %v17639_v36 = vpop.f32.mrf.mxu1  ;;  %17980 = vmatprep.subr.bf16.mxu1 %v27615_v15  ;;  %v14912_v62 = vcombine.low %v5499_v7, %v20990_v37 }
 0x2d8   : > { %18303 = vmatpush3.bf16.msra.mxu0 %v20153_v21 }
 0x2d9   : > { %v17891_v14 = vpop.f32.mrf.mxu0  ;;  %v2205_v49 = vpop.f32.mrf.mxu1  ;;  %17925 = vmatmul.mubr.bf16.gmra.mxu1 %v22360_v51  ;;  %18304 = vmatprep.subr.bf16.mxu0 %v27615_v15  ;;  %v20156_v51 = vld [vmem:[%s27494_s3 + $0x300] sm:$0xff]  }
 0x2da   : > { %v23616_v56 = vadd.f32 %v2205_v49, %v23479_v12  ;;  %17928 = vmatprep.mubr.msk.bf16.mxu1 %vm21083_vm1, %v27615_v15  ;;  %17981 = vmatpush3.bf16.msra.mxu1 %v20154_v10  ;;  %v5554_v12 = vshll.u32 %v14912_v62, 16 }
 0x2db   : > { %v23618_v36 = vpop.f32.mrf.mxu0  ;;  %18249 = vmatmul.mubr.bf16.gmra.mxu0 %v22365_v1  ;;  %v17642_v21 = vpop.f32.mrf.mxu1  ;;  %17982 = vmatprep.subr.bf16.mxu1 %v27615_v15  ;;  %v20157_v1 = vld [vmem:[%s27494_s3 + $0x540] sm:$0xff]  }
 0x2dc   : > { %18252 = vmatprep.mubr.msk.bf16.mxu0 %vm21083_vm1, %v27615_v15  ;;  %18305 = vmatpush3.bf16.msra.mxu0 %v20155_v2  ;;  %v5556_v2 = vrot.slane %v5554_v12, 1 }
 0x2dd   : > { %v17894_v7 = vpop.f32.mrf.mxu0  ;;  %v2208_v49 = vpop.f32.mrf.mxu1  ;;  %18306 = vmatprep.subr.bf16.mxu0 %v27615_v15 }
 0x2de   : > { %17983 = vmatpush3.bf16.msra.mxu1 %v20156_v51  ;;  %v23635_v7 = vld [vmem:[#allocation2 + $0x24] sm:$0xff]   ;;  %v27784_v51 = vrot.slane %v22325_v57, 3  ;;  %v20160_v57 = vld [vmem:[%s27494_s3 + $0x3b8] sm:$0xff]  }
 0x2df   : > { %v3499_v10 = vpop.f32.mrf.mxu0  ;;  %v17643_v14 = vpop.f32.mrf.mxu1  ;;  %18040 = vmatprep.subr.bf16.mxu1 %v27615_v15  ;;  %v27579_v40 = vshll.u32 %v23635_v7, 16 }
 0x2e0   : > { %18307 = vmatpush3.bf16.msra.mxu0 %v20157_v1 }
 0x2e1   : > { %v17895_v37 = vpop.f32.mrf.mxu0  ;;  %v2358_v21 = vpop.f32.mrf.mxu1  ;;  %17929 = vmatmul.mubr.bf16.gmra.mxu1 %v22349_v18  ;;  %18364 = vmatprep.subr.bf16.mxu0 %v27615_v15  ;;  %v5552_v18 = vshrl.u32 %v14912_v62, 16  ;;  %v20163_v62 = vld [vmem:[%s27494_s3 + $0x5f8] sm:$0xff]  }
 0x2e2   : > { %v23640_v49 = vadd.f32 %v2358_v21, %v23499_v24  ;;  %17984 = vmatprep.mubr.msk.bf16.mxu1 %vm21083_vm1, %v27615_v15  ;;  %v5561_v24 = vrot.slane %v27579_v40, 1  ;;  %v23665_v40 = vld [vmem:[#allocation2 + $0x2c] sm:$0xff]  }
 0x2e3   : > { %v23642_v10 = vpop.f32.mrf.mxu0  ;;  %18253 = vmatmul.mubr.bf16.gmra.mxu0 %v27784_v51  ;;  %v17662_v1 = vpop.f32.mrf.mxu1  ;;  %v5557_v37 = vor.u32 %v5556_v2, %v5552_v18  ;;  %v27785_v2 = vld [vmem:[#allocation27_spill] sm:$0xff] }
 0x2e4   : > { %18308 = vmatprep.mubr.msk.bf16.mxu0 %vm21083_vm1, %v27615_v15 }
 0x2e5   : > { %v17950_v12 = vpop.f32.mrf.mxu0  ;;  %v2361_v14 = vpop.f32.mrf.mxu1  ;;  %v5562_v18 = vsel %vm1764_vm2, %v5557_v37, %v5561_v24 }
 0x2e6   : > { %v23653_v21 = vadd.f32 %v2361_v14, %v23508_v48  ;;  %v27582_v48 = vshll.u32 %v23665_v40, 16 }
 0x2e7   : > { %v23655_v30 = vpop.f32.mrf.mxu0  ;;  %v17663_v51 = vpop.f32.mrf.mxu1 }
 0x2e8   : > { %v20161_v51 = vld [vmem:[%s27494_s3 + $0x3b0] sm:$0xff]  }
 0x2e9   : > { %v17951_v1 = vpop.f32.mrf.mxu0  ;;  %v2366_v12 = vpop.f32.mrf.mxu1  ;;  %17985 = vmatmul.mubr.bf16.vlgmr.msra.gmra.mxu1 %v27785_v2  ;;  %v5569_v2 = vrot.slane %v27582_v48, 1  ;;  %v27786_v48 = vld [vmem:[#allocation28_spill] sm:$0xff] }
 0x2ea   : > { %v23669_v14 = vadd.f32 %v2366_v12, %v23520_v55  ;;  %18041 = vmatpush3.bf16.msra.mxu1 %v20160_v57  ;;  %17988 = vmatprep.mubr.msk.bf16.mxu1 %vm21083_vm1, %v27615_v15  ;;  %v20165_v55 = vld [vmem:[%s27494_s3 + $0x5f0] sm:$0xff]   ;;  %v27583_v12 = vshrl.u32 %v23635_v7, 16 }
 0x2eb   : > { %v23671_v45 = vpop.f32.mrf.mxu0  ;;  %18309 = vmatmul.mubr.bf16.vlgmr.msra.gmra.mxu0 %v5562_v18  ;;  %v17666_v1 = vpop.f32.mrf.mxu1  ;;  %18042 = vmatprep.subr.bf16.mxu1 %v27615_v15 }
 0x2ec   : > { %18312 = vmatprep.mubr.msk.bf16.mxu0 %vm21083_vm1, %v27615_v15  ;;  %18365 = vmatpush3.bf16.msra.mxu0 %v20163_v62  ;;  %v5565_v62 = vor.u32 %v27583_v12, %v5561_v24 }
 0x2ed   : > { %v17954_v37 = vpop.f32.mrf.mxu0  ;;  %v2369_v57 = vpop.f32.mrf.mxu1  ;;  %18366 = vmatprep.subr.bf16.mxu0 %v27615_v15 }
 0x2ee   : > { %v23689_v18 = vadd.f32 %v2369_v57, %v23538_v31  ;;  %18043 = vmatpush3.bf16.msra.mxu1 %v20161_v51  ;;  %v20167_v31 = vld [vmem:[%s27494_s3 + $0x5e8] sm:$0xff]   ;;  %v5570_v51 = vsel %vm1764_vm2, %v5565_v62, %v5569_v2 }
 0x2ef   : > { %v23691_v1 = vpop.f32.mrf.mxu0  ;;  %v17667_v37 = vpop.f32.mrf.mxu1  ;;  %18044 = vmatprep.subr.bf16.mxu1 %v27615_v15 }
 0x2f0   : > { %18367 = vmatpush3.bf16.msra.mxu0 %v20165_v55  ;;  %v23704_v37 = vld [vmem:[#allocation2 + $0x34] sm:$0xff]  }
 0x2f1   : > { %v17955_v19 = vpop.f32.mrf.mxu0  ;;  %v2374_v57 = vpop.f32.mrf.mxu1  ;;  %17989 = vmatmul.mubr.bf16.gmra.mxu1 %v27786_v48  ;;  %v27589_v24 = vshll.u32 %v23704_v37, 16  ;;  %18368 = vmatprep.subr.bf16.mxu0 %v27615_v15  ;;  %v20168_v48 = vld [vmem:[%s27494_s3 + $0x3a0] sm:$0xff]  }
 0x2f2   : > { %v23709_v12 = vadd.f32 %v2374_v57, %v23552_v39  ;;  %17992 = vmatprep.mubr.msk.bf16.mxu1 %vm21083_vm1, %v27615_v15  ;;  %18045 = vmatpush3.bf16.msra.mxu1 %v20164_v0  ;;  %v20169_v39 = vld [vmem:[%s27494_s3 + $0x5e0] sm:$0xff]  }
 0x2f3   : > { %v23711_v19 = vpop.f32.mrf.mxu0  ;;  %18313 = vmatmul.mubr.bf16.gmra.mxu0 %v5570_v51  ;;  %v17670_v55 = vpop.f32.mrf.mxu1  ;;  %18046 = vmatprep.subr.bf16.mxu1 %v27615_v15  ;;  %v27591_v51 = vshrl.u32 %v23665_v40, 16  ;;  %v5577_v0 = vrot.slane %v27589_v24, 1  ;;  %v27789_v24 = vld [vmem:[#allocation29_spill] sm:$0xff] }
 0x2f4   : > { %27787 = vst [vmem:[#allocation12_spill] sm:$0xff] %v23711_v19  ;;  %18316 = vmatprep.mubr.msk.bf16.mxu0 %vm21083_vm1, %v27615_v15  ;;  %18369 = vmatpush3.bf16.msra.mxu0 %v20167_v31  ;;  %v27797_v19 = vld [vmem:[#allocation26_spill] sm:$0xff] }
 0x2f5   : > { %v17958_v62 = vpop.f32.mrf.mxu0  ;;  %v2377_v57 = vpop.f32.mrf.mxu1  ;;  %18370 = vmatprep.subr.bf16.mxu0 %v27615_v15  ;;  %v5573_v31 = vor.u32 %v27591_v51, %v5569_v2  ;;  %v5583_v2 = vshll.u32 %v27790_v27, 16  ;;  %v27798_v29 = vrot.slane %v27797_v19, 3 }
 0x2f6   : > { %v23729_v55 = vadd.f32 %v2377_v57, %v23570_v41  ;;  %18047 = vmatpush3.bf16.msra.mxu1 %v20168_v48  ;;  %v20172_v41 = vld [vmem:[%s27494_s3 + $0x5d8] sm:$0xff]  }
 0x2f7   : > { %v23731_v50 = vpop.f32.mrf.mxu0  ;;  %v17671_v62 = vpop.f32.mrf.mxu1  ;;  %18048 = vmatprep.subr.bf16.mxu1 %v27615_v15 }
 0x2f8   : > { %27788 = vst [vmem:[#allocation9_spill] sm:$0xff] %v23731_v50  ;;  %18371 = vmatpush3.bf16.msra.mxu0 %v20169_v39  ;;  %v5578_v62 = vsel %vm1764_vm2, %v5573_v31, %v5577_v0 }
 0x2f9   : > { %v17959_v25 = vpop.f32.mrf.mxu0  ;;  %v2382_v57 = vpop.f32.mrf.mxu1  ;;  %17993 = vmatmul.mubr.bf16.gmra.mxu1 %v27789_v24  ;;  %18372 = vmatprep.subr.bf16.mxu0 %v27615_v15  ;;  %v20173_v24 = vld [vmem:[%s27494_s3 + $0x390] sm:$0xff]  }
 0x2fa   : > { %v23747_v48 = vadd.f32 %v2382_v57, %v23584_v61  ;;  %17996 = vmatprep.mubr.msk.bf16.mxu1 %vm21083_vm1, %v27615_v15  ;;  %18049 = vmatpush3.bf16.msra.mxu1 %v20170_v46  ;;  %v20174_v61 = vld [vmem:[%s27494_s3 + $0x5d0] sm:$0xff]  }
 0x2fb   : > { %v23749_v25 = vpop.f32.mrf.mxu0  ;;  %18317 = vmatmul.mubr.bf16.gmra.mxu0 %v5578_v62  ;;  %v17674_v39 = vpop.f32.mrf.mxu1  ;;  %18050 = vmatprep.subr.bf16.mxu1 %v27615_v15  ;;  %v27594_v62 = vshrl.u32 %v23704_v37, 16 }
 0x2fc   : > { %27791 = vst [vmem:[#allocation18_spill] sm:$0xff] %v23749_v25  ;;  %18320 = vmatprep.mubr.msk.bf16.mxu0 %vm21083_vm1, %v27615_v15  ;;  %18373 = vmatpush3.bf16.msra.mxu0 %v20172_v41  ;;  %v5585_v39 = vrot.slane %v5583_v2, 1 }
 0x2fd   : > { %v17962_v31 = vpop.f32.mrf.mxu0  ;;  %v2385_v57 = vpop.f32.mrf.mxu1  ;;  %18374 = vmatprep.subr.bf16.mxu0 %v27615_v15  ;;  %v5581_v41 = vor.u32 %v27594_v62, %v5577_v0 }
 0x2fe   : > { %v23765_v46 = vadd.f32 %v2385_v57, %v23602_v3  ;;  %18051 = vmatpush3.bf16.msra.mxu1 %v20173_v24  ;;  %v20175_v31 = vld [vmem:[%s27494_s3 + $0x388] sm:$0xff]   ;;  %v27793_v57 = vld [vmem:[#allocation30_spill] sm:$0xff] }
 0x2ff   : > { %v23767_v51 = vpop.f32.mrf.mxu0  ;;  %v17675_v9 = vpop.f32.mrf.mxu1  ;;  %18052 = vmatprep.subr.bf16.mxu1 %v27615_v15  ;;  %v20176_v3 = vld [vmem:[%s27494_s3 + $0x5c8] sm:$0xff]  }
 0x300   : > { %27792 = vst [vmem:[#allocation11_spill] sm:$0xff] %v23767_v51  ;;  %18375 = vmatpush3.bf16.msra.mxu0 %v20174_v61  ;;  %v5586_v9 = vsel %vm1764_vm2, %v5581_v41, %v5585_v39  ;;  %v20177_v61 = vld [vmem:[%s27494_s3 + $0x380] sm:$0xff]   ;;  %v27796_v51 = vshrl.u32 %v23635_v7, 16 }
 0x301   : > { %v17963_v25 = vpop.f32.mrf.mxu0  ;;  %v2390_v2 = vpop.f32.mrf.mxu1  ;;  %17997 = vmatmul.mubr.bf16.gmra.mxu1 %v27793_v57  ;;  %18376 = vmatprep.subr.bf16.mxu0 %v27615_v15 }
 0x302   : > { %v23782_v0 = vadd.f32 %v2390_v2, %v23616_v56  ;;  %18000 = vmatprep.mubr.msk.bf16.mxu1 %vm21083_vm1, %v27615_v15  ;;  %18053 = vmatpush3.bf16.msra.mxu1 %v20175_v31  ;;  %v20178_v56 = vld [vmem:[%s27494_s3 + $0x5c0] sm:$0xff]   ;;  %v5587_v31 = vshrl.u32 %v27790_v27, 16  ;;  %v5917_v50 = vrot.slane %v27796_v51, 1 }
 0x303   : > { %v23784_v24 = vpop.f32.mrf.mxu0  ;;  %18321 = vmatmul.mubr.bf16.gmra.mxu0 %v5586_v9  ;;  %v17678_v25 = vpop.f32.mrf.mxu1  ;;  %18054 = vmatprep.subr.bf16.mxu1 %v27615_v15 }
 0x304   : > { %27794 = vst [vmem:[#allocation19_spill] sm:$0xff] %v23784_v24  ;;  %18324 = vmatprep.mubr.msk.bf16.mxu0 %vm21083_vm1, %v27615_v15  ;;  %18377 = vmatpush3.bf16.msra.mxu0 %v20176_v3  ;;  %v27795_v25 = vld [vmem:[#allocation37_spill] sm:$0xff]  ;;  %v5589_v3 = vor.u32 %v5587_v31, %v5585_v39 }
 0x305   : > { %v17966_v41 = vpop.f32.mrf.mxu0  ;;  %v2393_v2 = vpop.f32.mrf.mxu1  ;;  %18378 = vmatprep.subr.bf16.mxu0 %v27615_v15  ;;  %v5910_v62 = vshrl.u32 %v27795_v25, 16  ;;  %v5913_v24 = vshll.u32 %v27795_v25, 16 }
 0x306   : > { %18055 = vmatpush3.bf16.msra.mxu1 %v20177_v61 }
 0x307   : > { %v3894_v57 = vpop.f32.mrf.mxu0  ;;  %v17679_v9 = vpop.f32.mrf.mxu1  ;;  %18112 = vmatprep.subr.bf16.mxu1 %v27615_v15  ;;  %v5912_v19 = vrot.slane %v5910_v62, 1  ;;  %v20184_v62 = vld [vmem:[%s27494_s3 + $0x78] sm:$0xff]  }
 0x308   : > { %18379 = vmatpush3.bf16.msra.mxu0 %v20178_v56  ;;  %v27799_v57 = vshll.u32 %v23635_v7, 16 }
 0x309   : > { %v17967_v41 = vpop.f32.mrf.mxu0  ;;  %v2523_v2 = vpop.f32.mrf.mxu1  ;;  %18001 = vmatmul.mubr.bf16.gmra.mxu1 %v27798_v29  ;;  %18436 = vmatprep.subr.bf16.mxu0 %v27615_v15  ;;  %v5915_v29 = vrot.slane %v5913_v24, 2 }
 0x30a   : > { %v5918_v9 = vrot.slane %v27799_v57, 2  ;;  %v23810_v61 = vadd.f32 %v2523_v2, %v23640_v49  ;;  %18056 = vmatprep.mubr.msk.bf16.mxu1 %vm21083_vm1, %v27615_v15  ;;  %v20181_v41 = vld [vmem:[%s27494_s3 + $0x438] sm:$0xff]  }
 0x30b   : > { %v23812_v25 = vpop.f32.mrf.mxu0  ;;  %18325 = vmatmul.mubr.bf16.gmra.mxu0 %v5589_v3  ;;  %v17698_v39 = vpop.f32.mrf.mxu1  ;;  %v5916_v2 = vor.u32 %v5915_v29, %v5912_v19 }
 0x30c   : > { %18380 = vmatprep.mubr.msk.bf16.mxu0 %vm21083_vm1, %v27615_v15  ;;  %v5919_v56 = vor.u32 %v5918_v9, %v5917_v50  ;;  %v27801_v39 = vld [vmem:[#allocation13_spill] sm:$0xff]  ;;  %v27804_v9 = vshrl.u32 %v23665_v40, 16 }
 0x30d   : > { %v18022_v51 = vpop.f32.mrf.mxu0  ;;  %v2526_v7 = vpop.f32.mrf.mxu1 }
 0x30e   : > { %v23819_v31 = vadd.f32 %v2526_v7, %v23653_v21  ;;  %v27802_v51 = vld [vmem:[#allocation10_spill] sm:$0xff]  ;;  %v5920_v21 = vsel %vm2241_vm5, %v5916_v2, %v5919_v56  ;;  %v5921_v7 = vrot.slane %v27804_v9, 1 }
 0x30f   : > { %v23821_v49 = vpop.f32.mrf.mxu0  ;;  %v17699_v3 = vpop.f32.mrf.mxu1  ;;  %v27803_v50 = vcombine.low %v27801_v39, %v27802_v51 }
 0x310   : > { %27800 = vst [vmem:[#allocation22_spill] sm:$0xff] %v23821_v49  ;;  %v27805_v49 = vshll.u32 %v23665_v40, 16  ;;  %v20183_v3 = vld [vmem:[%s27494_s3 + $0x430] sm:$0xff]  }
 0x311   : > { %v18023_v57 = vpop.f32.mrf.mxu0  ;;  %v2531_v24 = vpop.f32.mrf.mxu1  ;;  %18057 = vmatmul.mubr.bf16.vlgmr.msra.gmra.mxu1 %v27803_v50  ;;  %v20186_v40 = vld [vmem:[%s27494_s3 + $0x70] sm:$0xff]  }
 0x312   : > { %v5922_v27 = vrot.slane %v27805_v49, 2  ;;  %v23838_v19 = vadd.f32 %v2531_v24, %v23669_v14  ;;  %18113 = vmatpush3.bf16.msra.mxu1 %v20181_v41  ;;  %18060 = vmatprep.mubr.msk.bf16.mxu1 %vm21083_vm1, %v27615_v15 }
 0x313   : > { %v23840_v29 = vpop.f32.mrf.mxu0  ;;  %18381 = vmatmul.mubr.bf16.vlgmr.msra.gmra.mxu0 %v5920_v21  ;;  %v17702_v57 = vpop.f32.mrf.mxu1  ;;  %18114 = vmatprep.subr.bf16.mxu1 %v27615_v15  ;;  %v27806_v21 = vld [vmem:[#allocation8_spill] sm:$0xff] }
 0x314   : > { %18384 = vmatprep.mubr.msk.bf16.mxu0 %vm21083_vm1, %v27615_v15  ;;  %18437 = vmatpush3.bf16.msra.mxu0 %v20184_v62  ;;  %v5923_v49 = vor.u32 %v5922_v27, %v5921_v7  ;;  %v20185_v62 = vld [vmem:[%s27494_s3 + $0x428] sm:$0xff]  }
 0x315   : > { %v18026_v2 = vpop.f32.mrf.mxu0  ;;  %v2534_v14 = vpop.f32.mrf.mxu1  ;;  %18438 = vmatprep.subr.bf16.mxu0 %v27615_v15  ;;  %v20188_v27 = vld [vmem:[%s27494_s3 + $0x68] sm:$0xff]  }
 0x316   : > { %v23855_v41 = vadd.f32 %v2534_v14, %v23689_v18  ;;  %18115 = vmatpush3.bf16.msra.mxu1 %v20183_v3  ;;  %v27807_v18 = vld [vmem:[#allocation14_spill] sm:$0xff]  ;;  %v5924_v7 = vsel %vm2241_vm5, %v5919_v56, %v5923_v49  ;;  %v27809_v3 = vshrl.u32 %v23704_v37, 16  ;;  %v27810_v2 = vshll.u32 %v23704_v37, 16  ;;  %v20189_v37 = vld [vmem:[%s27494_s3 + $0x420] sm:$0xff]  }
 0x317   : > { %v23857_v24 = vpop.f32.mrf.mxu0  ;;  %v17703_v39 = vpop.f32.mrf.mxu1  ;;  %18116 = vmatprep.subr.bf16.mxu1 %v27615_v15  ;;  %v27808_v9 = vcombine.low %v27806_v21, %v27807_v18 }
 0x318   : > { %18439 = vmatpush3.bf16.msra.mxu0 %v20186_v40  ;;  %v5925_v57 = vrot.slane %v27809_v3, 1  ;;  %v5926_v14 = vrot.slane %v27810_v2, 2 }
 0x319   : > { %v18027_v51 = vpop.f32.mrf.mxu0  ;;  %v2539_v50 = vpop.f32.mrf.mxu1  ;;  %18061 = vmatmul.mubr.bf16.gmra.mxu1 %v27808_v9  ;;  %18440 = vmatprep.subr.bf16.mxu0 %v27615_v15 }
 0x31a   : > { %v23876_v40 = vadd.f32 %v2539_v50, %v23709_v12  ;;  %18064 = vmatprep.mubr.msk.bf16.mxu1 %vm21083_vm1, %v27615_v15  ;;  %18117 = vmatpush3.bf16.msra.mxu1 %v20185_v62  ;;  %v20190_v12 = vld [vmem:[%s27494_s3 + $0x60] sm:$0xff]   ;;  %v5927_v21 = vor.u32 %v5926_v14, %v5925_v57  ;;  %v20194_v57 = vld [vmem:[%s27494_s3 + $0x58] sm:$0xff]  }
 0x31b   : > { %v23878_v39 = vpop.f32.mrf.mxu0  ;;  %18385 = vmatmul.mubr.bf16.gmra.mxu0 %v5924_v7  ;;  %v17706_v51 = vpop.f32.mrf.mxu1  ;;  %18118 = vmatprep.subr.bf16.mxu1 %v27615_v15  ;;  %v27811_v62 = vld [vmem:[#allocation47_spill] sm:$0xff] }
 0x31c   : > { %18388 = vmatprep.mubr.msk.bf16.mxu0 %vm21083_vm1, %v27615_v15  ;;  %18441 = vmatpush3.bf16.msra.mxu0 %v20188_v27  ;;  %v5930_v18 = vshrl.u32 %v27811_v62, 16  ;;  %v5933_v9 = vshll.u32 %v27811_v62, 16  ;;  %v20192_v27 = vld [vmem:[%s27494_s3 + $0x418] sm:$0xff]  }
 0x31d   : > { %v18030_v56 = vpop.f32.mrf.mxu0  ;;  %v2542_v50 = vpop.f32.mrf.mxu1  ;;  %18442 = vmatprep.subr.bf16.mxu0 %v27615_v15 }
 0x31e   : > { %v23895_v7 = vadd.f32 %v2542_v50, %v23729_v55  ;;  %18119 = vmatpush3.bf16.msra.mxu1 %v20189_v37  ;;  %v27813_v56 = vld [vmem:[#allocation15_spill] sm:$0xff]  ;;  %v27814_v55 = vld [vmem:[#allocation16_spill] sm:$0xff]  ;;  %v5932_v37 = vrot.slane %v5930_v18, 1  ;;  %v5935_v62 = vrot.slane %v5933_v9, 2 }
 0x31f   : > { %v23897_v3 = vpop.f32.mrf.mxu0  ;;  %v17707_v2 = vpop.f32.mrf.mxu1  ;;  %18120 = vmatprep.subr.bf16.mxu1 %v27615_v15  ;;  %v27815_v50 = vcombine.low %v27813_v56, %v27814_v55 }
 0x320   : > { %27812 = vst [vmem:[#allocation21_spill] sm:$0xff] %v23897_v3  ;;  %18443 = vmatpush3.bf16.msra.mxu0 %v20190_v12  ;;  %v5928_v2 = vsel %vm2241_vm5, %v5923_v49, %v5927_v21  ;;  %v20195_v49 = vld [vmem:[%s27494_s3 + $0x410] sm:$0xff]  }
 0x321   : > { %v18031_v51 = vpop.f32.mrf.mxu0  ;;  %v2547_v14 = vpop.f32.mrf.mxu1  ;;  %18065 = vmatmul.mubr.bf16.gmra.mxu1 %v27815_v50  ;;  %18444 = vmatprep.subr.bf16.mxu0 %v27615_v15  ;;  %v6307_v50 = vld [vmem:[#allocation2 + $0x24] sm:$0xf] }
 0x322   : > { %v23912_v51 = vadd.f32 %v2547_v14, %v23747_v48  ;;  %18068 = vmatprep.mubr.msk.bf16.mxu1 %vm21083_vm1, %v27615_v15  ;;  %18121 = vmatpush3.bf16.msra.mxu1 %v20192_v27  ;;  %v20196_v48 = vld [vmem:[%s27494_s3 + $0x50] sm:$0xff]   ;;  %v5936_v14 = vor.u32 %v5935_v62, %v5932_v37  ;;  %v20199_v62 = vld [vmem:[%s27494_s3 + $0x48] sm:$0xff]  }
 0x323   : > { %v23914_v12 = vpop.f32.mrf.mxu0  ;;  %18389 = vmatmul.mubr.bf16.gmra.mxu0 %v5928_v2  ;;  %v17710_v3 = vpop.f32.mrf.mxu1  ;;  %18122 = vmatprep.subr.bf16.mxu1 %v27615_v15  ;;  %v27819_v37 = vld [vmem:[#allocation20_spill] sm:$0xff] }
 0x324   : > { %27816 = vst [vmem:[#allocation23_spill] sm:$0xff] %v23914_v12  ;;  %18392 = vmatprep.mubr.msk.bf16.mxu0 %vm21083_vm1, %v27615_v15  ;;  %18445 = vmatpush3.bf16.msra.mxu0 %v20194_v57  ;;  %v20198_v57 = vld [vmem:[%s27494_s3 + $0x408] sm:$0xff]  }
 0x325   : > { %v18034_v18 = vpop.f32.mrf.mxu0  ;;  %v2550_v9 = vpop.f32.mrf.mxu1  ;;  %18446 = vmatprep.subr.bf16.mxu0 %v27615_v15 }
 0x326   : > { %v23929_v3 = vadd.f32 %v2550_v9, %v23765_v46  ;;  %18123 = vmatpush3.bf16.msra.mxu1 %v20195_v49  ;;  %v27818_v46 = vld [vmem:[#allocation17_spill] sm:$0xff]  ;;  %v5937_v49 = vsel %vm2241_vm5, %v5927_v21, %v5936_v14  ;;  %v20200_v21 = vld [vmem:[%s27494_s3 + $0x400] sm:$0xff]  }
 0x327   : > { %v23931_v27 = vpop.f32.mrf.mxu0  ;;  %v17711_v56 = vpop.f32.mrf.mxu1  ;;  %18124 = vmatprep.subr.bf16.mxu1 %v27615_v15  ;;  %v27820_v18 = vcombine.low %v27818_v46, %v27819_v37  ;;  %v23945_v9 = vld [vmem:[#allocation2 + $0x28] sm:$0xf] }
 0x328   : > { %27817 = vst [vmem:[#allocation24_spill] sm:$0xff] %v23931_v27  ;;  %18447 = vmatpush3.bf16.msra.mxu0 %v20196_v48  ;;  %v23948_v48 = vcombine.low %v6307_v50, %v23945_v9 }
 0x329   : > { %v18035_v55 = vpop.f32.mrf.mxu0  ;;  %v2555_v2 = vpop.f32.mrf.mxu1  ;;  %18069 = vmatmul.mubr.bf16.gmra.mxu1 %v27820_v18  ;;  %18448 = vmatprep.subr.bf16.mxu0 %v27615_v15 }
 0x32a   : > { %27821 = vst [vmem:[#allocation25_spill] sm:$0xff] %v23948_v48  ;;  %v23951_v56 = vadd.f32 %v2555_v2, %v23782_v0  ;;  %18072 = vmatprep.mubr.msk.bf16.mxu1 %vm21083_vm1, %v27615_v15  ;;  %18125 = vmatpush3.bf16.msra.mxu1 %v20198_v57  ;;  %v20201_v0 = vld [vmem:[%s27494_s3 + $0x40] sm:$0xff]   ;;  %v6377_v57 = vshll.u32 %v23948_v48, 16 }
 0x32b   : > { %v23953_v55 = vpop.f32.mrf.mxu0  ;;  %18393 = vmatmul.mubr.bf16.gmra.mxu0 %v5937_v49  ;;  %v17714_v46 = vpop.f32.mrf.mxu1  ;;  %18126 = vmatprep.subr.bf16.mxu1 %v27615_v15  ;;  %v20995_v49 = vld [vmem:[#allocation2 + $0x30] sm:$0xf] }
 0x32c   : > { %27822 = vst [vmem:[#allocation27_spill] sm:$0xff] %v23953_v55  ;;  %18396 = vmatprep.mubr.msk.bf16.mxu0 %vm21083_vm1, %v27615_v15  ;;  %18449 = vmatpush3.bf16.msra.mxu0 %v20199_v62  ;;  %v14729_v46 = vcombine.low %v20995_v49, %v20995_v49  ;;  %v6379_v27 = vrot.slane %v6377_v57, 1 }
 0x32d   : > { %v18038_v50 = vpop.f32.mrf.mxu0  ;;  %v2558_v2 = vpop.f32.mrf.mxu1  ;;  %18450 = vmatprep.subr.bf16.mxu0 %v27615_v15 }
 0x32e   : > { %18127 = vmatpush3.bf16.msra.mxu1 %v20200_v21  ;;  %v2757_v50 = vadd.f32 %v23182_v42, %v23810_v61  ;;  %v6375_v42 = vshrl.u32 %v23948_v48, 16  ;;  %v2758_v61 = vadd.f32 %v23206_v35, %v23819_v31  ;;  %v20207_v35 = vld [vmem:[%s27494_s3 + $0xb8] sm:$0xff]  }
 0x32f   : > { %v4242_v37 = vpop.f32.mrf.mxu0  ;;  %v17715_v18 = vpop.f32.mrf.mxu1  ;;  %18184 = vmatprep.subr.bf16.mxu1 %v27615_v15 }
 0x330   : > { %18451 = vmatpush3.bf16.msra.mxu0 %v20201_v0  ;;  %v6380_v37 = vor.u32 %v6379_v27, %v6375_v42  ;;  %v27825_v27 = vld [vmem:[#allocation31_spill] sm:$0xff] }
 0x331   : > { %v18039_v62 = vpop.f32.mrf.mxu0  ;;  %v2919_v55 = vpop.f32.mrf.mxu1  ;;  %18073 = vmatmul.mubr.bf16.gmra.mxu1 %v14729_v46  ;;  %18508 = vmatprep.subr.bf16.mxu0 %v27615_v15 }
 0x332   : > { %v23972_v2 = vadd.f32 %v2919_v55, %v2757_v50  ;;  %18128 = vmatprep.mubr.msk.bf16.mxu1 %vm21083_vm1, %v27615_v15  ;;  %v27823_v55 = vld [vmem:[#allocation49_spill] sm:$0xff]  ;;  %v20204_v50 = vld [vmem:[%s27494_s3 + $0x4b8] sm:$0xff]  }
 0x333   : > { %v23974_v12 = vpop.f32.mrf.mxu0  ;;  %18397 = vmatmul.mubr.bf16.gmra.mxu0 %v5936_v14  ;;  %v17770_v21 = vpop.f32.mrf.mxu1  ;;  %v27824_v18 = vshll.u32 %v27823_v55, 16 }
 0x334   : > { %18452 = vmatprep.mubr.msk.bf16.mxu0 %vm21083_vm1, %v27615_v15  ;;  %v2759_v21 = vadd.f32 %v23234_v6, %v23838_v19  ;;  %v20205_v6 = vld [vmem:[%s27494_s3 + $0x4b0] sm:$0xff]  }
 0x335   : > { %v18094_v0 = vpop.f32.mrf.mxu0  ;;  %v2922_v57 = vpop.f32.mrf.mxu1  ;;  %v6384_v49 = vrot.slane %v27824_v18, 1 }
 0x336   : > { %v23985_v46 = vadd.f32 %v2922_v57, %v2758_v61 }
 0x337   : > { %v23987_v14 = vpop.f32.mrf.mxu0  ;;  %v17771_v62 = vpop.f32.mrf.mxu1  ;;  %v6385_v42 = vsel %vm1764_vm2, %v6380_v37, %v6384_v49  ;;  %v20209_v37 = vld [vmem:[%s27494_s3 + $0xb0] sm:$0xff]  }
 0x339   : > { %v18095_v48 = vpop.f32.mrf.mxu0  ;;  %v2927_v31 = vpop.f32.mrf.mxu1  ;;  %18129 = vmatmul.mubr.bf16.vlgmr.msra.gmra.mxu1 %v27825_v27 }
 0x33a   : > { %v23999_v61 = vadd.f32 %v2927_v31, %v2759_v21  ;;  %18185 = vmatpush3.bf16.msra.mxu1 %v20204_v50  ;;  %18132 = vmatprep.mubr.msk.bf16.mxu1 %vm21083_vm1, %v27615_v15  ;;  %v2760_v48 = vadd.f32 %v23259_v23, %v23855_v41  ;;  %v27826_v50 = vld [vmem:[#allocation51_spill] sm:$0xff]  ;;  %v27829_v41 = vshrl.u32 %v27823_v55, 16 }
 0x33b   : > { %v24001_v0 = vpop.f32.mrf.mxu0  ;;  %18453 = vmatmul.mubr.bf16.vlgmr.msra.gmra.mxu0 %v6385_v42  ;;  %v17774_v19 = vpop.f32.mrf.mxu1  ;;  %18186 = vmatprep.subr.bf16.mxu1 %v27615_v15  ;;  %v27827_v62 = vshll.u32 %v27826_v50, 16 }
 0x33c   : > { %18456 = vmatprep.mubr.msk.bf16.mxu0 %vm21083_vm1, %v27615_v15  ;;  %18509 = vmatpush3.bf16.msra.mxu0 %v20207_v35  ;;  %v6388_v42 = vor.u32 %v27829_v41, %v6384_v49  ;;  %v20208_v35 = vld [vmem:[%s27494_s3 + $0x4a8] sm:$0xff]   ;;  %v2761_v19 = vadd.f32 %v23278_v63, %v23876_v40 }
 0x33d   : > { %v18098_v57 = vpop.f32.mrf.mxu0  ;;  %v2930_v18 = vpop.f32.mrf.mxu1  ;;  %v6392_v21 = vrot.slane %v27827_v62, 1  ;;  %18510 = vmatprep.subr.bf16.mxu0 %v27615_v15  ;;  %v6332_v63 = vld [vmem:[#allocation2 + $0x48] sm:$0x1] }
 0x33e   : > { %v24019_v31 = vadd.f32 %v2930_v18, %v2760_v48  ;;  %18187 = vmatpush3.bf16.msra.mxu1 %v20205_v6  ;;  %v20211_v48 = vld [vmem:[%s27494_s3 + $0xa8] sm:$0xff]  }
 0x33f   : > { %v24021_v27 = vpop.f32.mrf.mxu0  ;;  %v17775_v23 = vpop.f32.mrf.mxu1  ;;  %18188 = vmatprep.subr.bf16.mxu1 %v27615_v15  ;;  %v27830_v18 = vld [vmem:[#allocation32_spill] sm:$0xff]  ;;  %v6393_v55 = vsel %vm1764_vm2, %v6388_v42, %v6392_v21 }
 0x340   : > { %27828 = vst [vmem:[#allocation28_spill] sm:$0xff] %v24021_v27  ;;  %18511 = vmatpush3.bf16.msra.mxu0 %v20209_v37  ;;  %v20212_v37 = vld [vmem:[%s27494_s3 + $0x4a0] sm:$0xff]   ;;  %v2762_v23 = vadd.f32 %v23294_v13, %v23895_v7 }
 0x341   : > { %v18099_v57 = vpop.f32.mrf.mxu0  ;;  %v2935_v6 = vpop.f32.mrf.mxu1  ;;  %18133 = vmatmul.mubr.bf16.gmra.mxu1 %v27830_v18  ;;  %18512 = vmatprep.subr.bf16.mxu0 %v27615_v15  ;;  %v20213_v42 = vld [vmem:[%s27494_s3 + $0xa0] sm:$0xff]  }
 0x342   : > { %v24037_v49 = vadd.f32 %v2935_v6, %v2761_v19  ;;  %18136 = vmatprep.mubr.msk.bf16.mxu1 %vm21083_vm1, %v27615_v15  ;;  %18189 = vmatpush3.bf16.msra.mxu1 %v20208_v35  ;;  %v27832_v35 = vld [vmem:[#allocation54_spill] sm:$0xff]  ;;  %v20996_v18 = vld [vmem:[#allocation2 + $0x44] sm:$0xf] }
 0x343   : > { %v24039_v62 = vpop.f32.mrf.mxu0  ;;  %18457 = vmatmul.mubr.bf16.gmra.mxu0 %v6393_v55  ;;  %v17778_v40 = vpop.f32.mrf.mxu1  ;;  %18190 = vmatprep.subr.bf16.mxu1 %v27615_v15  ;;  %v27833_v57 = vshll.u32 %v27832_v35, 16  ;;  %v24057_v55 = vcombine.low %v20996_v18, %v6332_v63  ;;  %v20216_v63 = vld [vmem:[%s27494_s3 + $0x98] sm:$0xff]  }
 0x344   : > { %27831 = vst [vmem:[#allocation29_spill] sm:$0xff] %v24039_v62  ;;  %18460 = vmatprep.mubr.msk.bf16.mxu0 %vm21083_vm1, %v27615_v15  ;;  %18513 = vmatpush3.bf16.msra.mxu0 %v20211_v48  ;;  %v27834_v48 = vshrl.u32 %v27826_v50, 16  ;;  %v20214_v62 = vld [vmem:[%s27494_s3 + $0x498] sm:$0xff]  }
 0x345   : > { %v18102_v41 = vpop.f32.mrf.mxu0  ;;  %v2938_v19 = vpop.f32.mrf.mxu1  ;;  %v6400_v6 = vrot.slane %v27833_v57, 1  ;;  %18514 = vmatprep.subr.bf16.mxu0 %v27615_v15  ;;  %v2763_v57 = vadd.f32 %v23308_v58, %v23912_v51 }
 0x346   : > { %v24059_v40 = vadd.f32 %v2938_v19, %v2762_v23  ;;  %v6396_v41 = vor.u32 %v27834_v48, %v6392_v21  ;;  %18191 = vmatpush3.bf16.msra.mxu1 %v20212_v37  ;;  %v27835_v19 = vld [vmem:[#allocation33_spill] sm:$0xff]  ;;  %v6406_v21 = vshll.u32 %v24057_v55, 16 }
 0x347   : > { %v24061_v13 = vpop.f32.mrf.mxu0  ;;  %v17779_v7 = vpop.f32.mrf.mxu1  ;;  %18192 = vmatprep.subr.bf16.mxu1 %v27615_v15 }
 0x348   : > { %18515 = vmatpush3.bf16.msra.mxu0 %v20213_v42  ;;  %v6401_v50 = vsel %vm1764_vm2, %v6396_v41, %v6400_v6  ;;  %v2764_v42 = vadd.f32 %v23327_v43, %v23929_v3  ;;  %v20218_v7 = vld [vmem:[%s27494_s3 + $0x90] sm:$0xff]   ;;  %v20219_v3 = vld [vmem:[%s27494_s3 + $0x488] sm:$0xff]  }
 0x349   : > { %v18103_v27 = vpop.f32.mrf.mxu0  ;;  %v2943_v23 = vpop.f32.mrf.mxu1  ;;  %18137 = vmatmul.mubr.bf16.gmra.mxu1 %v27835_v19  ;;  %18516 = vmatprep.subr.bf16.mxu0 %v27615_v15  ;;  %v27836_v19 = vshrl.u32 %v27832_v35, 16 }
 0x34a   : > { %v24078_v37 = vadd.f32 %v2943_v23, %v2763_v57  ;;  %18140 = vmatprep.mubr.msk.bf16.mxu1 %vm21083_vm1, %v27615_v15  ;;  %18193 = vmatpush3.bf16.msra.mxu1 %v20214_v62  ;;  %v20217_v27 = vld [vmem:[%s27494_s3 + $0x490] sm:$0xff]   ;;  %v6408_v62 = vrot.slane %v6406_v21, 1  ;;  %v20220_v21 = vld [vmem:[%s27494_s3 + $0x88] sm:$0xff]  }
 0x34b   : > { %v24080_v58 = vpop.f32.mrf.mxu0  ;;  %18461 = vmatmul.mubr.bf16.gmra.mxu0 %v6401_v50  ;;  %v17782_v51 = vpop.f32.mrf.mxu1  ;;  %18194 = vmatprep.subr.bf16.mxu1 %v27615_v15  ;;  %v6404_v43 = vor.u32 %v27836_v19, %v6400_v6  ;;  %v6410_v19 = vshrl.u32 %v24057_v55, 16 }
 0x34c   : > { %18464 = vmatprep.mubr.msk.bf16.mxu0 %vm21083_vm1, %v27615_v15  ;;  %18517 = vmatpush3.bf16.msra.mxu0 %v20216_v63  ;;  %v2765_v63 = vadd.f32 %v23338_v52, %v23951_v56  ;;  %v20221_v56 = vld [vmem:[%s27494_s3 + $0x480] sm:$0xff]  }
 0x34d   : > { %v18106_v18 = vpop.f32.mrf.mxu0  ;;  %v2946_v48 = vpop.f32.mrf.mxu1  ;;  %18518 = vmatprep.subr.bf16.mxu0 %v27615_v15  ;;  %v6409_v35 = vsel %vm1764_vm2, %v6404_v43, %v6408_v62 }
 0x34e   : > { %v24096_v41 = vadd.f32 %v2946_v48, %v2764_v42  ;;  %18195 = vmatpush3.bf16.msra.mxu1 %v20217_v27  ;;  %v27837_v42 = vld [vmem:[#allocation35_spill] sm:$0xff] }
 0x34f   : > { %v24098_v57 = vpop.f32.mrf.mxu0  ;;  %v17783_v23 = vpop.f32.mrf.mxu1  ;;  %18196 = vmatprep.subr.bf16.mxu1 %v27615_v15 }
 0x350   : > { %18519 = vmatpush3.bf16.msra.mxu0 %v20218_v7  ;;  %v20222_v7 = vld [vmem:[%s27494_s3 + $0x80] sm:$0xff]  }
 0x351   : > { %v18107_v50 = vpop.f32.mrf.mxu0  ;;  %v2951_v51 = vpop.f32.mrf.mxu1  ;;  %18141 = vmatmul.mubr.bf16.gmra.mxu1 %v27837_v42  ;;  %18520 = vmatprep.subr.bf16.mxu0 %v27615_v15 }
 0x352   : > { %v24114_v6 = vadd.f32 %v2951_v51, %v2765_v63  ;;  %18144 = vmatprep.mubr.msk.bf16.mxu1 %vm21083_vm1, %v27615_v15  ;;  %18197 = vmatpush3.bf16.msra.mxu1 %v20219_v3  ;;  %v3113_v3 = vadd.f32 %v23359_v54, %v23972_v2  ;;  %v6412_v50 = vor.u32 %v6410_v19, %v6408_v62  ;;  %v27838_v51 = vld [vmem:[#allocation34_spill] sm:$0xff] }
 0x353   : > { %v24116_v27 = vpop.f32.mrf.mxu0  ;;  %18465 = vmatmul.mubr.bf16.gmra.mxu0 %v6409_v35  ;;  %v17786_v52 = vpop.f32.mrf.mxu1  ;;  %18198 = vmatprep.subr.bf16.mxu1 %v27615_v15  ;;  %v3114_v54 = vadd.f32 %v23371_v59, %v23985_v46  ;;  %v3115_v59 = vadd.f32 %v23385_v11, %v23999_v61  ;;  %v20225_v11 = vld [vmem:[%s27494_s3 + $0x530] sm:$0xff]  }
 0x354   : > { %18468 = vmatprep.mubr.msk.bf16.mxu0 %vm21083_vm1, %v27615_v15  ;;  %18521 = vmatpush3.bf16.msra.mxu0 %v20220_v21 }
 0x355   : > { %v18110_v18 = vpop.f32.mrf.mxu0  ;;  %v2954_v48 = vpop.f32.mrf.mxu1  ;;  %18522 = vmatprep.subr.bf16.mxu0 %v27615_v15 }
 0x356   : > { %18199 = vmatpush3.bf16.msra.mxu1 %v20221_v56  ;;  %v24146_v56 = vld [vmem:[#allocation2 + $0x2c] sm:$0xff]  }
 0x357   : > { %v4593_v23 = vpop.f32.mrf.mxu0  ;;  %v17787_v43 = vpop.f32.mrf.mxu1  ;;  %18256 = vmatprep.subr.bf16.mxu1 %v27615_v15  ;;  %v6685_v18 = vrot.slane %v24146_v56, 1 }
 0x358   : > { %18523 = vmatpush3.bf16.msra.mxu0 %v20222_v7  ;;  %v20224_v23 = vld [vmem:[%s27494_s3 + $0x538] sm:$0xff]   ;;  %v27839_v43 = vld [vmem:[#allocation52_spill] sm:$0xff] }
 0x359   : > { %v18111_v63 = vpop.f32.mrf.mxu0  ;;  %v3300_v21 = vpop.f32.mrf.mxu1  ;;  %18145 = vmatmul.mubr.bf16.gmra.mxu1 %v27838_v51  ;;  %18580 = vmatprep.subr.bf16.mxu0 %v27615_v15 }
 0x35a   : > { %v24136_v42 = vadd.f32 %v3300_v21, %v3113_v3  ;;  %18200 = vmatprep.mubr.msk.bf16.mxu1 %vm21083_vm1, %v27615_v15  ;;  %v6684_v3 = vrot.slane %v27839_v43, 1  ;;  %v20226_v63 = vld [vmem:[%s27494_s3 + $0x138] sm:$0xff]   ;;  %v27840_v21 = vld [vmem:[#allocation36_spill] sm:$0xff] }
 0x35b   : > { %v24138_v35 = vpop.f32.mrf.mxu0  ;;  %18469 = vmatmul.mubr.bf16.gmra.mxu0 %v6412_v50  ;;  %v17842_v52 = vpop.f32.mrf.mxu1  ;;  %v24181_v43 = vld [vmem:[#allocation2 + $0x34] sm:$0xff]  }
 0x35c   : > { %18524 = vmatprep.mubr.msk.bf16.mxu0 %vm21083_vm1, %v27615_v15  ;;  %v6686_v51 = vsel %vm2076_vm4, %v6684_v3, %v6685_v18  ;;  %v6687_v3 = vrot.slane %v24181_v43, 1 }
 0x35d   : > { %v18166_v2 = vpop.f32.mrf.mxu0  ;;  %v3303_v62 = vpop.f32.mrf.mxu1 }
 0x35e   : > { %v24149_v7 = vadd.f32 %v3303_v62, %v3114_v54  ;;  %v3116_v2 = vadd.f32 %v23400_v32, %v24019_v31  ;;  %v20227_v31 = vld [vmem:[%s27494_s3 + $0x528] sm:$0xff]  }
 0x35f   : > { %v24151_v48 = vpop.f32.mrf.mxu0  ;;  %v17843_v19 = vpop.f32.mrf.mxu1 }
 0x361   : > { %v18167_v46 = vpop.f32.mrf.mxu0  ;;  %v3308_v50 = vpop.f32.mrf.mxu1  ;;  %18201 = vmatmul.mubr.bf16.vlgmr.msra.gmra.mxu1 %v27840_v21  ;;  %v20229_v21 = vld [vmem:[%s27494_s3 + $0x128] sm:$0xff]  }
 0x362   : > { %v24164_v52 = vadd.f32 %v3308_v50, %v3115_v59  ;;  %18257 = vmatpush3.bf16.msra.mxu1 %v20224_v23  ;;  %18204 = vmatprep.mubr.msk.bf16.mxu1 %vm21083_vm1, %v27615_v15  ;;  %v20228_v23 = vld [vmem:[%s27494_s3 + $0x130] sm:$0xff]  }
 0x363   : > { %v24166_v54 = vpop.f32.mrf.mxu0  ;;  %18525 = vmatmul.mubr.bf16.vlgmr.msra.gmra.mxu0 %v6686_v51  ;;  %v17846_v61 = vpop.f32.mrf.mxu1  ;;  %18258 = vmatprep.subr.bf16.mxu1 %v27615_v15 }
 0x364   : > { %18528 = vmatprep.mubr.msk.bf16.mxu0 %vm21083_vm1, %v27615_v15  ;;  %18581 = vmatpush3.bf16.msra.mxu0 %v20226_v63  ;;  %v3117_v63 = vadd.f32 %v23418_v33, %v24037_v49  ;;  %v27841_v61 = vld [vmem:[#allocation38_spill] sm:$0xff]  ;;  %v20230_v49 = vld [vmem:[%s27494_s3 + $0x520] sm:$0xff]  }
 0x365   : > { %v18170_v62 = vpop.f32.mrf.mxu0  ;;  %v3311_v19 = vpop.f32.mrf.mxu1  ;;  %18582 = vmatprep.subr.bf16.mxu0 %v27615_v15 }
 0x366   : > { %v24185_v59 = vadd.f32 %v3311_v19, %v3116_v2  ;;  %18259 = vmatpush3.bf16.msra.mxu1 %v20225_v11  ;;  %v6688_v11 = vsel %vm2076_vm4, %v6685_v18, %v6687_v3  ;;  %v3118_v18 = vadd.f32 %v23433_v22, %v24059_v40  ;;  %v20231_v19 = vld [vmem:[%s27494_s3 + $0x120] sm:$0xff]   ;;  %v20232_v40 = vld [vmem:[%s27494_s3 + $0x518] sm:$0xff]  }
 0x367   : > { %v24187_v46 = vpop.f32.mrf.mxu0  ;;  %v17847_v32 = vpop.f32.mrf.mxu1  ;;  %18260 = vmatprep.subr.bf16.mxu1 %v27615_v15 }
 0x368   : > { %18583 = vmatpush3.bf16.msra.mxu0 %v20228_v23 }
 0x369   : > { %v18171_v50 = vpop.f32.mrf.mxu0  ;;  %v3316_v51 = vpop.f32.mrf.mxu1  ;;  %18205 = vmatmul.mubr.bf16.gmra.mxu1 %v27841_v61  ;;  %18584 = vmatprep.subr.bf16.mxu0 %v27615_v15 }
 0x36a   : > { %v24201_v2 = vadd.f32 %v3316_v51, %v3117_v63  ;;  %18208 = vmatprep.mubr.msk.bf16.mxu1 %vm21083_vm1, %v27615_v15  ;;  %18261 = vmatpush3.bf16.msra.mxu1 %v20227_v31  ;;  %v24218_v31 = vld [vmem:[#allocation2 + $0x3c] sm:$0xff]  }
 0x36b   : > { %v24203_v62 = vpop.f32.mrf.mxu0  ;;  %18529 = vmatmul.mubr.bf16.gmra.mxu0 %v6688_v11  ;;  %v17850_v33 = vpop.f32.mrf.mxu1  ;;  %18262 = vmatprep.subr.bf16.mxu1 %v27615_v15  ;;  %v6689_v63 = vrot.slane %v24218_v31, 1  ;;  %v20233_v11 = vld [vmem:[%s27494_s3 + $0x118] sm:$0xff]  }
 0x36c   : > { %18532 = vmatprep.mubr.msk.bf16.mxu0 %vm21083_vm1, %v27615_v15  ;;  %18585 = vmatpush3.bf16.msra.mxu0 %v20229_v21  ;;  %v3119_v21 = vadd.f32 %v23448_v38, %v24078_v37  ;;  %v20234_v37 = vld [vmem:[%s27494_s3 + $0x510] sm:$0xff]  }
 0x36d   : > { %v18174_v23 = vpop.f32.mrf.mxu0  ;;  %v3319_v32 = vpop.f32.mrf.mxu1  ;;  %18586 = vmatprep.subr.bf16.mxu0 %v27615_v15 }
 0x36e   : > { %v24222_v50 = vadd.f32 %v3319_v32, %v3118_v18  ;;  %18263 = vmatpush3.bf16.msra.mxu1 %v20230_v49  ;;  %v27842_v18 = vld [vmem:[#allocation39_spill] sm:$0xff]  ;;  %v6690_v49 = vsel %vm2076_vm4, %v6687_v3, %v6689_v63  ;;  %v3120_v3 = vadd.f32 %v23469_v4, %v24096_v41  ;;  %v20236_v4 = vld [vmem:[%s27494_s3 + $0x508] sm:$0xff]   ;;  %v3121_v41 = vadd.f32 %v23481_v17, %v24114_v6 }
 0x36f   : > { %v24224_v51 = vpop.f32.mrf.mxu0  ;;  %v17851_v22 = vpop.f32.mrf.mxu1  ;;  %18264 = vmatprep.subr.bf16.mxu1 %v27615_v15  ;;  %v20238_v6 = vld [vmem:[%s27494_s3 + $0x500] sm:$0xff]  }
 0x370   : > { %18587 = vmatpush3.bf16.msra.mxu0 %v20231_v19  ;;  %v20235_v22 = vld [vmem:[%s27494_s3 + $0x110] sm:$0xff]  }
 0x371   : > { %v18175_v61 = vpop.f32.mrf.mxu0  ;;  %v3324_v33 = vpop.f32.mrf.mxu1  ;;  %18209 = vmatmul.mubr.bf16.gmra.mxu1 %v27842_v18  ;;  %18588 = vmatprep.subr.bf16.mxu0 %v27615_v15 }
 0x372   : > { %v24238_v23 = vadd.f32 %v3324_v33, %v3119_v21  ;;  %18212 = vmatprep.mubr.msk.bf16.mxu1 %vm21083_vm1, %v27615_v15  ;;  %18265 = vmatpush3.bf16.msra.mxu1 %v20232_v40  ;;  %v6691_v40 = vrot.slane %v24057_v55, 1  ;;  %v20237_v55 = vld [vmem:[%s27494_s3 + $0x108] sm:$0xff]  }
 0x373   : > { %v24240_v32 = vpop.f32.mrf.mxu0  ;;  %18533 = vmatmul.mubr.bf16.gmra.mxu0 %v6690_v49  ;;  %v17854_v38 = vpop.f32.mrf.mxu1  ;;  %18266 = vmatprep.subr.bf16.mxu1 %v27615_v15 }
 0x374   : > { %18536 = vmatprep.mubr.msk.bf16.mxu0 %vm21083_vm1, %v27615_v15  ;;  %18589 = vmatpush3.bf16.msra.mxu0 %v20233_v11  ;;  %v27843_v38 = vld [vmem:[#allocation41_spill] sm:$0xff] }
 0x375   : > { %v18178_v19 = vpop.f32.mrf.mxu0  ;;  %v3327_v21 = vpop.f32.mrf.mxu1  ;;  %18590 = vmatprep.subr.bf16.mxu0 %v27615_v15 }
 0x376   : > { %v24257_v61 = vadd.f32 %v3327_v21, %v3120_v3  ;;  %18267 = vmatpush3.bf16.msra.mxu1 %v20234_v37  ;;  %v6692_v37 = vsel %vm2076_vm4, %v6689_v63, %v6691_v40 }
 0x377   : > { %v24259_v33 = vpop.f32.mrf.mxu0  ;;  %v17855_v18 = vpop.f32.mrf.mxu1  ;;  %18268 = vmatprep.subr.bf16.mxu1 %v27615_v15 }
 0x378   : > { %18591 = vmatpush3.bf16.msra.mxu0 %v20235_v22  ;;  %v20239_v22 = vld [vmem:[%s27494_s3 + $0x100] sm:$0xff]  }
 0x379   : > { %v18179_v11 = vpop.f32.mrf.mxu0  ;;  %v3332_v49 = vpop.f32.mrf.mxu1  ;;  %18213 = vmatmul.mubr.bf16.gmra.mxu1 %v27843_v38  ;;  %18592 = vmatprep.subr.bf16.mxu0 %v27615_v15 }
 0x37a   : > { %v24273_v3 = vadd.f32 %v3332_v49, %v3121_v41  ;;  %18216 = vmatprep.mubr.msk.bf16.mxu1 %vm21083_vm1, %v27615_v15  ;;  %18269 = vmatpush3.bf16.msra.mxu1 %v20236_v4  ;;  %v3502_v41 = vadd.f32 %v23501_v28, %v24136_v42  ;;  %v27844_v49 = vld [vmem:[#allocation40_spill] sm:$0xff]  ;;  %v3503_v42 = vadd.f32 %v23510_v20, %v24149_v7  ;;  %v20245_v20 = vld [vmem:[%s27494_s3 + $0x1b8] sm:$0xff]  }
 0x37b   : > { %v24275_v19 = vpop.f32.mrf.mxu0  ;;  %18537 = vmatmul.mubr.bf16.gmra.mxu0 %v6692_v37  ;;  %v17858_v17 = vpop.f32.mrf.mxu1  ;;  %18270 = vmatprep.subr.bf16.mxu1 %v27615_v15 }
 0x37c   : > { %18540 = vmatprep.mubr.msk.bf16.mxu0 %vm21083_vm1, %v27615_v15  ;;  %18593 = vmatpush3.bf16.msra.mxu0 %v20237_v55  ;;  %v7010_v17 = vld [vmem:[#allocation2 + $0x24] sm:$0xc] }
 0x37d   : > { %v18182_v63 = vpop.f32.mrf.mxu0  ;;  %v3335_v21 = vpop.f32.mrf.mxu1  ;;  %18594 = vmatprep.subr.bf16.mxu0 %v27615_v15  ;;  %v15114_v28 = vcombine.low %v7010_v17, %v23945_v9  ;;  %v3504_v9 = vadd.f32 %v23522_v8, %v24164_v52  ;;  %v3505_v52 = vadd.f32 %v23540_v47, %v24185_v59  ;;  %v20243_v59 = vld [vmem:[#allocation2 + $0x24] sm:$0xff]  }
 0x37e   : > { %18271 = vmatpush3.bf16.msra.mxu1 %v20238_v6  ;;  %v7031_v21 = vrot.slane %v24146_v56, 2 }
 0x37f   : > { %v4956_v18 = vpop.f32.mrf.mxu0  ;;  %v17859_v4 = vpop.f32.mrf.mxu1  ;;  %18328 = vmatprep.subr.bf16.mxu1 %v27615_v15 }
 0x380   : > { %18595 = vmatpush3.bf16.msra.mxu0 %v20239_v22  ;;  %v20242_v4 = vld [vmem:[%s27494_s3 + $0x5b8] sm:$0xff]  }
 0x381   : > { %v18183_v11 = vpop.f32.mrf.mxu0  ;;  %v3659_v55 = vpop.f32.mrf.mxu1  ;;  %18217 = vmatmul.mubr.bf16.gmra.mxu1 %v27844_v49  ;;  %18652 = vmatprep.subr.bf16.mxu0 %v27615_v15 }
 0x382   : > { %v24294_v38 = vadd.f32 %v3659_v55, %v3502_v41  ;;  %18272 = vmatprep.mubr.msk.bf16.mxu1 %vm21083_vm1, %v27615_v15  ;;  %v20240_v11 = vld [vmem:[#allocation2 + $0x1c] sm:$0xff]   ;;  %v7030_v55 = vrot.slane %v15114_v28, 2  ;;  %v20244_v28 = vld [vmem:[%s27494_s3 + $0x5b0] sm:$0xff]  }
 0x383   : > { %v24296_v37 = vpop.f32.mrf.mxu0  ;;  %18541 = vmatmul.mubr.bf16.gmra.mxu0 %v6691_v40  ;;  %v17914_v6 = vpop.f32.mrf.mxu1 }
 0x384   : > { %18596 = vmatprep.mubr.msk.bf16.mxu0 %vm21083_vm1, %v27615_v15  ;;  %v7032_v7 = vsel %vm2426_vm6, %v7030_v55, %v7031_v21  ;;  %v20246_v55 = vld [vmem:[%s27494_s3 + $0x5a8] sm:$0xff]  }
 0x385   : > { %v18238_v63 = vpop.f32.mrf.mxu0  ;;  %v3662_v22 = vpop.f32.mrf.mxu1 }
 0x386   : > { %v24306_v18 = vadd.f32 %v3662_v22, %v3503_v42  ;;  %v20247_v63 = vld [vmem:[%s27494_s3 + $0x1b0] sm:$0xff]  }
 0x387   : > { %v24308_v40 = vpop.f32.mrf.mxu0  ;;  %v17915_v41 = vpop.f32.mrf.mxu1 }
 0x389   : > { %v18239_v49 = vpop.f32.mrf.mxu0  ;;  %v3667_v56 = vpop.f32.mrf.mxu1  ;;  %18273 = vmatmul.mubr.bf16.vlgmr.msra.gmra.mxu1 %v20240_v11 }
 0x38a   : > { %v24319_v17 = vadd.f32 %v3667_v56, %v3504_v9  ;;  %18329 = vmatpush3.bf16.msra.mxu1 %v20242_v4  ;;  %18276 = vmatprep.mubr.msk.bf16.mxu1 %vm21083_vm1, %v27615_v15  ;;  %v7033_v4 = vrot.slane %v24181_v43, 2  ;;  %v3506_v9 = vadd.f32 %v23554_v53, %v24201_v2  ;;  %v20249_v43 = vld [vmem:[%s27494_s3 + $0x1a8] sm:$0xff]   ;;  %v20250_v2 = vld [vmem:[%s27494_s3 + $0x5a0] sm:$0xff]  }
 0x38b   : > { %v24321_v6 = vpop.f32.mrf.mxu0  ;;  %18597 = vmatmul.mubr.bf16.vlgmr.msra.gmra.mxu0 %v7032_v7  ;;  %v17918_v8 = vpop.f32.mrf.mxu1  ;;  %18330 = vmatprep.subr.bf16.mxu1 %v27615_v15 }
 0x38c   : > { %18600 = vmatprep.mubr.msk.bf16.mxu0 %vm21083_vm1, %v27615_v15  ;;  %18653 = vmatpush3.bf16.msra.mxu0 %v20245_v20  ;;  %v7034_v56 = vsel %vm2426_vm6, %v7031_v21, %v7033_v4  ;;  %v3507_v21 = vadd.f32 %v23572_v44, %v24222_v50  ;;  %v20253_v44 = vld [vmem:[%s27494_s3 + $0x598] sm:$0xff]   ;;  %v3508_v50 = vadd.f32 %v23586_v60, %v24238_v23  ;;  %v20256_v23 = vld [vmem:[%s27494_s3 + $0x590] sm:$0xff]  }
 0x38d   : > { %v18242_v42 = vpop.f32.mrf.mxu0  ;;  %v3670_v22 = vpop.f32.mrf.mxu1  ;;  %18654 = vmatprep.subr.bf16.mxu0 %v27615_v15 }
 0x38e   : > { %v24338_v41 = vadd.f32 %v3670_v22, %v3505_v52  ;;  %18331 = vmatpush3.bf16.msra.mxu1 %v20244_v28  ;;  %v20251_v52 = vld [vmem:[%s27494_s3 + $0x1a0] sm:$0xff]  }
 0x38f   : > { %v24340_v11 = vpop.f32.mrf.mxu0  ;;  %v17919_v47 = vpop.f32.mrf.mxu1  ;;  %18332 = vmatprep.subr.bf16.mxu1 %v27615_v15 }
 0x390   : > { %18655 = vmatpush3.bf16.msra.mxu0 %v20247_v63  ;;  %v7035_v63 = vrot.slane %v24218_v31, 2  ;;  %v20255_v31 = vld [vmem:[%s27494_s3 + $0x198] sm:$0xff]  }
 0x391   : > { %v18243_v49 = vpop.f32.mrf.mxu0  ;;  %v3675_v20 = vpop.f32.mrf.mxu1  ;;  %18277 = vmatmul.mubr.bf16.gmra.mxu1 %v20243_v59  ;;  %18656 = vmatprep.subr.bf16.mxu0 %v27615_v15 }
 0x392   : > { %v24353_v7 = vadd.f32 %v3675_v20, %v3506_v9  ;;  %18280 = vmatprep.mubr.msk.bf16.mxu1 %vm21083_vm1, %v27615_v15  ;;  %18333 = vmatpush3.bf16.msra.mxu1 %v20246_v55  ;;  %v20248_v55 = vld [vmem:[#allocation2 + $0x2c] sm:$0xff]  }
 0x393   : > { %v24355_v28 = vpop.f32.mrf.mxu0  ;;  %18601 = vmatmul.mubr.bf16.gmra.mxu0 %v7034_v56  ;;  %v17922_v53 = vpop.f32.mrf.mxu1  ;;  %18334 = vmatprep.subr.bf16.mxu1 %v27615_v15 }
 0x394   : > { %18604 = vmatprep.mubr.msk.bf16.mxu0 %vm21083_vm1, %v27615_v15  ;;  %18657 = vmatpush3.bf16.msra.mxu0 %v20249_v43  ;;  %v7036_v43 = vsel %vm2426_vm6, %v7033_v4, %v7035_v63  ;;  %v3509_v4 = vadd.f32 %v23604_v34, %v24257_v61  ;;  %v20259_v34 = vld [vmem:[%s27494_s3 + $0x588] sm:$0xff]   ;;  %v3510_v61 = vadd.f32 %v23618_v36, %v24273_v3  ;;  %v20261_v3 = vld [vmem:[%s27494_s3 + $0x580] sm:$0xff]  }
 0x395   : > { %v18246_v8 = vpop.f32.mrf.mxu0  ;;  %v3678_v42 = vpop.f32.mrf.mxu1  ;;  %18658 = vmatprep.subr.bf16.mxu0 %v27615_v15 }
 0x396   : > { %v24372_v22 = vadd.f32 %v3678_v42, %v3507_v21  ;;  %18335 = vmatpush3.bf16.msra.mxu1 %v20250_v2  ;;  %v20257_v2 = vld [vmem:[%s27494_s3 + $0x190] sm:$0xff]  }
 0x397   : > { %v24374_v47 = vpop.f32.mrf.mxu0  ;;  %v17923_v59 = vpop.f32.mrf.mxu1  ;;  %18336 = vmatprep.subr.bf16.mxu1 %v27615_v15  ;;  %v27845_v8 = vld [vmem:[#allocation61_spill] sm:$0xff] }
 0x398   : > { %18659 = vmatpush3.bf16.msra.mxu0 %v20251_v52  ;;  %v7037_v52 = vrot.slane %v27845_v8, 2 }
 0x399   : > { %v18247_v9 = vpop.f32.mrf.mxu0  ;;  %v3683_v49 = vpop.f32.mrf.mxu1  ;;  %18281 = vmatmul.mubr.bf16.gmra.mxu1 %v20248_v55  ;;  %18660 = vmatprep.subr.bf16.mxu0 %v27615_v15 }
 0x39a   : > { %v24387_v20 = vadd.f32 %v3683_v49, %v3508_v50  ;;  %18284 = vmatprep.mubr.msk.bf16.mxu1 %vm21083_vm1, %v27615_v15  ;;  %18337 = vmatpush3.bf16.msra.mxu1 %v20253_v44  ;;  %v20252_v44 = vld [vmem:[#allocation2 + $0x34] sm:$0xff]   ;;  %v20260_v9 = vld [vmem:[%s27494_s3 + $0x188] sm:$0xff]   ;;  %v7038_v49 = vsel %vm2426_vm6, %v7035_v63, %v7037_v52 }
 0x39b   : > { %v24389_v56 = vpop.f32.mrf.mxu0  ;;  %18605 = vmatmul.mubr.bf16.gmra.mxu0 %v7036_v43  ;;  %v17926_v60 = vpop.f32.mrf.mxu1  ;;  %18338 = vmatprep.subr.bf16.mxu1 %v27615_v15 }
 0x39c   : > { %18608 = vmatprep.mubr.msk.bf16.mxu0 %vm21083_vm1, %v27615_v15  ;;  %18661 = vmatpush3.bf16.msra.mxu0 %v20255_v31 }
 0x39d   : > { %v18250_v53 = vpop.f32.mrf.mxu0  ;;  %v3686_v21 = vpop.f32.mrf.mxu1  ;;  %18662 = vmatprep.subr.bf16.mxu0 %v27615_v15 }
 0x39e   : > { %v24406_v42 = vadd.f32 %v3686_v21, %v3509_v4  ;;  %18339 = vmatpush3.bf16.msra.mxu1 %v20256_v23  ;;  %v20262_v23 = vld [vmem:[%s27494_s3 + $0x180] sm:$0xff]   ;;  %v7396_v53 = vshrl.u32 %v22733_v16, 16 }
 0x39f   : > { %v24408_v59 = vpop.f32.mrf.mxu0  ;;  %v17927_v55 = vpop.f32.mrf.mxu1  ;;  %18340 = vmatprep.subr.bf16.mxu1 %v27615_v15 }
 0x3a0   : > { %18663 = vmatpush3.bf16.msra.mxu0 %v20257_v2  ;;  %v7399_v2 = vshll.u32 %v22733_v16, 16  ;;  %v20258_v55 = vld [vmem:[#allocation2 + $0x3c] ss:$0 sps:$4 sm:$0xff]  }
 0x3a1   : > { %v18251_v50 = vpop.f32.mrf.mxu0  ;;  %v3691_v31 = vpop.f32.mrf.mxu1  ;;  %18285 = vmatmul.mubr.bf16.gmra.mxu1 %v20252_v44  ;;  %18664 = vmatprep.subr.bf16.mxu0 %v27615_v15  ;;  %v7388_v44 = vshrl.u32 %v22724_v26, 16 }
 0x3a2   : > { %v24421_v43 = vadd.f32 %v3691_v31, %v3510_v61  ;;  %18288 = vmatprep.mubr.msk.bf16.mxu1 %vm21083_vm1, %v27615_v15  ;;  %18341 = vmatpush3.bf16.msra.mxu1 %v20259_v34  ;;  %v7391_v34 = vshll.u32 %v22724_v26, 16  ;;  %v3897_v61 = vadd.f32 %v23642_v10, %v24294_v38  ;;  %v7398_v31 = vrot.slane %v7396_v53, 3 }
 0x3a3   : > { %v24423_v60 = vpop.f32.mrf.mxu0  ;;  %18609 = vmatmul.mubr.bf16.gmra.mxu0 %v7038_v49  ;;  %v17930_v36 = vpop.f32.mrf.mxu1  ;;  %18342 = vmatprep.subr.bf16.mxu1 %v27615_v15  ;;  %v7401_v49 = vrot.slane %v7399_v2, 4  ;;  %v7390_v10 = vrot.slane %v7388_v44, 3  ;;  %v7405_v53 = vshrl.u32 %v22748_v5, 16  ;;  %v7408_v2 = vshll.u32 %v22748_v5, 16  ;;  %v27846_v5 = vld [vmem:[#allocation43_spill] sm:$0xff] }
 0x3a4   : > { %18612 = vmatprep.mubr.msk.bf16.mxu0 %vm21083_vm1, %v27615_v15  ;;  %18665 = vmatpush3.bf16.msra.mxu0 %v20260_v9  ;;  %v7393_v38 = vrot.slane %v7391_v34, 4  ;;  %v20268_v34 = vld [vmem:[%s27494_s3 + $0x238] sm:$0xff]  }
 0x3a5   : > { %v18254_v63 = vpop.f32.mrf.mxu0  ;;  %v3694_v4 = vpop.f32.mrf.mxu1  ;;  %18666 = vmatprep.subr.bf16.mxu0 %v27615_v15 }
 0x3a6   : > { %18343 = vmatpush3.bf16.msra.mxu1 %v20261_v3  ;;  %v3898_v3 = vadd.f32 %v23655_v30, %v24306_v18  ;;  %v7402_v4 = vor.u32 %v7401_v49, %v7398_v31  ;;  %v7394_v44 = vor.u32 %v7393_v38, %v7390_v10  ;;  %v3899_v30 = vadd.f32 %v23671_v45, %v24319_v17  ;;  %v20266_v45 = vld [vmem:[%s27494_s3 + $0x630] sm:$0xff]  }
 0x3a7   : > { %v5304_v21 = vpop.f32.mrf.mxu0  ;;  %v17931_v8 = vpop.f32.mrf.mxu1  ;;  %18400 = vmatprep.subr.bf16.mxu1 %v27615_v15  ;;  %v7410_v31 = vrot.slane %v7408_v2, 4  ;;  %v3900_v10 = vadd.f32 %v23691_v1, %v24338_v41  ;;  %v7367_v41 = vld [vmem:[#allocation2 + $0x4c] sm:$0xf] }
 0x3a8   : > { %18667 = vmatpush3.bf16.msra.mxu0 %v20262_v23  ;;  %v20265_v8 = vld [vmem:[%s27494_s3 + $0x638] sm:$0xff]  }
 0x3a9   : > { %v18255_v50 = vpop.f32.mrf.mxu0  ;;  %v4023_v9 = vpop.f32.mrf.mxu1  ;;  %18289 = vmatmul.mubr.bf16.gmra.mxu1 %v20258_v55  ;;  %18724 = vmatprep.subr.bf16.mxu0 %v27615_v15 }
 0x3aa   : > { %v24445_v16 = vadd.f32 %v4023_v9, %v3897_v61  ;;  %18344 = vmatprep.mubr.msk.bf16.mxu1 %vm21083_vm1, %v27615_v15  ;;  %v7403_v50 = vsel %vm2787_vm7, %v7394_v44, %v7402_v4  ;;  %v7407_v9 = vrot.slane %v7405_v53, 3  ;;  %v27847_v53 = vld [vmem:[#allocation66_spill] sm:$0xff] }
 0x3ab   : > { %v24447_v36 = vpop.f32.mrf.mxu0  ;;  %18613 = vmatmul.mubr.bf16.gmra.mxu0 %v7037_v52  ;;  %v17986_v26 = vpop.f32.mrf.mxu1  ;;  %v7414_v2 = vshrl.u32 %v27847_v53, 16 }
 0x3ac   : > { %18668 = vmatprep.mubr.msk.bf16.mxu0 %vm21083_vm1, %v27615_v15 }
 0x3ad   : > { %v18310_v63 = vpop.f32.mrf.mxu0  ;;  %v4026_v23 = vpop.f32.mrf.mxu1 }
 0x3ae   : > { %v24457_v52 = vadd.f32 %v4026_v23, %v3898_v3  ;;  %v20270_v3 = vld [vmem:[%s27494_s3 + $0x230] sm:$0xff]   ;;  %v7411_v23 = vor.u32 %v7410_v31, %v7407_v9  ;;  %v27849_v9 = vld [vmem:[#allocation44_spill] sm:$0xff] }
 0x3af   : > { %v24459_v21 = vpop.f32.mrf.mxu0  ;;  %v17987_v55 = vpop.f32.mrf.mxu1 }
 0x3b0   : > { %v7412_v31 = vsel %vm2787_vm7, %v7402_v4, %v7411_v23  ;;  %v20273_v4 = vld [vmem:[%s27494_s3 + $0x620] sm:$0xff]  }
 0x3b1   : > { %v18311_v18 = vpop.f32.mrf.mxu0  ;;  %v4031_v61 = vpop.f32.mrf.mxu1  ;;  %18345 = vmatmul.mubr.bf16.vlgmr.msra.gmra.mxu1 %v27846_v5  ;;  %v20272_v5 = vld [vmem:[%s27494_s3 + $0x228] sm:$0xff]  }
 0x3b2   : > { %v24471_v49 = vadd.f32 %v4031_v61, %v3899_v30  ;;  %18401 = vmatpush3.bf16.msra.mxu1 %v20265_v8  ;;  %18348 = vmatprep.mubr.msk.bf16.mxu1 %vm21083_vm1, %v27615_v15  ;;  %v7417_v8 = vshll.u32 %v27847_v53, 16  ;;  %v20269_v30 = vld [vmem:[%s27494_s3 + $0x628] sm:$0xff]  }
 0x3b3   : > { %v24473_v26 = vpop.f32.mrf.mxu0  ;;  %18669 = vmatmul.mubr.bf16.vlgmr.msra.gmra.mxu0 %v7403_v50  ;;  %v17990_v17 = vpop.f32.mrf.mxu1  ;;  %18402 = vmatprep.subr.bf16.mxu1 %v27615_v15  ;;  %v27848_v18 = vld [vmem:[#allocation12_spill] sm:$0xff]  ;;  %v27850_v53 = vld [vmem:[#allocation9_spill] sm:$0xff] }
 0x3b4   : > { %18672 = vmatprep.mubr.msk.bf16.mxu0 %vm21083_vm1, %v27615_v15  ;;  %18725 = vmatpush3.bf16.msra.mxu0 %v20268_v34  ;;  %v3901_v34 = vadd.f32 %v27848_v18, %v24353_v7  ;;  %v7419_v17 = vrot.slane %v7417_v8, 4 }
 0x3b5   : > { %v18314_v38 = vpop.f32.mrf.mxu0  ;;  %v4034_v63 = vpop.f32.mrf.mxu1  ;;  %18726 = vmatprep.subr.bf16.mxu0 %v27615_v15 }
 0x3b6   : > { %v24491_v55 = vadd.f32 %v4034_v63, %v3900_v10  ;;  %18403 = vmatpush3.bf16.msra.mxu1 %v20266_v45  ;;  %v7416_v45 = vrot.slane %v7414_v2, 3  ;;  %v21000_v10 = vld [vmem:[#allocation2 + $0x48] sm:$0xf]  ;;  %v3902_v2 = vadd.f32 %v27850_v53, %v24372_v22  ;;  %v20275_v22 = vld [vmem:[%s27494_s3 + $0x618] sm:$0xff]  }
 0x3b7   : > { %v24493_v1 = vpop.f32.mrf.mxu0  ;;  %v17991_v44 = vpop.f32.mrf.mxu1  ;;  %18404 = vmatprep.subr.bf16.mxu1 %v27615_v15  ;;  %v15168_v38 = vcombine.low %v21000_v10, %v7367_v41  ;;  %v20274_v41 = vld [vmem:[%s27494_s3 + $0x220] sm:$0xff]  }
 0x3b8   : > { %18727 = vmatpush3.bf16.msra.mxu0 %v20270_v3 }
 0x3b9   : > { %v18315_v61 = vpop.f32.mrf.mxu0  ;;  %v4039_v50 = vpop.f32.mrf.mxu1  ;;  %18349 = vmatmul.mubr.bf16.gmra.mxu1 %v27849_v9  ;;  %18728 = vmatprep.subr.bf16.mxu0 %v27615_v15  ;;  %v7423_v18 = vshrl.u32 %v15168_v38, 16 }
 0x3ba   : > { %v24507_v63 = vadd.f32 %v4039_v50, %v3901_v34  ;;  %18352 = vmatprep.mubr.msk.bf16.mxu1 %vm21083_vm1, %v27615_v15  ;;  %18405 = vmatpush3.bf16.msra.mxu1 %v20269_v30  ;;  %v7420_v30 = vor.u32 %v7419_v17, %v7416_v45  ;;  %v7426_v34 = vshll.u32 %v15168_v38, 16  ;;  %v20277_v45 = vld [vmem:[%s27494_s3 + $0x218] sm:$0xff]   ;;  %v27852_v38 = vld [vmem:[#allocation45_spill] sm:$0xff] }
 0x3bb   : > { %v24509_v7 = vpop.f32.mrf.mxu0  ;;  %18673 = vmatmul.mubr.bf16.gmra.mxu0 %v7412_v31  ;;  %v17994_v3 = vpop.f32.mrf.mxu1  ;;  %18406 = vmatprep.subr.bf16.mxu1 %v27615_v15 }
 0x3bc   : > { %18676 = vmatprep.mubr.msk.bf16.mxu0 %vm21083_vm1, %v27615_v15  ;;  %18729 = vmatpush3.bf16.msra.mxu0 %v20272_v5  ;;  %v27851_v5 = vld [vmem:[#allocation18_spill] sm:$0xff]  ;;  %v7421_v3 = vsel %vm2787_vm7, %v7411_v23, %v7420_v30  ;;  %v7428_v53 = vrot.slane %v7426_v34, 4 }
 0x3bd   : > { %v18318_v8 = vpop.f32.mrf.mxu0  ;;  %v4042_v44 = vpop.f32.mrf.mxu1  ;;  %18730 = vmatprep.subr.bf16.mxu0 %v27615_v15  ;;  %v3903_v31 = vadd.f32 %v27851_v5, %v24387_v20  ;;  %v20278_v23 = vld [vmem:[%s27494_s3 + $0x610] sm:$0xff]  }
 0x3be   : > { %v24525_v61 = vadd.f32 %v4042_v44, %v3902_v2  ;;  %18407 = vmatpush3.bf16.msra.mxu1 %v20273_v4  ;;  %v7425_v4 = vrot.slane %v7423_v18, 3  ;;  %v20279_v34 = vld [vmem:[%s27494_s3 + $0x210] sm:$0xff]  }
 0x3bf   : > { %v24527_v50 = vpop.f32.mrf.mxu0  ;;  %v17995_v9 = vpop.f32.mrf.mxu1  ;;  %18408 = vmatprep.subr.bf16.mxu1 %v27615_v15 }
 0x3c0   : > { %18731 = vmatpush3.bf16.msra.mxu0 %v20274_v41  ;;  %v27853_v41 = vld [vmem:[#allocation11_spill] sm:$0xff] }
 0x3c1   : > { %v18319_v10 = vpop.f32.mrf.mxu0  ;;  %v4047_v17 = vpop.f32.mrf.mxu1  ;;  %18353 = vmatmul.mubr.bf16.gmra.mxu1 %v27852_v38  ;;  %18732 = vmatprep.subr.bf16.mxu0 %v27615_v15  ;;  %v3904_v44 = vadd.f32 %v27853_v41, %v24406_v42  ;;  %v20280_v42 = vld [vmem:[%s27494_s3 + $0x608] sm:$0xff]   ;;  %v21001_v41 = vld [vmem:[#allocation2 + $0x30] sm:$0xf] }
 0x3c2   : > { %v24541_v2 = vadd.f32 %v4047_v17, %v3903_v31  ;;  %18356 = vmatprep.mubr.msk.bf16.mxu1 %vm21083_vm1, %v27615_v15  ;;  %18409 = vmatpush3.bf16.msra.mxu1 %v20275_v22  ;;  %v7429_v22 = vor.u32 %v7428_v53, %v7425_v4  ;;  %v7720_v4 = vld [vmem:[#allocation2 + $0x2c] sm:$0xf] }
 0x3c3   : > { %v24543_v20 = vpop.f32.mrf.mxu0  ;;  %18677 = vmatmul.mubr.bf16.gmra.mxu0 %v7421_v3  ;;  %v17998_v8 = vpop.f32.mrf.mxu1  ;;  %18410 = vmatprep.subr.bf16.mxu1 %v27615_v15  ;;  %v20281_v3 = vld [vmem:[%s27494_s3 + $0x208] sm:$0xff]  }
 0x3c4   : > { %18680 = vmatprep.mubr.msk.bf16.mxu0 %vm21083_vm1, %v27615_v15  ;;  %18733 = vmatpush3.bf16.msra.mxu0 %v20277_v45  ;;  %v27855_v45 = vld [vmem:[#allocation19_spill] sm:$0xff]  ;;  %v27856_v8 = vld [vmem:[#allocation46_spill] sm:$0xff] }
 0x3c5   : > { %v18322_v18 = vpop.f32.mrf.mxu0  ;;  %v4050_v9 = vpop.f32.mrf.mxu1  ;;  %18734 = vmatprep.subr.bf16.mxu0 %v27615_v15  ;;  %v3905_v17 = vadd.f32 %v27855_v45, %v24421_v43 }
 0x3c6   : > { %v24559_v5 = vadd.f32 %v4050_v9, %v3904_v44  ;;  %18411 = vmatpush3.bf16.msra.mxu1 %v20278_v23  ;;  %v7430_v23 = vsel %vm2787_vm7, %v7420_v30, %v7429_v22  ;;  %v15222_v44 = vcombine.low %v7720_v4, %v21001_v41  ;;  %v20282_v30 = vld [vmem:[%s27494_s3 + $0x600] sm:$0xff]   ;;  %v4245_v4 = vadd.f32 %v23812_v25, %v24445_v16 }
 0x3c7   : > { %v24561_v31 = vpop.f32.mrf.mxu0  ;;  %v17999_v10 = vpop.f32.mrf.mxu1  ;;  %18412 = vmatprep.subr.bf16.mxu1 %v27615_v15 }
 0x3c8   : > { %27854 = vst [vmem:[#allocation30_spill] sm:$0xff] %v24561_v31  ;;  %18735 = vmatpush3.bf16.msra.mxu0 %v20279_v34  ;;  %v20283_v10 = vld [vmem:[%s27494_s3 + $0x200] sm:$0xff]   ;;  %v7772_v16 = vshrl.u32 %v15222_v44, 16 }
 0x3c9   : > { %v18323_v38 = vpop.f32.mrf.mxu0  ;;  %v4055_v53 = vpop.f32.mrf.mxu1  ;;  %18357 = vmatmul.mubr.bf16.gmra.mxu1 %v27856_v8  ;;  %18736 = vmatprep.subr.bf16.mxu0 %v27615_v15  ;;  %v27858_v8 = vld [vmem:[#allocation42_spill] sm:$0xff] }
 0x3ca   : > { %v24575_v18 = vadd.f32 %v4055_v53, %v3905_v17  ;;  %18360 = vmatprep.mubr.msk.bf16.mxu1 %vm21083_vm1, %v27615_v15  ;;  %18413 = vmatpush3.bf16.msra.mxu1 %v20280_v42  ;;  %v7774_v17 = vshll.u32 %v15222_v44, 16 }
 0x3cb   : > { %v24577_v43 = vpop.f32.mrf.mxu0  ;;  %18681 = vmatmul.mubr.bf16.gmra.mxu0 %v7430_v23  ;;  %v18002_v34 = vpop.f32.mrf.mxu1  ;;  %18414 = vmatprep.subr.bf16.mxu1 %v27615_v15  ;;  %v27859_v23 = vrot.slane %v27858_v8, 1 }
 0x3cc   : > { %27857 = vst [vmem:[#allocation37_spill] sm:$0xff] %v24577_v43  ;;  %18684 = vmatprep.mubr.msk.bf16.mxu0 %vm21083_vm1, %v27615_v15  ;;  %18737 = vmatpush3.bf16.msra.mxu0 %v20281_v3  ;;  %v7776_v41 = vrot.slane %v7774_v17, 1  ;;  %v21002_v34 = vld [vmem:[#allocation2 + $0x34] sm:$0xff]  }
 0x3cd   : > { %v18326_v9 = vpop.f32.mrf.mxu0  ;;  %v4058_v45 = vpop.f32.mrf.mxu1  ;;  %18738 = vmatprep.subr.bf16.mxu0 %v27615_v15 }
 0x3ce   : > { %18415 = vmatpush3.bf16.msra.mxu1 %v20282_v30  ;;  %v7779_v9 = vshll.u32 %v21002_v34, 16  ;;  %v27860_v30 = vld [vmem:[#allocation22_spill] sm:$0xff] }
 0x3cf   : > { %v5712_v42 = vpop.f32.mrf.mxu0  ;;  %v18003_v38 = vpop.f32.mrf.mxu1  ;;  %18472 = vmatprep.subr.bf16.mxu1 %v27615_v15 }
 0x3d0   : > { %18739 = vmatpush3.bf16.msra.mxu0 %v20283_v10  ;;  %v4246_v10 = vadd.f32 %v27860_v30, %v24457_v52  ;;  %v7781_v8 = vrot.slane %v7779_v9, 1  ;;  %v20290_v52 = vld [vmem:[%s27494_s3 + $0x2b8] sm:$0xff]  }
 0x3d1   : > { %v18327_v53 = vpop.f32.mrf.mxu0  ;;  %v4363_v3 = vpop.f32.mrf.mxu1  ;;  %18361 = vmatmul.mubr.bf16.gmra.mxu1 %v27859_v23  ;;  %18796 = vmatprep.subr.bf16.mxu0 %v27615_v15 }
 0x3d2   : > { %v24597_v45 = vadd.f32 %v4363_v3, %v4245_v4  ;;  %18416 = vmatprep.mubr.msk.bf16.mxu1 %vm21083_vm1, %v27615_v15  ;;  %v7777_v53 = vor.u32 %v7776_v41, %v7772_v16  ;;  %v27861_v41 = vld [vmem:[#allocation48_spill] sm:$0xff] }
 0x3d3   : > { %v24599_v42 = vpop.f32.mrf.mxu0  ;;  %18685 = vmatmul.mubr.bf16.gmra.mxu0 %v7429_v22  ;;  %v18058_v25 = vpop.f32.mrf.mxu1  ;;  %v20287_v22 = vld [vmem:[%s27494_s3 + $0x38] sm:$0xff]  }
 0x3d4   : > { %18740 = vmatprep.mubr.msk.bf16.mxu0 %vm21083_vm1, %v27615_v15  ;;  %v4247_v25 = vadd.f32 %v23840_v29, %v24471_v49  ;;  %v7782_v9 = vsel %vm1764_vm2, %v7777_v53, %v7781_v8  ;;  %v21003_v16 = vld [vmem:[#allocation2 + $0x3c] sm:$0xff]   ;;  %v20288_v29 = vld [vmem:[%s27494_s3 + $0x30] sm:$0xff]   ;;  %v4248_v53 = vadd.f32 %v23857_v24, %v24491_v55 }
 0x3d5   : > { %v18382_v17 = vpop.f32.mrf.mxu0  ;;  %v4366_v38 = vpop.f32.mrf.mxu1 }
 0x3d6   : > { %v24607_v4 = vadd.f32 %v4366_v38, %v4246_v10  ;;  %v7787_v10 = vshll.u32 %v21003_v16, 16 }
 0x3d7   : > { %v24609_v3 = vpop.f32.mrf.mxu0  ;;  %v18059_v23 = vpop.f32.mrf.mxu1 }
 0x3d9   : > { %v18383_v44 = vpop.f32.mrf.mxu0  ;;  %v4371_v30 = vpop.f32.mrf.mxu1  ;;  %18417 = vmatmul.mubr.bf16.vlgmr.msra.gmra.mxu1 %v27861_v41 }
 0x3da   : > { %v24621_v17 = vadd.f32 %v4371_v30, %v4247_v25  ;;  %18473 = vmatpush3.bf16.msra.mxu1 %v20287_v22  ;;  %18420 = vmatprep.mubr.msk.bf16.mxu1 %vm21083_vm1, %v27615_v15  ;;  %v20292_v22 = vld [vmem:[%s27494_s3 + $0x2b0] sm:$0xff]   ;;  %v7783_v44 = vshrl.u32 %v21002_v34, 16  ;;  %v7789_v30 = vrot.slane %v7787_v10, 1  ;;  %v20294_v10 = vld [vmem:[%s27494_s3 + $0x2a8] sm:$0xff]  }
 0x3db   : > { %v24623_v38 = vpop.f32.mrf.mxu0  ;;  %18741 = vmatmul.mubr.bf16.vlgmr.msra.gmra.mxu0 %v7782_v9  ;;  %v18062_v49 = vpop.f32.mrf.mxu1  ;;  %18474 = vmatprep.subr.bf16.mxu1 %v27615_v15 }
 0x3dc   : > { %18744 = vmatprep.mubr.msk.bf16.mxu0 %vm21083_vm1, %v27615_v15  ;;  %18797 = vmatpush3.bf16.msra.mxu0 %v20290_v52  ;;  %v7785_v55 = vor.u32 %v7783_v44, %v7781_v8  ;;  %v20291_v52 = vld [vmem:[%s27494_s3 + $0x28] sm:$0xff]   ;;  %v4249_v49 = vadd.f32 %v23878_v39, %v24507_v63  ;;  %v20295_v63 = vld [vmem:[%s27494_s3 + $0x20] sm:$0xff]  }
 0x3dd   : > { %v18386_v23 = vpop.f32.mrf.mxu0  ;;  %v4374_v25 = vpop.f32.mrf.mxu1  ;;  %18798 = vmatprep.subr.bf16.mxu0 %v27615_v15 }
 0x3de   : > { %v24639_v41 = vadd.f32 %v4374_v25, %v4248_v53  ;;  %18475 = vmatpush3.bf16.msra.mxu1 %v20288_v29  ;;  %v27862_v23 = vld [vmem:[#allocation50_spill] sm:$0xff]  ;;  %v7790_v8 = vsel %vm1764_vm2, %v7785_v55, %v7789_v30  ;;  %v21004_v29 = vld [vmem:[#allocation2 + $0x44] sm:$0xff]  }
 0x3df   : > { %v24641_v9 = vpop.f32.mrf.mxu0  ;;  %v18063_v24 = vpop.f32.mrf.mxu1  ;;  %18476 = vmatprep.subr.bf16.mxu1 %v27615_v15  ;;  %v7795_v25 = vshll.u32 %v21004_v29, 16 }
 0x3e0   : > { %18799 = vmatpush3.bf16.msra.mxu0 %v20292_v22  ;;  %v27863_v22 = vld [vmem:[#allocation21_spill] sm:$0xff] }
 0x3e1   : > { %v18387_v34 = vpop.f32.mrf.mxu0  ;;  %v4379_v53 = vpop.f32.mrf.mxu1  ;;  %18421 = vmatmul.mubr.bf16.gmra.mxu1 %v27862_v23  ;;  %18800 = vmatprep.subr.bf16.mxu0 %v27615_v15  ;;  %v4250_v55 = vadd.f32 %v27863_v22, %v24525_v61  ;;  %v7797_v23 = vrot.slane %v7795_v25, 1  ;;  %v20297_v61 = vld [vmem:[%s27494_s3 + $0x18] sm:$0xff]  }
 0x3e2   : > { %v24655_v44 = vadd.f32 %v4379_v53, %v4249_v49  ;;  %18424 = vmatprep.mubr.msk.bf16.mxu1 %vm21083_vm1, %v27615_v15  ;;  %18477 = vmatpush3.bf16.msra.mxu1 %v20291_v52  ;;  %v20296_v34 = vld [vmem:[%s27494_s3 + $0x2a0] sm:$0xff]   ;;  %v7791_v52 = vshrl.u32 %v21003_v16, 16  ;;  %v20299_v16 = vld [vmem:[%s27494_s3 + $0x298] sm:$0xff]  }
 0x3e3   : > { %v24657_v24 = vpop.f32.mrf.mxu0  ;;  %18745 = vmatmul.mubr.bf16.gmra.mxu0 %v7790_v8  ;;  %v18066_v39 = vpop.f32.mrf.mxu1  ;;  %18478 = vmatprep.subr.bf16.mxu1 %v27615_v15 }
 0x3e4   : > { %18748 = vmatprep.mubr.msk.bf16.mxu0 %vm21083_vm1, %v27615_v15  ;;  %18801 = vmatpush3.bf16.msra.mxu0 %v20294_v10  ;;  %v7793_v31 = vor.u32 %v7791_v52, %v7789_v30  ;;  %v27865_v10 = vld [vmem:[#allocation23_spill] sm:$0xff]  ;;  %v21005_v30 = vld [vmem:[#allocation2 + $0x4c] sm:$0x1f]   ;;  %v27868_v52 = vld [vmem:[#allocation24_spill] sm:$0xff] }
 0x3e5   : > { %v18390_v49 = vpop.f32.mrf.mxu0  ;;  %v4382_v53 = vpop.f32.mrf.mxu1  ;;  %18802 = vmatprep.subr.bf16.mxu0 %v27615_v15  ;;  %v4251_v22 = vadd.f32 %v27865_v10, %v24541_v2  ;;  %v4252_v10 = vadd.f32 %v27868_v52, %v24559_v5  ;;  %v20302_v5 = vld [vmem:[%s27494_s3 + $0x8] sm:$0xff]  }
 0x3e6   : > { %v24673_v8 = vadd.f32 %v4382_v53, %v4250_v55  ;;  %18479 = vmatpush3.bf16.msra.mxu1 %v20295_v63  ;;  %v27866_v55 = vld [vmem:[#allocation53_spill] sm:$0xff]  ;;  %v7803_v63 = vshll.u32 %v21005_v30, 16 }
 0x3e7   : > { %v24675_v39 = vpop.f32.mrf.mxu0  ;;  %v18067_v43 = vpop.f32.mrf.mxu1  ;;  %18480 = vmatprep.subr.bf16.mxu1 %v27615_v15 }
 0x3e8   : > { %27864 = vst [vmem:[#allocation26_spill] sm:$0xff] %v24675_v39  ;;  %18803 = vmatpush3.bf16.msra.mxu0 %v20296_v34  ;;  %v7798_v43 = vsel %vm1764_vm2, %v7793_v31, %v7797_v23  ;;  %v20300_v31 = vld [vmem:[%s27494_s3 + $0x10] sm:$0xff]  }
 0x3e9   : > { %v18391_v49 = vpop.f32.mrf.mxu0  ;;  %v4387_v25 = vpop.f32.mrf.mxu1  ;;  %18425 = vmatmul.mubr.bf16.gmra.mxu1 %v27866_v55  ;;  %18804 = vmatprep.subr.bf16.mxu0 %v27615_v15  ;;  %v7805_v55 = vrot.slane %v7803_v63, 1 }
 0x3ea   : > { %v24689_v53 = vadd.f32 %v4387_v25, %v4251_v22  ;;  %18428 = vmatprep.mubr.msk.bf16.mxu1 %vm21083_vm1, %v27615_v15  ;;  %18481 = vmatpush3.bf16.msra.mxu1 %v20297_v61  ;;  %v20301_v49 = vld [vmem:[%s27494_s3 + $0x290] sm:$0xff]   ;;  %v7799_v61 = vshrl.u32 %v21004_v29, 16  ;;  %v20303_v29 = vld [vmem:[%s27494_s3 + $0x288] sm:$0xff]  }
 0x3eb   : > { %v24691_v2 = vpop.f32.mrf.mxu0  ;;  %18749 = vmatmul.mubr.bf16.gmra.mxu0 %v7798_v43  ;;  %v18070_v34 = vpop.f32.mrf.mxu1  ;;  %18482 = vmatprep.subr.bf16.mxu1 %v27615_v15 }
 0x3ec   : > { %27867 = vst [vmem:[#allocation13_spill] sm:$0xff] %v24691_v2  ;;  %18752 = vmatprep.mubr.msk.bf16.mxu0 %vm21083_vm1, %v27615_v15  ;;  %18805 = vmatpush3.bf16.msra.mxu0 %v20299_v16  ;;  %v7801_v39 = vor.u32 %v7799_v61, %v7797_v23  ;;  %v27869_v16 = vld [vmem:[#allocation27_spill] sm:$0xff] }
 0x3ed   : > { %v18394_v22 = vpop.f32.mrf.mxu0  ;;  %v4390_v25 = vpop.f32.mrf.mxu1  ;;  %18806 = vmatprep.subr.bf16.mxu0 %v27615_v15  ;;  %v4253_v52 = vadd.f32 %v27869_v16, %v24575_v18 }
 0x3ee   : > { %v24707_v43 = vadd.f32 %v4390_v25, %v4252_v10  ;;  %18483 = vmatpush3.bf16.msra.mxu1 %v20300_v31  ;;  %v27870_v10 = vld [vmem:[#allocation55_spill] sm:$0xff]  ;;  %v7806_v23 = vsel %vm1764_vm2, %v7801_v39, %v7805_v55 }
 0x3ef   : > { %v24709_v34 = vpop.f32.mrf.mxu0  ;;  %v18071_v2 = vpop.f32.mrf.mxu1  ;;  %18484 = vmatprep.subr.bf16.mxu1 %v27615_v15  ;;  %v20305_v25 = vld [vmem:[%s27494_s3 + $0x280] sm:$0xff]  }
 0x3f0   : > { %18807 = vmatpush3.bf16.msra.mxu0 %v20301_v49  ;;  %v20304_v49 = vld [vmem:[%s27494_s3] sm:$0xff]  }
 0x3f1   : > { %v18395_v22 = vpop.f32.mrf.mxu0  ;;  %v4395_v63 = vpop.f32.mrf.mxu1  ;;  %18429 = vmatmul.mubr.bf16.gmra.mxu1 %v27870_v10  ;;  %18808 = vmatprep.subr.bf16.mxu0 %v27615_v15 }
 0x3f2   : > { %v24723_v2 = vadd.f32 %v4395_v63, %v4253_v52  ;;  %18432 = vmatprep.mubr.msk.bf16.mxu1 %vm21083_vm1, %v27615_v15  ;;  %18485 = vmatpush3.bf16.msra.mxu1 %v20302_v5  ;;  %v7807_v5 = vshrl.u32 %v21005_v30, 16  ;;  %v4596_v22 = vadd.f32 %v23974_v12, %v24597_v45  ;;  %v4597_v45 = vadd.f32 %v23987_v14, %v24607_v4  ;;  %v20311_v14 = vld [vmem:[%s27494_s3 + $0x338] sm:$0xff]  }
 0x3f3   : > { %v24725_v31 = vpop.f32.mrf.mxu0  ;;  %18753 = vmatmul.mubr.bf16.gmra.mxu0 %v7806_v23  ;;  %v18074_v18 = vpop.f32.mrf.mxu1  ;;  %18486 = vmatprep.subr.bf16.mxu1 %v27615_v15  ;;  %v27871_v23 = vld [vmem:[#allocation47_spill] sm:$0xff] }
 0x3f4   : > { %18756 = vmatprep.mubr.msk.bf16.mxu0 %vm21083_vm1, %v27615_v15  ;;  %18809 = vmatpush3.bf16.msra.mxu0 %v20303_v29  ;;  %v7809_v10 = vor.u32 %v7807_v5, %v7805_v55  ;;  %v27872_v18 = vrot.slane %v27871_v23, 2 }
 0x3f5   : > { %v18398_v39 = vpop.f32.mrf.mxu0  ;;  %v4398_v61 = vpop.f32.mrf.mxu1  ;;  %18810 = vmatprep.subr.bf16.mxu0 %v27615_v15 }
 0x3f6   : > { %18487 = vmatpush3.bf16.msra.mxu1 %v20304_v49  ;;  %v27873_v49 = vld [vmem:[#allocation87_spill] sm:$0xff] }
 0x3f7   : > { %v6060_v16 = vpop.f32.mrf.mxu0  ;;  %v18075_v52 = vpop.f32.mrf.mxu1  ;;  %18544 = vmatprep.subr.bf16.mxu1 %v27615_v15 }
 0x3f8   : > { %18811 = vmatpush3.bf16.msra.mxu0 %v20305_v25  ;;  %v8159_v25 = vrot.slane %v27873_v49, 2  ;;  %v20308_v52 = vld [vmem:[%s27494_s3 + $0xf8] sm:$0xff]  }
 0x3f9   : > { %v18399_v63 = vpop.f32.mrf.mxu0  ;;  %v4757_v29 = vpop.f32.mrf.mxu1  ;;  %18433 = vmatmul.mubr.bf16.gmra.mxu1 %v27872_v18  ;;  %18868 = vmatprep.subr.bf16.mxu0 %v27615_v15  ;;  %v27875_v18 = vld [vmem:[#allocation25_spill] sm:$0xff] }
 0x3fa   : > { %v24745_v39 = vadd.f32 %v4757_v29, %v4596_v22  ;;  %18488 = vmatprep.mubr.msk.bf16.mxu1 %vm21083_vm1, %v27615_v15  ;;  %v27874_v63 = vld [vmem:[#allocation86_spill] sm:$0xff]  ;;  %v4598_v29 = vadd.f32 %v24001_v0, %v24621_v17 }
 0x3fb   : > { %v24747_v61 = vpop.f32.mrf.mxu0  ;;  %18757 = vmatmul.mubr.bf16.gmra.mxu0 %v7809_v10  ;;  %v18130_v12 = vpop.f32.mrf.mxu1  ;;  %v8158_v10 = vrot.slane %v27874_v63, 2  ;;  %v20309_v0 = vld [vmem:[%s27494_s3 + $0xf0] sm:$0xff]  }
 0x3fc   : > { %18812 = vmatprep.mubr.msk.bf16.mxu0 %vm21083_vm1, %v27615_v15 }
 0x3fd   : > { %v18454_v30 = vpop.f32.mrf.mxu0  ;;  %v4760_v55 = vpop.f32.mrf.mxu1  ;;  %v8160_v12 = vsel %vm2426_vm6, %v8158_v10, %v8159_v25 }
 0x3fe   : > { %v24756_v16 = vadd.f32 %v4760_v55, %v4597_v45  ;;  %v27877_v55 = vld [vmem:[#allocation28_spill] sm:$0xff] }
 0x3ff   : > { %v24758_v5 = vpop.f32.mrf.mxu0  ;;  %v18131_v22 = vpop.f32.mrf.mxu1 }
 0x400   : > { %v4599_v22 = vadd.f32 %v27877_v55, %v24639_v41 }
 0x401   : > { %v18455_v23 = vpop.f32.mrf.mxu0  ;;  %v4765_v4 = vpop.f32.mrf.mxu1  ;;  %18489 = vmatmul.mubr.bf16.vlgmr.msra.gmra.mxu1 %v27875_v18 }
 0x402   : > { %v24771_v45 = vadd.f32 %v4765_v4, %v4598_v29  ;;  %18545 = vmatpush3.bf16.msra.mxu1 %v20308_v52  ;;  %18492 = vmatprep.mubr.msk.bf16.mxu1 %vm21083_vm1, %v27615_v15  ;;  %v20313_v52 = vld [vmem:[%s27494_s3 + $0x330] sm:$0xff]  }
 0x403   : > { %v24773_v30 = vpop.f32.mrf.mxu0  ;;  %18813 = vmatmul.mubr.bf16.vlgmr.msra.gmra.mxu0 %v8160_v12  ;;  %v18134_v17 = vpop.f32.mrf.mxu1  ;;  %18546 = vmatprep.subr.bf16.mxu1 %v27615_v15  ;;  %v27878_v29 = vld [vmem:[#allocation89_spill] sm:$0xff] }
 0x404   : > { %27876 = vst [vmem:[#allocation10_spill] sm:$0xff] %v24773_v30  ;;  %18816 = vmatprep.mubr.msk.bf16.mxu0 %vm21083_vm1, %v27615_v15  ;;  %18869 = vmatpush3.bf16.msra.mxu0 %v20311_v14  ;;  %v8161_v23 = vrot.slane %v27878_v29, 2  ;;  %v20312_v14 = vld [vmem:[%s27494_s3 + $0xe8] sm:$0xff]  }
 0x405   : > { %v18458_v63 = vpop.f32.mrf.mxu0  ;;  %v4768_v10 = vpop.f32.mrf.mxu1  ;;  %18870 = vmatprep.subr.bf16.mxu0 %v27615_v15  ;;  %v27880_v12 = vld [vmem:[#allocation29_spill] sm:$0xff] }
 0x406   : > { %v24790_v4 = vadd.f32 %v4768_v10, %v4599_v22  ;;  %18547 = vmatpush3.bf16.msra.mxu1 %v20309_v0  ;;  %v4600_v17 = vadd.f32 %v27880_v12, %v24655_v44  ;;  %v20315_v22 = vld [vmem:[%s27494_s3 + $0x328] sm:$0xff]   ;;  %v8162_v0 = vsel %vm2426_vm6, %v8159_v25, %v8161_v23  ;;  %v4601_v25 = vadd.f32 %v24061_v13, %v24673_v8  ;;  %v20318_v13 = vld [vmem:[%s27494_s3 + $0xd8] sm:$0xff]  }
 0x407   : > { %v24792_v18 = vpop.f32.mrf.mxu0  ;;  %v18135_v41 = vpop.f32.mrf.mxu1  ;;  %18548 = vmatprep.subr.bf16.mxu1 %v27615_v15  ;;  %v21006_v10 = vld [vmem:[#allocation2 + $0x2c] sm:$0xff]   ;;  %v4602_v8 = vadd.f32 %v24080_v58, %v24689_v53 }
 0x408   : > { %27879 = vst [vmem:[#allocation8_spill] sm:$0xff] %v24792_v18  ;;  %18871 = vmatpush3.bf16.msra.mxu0 %v20313_v52  ;;  %v20316_v52 = vld [vmem:[%s27494_s3 + $0xe0] sm:$0xff]  }
 0x409   : > { %v18459_v55 = vpop.f32.mrf.mxu0  ;;  %v4773_v63 = vpop.f32.mrf.mxu1  ;;  %18493 = vmatmul.mubr.bf16.gmra.mxu1 %v21006_v10  ;;  %18872 = vmatprep.subr.bf16.mxu0 %v27615_v15 }
 0x40a   : > { %v24805_v41 = vadd.f32 %v4773_v63, %v4600_v17  ;;  %18496 = vmatprep.mubr.msk.bf16.mxu1 %vm21083_vm1, %v27615_v15  ;;  %18549 = vmatpush3.bf16.msra.mxu1 %v20312_v14  ;;  %v20317_v17 = vld [vmem:[%s27494_s3 + $0x320] sm:$0xff]  }
 0x40b   : > { %v24807_v18 = vpop.f32.mrf.mxu0  ;;  %18817 = vmatmul.mubr.bf16.gmra.mxu0 %v8162_v0  ;;  %v18138_v44 = vpop.f32.mrf.mxu1  ;;  %18550 = vmatprep.subr.bf16.mxu1 %v27615_v15  ;;  %v27882_v14 = vld [vmem:[#allocation91_spill] sm:$0xff] }
 0x40c   : > { %27881 = vst [vmem:[#allocation14_spill] sm:$0xff] %v24807_v18  ;;  %18820 = vmatprep.mubr.msk.bf16.mxu0 %vm21083_vm1, %v27615_v15  ;;  %18873 = vmatpush3.bf16.msra.mxu0 %v20315_v22  ;;  %v8163_v63 = vrot.slane %v27882_v14, 2  ;;  %v8116_v44 = vld [vmem:[#allocation2 + $0x54] sm:$0x3] }
 0x40d   : > { %v18462_v12 = vpop.f32.mrf.mxu0  ;;  %v4776_v55 = vpop.f32.mrf.mxu1  ;;  %18874 = vmatprep.subr.bf16.mxu0 %v27615_v15 }
 0x40e   : > { %v24824_v10 = vadd.f32 %v4776_v55, %v4601_v25  ;;  %18551 = vmatpush3.bf16.msra.mxu1 %v20316_v52  ;;  %v20320_v25 = vld [vmem:[%s27494_s3 + $0x318] sm:$0xff]   ;;  %v21008_v52 = vld [vmem:[#allocation2 + $0x50] sm:$0xf] }
 0x40f   : > { %v24826_v0 = vpop.f32.mrf.mxu0  ;;  %v18139_v18 = vpop.f32.mrf.mxu1  ;;  %18552 = vmatprep.subr.bf16.mxu1 %v27615_v15  ;;  %v21007_v55 = vld [vmem:[#allocation2 + $0x34] sm:$0xff]  }
 0x410   : > { %27883 = vst [vmem:[#allocation15_spill] sm:$0xff] %v24826_v0  ;;  %18875 = vmatpush3.bf16.msra.mxu0 %v20317_v17  ;;  %v8164_v18 = vsel %vm2426_vm6, %v8161_v23, %v8163_v63  ;;  %v15280_v0 = vcombine.low %v21008_v52, %v8116_v44  ;;  %v20321_v23 = vld [vmem:[%s27494_s3 + $0xd0] sm:$0xff]   ;;  %v4603_v17 = vadd.f32 %v24098_v57, %v24707_v43  ;;  %v20324_v57 = vld [vmem:[%s27494_s3 + $0xc8] sm:$0xff]  }
 0x411   : > { %v18463_v22 = vpop.f32.mrf.mxu0  ;;  %v4781_v12 = vpop.f32.mrf.mxu1  ;;  %18497 = vmatmul.mubr.bf16.gmra.mxu1 %v21007_v55  ;;  %18876 = vmatprep.subr.bf16.mxu0 %v27615_v15  ;;  %v4604_v43 = vadd.f32 %v24116_v27, %v24723_v2  ;;  %v20326_v2 = vld [vmem:[%s27494_s3 + $0xc0] sm:$0xff]  }
 0x412   : > { %v24839_v30 = vadd.f32 %v4781_v12, %v4602_v8  ;;  %18500 = vmatprep.mubr.msk.bf16.mxu1 %vm21083_vm1, %v27615_v15  ;;  %18553 = vmatpush3.bf16.msra.mxu1 %v20318_v13  ;;  %v20322_v8 = vld [vmem:[%s27494_s3 + $0x310] sm:$0xff]   ;;  %v8165_v13 = vrot.slane %v15280_v0, 2  ;;  %v20325_v0 = vld [vmem:[%s27494_s3 + $0x308] sm:$0xff]  }
 0x413   : > { %v24841_v58 = vpop.f32.mrf.mxu0  ;;  %18821 = vmatmul.mubr.bf16.gmra.mxu0 %v8164_v18  ;;  %v18142_v53 = vpop.f32.mrf.mxu1  ;;  %18554 = vmatprep.subr.bf16.mxu1 %v27615_v15 }
 0x414   : > { %18824 = vmatprep.mubr.msk.bf16.mxu0 %vm21083_vm1, %v27615_v15  ;;  %18877 = vmatpush3.bf16.msra.mxu0 %v20320_v25  ;;  %v21009_v53 = vld [vmem:[#allocation2 + $0x3c] sm:$0xff]  }
 0x415   : > { %v18466_v44 = vpop.f32.mrf.mxu0  ;;  %v4784_v22 = vpop.f32.mrf.mxu1  ;;  %18878 = vmatprep.subr.bf16.mxu0 %v27615_v15 }
 0x416   : > { %v24857_v12 = vadd.f32 %v4784_v22, %v4603_v17  ;;  %18555 = vmatpush3.bf16.msra.mxu1 %v20321_v23  ;;  %v8166_v23 = vsel %vm2426_vm6, %v8163_v63, %v8165_v13 }
 0x417   : > { %v24859_v55 = vpop.f32.mrf.mxu0  ;;  %v18143_v18 = vpop.f32.mrf.mxu1  ;;  %18556 = vmatprep.subr.bf16.mxu1 %v27615_v15 }
 0x418   : > { %18879 = vmatpush3.bf16.msra.mxu0 %v20322_v8  ;;  %v20327_v8 = vld [vmem:[%s27494_s3 + $0x300] sm:$0xff]  }
 0x419   : > { %v18467_v25 = vpop.f32.mrf.mxu0  ;;  %v4789_v52 = vpop.f32.mrf.mxu1  ;;  %18501 = vmatmul.mubr.bf16.gmra.mxu1 %v21009_v53  ;;  %18880 = vmatprep.subr.bf16.mxu0 %v27615_v15 }
 0x41a   : > { %v24872_v17 = vadd.f32 %v4789_v52, %v4604_v43  ;;  %18504 = vmatprep.mubr.msk.bf16.mxu1 %vm21083_vm1, %v27615_v15  ;;  %18557 = vmatpush3.bf16.msra.mxu1 %v20324_v57  ;;  %v21010_v43 = vld [vmem:[#allocation2 + $0x44] sm:$0xf]  ;;  %v4959_v52 = vadd.f32 %v24138_v35, %v24745_v39  ;;  %v4960_v35 = vadd.f32 %v24151_v48, %v24756_v16  ;;  %v20331_v48 = vld [vmem:[%s27494_s3 + $0x3b8] sm:$0xff]  }
 0x41b   : > { %v24874_v44 = vpop.f32.mrf.mxu0  ;;  %18825 = vmatmul.mubr.bf16.gmra.mxu0 %v8166_v23  ;;  %v18146_v27 = vpop.f32.mrf.mxu1  ;;  %18558 = vmatprep.subr.bf16.mxu1 %v27615_v15  ;;  %v15039_v25 = vcombine.low %v21010_v43, %v21010_v43  ;;  %v27884_v43 = vld [vmem:[#allocation94_spill] sm:$0xff] }
 0x41c   : > { %18828 = vmatprep.mubr.msk.bf16.mxu0 %vm21083_vm1, %v27615_v15  ;;  %18881 = vmatpush3.bf16.msra.mxu0 %v20325_v0  ;;  %v27885_v16 = vld [vmem:[#allocation70_spill] sm:$0xff] }
 0x41d   : > { %v18470_v63 = vpop.f32.mrf.mxu0  ;;  %v4792_v22 = vpop.f32.mrf.mxu1  ;;  %18882 = vmatprep.subr.bf16.mxu0 %v27615_v15 }
 0x41e   : > { %18559 = vmatpush3.bf16.msra.mxu1 %v20326_v2 }
 0x41f   : > { %v6535_v18 = vpop.f32.mrf.mxu0  ;;  %v18147_v57 = vpop.f32.mrf.mxu1  ;;  %18616 = vmatprep.subr.bf16.mxu1 %v27615_v15 }
 0x420   : > { %18883 = vmatpush3.bf16.msra.mxu0 %v20327_v8  ;;  %v8520_v8 = vrot.slane %v27873_v49, 3 }
 0x421   : > { %v18471_v53 = vpop.f32.mrf.mxu0  ;;  %v5105_v0 = vpop.f32.mrf.mxu1  ;;  %18505 = vmatmul.mubr.bf16.gmra.mxu1 %v15039_v25  ;;  %18940 = vmatprep.subr.bf16.mxu0 %v27615_v15  ;;  %v8519_v25 = vrot.slane %v27884_v43, 3  ;;  %v8522_v43 = vrot.slane %v27878_v29, 3  ;;  %v20334_v29 = vld [vmem:[%s27494_s3 + $0x3a8] sm:$0xff]  }
 0x422   : > { %v24892_v23 = vadd.f32 %v5105_v0, %v4959_v52  ;;  %18560 = vmatprep.mubr.msk.bf16.mxu1 %vm21083_vm1, %v27615_v15  ;;  %v4961_v52 = vadd.f32 %v24166_v54, %v24771_v45  ;;  %v20330_v54 = vld [vmem:[%s27494_s3 + $0x170] sm:$0xff]  }
 0x423   : > { %v24894_v27 = vpop.f32.mrf.mxu0  ;;  %18829 = vmatmul.mubr.bf16.gmra.mxu0 %v8165_v13  ;;  %v18202_v2 = vpop.f32.mrf.mxu1  ;;  %v20329_v13 = vld [vmem:[%s27494_s3 + $0x178] sm:$0xff]   ;;  %v8521_v0 = vsel %vm2622_vm3, %v8519_v25, %v8520_v8 }
 0x424   : > { %18884 = vmatprep.mubr.msk.bf16.mxu0 %vm21083_vm1, %v27615_v15 }
 0x425   : > { %v18526_v39 = vpop.f32.mrf.mxu0  ;;  %v5108_v63 = vpop.f32.mrf.mxu1 }
 0x426   : > { %v24903_v22 = vadd.f32 %v5108_v63, %v4960_v35  ;;  %v4962_v39 = vadd.f32 %v24187_v46, %v24790_v4  ;;  %v20332_v4 = vld [vmem:[%s27494_s3 + $0x168] sm:$0xff]  }
 0x427   : > { %v24905_v18 = vpop.f32.mrf.mxu0  ;;  %v18203_v57 = vpop.f32.mrf.mxu1 }
 0x429   : > { %v18527_v53 = vpop.f32.mrf.mxu0  ;;  %v5113_v49 = vpop.f32.mrf.mxu1  ;;  %18561 = vmatmul.mubr.bf16.vlgmr.msra.gmra.mxu1 %v27885_v16  ;;  %v27886_v16 = vld [vmem:[#allocation74_spill] sm:$0xff] }
 0x42a   : > { %v24918_v2 = vadd.f32 %v5113_v49, %v4961_v52  ;;  %18617 = vmatpush3.bf16.msra.mxu1 %v20329_v13  ;;  %18564 = vmatprep.mubr.msk.bf16.mxu1 %vm21083_vm1, %v27615_v15  ;;  %v20333_v13 = vld [vmem:[%s27494_s3 + $0x3b0] sm:$0xff]   ;;  %v4963_v53 = vadd.f32 %v24203_v62, %v24805_v41  ;;  %v20335_v41 = vld [vmem:[%s27494_s3 + $0x160] sm:$0xff]  }
 0x42b   : > { %v24920_v35 = vpop.f32.mrf.mxu0  ;;  %18885 = vmatmul.mubr.bf16.vlgmr.msra.gmra.mxu0 %v8521_v0  ;;  %v18206_v45 = vpop.f32.mrf.mxu1  ;;  %18618 = vmatprep.subr.bf16.mxu1 %v27615_v15  ;;  %v8523_v0 = vsel %vm2622_vm3, %v8520_v8, %v8522_v43  ;;  %v4964_v8 = vadd.f32 %v24224_v51, %v24824_v10  ;;  %v20337_v51 = vld [vmem:[%s27494_s3 + $0x158] sm:$0xff]   ;;  %v4965_v10 = vadd.f32 %v24240_v32, %v24839_v30  ;;  %v20340_v30 = vld [vmem:[%s27494_s3 + $0x150] sm:$0xff]  }
 0x42c   : > { %18888 = vmatprep.mubr.msk.bf16.mxu0 %vm21083_vm1, %v27615_v15  ;;  %18941 = vmatpush3.bf16.msra.mxu0 %v20331_v48 }
 0x42d   : > { %v18530_v63 = vpop.f32.mrf.mxu0  ;;  %v5116_v57 = vpop.f32.mrf.mxu1  ;;  %18942 = vmatprep.subr.bf16.mxu0 %v27615_v15 }
 0x42e   : > { %v24937_v25 = vadd.f32 %v5116_v57, %v4962_v39  ;;  %18619 = vmatpush3.bf16.msra.mxu1 %v20330_v54  ;;  %v20336_v63 = vld [vmem:[%s27494_s3 + $0x3a0] sm:$0xff]   ;;  %v8524_v57 = vrot.slane %v27882_v14, 3  ;;  %v20339_v14 = vld [vmem:[%s27494_s3 + $0x398] sm:$0xff]  }
 0x42f   : > { %v24939_v52 = vpop.f32.mrf.mxu0  ;;  %v18207_v46 = vpop.f32.mrf.mxu1  ;;  %18620 = vmatprep.subr.bf16.mxu1 %v27615_v15 }
 0x430   : > { %18943 = vmatpush3.bf16.msra.mxu0 %v20333_v13 }
 0x431   : > { %v18531_v48 = vpop.f32.mrf.mxu0  ;;  %v5121_v49 = vpop.f32.mrf.mxu1  ;;  %18565 = vmatmul.mubr.bf16.gmra.mxu1 %v27886_v16  ;;  %18944 = vmatprep.subr.bf16.mxu0 %v27615_v15  ;;  %v8525_v16 = vsel %vm2622_vm3, %v8522_v43, %v8524_v57  ;;  %v4966_v43 = vadd.f32 %v24259_v33, %v24857_v12  ;;  %v20342_v33 = vld [vmem:[%s27494_s3 + $0x148] sm:$0xff]   ;;  %v4967_v12 = vadd.f32 %v24275_v19, %v24872_v17  ;;  %v20344_v17 = vld [vmem:[%s27494_s3 + $0x140] sm:$0xff]  }
 0x432   : > { %v24953_v54 = vadd.f32 %v5121_v49, %v4963_v53  ;;  %18568 = vmatprep.mubr.msk.bf16.mxu1 %vm21083_vm1, %v27615_v15  ;;  %18621 = vmatpush3.bf16.msra.mxu1 %v20332_v4  ;;  %v27887_v49 = vld [vmem:[#allocation75_spill] sm:$0xff] }
 0x433   : > { %v24955_v45 = vpop.f32.mrf.mxu0  ;;  %18889 = vmatmul.mubr.bf16.gmra.mxu0 %v8523_v0  ;;  %v18210_v62 = vpop.f32.mrf.mxu1  ;;  %18622 = vmatprep.subr.bf16.mxu1 %v27615_v15 }
 0x434   : > { %18892 = vmatprep.mubr.msk.bf16.mxu0 %vm21083_vm1, %v27615_v15  ;;  %18945 = vmatpush3.bf16.msra.mxu0 %v20334_v29 }
 0x435   : > { %v18534_v39 = vpop.f32.mrf.mxu0  ;;  %v5124_v13 = vpop.f32.mrf.mxu1  ;;  %18946 = vmatprep.subr.bf16.mxu0 %v27615_v15 }
 0x436   : > { %v24972_v46 = vadd.f32 %v5124_v13, %v4964_v8  ;;  %18623 = vmatpush3.bf16.msra.mxu1 %v20335_v41  ;;  %v20341_v8 = vld [vmem:[%s27494_s3 + $0x390] sm:$0xff]  }
 0x437   : > { %v24974_v4 = vpop.f32.mrf.mxu0  ;;  %v18211_v53 = vpop.f32.mrf.mxu1  ;;  %18624 = vmatprep.subr.bf16.mxu1 %v27615_v15 }
 0x438   : > { %18947 = vmatpush3.bf16.msra.mxu0 %v20336_v63  ;;  %v27888_v63 = vld [vmem:[#allocation92_spill] sm:$0xff] }
 0x439   : > { %v18535_v48 = vpop.f32.mrf.mxu0  ;;  %v5129_v29 = vpop.f32.mrf.mxu1  ;;  %18569 = vmatmul.mubr.bf16.gmra.mxu1 %v27887_v49  ;;  %18948 = vmatprep.subr.bf16.mxu0 %v27615_v15  ;;  %v8526_v13 = vrot.slane %v27888_v63, 3  ;;  %v27889_v49 = vld [vmem:[#allocation80_spill] sm:$0xff]  ;;  %v5307_v63 = vadd.f32 %v24296_v37, %v24892_v23  ;;  %v5308_v37 = vadd.f32 %v24308_v40, %v24903_v22  ;;  %v27892_v22 = vld [vmem:[#allocation77_spill] sm:$0xff] }
 0x43a   : > { %v24988_v0 = vadd.f32 %v5129_v29, %v4965_v10  ;;  %18572 = vmatprep.mubr.msk.bf16.mxu1 %vm21083_vm1, %v27615_v15  ;;  %18625 = vmatpush3.bf16.msra.mxu1 %v20337_v51 }
 0x43b   : > { %v24990_v62 = vpop.f32.mrf.mxu0  ;;  %18893 = vmatmul.mubr.bf16.gmra.mxu0 %v8525_v16  ;;  %v18214_v32 = vpop.f32.mrf.mxu1  ;;  %18626 = vmatprep.subr.bf16.mxu1 %v27615_v15  ;;  %v8527_v16 = vsel %vm2622_vm3, %v8524_v57, %v8526_v13 }
 0x43c   : > { %18896 = vmatprep.mubr.msk.bf16.mxu0 %vm21083_vm1, %v27615_v15  ;;  %18949 = vmatpush3.bf16.msra.mxu0 %v20339_v14  ;;  %v20343_v14 = vld [vmem:[%s27494_s3 + $0x388] sm:$0xff]  }
 0x43d   : > { %v18538_v41 = vpop.f32.mrf.mxu0  ;;  %v5132_v39 = vpop.f32.mrf.mxu1  ;;  %18950 = vmatprep.subr.bf16.mxu0 %v27615_v15 }
 0x43e   : > { %v25007_v53 = vadd.f32 %v5132_v39, %v4966_v43  ;;  %18627 = vmatpush3.bf16.msra.mxu1 %v20340_v30  ;;  %v20345_v43 = vld [vmem:[%s27494_s3 + $0x380] sm:$0xff]  }
 0x43f   : > { %v25009_v51 = vpop.f32.mrf.mxu0  ;;  %v18215_v10 = vpop.f32.mrf.mxu1  ;;  %18628 = vmatprep.subr.bf16.mxu1 %v27615_v15 }
 0x440   : > { %18951 = vmatpush3.bf16.msra.mxu0 %v20341_v8 }
 0x441   : > { %v18539_v48 = vpop.f32.mrf.mxu0  ;;  %v5137_v29 = vpop.f32.mrf.mxu1  ;;  %18573 = vmatmul.mubr.bf16.gmra.mxu1 %v27889_v49  ;;  %18952 = vmatprep.subr.bf16.mxu0 %v27615_v15 }
 0x442   : > { %v25023_v32 = vadd.f32 %v5137_v29, %v4967_v12  ;;  %18576 = vmatprep.mubr.msk.bf16.mxu1 %vm21083_vm1, %v27615_v15  ;;  %18629 = vmatpush3.bf16.msra.mxu1 %v20342_v33  ;;  %v27890_v12 = vld [vmem:[#allocation76_spill] sm:$0xff] }
 0x443   : > { %v25025_v30 = vpop.f32.mrf.mxu0  ;;  %18897 = vmatmul.mubr.bf16.gmra.mxu0 %v8527_v16  ;;  %v18218_v19 = vpop.f32.mrf.mxu1  ;;  %18630 = vmatprep.subr.bf16.mxu1 %v27615_v15 }
 0x444   : > { %18900 = vmatprep.mubr.msk.bf16.mxu0 %vm21083_vm1, %v27615_v15  ;;  %18953 = vmatpush3.bf16.msra.mxu0 %v20343_v14 }
 0x445   : > { %v18542_v57 = vpop.f32.mrf.mxu0  ;;  %v5140_v41 = vpop.f32.mrf.mxu1  ;;  %18954 = vmatprep.subr.bf16.mxu0 %v27615_v15 }
 0x446   : > { %18631 = vmatpush3.bf16.msra.mxu1 %v20344_v17  ;;  %v5309_v57 = vadd.f32 %v24321_v6, %v24918_v2  ;;  %v20350_v41 = vld [vmem:[%s27494_s3 + $0x438] sm:$0xff]   ;;  %v20348_v6 = vld [vmem:[%s27494_s3 + $0x1f0] sm:$0xff]  }
 0x447   : > { %v6815_v8 = vpop.f32.mrf.mxu0  ;;  %v18219_v39 = vpop.f32.mrf.mxu1  ;;  %18688 = vmatprep.subr.bf16.mxu1 %v27615_v15 }
 0x448   : > { %18955 = vmatpush3.bf16.msra.mxu0 %v20345_v43 }
 0x449   : > { %v18543_v10 = vpop.f32.mrf.mxu0  ;;  %v5452_v33 = vpop.f32.mrf.mxu1  ;;  %18577 = vmatmul.mubr.bf16.gmra.mxu1 %v27890_v12  ;;  %19012 = vmatprep.subr.bf16.mxu0 %v27615_v15  ;;  %v5310_v12 = vadd.f32 %v24340_v11, %v24937_v25  ;;  %v20351_v11 = vld [vmem:[%s27494_s3 + $0x1e8] sm:$0xff]   ;;  %v5311_v25 = vadd.f32 %v24355_v28, %v24953_v54  ;;  %v20355_v54 = vld [vmem:[%s27494_s3 + $0x1e0] sm:$0xff]  }
 0x44a   : > { %v25044_v48 = vadd.f32 %v5452_v33, %v5307_v63  ;;  %18632 = vmatprep.mubr.msk.bf16.mxu1 %vm21083_vm1, %v27615_v15  ;;  %v27894_v63 = vld [vmem:[#allocation68_spill] sm:$0xff] }
 0x44b   : > { %v25046_v14 = vpop.f32.mrf.mxu0  ;;  %18901 = vmatmul.mubr.bf16.gmra.mxu0 %v8526_v13  ;;  %v18274_v29 = vpop.f32.mrf.mxu1  ;;  %v20347_v13 = vld [vmem:[%s27494_s3 + $0x1f8] sm:$0xff]   ;;  %v27895_v10 = vld [vmem:[#allocation64_spill] sm:$0xff] }
 0x44c   : > { %18956 = vmatprep.mubr.msk.bf16.mxu0 %vm21083_vm1, %v27615_v15  ;;  %v27896_v33 = vcombine.low %v27894_v63, %v27895_v10  ;;  %v27900_v10 = vld [vmem:[#allocation71_spill] sm:$0xff] }
 0x44d   : > { %v18598_v23 = vpop.f32.mrf.mxu0  ;;  %v5455_v49 = vpop.f32.mrf.mxu1 }
 0x44e   : > { %v25054_v16 = vadd.f32 %v5455_v49, %v5308_v37  ;;  %v20352_v37 = vld [vmem:[%s27494_s3 + $0x430] sm:$0xff]  }
 0x44f   : > { %v25056_v19 = vpop.f32.mrf.mxu0  ;;  %v18275_v17 = vpop.f32.mrf.mxu1 }
 0x450   : > { %27891 = vst [vmem:[#allocation16_spill] sm:$0xff] %v25056_v19 }
 0x451   : > { %v18599_v43 = vpop.f32.mrf.mxu0  ;;  %v5460_v40 = vpop.f32.mrf.mxu1  ;;  %18633 = vmatmul.mubr.bf16.vlgmr.msra.gmra.mxu1 %v27892_v22 }
 0x452   : > { %v25067_v8 = vadd.f32 %v5460_v40, %v5309_v57  ;;  %18689 = vmatpush3.bf16.msra.mxu1 %v20347_v13  ;;  %18636 = vmatprep.mubr.msk.bf16.mxu1 %vm21083_vm1, %v27615_v15  ;;  %v20354_v43 = vld [vmem:[%s27494_s3 + $0x428] sm:$0xff]   ;;  %v27898_v40 = vld [vmem:[#allocation79_spill] sm:$0xff] }
 0x453   : > { %v25069_v39 = vpop.f32.mrf.mxu0  ;;  %18957 = vmatmul.mubr.bf16.vlgmr.msra.gmra.mxu0 %v27896_v33  ;;  %v18278_v2 = vpop.f32.mrf.mxu1  ;;  %18690 = vmatprep.subr.bf16.mxu1 %v27615_v15  ;;  %v27901_v33 = vld [vmem:[#allocation65_spill] sm:$0xff] }
 0x454   : > { %27893 = vst [vmem:[#allocation17_spill] sm:$0xff] %v25069_v39  ;;  %18960 = vmatprep.mubr.msk.bf16.mxu0 %vm21083_vm1, %v27615_v15  ;;  %19013 = vmatpush3.bf16.msra.mxu0 %v20350_v41  ;;  %v5312_v2 = vadd.f32 %v24374_v47, %v24972_v46  ;;  %v20358_v47 = vld [vmem:[%s27494_s3 + $0x1d8] sm:$0xff]   ;;  %v5313_v46 = vadd.f32 %v24389_v56, %v24988_v0 }
 0x455   : > { %v18602_v29 = vpop.f32.mrf.mxu0  ;;  %v5463_v23 = vpop.f32.mrf.mxu1  ;;  %19014 = vmatprep.subr.bf16.mxu0 %v27615_v15 }
 0x456   : > { %v25088_v49 = vadd.f32 %v5463_v23, %v5310_v12  ;;  %18691 = vmatpush3.bf16.msra.mxu1 %v20348_v6  ;;  %v27902_v6 = vcombine.low %v27900_v10, %v27901_v33  ;;  %v20356_v29 = vld [vmem:[%s27494_s3 + $0x420] sm:$0xff]   ;;  %v27906_v33 = vld [vmem:[#allocation73_spill] sm:$0xff] }
 0x457   : > { %v25090_v13 = vpop.f32.mrf.mxu0  ;;  %v18279_v17 = vpop.f32.mrf.mxu1  ;;  %18692 = vmatprep.subr.bf16.mxu1 %v27615_v15 }
 0x458   : > { %27897 = vst [vmem:[#allocation20_spill] sm:$0xff] %v25090_v13  ;;  %19015 = vmatpush3.bf16.msra.mxu0 %v20352_v37  ;;  %v27934_v13 = vld [vmem:[#allocation60_spill] sm:$0xff] }
 0x459   : > { %v18603_v57 = vpop.f32.mrf.mxu0  ;;  %v5468_v41 = vpop.f32.mrf.mxu1  ;;  %18637 = vmatmul.mubr.bf16.gmra.mxu1 %v27898_v40  ;;  %19016 = vmatprep.subr.bf16.mxu0 %v27615_v15 }
 0x45a   : > { %v25103_v22 = vadd.f32 %v5468_v41, %v5311_v25  ;;  %18640 = vmatprep.mubr.msk.bf16.mxu1 %vm21083_vm1, %v27615_v15  ;;  %18693 = vmatpush3.bf16.msra.mxu1 %v20351_v11  ;;  %v20360_v57 = vld [vmem:[%s27494_s3 + $0x418] sm:$0xff]   ;;  %v27904_v41 = vld [vmem:[#allocation81_spill] sm:$0xff] }
 0x45b   : > { %v25105_v63 = vpop.f32.mrf.mxu0  ;;  %18961 = vmatmul.mubr.bf16.gmra.mxu0 %v27902_v6  ;;  %v18282_v28 = vpop.f32.mrf.mxu1  ;;  %18694 = vmatprep.subr.bf16.mxu1 %v27615_v15  ;;  %v27907_v6 = vld [vmem:[#allocation69_spill] sm:$0xff] }
 0x45c   : > { %27899 = vst [vmem:[#allocation49_spill] sm:$0xff] %v25105_v63  ;;  %18964 = vmatprep.mubr.msk.bf16.mxu0 %vm21083_vm1, %v27615_v15  ;;  %19017 = vmatpush3.bf16.msra.mxu0 %v20354_v43  ;;  %v27908_v56 = vcombine.low %v27906_v33, %v27907_v6  ;;  %v20361_v28 = vld [vmem:[%s27494_s3 + $0x1d0] sm:$0xff]  }
 0x45d   : > { %v18606_v12 = vpop.f32.mrf.mxu0  ;;  %v5471_v37 = vpop.f32.mrf.mxu1  ;;  %19018 = vmatprep.subr.bf16.mxu0 %v27615_v15  ;;  %v27912_v6 = vld [vmem:[#allocation78_spill] sm:$0xff] }
 0x45e   : > { %v25124_v23 = vadd.f32 %v5471_v37, %v5312_v2  ;;  %18695 = vmatpush3.bf16.msra.mxu1 %v20355_v54  ;;  %v5314_v54 = vadd.f32 %v24408_v59, %v25007_v53  ;;  %v20362_v12 = vld [vmem:[%s27494_s3 + $0x410] sm:$0xff]   ;;  %v20363_v59 = vld [vmem:[%s27494_s3 + $0x1c8] sm:$0xff]   ;;  %v5315_v53 = vadd.f32 %v24423_v60, %v25023_v32 }
 0x45f   : > { %v25126_v17 = vpop.f32.mrf.mxu0  ;;  %v18283_v11 = vpop.f32.mrf.mxu1  ;;  %18696 = vmatprep.subr.bf16.mxu1 %v27615_v15 }
 0x460   : > { %27903 = vst [vmem:[#allocation31_spill] sm:$0xff] %v25126_v17  ;;  %19019 = vmatpush3.bf16.msra.mxu0 %v20356_v29 }
 0x461   : > { %v18607_v25 = vpop.f32.mrf.mxu0  ;;  %v5476_v43 = vpop.f32.mrf.mxu1  ;;  %18641 = vmatmul.mubr.bf16.gmra.mxu1 %v27904_v41  ;;  %19020 = vmatprep.subr.bf16.mxu0 %v27615_v15 }
 0x462   : > { %v25139_v40 = vadd.f32 %v5476_v43, %v5313_v46  ;;  %18644 = vmatprep.mubr.msk.bf16.mxu1 %vm21083_vm1, %v27615_v15  ;;  %18697 = vmatpush3.bf16.msra.mxu1 %v20358_v47  ;;  %v20366_v25 = vld [vmem:[%s27494_s3 + $0x408] sm:$0xff]   ;;  %v27910_v43 = vld [vmem:[#allocation83_spill] sm:$0xff] }
 0x463   : > { %v25141_v10 = vpop.f32.mrf.mxu0  ;;  %18965 = vmatmul.mubr.bf16.gmra.mxu0 %v27908_v56  ;;  %v18286_v0 = vpop.f32.mrf.mxu1  ;;  %18698 = vmatprep.subr.bf16.mxu1 %v27615_v15  ;;  %v27913_v56 = vld [vmem:[#allocation72_spill] sm:$0xff] }
 0x464   : > { %27905 = vst [vmem:[#allocation51_spill] sm:$0xff] %v25141_v10  ;;  %18968 = vmatprep.mubr.msk.bf16.mxu0 %vm21083_vm1, %v27615_v15  ;;  %19021 = vmatpush3.bf16.msra.mxu0 %v20360_v57  ;;  %v27914_v60 = vcombine.low %v27912_v6, %v27913_v56  ;;  %v20367_v0 = vld [vmem:[%s27494_s3 + $0x1c0] sm:$0xff]   ;;  %v21012_v6 = vld [vmem:[#allocation2 + $0x54] sm:$0xf] }
 0x465   : > { %v18610_v2 = vpop.f32.mrf.mxu0  ;;  %v5479_v29 = vpop.f32.mrf.mxu1  ;;  %19022 = vmatprep.subr.bf16.mxu0 %v27615_v15  ;;  %v15384_v56 = vcombine.low %v21012_v6, %v21012_v6 }
 0x466   : > { %v25160_v37 = vadd.f32 %v5479_v29, %v5314_v54  ;;  %18699 = vmatpush3.bf16.msra.mxu1 %v20361_v28  ;;  %v20368_v54 = vld [vmem:[%s27494_s3 + $0x400] sm:$0xff]  }
 0x467   : > { %v25162_v11 = vpop.f32.mrf.mxu0  ;;  %v18287_v47 = vpop.f32.mrf.mxu1  ;;  %18700 = vmatprep.subr.bf16.mxu1 %v27615_v15 }
 0x468   : > { %27909 = vst [vmem:[#allocation32_spill] sm:$0xff] %v25162_v11  ;;  %19023 = vmatpush3.bf16.msra.mxu0 %v20362_v12  ;;  %v25194_v12 = vld [vmem:[#allocation2 + $0x40] sm:$0xff]  }
 0x469   : > { %v18611_v46 = vpop.f32.mrf.mxu0  ;;  %v5484_v57 = vpop.f32.mrf.mxu1  ;;  %18645 = vmatmul.mubr.bf16.gmra.mxu1 %v27910_v43  ;;  %19024 = vmatprep.subr.bf16.mxu0 %v27615_v15  ;;  %v27601_v29 = vshrl.u32 %v25194_v12, 16  ;;  %v27600_v47 = vshll.u32 %v25194_v12, 16 }
 0x46a   : > { %v25175_v41 = vadd.f32 %v5484_v57, %v5315_v53  ;;  %18648 = vmatprep.mubr.msk.bf16.mxu1 %vm21083_vm1, %v27615_v15  ;;  %18701 = vmatpush3.bf16.msra.mxu1 %v20363_v59  ;;  %v27915_v46 = vld [vmem:[#allocation100_spill] sm:$0xff] }
 0x46b   : > { %v25177_v33 = vpop.f32.mrf.mxu0  ;;  %18969 = vmatmul.mubr.bf16.gmra.mxu0 %v27914_v60  ;;  %v18290_v32 = vpop.f32.mrf.mxu1  ;;  %18702 = vmatprep.subr.bf16.mxu1 %v27615_v15  ;;  %v9218_v57 = vshll.u32 %v27915_v46, 16 }
 0x46c   : > { %27911 = vst [vmem:[#allocation54_spill] sm:$0xff] %v25177_v33  ;;  %18972 = vmatprep.mubr.msk.bf16.mxu0 %vm21083_vm1, %v27615_v15  ;;  %19025 = vmatpush3.bf16.msra.mxu0 %v20366_v25  ;;  %v9215_v25 = vshrl.u32 %v27915_v46, 16  ;;  %v27916_v32 = vld [vmem:[#allocation82_spill] sm:$0xff] }
 0x46d   : > { %v18614_v28 = vpop.f32.mrf.mxu0  ;;  %v5487_v2 = vpop.f32.mrf.mxu1  ;;  %19026 = vmatprep.subr.bf16.mxu0 %v27615_v15 }
 0x46e   : > { %18703 = vmatpush3.bf16.msra.mxu1 %v20367_v0  ;;  %v9225_v28 = vrot.slane %v27601_v29, 1  ;;  %v9228_v0 = vrot.slane %v27600_v47, 2 }
 0x46f   : > { %v7161_v59 = vpop.f32.mrf.mxu0  ;;  %v18291_v53 = vpop.f32.mrf.mxu1  ;;  %18760 = vmatprep.subr.bf16.mxu1 %v27615_v15 }
 0x470   : > { %19027 = vmatpush3.bf16.msra.mxu0 %v20368_v54  ;;  %v9217_v59 = vrot.slane %v9215_v25, 1  ;;  %v9220_v53 = vrot.slane %v9218_v57, 2  ;;  %v9229_v6 = vor.u32 %v9228_v0, %v9225_v28  ;;  %v20376_v57 = vld [vmem:[%s27494_s3 + $0x4b8] sm:$0xff]   ;;  %v27919_v0 = vld [vmem:[#allocation56_spill] sm:$0xff] }
 0x471   : > { %v18615_v43 = vpop.f32.mrf.mxu0  ;;  %v25201_v60 = vpop.f32.mrf.mxu1  ;;  %18649 = vmatmul.mubr.bf16.gmra.mxu1 %v27916_v32  ;;  %19084 = vmatprep.subr.bf16.mxu0 %v27615_v15  ;;  %v25217_v32 = vld [vmem:[#allocation2 + $0x48] sm:$0xff]  }
 0x472   : > { %18704 = vmatprep.mubr.msk.bf16.mxu1 %vm21083_vm1, %v27615_v15  ;;  %v9221_v33 = vor.u32 %v9220_v53, %v9217_v59  ;;  %v27923_v10 = vshll.u32 %v25217_v32, 16  ;;  %v20374_v53 = vld [vmem:[%s27494_s3 + $0x270] sm:$0xff]  }
 0x473   : > { %v25209_v2 = vpop.f32.mrf.mxu0  ;;  %18973 = vmatmul.mubr.bf16.gmra.mxu0 %v15384_v56  ;;  %v18346_v54 = vpop.f32.mrf.mxu1 }
 0x474   : > { %27917 = vst [vmem:[#allocation33_spill] sm:$0xff] %v25209_v2  ;;  %19028 = vmatprep.mubr.msk.bf16.mxu0 %vm21083_vm1, %v27615_v15  ;;  %v20372_v54 = vld [vmem:[%s27494_s3 + $0x278] sm:$0xff]   ;;  %v9230_v29 = vsel %vm2241_vm5, %v9221_v33, %v9229_v6 }
 0x475   : > { %v18670_v46 = vpop.f32.mrf.mxu0  ;;  %v25215_v43 = vpop.f32.mrf.mxu1 }
 0x476   : > { %v27920_v46 = vld [vmem:[#allocation57_spill] sm:$0xff] }
 0x477   : > { %v25221_v56 = vpop.f32.mrf.mxu0  ;;  %v18347_v2 = vpop.f32.mrf.mxu1  ;;  %v27921_v47 = vcombine.low %v27919_v0, %v27920_v46  ;;  %v27927_v0 = vld [vmem:[#allocation59_spill] sm:$0xff] }
 0x478   : > { %27918 = vst [vmem:[#allocation35_spill] sm:$0xff] %v25221_v56  ;;  %v27922_v56 = vshrl.u32 %v25217_v32, 16  ;;  %v9237_v2 = vrot.slane %v27923_v10, 2  ;;  %v20378_v10 = vld [vmem:[%s27494_s3 + $0x4b0] sm:$0xff]  }
 0x479   : > { %v18671_v25 = vpop.f32.mrf.mxu0  ;;  %v25229_v28 = vpop.f32.mrf.mxu1  ;;  %18705 = vmatmul.mubr.bf16.vlgmr.msra.gmra.mxu1 %v27921_v47 }
 0x47a   : > { %v9234_v11 = vrot.slane %v27922_v56, 1  ;;  %18761 = vmatpush3.bf16.msra.mxu1 %v20372_v54  ;;  %18708 = vmatprep.mubr.msk.bf16.mxu1 %vm21083_vm1, %v27615_v15  ;;  %v25255_v56 = vld [vmem:[#allocation2 + $0x50] sm:$0xff]  }
 0x47b   : > { %v25239_v59 = vpop.f32.mrf.mxu0  ;;  %19029 = vmatmul.mubr.bf16.vlgmr.msra.gmra.mxu0 %v9230_v29  ;;  %v18350_v25 = vpop.f32.mrf.mxu1  ;;  %18762 = vmatprep.subr.bf16.mxu1 %v27615_v15  ;;  %v27926_v54 = vld [vmem:[#allocation58_spill] sm:$0xff]  ;;  %v27930_v17 = vshll.u32 %v25255_v56, 16 }
 0x47c   : > { %27924 = vst [vmem:[#allocation34_spill] sm:$0xff] %v25239_v59  ;;  %19032 = vmatprep.mubr.msk.bf16.mxu0 %vm21083_vm1, %v27615_v15  ;;  %19085 = vmatpush3.bf16.msra.mxu0 %v20376_v57  ;;  %v9238_v47 = vor.u32 %v9237_v2, %v9234_v11  ;;  %v20377_v57 = vld [vmem:[%s27494_s3 + $0x268] sm:$0xff]   ;;  %v27928_v59 = vcombine.low %v27926_v54, %v27927_v0 }
 0x47d   : > { %v18674_v33 = vpop.f32.mrf.mxu0  ;;  %v25252_v29 = vpop.f32.mrf.mxu1  ;;  %19086 = vmatprep.subr.bf16.mxu0 %v27615_v15  ;;  %v20381_v11 = vld [vmem:[%s27494_s3 + $0x4a8] sm:$0xff]   ;;  %v9246_v63 = vrot.slane %v27930_v17, 2  ;;  %v20383_v17 = vld [vmem:[%s27494_s3 + $0x4a0] sm:$0xff]  }
 0x47e   : > { %18763 = vmatpush3.bf16.msra.mxu1 %v20374_v53  ;;  %v9239_v53 = vsel %vm2241_vm5, %v9229_v6, %v9238_v47  ;;  %v20382_v6 = vld [vmem:[%s27494_s3 + $0x260] sm:$0xff]  }
 0x47f   : > { %v25259_v46 = vpop.f32.mrf.mxu0  ;;  %v18351_v25 = vpop.f32.mrf.mxu1  ;;  %18764 = vmatprep.subr.bf16.mxu1 %v27615_v15 }
 0x480   : > { %27925 = vst [vmem:[#allocation52_spill] sm:$0xff] %v25259_v46  ;;  %19087 = vmatpush3.bf16.msra.mxu0 %v20378_v10  ;;  %v27929_v25 = vshrl.u32 %v25255_v56, 16 }
 0x481   : > { %v18675_v33 = vpop.f32.mrf.mxu0  ;;  %v25268_v2 = vpop.f32.mrf.mxu1  ;;  %18709 = vmatmul.mubr.bf16.gmra.mxu1 %v27928_v59  ;;  %19088 = vmatprep.subr.bf16.mxu0 %v27615_v15 }
 0x482   : > { %v9243_v46 = vrot.slane %v27929_v25, 1  ;;  %18712 = vmatprep.mubr.msk.bf16.mxu1 %vm21083_vm1, %v27615_v15  ;;  %18765 = vmatpush3.bf16.msra.mxu1 %v20377_v57  ;;  %v27932_v57 = vld [vmem:[#allocation105_spill] sm:$0xff] }
 0x483   : > { %v25279_v10 = vpop.f32.mrf.mxu0  ;;  %19033 = vmatmul.mubr.bf16.gmra.mxu0 %v9239_v53  ;;  %v18354_v33 = vpop.f32.mrf.mxu1  ;;  %18766 = vmatprep.subr.bf16.mxu1 %v27615_v15  ;;  %v9250_v53 = vshrl.u32 %v27932_v57, 16  ;;  %v9253_v25 = vshll.u32 %v27932_v57, 16  ;;  %v27935_v57 = vld [vmem:[#allocation62_spill] sm:$0xff] }
 0x484   : > { %27931 = vst [vmem:[#allocation36_spill] sm:$0xff] %v25279_v10  ;;  %19036 = vmatprep.mubr.msk.bf16.mxu0 %vm21083_vm1, %v27615_v15  ;;  %19089 = vmatpush3.bf16.msra.mxu0 %v20381_v11  ;;  %v9247_v0 = vor.u32 %v9246_v63, %v9243_v46  ;;  %v20385_v11 = vld [vmem:[%s27494_s3 + $0x258] sm:$0xff]   ;;  %v27936_v39 = vcombine.low %v27934_v13, %v27935_v57 }
 0x485   : > { %v18678_v59 = vpop.f32.mrf.mxu0  ;;  %v25292_v54 = vpop.f32.mrf.mxu1  ;;  %19090 = vmatprep.subr.bf16.mxu0 %v27615_v15  ;;  %v20387_v63 = vld [vmem:[%s27494_s3 + $0x498] sm:$0xff]  }
 0x486   : > { %18767 = vmatpush3.bf16.msra.mxu1 %v20382_v6  ;;  %v9252_v6 = vrot.slane %v9250_v53, 1 }
 0x487   : > { %v25297_v33 = vpop.f32.mrf.mxu0  ;;  %v18355_v10 = vpop.f32.mrf.mxu1  ;;  %18768 = vmatprep.subr.bf16.mxu1 %v27615_v15 }
 0x488   : > { %27933 = vst [vmem:[#allocation38_spill] sm:$0xff] %v25297_v33  ;;  %19091 = vmatpush3.bf16.msra.mxu0 %v20383_v17  ;;  %v9248_v10 = vsel %vm2241_vm5, %v9238_v47, %v9247_v0  ;;  %v9255_v33 = vrot.slane %v9253_v25, 2  ;;  %v20389_v47 = vld [vmem:[%s27494_s3 + $0x490] sm:$0xff]  }
 0x489   : > { %v18679_v59 = vpop.f32.mrf.mxu0  ;;  %v25306_v46 = vpop.f32.mrf.mxu1  ;;  %18713 = vmatmul.mubr.bf16.gmra.mxu1 %v27936_v39  ;;  %19092 = vmatprep.subr.bf16.mxu0 %v27615_v15  ;;  %v20388_v39 = vld [vmem:[%s27494_s3 + $0x250] sm:$0xff]  }
 0x48a   : > { %18716 = vmatprep.mubr.msk.bf16.mxu1 %vm21083_vm1, %v27615_v15  ;;  %18769 = vmatpush3.bf16.msra.mxu1 %v20385_v11  ;;  %v9256_v53 = vor.u32 %v9255_v33, %v9252_v6  ;;  %v27939_v33 = vld [vmem:[#allocation63_spill] sm:$0xff] }
 0x48b   : > { %v25313_v59 = vpop.f32.mrf.mxu0  ;;  %19037 = vmatmul.mubr.bf16.gmra.mxu0 %v9248_v10  ;;  %v18358_v17 = vpop.f32.mrf.mxu1  ;;  %18770 = vmatprep.subr.bf16.mxu1 %v27615_v15  ;;  %v20391_v10 = vld [vmem:[%s27494_s3 + $0x248] sm:$0xff]   ;;  %v27940_v6 = vld [vmem:[#allocation67_spill] sm:$0xff] }
 0x48c   : > { %27937 = vst [vmem:[#allocation39_spill] sm:$0xff] %v25313_v59  ;;  %19040 = vmatprep.mubr.msk.bf16.mxu0 %vm21083_vm1, %v27615_v15  ;;  %19093 = vmatpush3.bf16.msra.mxu0 %v20387_v63  ;;  %v20392_v17 = vld [vmem:[%s27494_s3 + $0x488] sm:$0xff]   ;;  %v27941_v59 = vcombine.low %v27939_v33, %v27940_v6 }
 0x48d   : > { %v18682_v13 = vpop.f32.mrf.mxu0  ;;  %v25326_v57 = vpop.f32.mrf.mxu1  ;;  %19094 = vmatprep.subr.bf16.mxu0 %v27615_v15 }
 0x48e   : > { %18771 = vmatpush3.bf16.msra.mxu1 %v20388_v39  ;;  %v9257_v39 = vsel %vm2241_vm5, %v9247_v0, %v9256_v53  ;;  %v20393_v0 = vld [vmem:[%s27494_s3 + $0x240] sm:$0xff]  }
 0x48f   : > { %v25329_v25 = vpop.f32.mrf.mxu0  ;;  %v18359_v11 = vpop.f32.mrf.mxu1  ;;  %18772 = vmatprep.subr.bf16.mxu1 %v27615_v15 }
 0x490   : > { %27938 = vst [vmem:[#allocation41_spill] sm:$0xff] %v25329_v25  ;;  %19095 = vmatpush3.bf16.msra.mxu0 %v20389_v47  ;;  %v5715_v11 = vadd.f32 %v24447_v36, %v25044_v48  ;;  %v20394_v36 = vld [vmem:[%s27494_s3 + $0x480] sm:$0xff]  }
 0x491   : > { %v18683_v63 = vpop.f32.mrf.mxu0  ;;  %v25338_v13 = vpop.f32.mrf.mxu1  ;;  %18717 = vmatmul.mubr.bf16.gmra.mxu1 %v27941_v59  ;;  %19096 = vmatprep.subr.bf16.mxu0 %v27615_v15 }
 0x492   : > { %18720 = vmatprep.mubr.msk.bf16.mxu1 %vm21083_vm1, %v27615_v15  ;;  %18773 = vmatpush3.bf16.msra.mxu1 %v20391_v10  ;;  %v5879_v59 = vadd.f32 %v25201_v60, %v5715_v11  ;;  %v5716_v10 = vadd.f32 %v24459_v21, %v25054_v16  ;;  %v27943_v60 = vld [vmem:[#allocation102_spill] sm:$0xff]  ;;  %v27944_v21 = vshrl.u32 %v25194_v12, 16 }
 0x493   : > { %v25347_v47 = vpop.f32.mrf.mxu0  ;;  %19041 = vmatmul.mubr.bf16.gmra.mxu0 %v9257_v39  ;;  %v18362_v63 = vpop.f32.mrf.mxu1  ;;  %18774 = vmatprep.subr.bf16.mxu1 %v27615_v15  ;;  %v9576_v11 = vshrl.u32 %v27943_v60, 16 }
 0x494   : > { %27942 = vst [vmem:[#allocation40_spill] sm:$0xff] %v25347_v47  ;;  %19044 = vmatprep.mubr.msk.bf16.mxu0 %vm21083_vm1, %v27615_v15  ;;  %19097 = vmatpush3.bf16.msra.mxu0 %v20392_v17  ;;  %v21015_v63 = vld [vmem:[#allocation2 + $0x4c] sm:$0xf]  ;;  %v9579_v17 = vshll.u32 %v27943_v60, 16  ;;  %v6063_v25 = vadd.f32 %v24599_v42, %v5879_v59  ;;  %v9583_v16 = vrot.slane %v27944_v21, 2 }
 0x495   : > { %v18686_v33 = vpop.f32.mrf.mxu0  ;;  %v5876_v48 = vpop.f32.mrf.mxu1  ;;  %19098 = vmatprep.subr.bf16.mxu0 %v27615_v15  ;;  %v15197_v47 = vcombine.low %v21015_v63, %v21015_v63  ;;  %v25379_v42 = vld [vmem:[%s27495_s4] ss:$0 sm:$0xff] }
 0x496   : > { %18775 = vmatpush3.bf16.msra.mxu1 %v20393_v0  ;;  %v5880_v33 = vadd.f32 %v25215_v43, %v5716_v10  ;;  %v9581_v59 = vrot.slane %v9579_v17, 3 }
 0x497   : > { %v7553_v6 = vpop.f32.mrf.mxu0  ;;  %v18363_v39 = vpop.f32.mrf.mxu1  ;;  %18832 = vmatprep.subr.bf16.mxu1 %v27615_v15 }
 0x498   : > { %19099 = vmatpush3.bf16.msra.mxu0 %v20394_v36  ;;  %v27945_v6 = vshll.u32 %v25194_v12, 16  ;;  %v5717_v39 = vadd.f32 %v24473_v26, %v25067_v8  ;;  %v9578_v12 = vrot.slane %v9576_v11, 2  ;;  %v6064_v8 = vadd.f32 %v24609_v3, %v5880_v33  ;;  %v20397_v11 = vld [vmem:[%s27494_s3 + $0x2f8] sm:$0xff]  }
 0x499   : > { %v18687_v19 = vpop.f32.mrf.mxu0  ;;  %v6189_v48 = vpop.f32.mrf.mxu1  ;;  %18721 = vmatmul.mubr.bf16.gmra.mxu1 %v15197_v47  ;;  %19156 = vmatprep.subr.bf16.mxu0 %v27615_v15 }
 0x49a   : > { %v9584_v0 = vrot.slane %v27945_v6, 3  ;;  %v6227_v43 = vadd.f32 %v6189_v48, %v6063_v25  ;;  %18776 = vmatprep.mubr.msk.bf16.mxu1 %vm21083_vm1, %v27615_v15  ;;  %v5881_v26 = vadd.f32 %v25229_v28, %v5717_v39  ;;  %v9582_v21 = vor.u32 %v9581_v59, %v9578_v12 }
 0x49b   : > { %v25381_v19 = vpop.f32.mrf.mxu0  ;;  %19045 = vmatmul.mubr.bf16.gmra.mxu0 %v9256_v53  ;;  %v18418_v47 = vpop.f32.mrf.mxu1  ;;  %v5718_v53 = vadd.f32 %v24493_v1, %v25088_v49  ;;  %v20399_v1 = vld [vmem:[%s27494_s3 + $0x538] sm:$0xff]   ;;  %v27947_v39 = vshrl.u32 %v25217_v32, 16 }
 0x49c   : > { %19100 = vmatprep.mubr.msk.bf16.mxu0 %vm21083_vm1, %v27615_v15  ;;  %v6243_v36 = vadd.f32 %v25379_v42, %v6227_v43  ;;  %v9585_v63 = vor.u32 %v9584_v0, %v9583_v16  ;;  %v6065_v33 = vadd.f32 %v24623_v38, %v5881_v26  ;;  %v27946_v16 = vld [vmem:[#allocation85_spill] sm:$0xff]  ;;  %v5719_v38 = vadd.f32 %v24509_v7, %v25103_v22 }
 0x49d   : > { %v18742_v25 = vpop.f32.mrf.mxu0  ;;  %v6192_v10 = vpop.f32.mrf.mxu1  ;;  %v5882_v28 = vadd.f32 %v25252_v29, %v5718_v53  ;;  %v9587_v43 = vrot.slane %v27947_v39, 2  ;;  %v27948_v29 = vshll.u32 %v25217_v32, 16  ;;  %v20398_v26 = vld [vmem:[%s27494_s3 + $0x2f0] sm:$0xff]  }
 0x49e   : > { %v6228_v60 = vadd.f32 %v6192_v10, %v6064_v8  ;;  %20945 = vtanh.f32 %v6243_v36  ;;  %v9586_v0 = vsel %vm3727_vm8, %v9582_v21, %v9585_v63  ;;  %v5883_v32 = vadd.f32 %v25268_v2, %v5719_v38  ;;  %v20401_v25 = vld [vmem:[%s27494_s3 + $0x530] sm:$0xff]   ;;  %v20404_v38 = vld [vmem:[%s27494_s3 + $0x520] sm:$0xff]  }
 0x49f   : > { %v25392_v48 = vpop.f32.mrf.mxu0  ;;  %v18419_v17 = vpop.f32.mrf.mxu1  ;;  %v9588_v47 = vrot.slane %v27948_v29, 3  ;;  %v6066_v7 = vadd.f32 %v24641_v9, %v5882_v28  ;;  %v5720_v2 = vadd.f32 %v24527_v50, %v25124_v23  ;;  %v27949_v50 = vshrl.u32 %v25255_v56, 16 }
 0x4a0   : > { %v6244_v3 = vadd.f32 %v25379_v42, %v6228_v60  ;;  %v20400_v17 = vld [vmem:[%s27494_s3 + $0x2e8] sm:$0xff]  }
 0x4a1   : > { %v18743_v6 = vpop.f32.mrf.mxu0  ;;  %v6197_v49 = vpop.f32.mrf.mxu1  ;;  %18777 = vmatmul.mubr.bf16.vlgmr.msra.gmra.mxu1 %v27946_v16  ;;  %v25427_v53 = vor.u32 %v9588_v47, %v9587_v43  ;;  %v5884_v21 = vadd.f32 %v25292_v54, %v5720_v2  ;;  %v9591_v23 = vrot.slane %v27949_v50, 2  ;;  %v27950_v16 = vld [vmem:[#allocation88_spill] sm:$0xff] }
 0x4a2   : > { %20947 = vtanh.f32 %v6244_v3  ;;  %v6229_v12 = vadd.f32 %v6197_v49, %v6065_v33  ;;  %18833 = vmatpush3.bf16.msra.mxu1 %v20397_v11  ;;  %18780 = vmatprep.mubr.msk.bf16.mxu1 %vm21083_vm1, %v27615_v15  ;;  %v6067_v3 = vadd.f32 %v24657_v24, %v5883_v32  ;;  %v20402_v6 = vld [vmem:[%s27494_s3 + $0x528] sm:$0xff]   ;;  %v27951_v24 = vshll.u32 %v25255_v56, 16  ;;  %v20403_v56 = vld [vmem:[%s27494_s3 + $0x2e0] sm:$0xff]  }
 0x4a3   : > { %v25411_v59 = vpop.f32.mrf.mxu0  ;;  %19101 = vmatmul.mubr.bf16.vlgmr.msra.gmra.mxu0 %v9586_v0  ;;  %v18422_v8 = vpop.f32.mrf.mxu1  ;;  %18834 = vmatprep.subr.bf16.mxu1 %v27615_v15  ;;  %v9590_v54 = vsel %vm3727_vm8, %v9585_v63, %v25427_v53  ;;  %v27952_v63 = vld [vmem:[#allocation26_spill] sm:$0xff] }
 0x4a4   : > { %19104 = vmatprep.mubr.msk.bf16.mxu0 %vm21083_vm1, %v27615_v15  ;;  %19157 = vmatpush3.bf16.msra.mxu0 %v20399_v1  ;;  %v6245_v36 = vadd.f32 %v25379_v42, %v6229_v12  ;;  %v5721_v1 = vadd.f32 %v24543_v20, %v25139_v40  ;;  %v9592_v0 = vrot.slane %v27951_v24, 3  ;;  %v6068_v29 = vadd.f32 %v27952_v63, %v5884_v21  ;;  %v27953_v8 = vld [vmem:[#allocation110_spill] sm:$0xff] }
 0x4a5   : > { %v18746_v22 = vpop.f32.mrf.mxu0  ;;  %v6200_v10 = vpop.f32.mrf.mxu1  ;;  %19158 = vmatprep.subr.bf16.mxu0 %v27615_v15  ;;  %v9596_v32 = vshrl.u32 %v27953_v8, 16  ;;  %v20409_v63 = vld [vmem:[%s27494_s3 + $0x510] sm:$0xff]  }
 0x4a6   : > { %v6230_v9 = vadd.f32 %v6200_v10, %v6066_v7  ;;  %18835 = vmatpush3.bf16.msra.mxu1 %v20398_v26  ;;  %20949 = vtanh.f32 %v6245_v36  ;;  %v5885_v20 = vadd.f32 %v25306_v46, %v5721_v1  ;;  %v25470_v26 = vor.u32 %v9592_v0, %v9591_v23  ;;  %v27956_v1 = vld [vmem:[#allocation90_spill] sm:$0xff] }
 0x4a7   : > { %v25432_v60 = vpop.f32.mrf.mxu0  ;;  %v18423_v11 = vpop.f32.mrf.mxu1  ;;  %18836 = vmatprep.subr.bf16.mxu1 %v27615_v15  ;;  %v9599_v7 = vshll.u32 %v27953_v8, 16 }
 0x4a8   : > { %v6246_v28 = vadd.f32 %v25379_v42, %v6230_v9  ;;  %19159 = vmatpush3.bf16.msra.mxu0 %v20401_v25  ;;  %v27954_v25 = vld [vmem:[#allocation30_spill] sm:$0xff] }
 0x4a9   : > { %v18747_v33 = vpop.f32.mrf.mxu0  ;;  %v6205_v49 = vpop.f32.mrf.mxu1  ;;  %18781 = vmatmul.mubr.bf16.gmra.mxu1 %v27950_v16  ;;  %19160 = vmatprep.subr.bf16.mxu0 %v27615_v15  ;;  %v5722_v36 = vadd.f32 %v27954_v25, %v25160_v37  ;;  %v20407_v37 = vld [vmem:[%s27494_s3 + $0x518] sm:$0xff]   ;;  %v9601_v16 = vrot.slane %v9599_v7, 3  ;;  %v20410_v7 = vld [vmem:[%s27494_s3 + $0x2c8] sm:$0xff]  }
 0x4aa   : > { %20951 = vtanh.f32 %v6246_v28  ;;  %v6231_v39 = vadd.f32 %v6205_v49, %v6067_v3  ;;  %18784 = vmatprep.mubr.msk.bf16.mxu1 %vm21083_vm1, %v27615_v15  ;;  %18837 = vmatpush3.bf16.msra.mxu1 %v20400_v17  ;;  %v27955_v17 = vld [vmem:[#allocation13_spill] sm:$0xff]  ;;  %v20405_v28 = vld [vmem:[%s27494_s3 + $0x2d8] sm:$0xff]   ;;  %v9594_v49 = vsel %vm3727_vm8, %v25427_v53, %v25470_v26 }
 0x4ab   : > { %v25454_v43 = vpop.f32.mrf.mxu0  ;;  %19105 = vmatmul.mubr.bf16.gmra.mxu0 %v9590_v54  ;;  %v18426_v40 = vpop.f32.mrf.mxu1  ;;  %18838 = vmatprep.subr.bf16.mxu1 %v27615_v15  ;;  %v6069_v21 = vadd.f32 %v27955_v17, %v5885_v20  ;;  %v5886_v3 = vadd.f32 %v25326_v57, %v5722_v36  ;;  %v9598_v57 = vrot.slane %v9596_v32, 2  ;;  %v27957_v54 = vld [vmem:[#allocation37_spill] sm:$0xff] }
 0x4ac   : > { %19108 = vmatprep.mubr.msk.bf16.mxu0 %vm21083_vm1, %v27615_v15  ;;  %19161 = vmatpush3.bf16.msra.mxu0 %v20402_v6  ;;  %v6247_v46 = vadd.f32 %v25379_v42, %v6231_v39  ;;  %v20946_v22 = vpop.eup %20945  ;;  %v5723_v24 = vadd.f32 %v27957_v54, %v25175_v41  ;;  %v20408_v53 = vld [vmem:[%s27494_s3 + $0x2d0] sm:$0xff]  }
 0x4ad   : > { %v18750_v47 = vpop.f32.mrf.mxu0  ;;  %v6208_v12 = vpop.f32.mrf.mxu1  ;;  %19162 = vmatprep.subr.bf16.mxu0 %v27615_v15  ;;  %v6070_v40 = vadd.f32 %v24709_v34, %v5886_v3  ;;  %v27958_v17 = vld [vmem:[#allocation93_spill] sm:$0xff] }
 0x4ae   : > { %v6232_v10 = vadd.f32 %v6208_v12, %v6068_v29  ;;  %18839 = vmatpush3.bf16.msra.mxu1 %v20403_v56  ;;  %20953 = vtanh.f32 %v6247_v46  ;;  %v5887_v41 = vadd.f32 %v25338_v13, %v5723_v24  ;;  %v27959_v24 = vld [vmem:[#allocation84_spill] sm:$0xff] }
 0x4af   : > { %v25477_v2 = vpop.f32.mrf.mxu0  ;;  %v20948_v9 = vpop.eup %20947  ;;  %18840 = vmatprep.subr.bf16.mxu1 %v27615_v15 }
 0x4b0   : > { %v18427_v11 = vpop.f32.mrf.mxu1  ;;  %v16421_v33 = vpack.c.bf16 %v20948_v9, %v20946_v22  ;;  %v6248_v50 = vadd.f32 %v25379_v42, %v6232_v10  ;;  %19163 = vmatpush3.bf16.msra.mxu0 %v20404_v38  ;;  %v9602_v38 = vor.u32 %v9601_v16, %v9598_v57  ;;  %v6071_v36 = vadd.f32 %v24725_v31, %v5887_v41  ;;  %v20411_v9 = vld [vmem:[%s27494_s3 + $0x508] sm:$0xff]  }
 0x4b1   : > { %v18751_v23 = vpop.f32.mrf.mxu0  ;;  %18785 = vmatmul.mubr.bf16.gmra.mxu1 %v27956_v1  ;;  %19164 = vmatprep.subr.bf16.mxu0 %v27615_v15 }
 0x4b2   : > { %v6213_v6 = vpop.f32.mrf.mxu1  ;;  %16422 = vst [vmem:[#allocation3] sm:$0xff] %v16421_v33   ;;  %20955 = vtanh.f32 %v6248_v50  ;;  %18788 = vmatprep.mubr.msk.bf16.mxu1 %vm21083_vm1, %v27615_v15  ;;  %18841 = vmatpush3.bf16.msra.mxu1 %v20405_v28  ;;  %v20413_v23 = vld [vmem:[%s27494_s3 + $0x500] sm:$0xff]  }
 0x4b3   : > { %v6233_v0 = vadd.f32 %v6213_v6, %v6069_v21  ;;  %v25496_v39 = vpop.f32.mrf.mxu0  ;;  %19109 = vmatmul.mubr.bf16.gmra.mxu0 %v9594_v49  ;;  %18842 = vmatprep.subr.bf16.mxu1 %v27615_v15  ;;  %v20950_v46 = vpop.eup %20949  ;;  %v9603_v21 = vsel %vm3727_vm8, %v25470_v26, %v9602_v38  ;;  %v20412_v26 = vld [vmem:[%s27494_s3 + $0x2c0] sm:$0xff]  }
 0x4b4   : > { %v18430_v20 = vpop.f32.mrf.mxu1  ;;  %19112 = vmatprep.mubr.msk.bf16.mxu0 %vm21083_vm1, %v27615_v15  ;;  %19165 = vmatpush3.bf16.msra.mxu0 %v20407_v37 }
 0x4b5   : > { %v18754_v56 = vpop.f32.mrf.mxu0  ;;  %v6249_v29 = vadd.f32 %v25379_v42, %v6233_v0  ;;  %19166 = vmatprep.subr.bf16.mxu0 %v27615_v15  ;;  %v27960_v0 = vrot.slane %v27959_v24, 1  ;;  %v20424_v24 = vld [vmem:[%s27494_s3 + $0x5a0] sm:$0xff]  }
 0x4b6   : > { %v6216_v47 = vpop.f32.mrf.mxu1  ;;  %18843 = vmatpush3.bf16.msra.mxu1 %v20408_v53 }
 0x4b7   : > { %v6234_v12 = vadd.f32 %v6216_v47, %v6070_v40  ;;  %v25513_v32 = vpop.f32.mrf.mxu0  ;;  %v20952_v13 = vpop.eup %20951  ;;  %18844 = vmatprep.subr.bf16.mxu1 %v27615_v15  ;;  %20957 = vtanh.f32 %v6249_v29  ;;  %v20415_v29 = vld [vmem:[%s27494_s3 + $0x378] sm:$0xff]  }
 0x4b8   : > { %v18431_v34 = vpop.f32.mrf.mxu1  ;;  %v16426_v22 = vpack.c.bf16 %v20952_v13, %v20950_v46  ;;  %19167 = vmatpush3.bf16.msra.mxu0 %v20409_v63  ;;  %v20414_v13 = vld [vmem:[#allocation2 + $0x40] sm:$0xff]  }
 0x4b9   : > { %v6250_v25 = vadd.f32 %v25379_v42, %v6234_v12  ;;  %v18755_v10 = vpop.f32.mrf.mxu0  ;;  %18789 = vmatmul.mubr.bf16.gmra.mxu1 %v27958_v17  ;;  %19168 = vmatprep.subr.bf16.mxu0 %v27615_v15  ;;  %v20418_v34 = vld [vmem:[%s27494_s3 + $0x5b8] sm:$0xff]  }
 0x4ba   : > { %v6221_v11 = vpop.f32.mrf.mxu1  ;;  %16479 = vst [vmem:[#allocation3 + $0x8] sm:$0xff] %v16426_v22   ;;  %18792 = vmatprep.mubr.msk.bf16.mxu1 %vm21083_vm1, %v27615_v15  ;;  %18845 = vmatpush3.bf16.msra.mxu1 %v20410_v7  ;;  %v27961_v22 = vld [vmem:[#allocation95_spill] sm:$0xff] }
 0x4bb   : > { %20959 = vtanh.f32 %v6250_v25  ;;  %v6235_v31 = vadd.f32 %v6221_v11, %v6071_v36  ;;  %v25528_v28 = vpop.f32.mrf.mxu0  ;;  %19113 = vmatmul.mubr.bf16.gmra.mxu0 %v9603_v21  ;;  %18846 = vmatprep.subr.bf16.mxu1 %v27615_v15  ;;  %v20954_v6 = vpop.eup %20953  ;;  %v20416_v36 = vld [vmem:[%s27494_s3 + $0x370] sm:$0xff]  }
 0x4bc   : > { %v18434_v3 = vpop.f32.mrf.mxu1  ;;  %19116 = vmatprep.mubr.msk.bf16.mxu0 %vm21083_vm1, %v27615_v15  ;;  %19169 = vmatpush3.bf16.msra.mxu0 %v20411_v9  ;;  %v20420_v21 = vld [vmem:[%s27494_s3 + $0x5b0] sm:$0xff]  }
 0x4bd   : > { %v6251_v33 = vadd.f32 %v25379_v42, %v6235_v31  ;;  %v18758_v50 = vpop.f32.mrf.mxu0  ;;  %19170 = vmatprep.subr.bf16.mxu0 %v27615_v15 }
 0x4be   : > { %v6224_v37 = vpop.f32.mrf.mxu1  ;;  %18847 = vmatpush3.bf16.msra.mxu1 %v20412_v26 }
 0x4bf   : > { %20961 = vtanh.f32 %v6251_v33  ;;  %v7932_v1 = vpop.f32.mrf.mxu0  ;;  %v20956_v49 = vpop.eup %20955  ;;  %18904 = vmatprep.subr.bf16.mxu1 %v27615_v15  ;;  %v20419_v33 = vld [vmem:[%s27494_s3 + $0x368] sm:$0xff]  }
 0x4c0   : > { %v18435_v57 = vpop.f32.mrf.mxu1  ;;  %v16431_v16 = vpack.c.bf16 %v20956_v49, %v20954_v6  ;;  %19171 = vmatpush3.bf16.msra.mxu0 %v20413_v23  ;;  %v20417_v23 = vld [vmem:[#allocation2 + $0x48] sm:$0xff]  }
 0x4c1   : > { %v18759_v54 = vpop.f32.mrf.mxu0  ;;  %18793 = vmatmul.mubr.bf16.gmra.mxu1 %v27960_v0  ;;  %19228 = vmatprep.subr.bf16.mxu0 %v27615_v15  ;;  %v20422_v37 = vld [vmem:[%s27494_s3 + $0x5a8] sm:$0xff]  }
 0x4c2   : > { %v25544_v42 = vpop.f32.mrf.mxu1  ;;  %16480 = vst [vmem:[#allocation3 + $0x10] sm:$0xff] %v16431_v16   ;;  %18848 = vmatprep.mubr.msk.bf16.mxu1 %vm21083_vm1, %v27615_v15  ;;  %v27962_v1 = vld [vmem:[#allocation96_spill] sm:$0xff] }
 0x4c3   : > { %v25549_v20 = vpop.f32.mrf.mxu0  ;;  %19117 = vmatmul.mubr.bf16.gmra.mxu0 %v9602_v38  ;;  %v20423_v16 = vld [vmem:[%s27494_s3 + $0x360] sm:$0xff]  }
 0x4c4   : > { %v18490_v53 = vpop.f32.mrf.mxu1  ;;  %19172 = vmatprep.mubr.msk.bf16.mxu0 %vm21083_vm1, %v27615_v15  ;;  %v20958_v56 = vpop.eup %20957 }
 0x4c5   : > { %v18814_v41 = vpop.f32.mrf.mxu0 }
 0x4c6   : > { %v25555_v40 = vpop.f32.mrf.mxu1 }
 0x4c7   : > { %v25557_v63 = vpop.f32.mrf.mxu0 }
 0x4c8   : > { %v20960_v47 = vpop.eup %20959  ;;  %v18491_v46 = vpop.f32.mrf.mxu1 }
 0x4c9   : > { %v16436_v38 = vpack.c.bf16 %v20960_v47, %v20958_v56  ;;  %v18815_v12 = vpop.f32.mrf.mxu0  ;;  %18849 = vmatmul.mubr.bf16.vlgmr.msra.gmra.mxu1 %v27961_v22  ;;  %v20425_v56 = vld [vmem:[%s27494_s3 + $0x358] sm:$0xff]   ;;  %v20421_v47 = vld [vmem:[#allocation2 + $0x50] sm:$0xff]  }
 0x4ca   : > { %v25565_v7 = vpop.f32.mrf.mxu1  ;;  %18905 = vmatpush3.bf16.msra.mxu1 %v20415_v29  ;;  %18852 = vmatprep.mubr.msk.bf16.mxu1 %vm21083_vm1, %v27615_v15  ;;  %v20427_v46 = vld [vmem:[%s27494_s3 + $0x598] sm:$0xff]   ;;  %v20428_v22 = vld [vmem:[%s27494_s3 + $0x350] sm:$0xff]  }
 0x4cb   : > { %16481 = vst [vmem:[#allocation3 + $0x18] sm:$0xff] %v16436_v38   ;;  %v25568_v25 = vpop.f32.mrf.mxu0  ;;  %19173 = vmatmul.mubr.bf16.vlgmr.msra.gmra.mxu0 %v20414_v13  ;;  %18906 = vmatprep.subr.bf16.mxu1 %v27615_v15  ;;  %v27963_v12 = vld [vmem:[#allocation98_spill] sm:$0xff] }
 0x4cc   : > { %v20962_v10 = vpop.eup %20961  ;;  %v18494_v9 = vpop.f32.mrf.mxu1  ;;  %19176 = vmatprep.mubr.msk.bf16.mxu0 %vm21083_vm1, %v27615_v15  ;;  %19229 = vmatpush3.bf16.msra.mxu0 %v20418_v34 }
 0x4cd   : > { %v16344_v11 = vpack.c.bf16 %v20962_v10, %v20962_v10  ;;  %v18818_v17 = vpop.f32.mrf.mxu0  ;;  %19230 = vmatprep.subr.bf16.mxu0 %v27615_v15  ;;  %v20429_v10 = vld [vmem:[%s27494_s3 + $0x590] sm:$0xff]  }
 0x4ce   : > { %v25581_v31 = vpop.f32.mrf.mxu1  ;;  %18907 = vmatpush3.bf16.msra.mxu1 %v20416_v36 }
 0x4cf   : > { %6306 = vst [vmem:[#allocation3 + $0x20] sm:$0xf] %v16344_v11  ;;  %v25584_v3 = vpop.f32.mrf.mxu0  ;;  %18908 = vmatprep.subr.bf16.mxu1 %v27615_v15 }
 0x4d0   : > { %v18495_v26 = vpop.f32.mrf.mxu1  ;;  %19231 = vmatpush3.bf16.msra.mxu0 %v20420_v21  ;;  %v20430_v21 = vld [vmem:[%s27494_s3 + $0x348] sm:$0xff]  }
 0x4d1   : > { %v18819_v50 = vpop.f32.mrf.mxu0  ;;  %18853 = vmatmul.mubr.bf16.gmra.mxu1 %v27962_v1  ;;  %19232 = vmatprep.subr.bf16.mxu0 %v27615_v15 }
 0x4d2   : > { %v25593_v6 = vpop.f32.mrf.mxu1  ;;  %18856 = vmatprep.mubr.msk.bf16.mxu1 %vm21083_vm1, %v27615_v15  ;;  %18909 = vmatpush3.bf16.msra.mxu1 %v20419_v33  ;;  %v20426_v33 = vld [vmem:[#allocation2 + $0x58] sm:$0xff]   ;;  %v20432_v50 = vld [vmem:[%s27494_s3 + $0x588] sm:$0xff]  }
 0x4d3   : > { %v25597_v49 = vpop.f32.mrf.mxu0  ;;  %19177 = vmatmul.mubr.bf16.gmra.mxu0 %v20417_v23  ;;  %18910 = vmatprep.subr.bf16.mxu1 %v27615_v15 }
 0x4d4   : > { %v18498_v57 = vpop.f32.mrf.mxu1  ;;  %19180 = vmatprep.mubr.msk.bf16.mxu0 %vm21083_vm1, %v27615_v15  ;;  %19233 = vmatpush3.bf16.msra.mxu0 %v20422_v37  ;;  %v27964_v37 = vld [vmem:[#allocation99_spill] sm:$0xff] }
 0x4d5   : > { %v18822_v54 = vpop.f32.mrf.mxu0  ;;  %19234 = vmatprep.subr.bf16.mxu0 %v27615_v15 }
 0x4d6   : > { %v25610_v0 = vpop.f32.mrf.mxu1  ;;  %18911 = vmatpush3.bf16.msra.mxu1 %v20423_v16  ;;  %v20433_v16 = vld [vmem:[%s27494_s3 + $0x340] sm:$0xff]   ;;  %v6627_v54 = vadd.f32 %v25544_v42, %v24747_v61 }
 0x4d7   : > { %v25613_v53 = vpop.f32.mrf.mxu0  ;;  %18912 = vmatprep.subr.bf16.mxu1 %v27615_v15  ;;  %v20431_v42 = vld [vmem:[#allocation2 + $0x60] ss:$0 sps:$4 sm:$0xff]  }
 0x4d8   : > { %v18499_v41 = vpop.f32.mrf.mxu1  ;;  %19235 = vmatpush3.bf16.msra.mxu0 %v20424_v24 }
 0x4d9   : > { %v18823_v29 = vpop.f32.mrf.mxu0  ;;  %18857 = vmatmul.mubr.bf16.gmra.mxu1 %v27963_v12  ;;  %19236 = vmatprep.subr.bf16.mxu0 %v27615_v15  ;;  %v20434_v41 = vld [vmem:[%s27494_s3 + $0x580] sm:$0xff]   ;;  %v6818_v12 = vadd.f32 %v24894_v27, %v6627_v54  ;;  %v27966_v27 = vld [vmem:[#allocation10_spill] sm:$0xff] }
 0x4da   : > { %v25622_v38 = vpop.f32.mrf.mxu1  ;;  %18860 = vmatprep.mubr.msk.bf16.mxu1 %vm21083_vm1, %v27615_v15  ;;  %18913 = vmatpush3.bf16.msra.mxu1 %v20425_v56 }
 0x4db   : > { %v25626_v13 = vpop.f32.mrf.mxu0  ;;  %19181 = vmatmul.mubr.bf16.gmra.mxu0 %v20421_v47  ;;  %18914 = vmatprep.subr.bf16.mxu1 %v27615_v15 }
 0x4dc   : > { %v18502_v34 = vpop.f32.mrf.mxu1  ;;  %19184 = vmatprep.mubr.msk.bf16.mxu0 %vm21083_vm1, %v27615_v15  ;;  %19237 = vmatpush3.bf16.msra.mxu0 %v20427_v46  ;;  %v6630_v46 = vadd.f32 %v25555_v40, %v24758_v5  ;;  %v6635_v40 = vadd.f32 %v25565_v7, %v27966_v27  ;;  %v27968_v7 = vld [vmem:[#allocation8_spill] sm:$0xff] }
 0x4dd   : > { %v18826_v36 = vpop.f32.mrf.mxu0  ;;  %19238 = vmatprep.subr.bf16.mxu0 %v27615_v15 }
 0x4de   : > { %v25639_v9 = vpop.f32.mrf.mxu1  ;;  %18915 = vmatpush3.bf16.msra.mxu1 %v20428_v22  ;;  %v27965_v22 = vld [vmem:[#allocation97_spill] sm:$0xff] }
 0x4df   : > { %v25642_v11 = vpop.f32.mrf.mxu0  ;;  %18916 = vmatprep.subr.bf16.mxu1 %v27615_v15 }
 0x4e0   : > { %v18503_v17 = vpop.f32.mrf.mxu1  ;;  %19239 = vmatpush3.bf16.msra.mxu0 %v20429_v10 }
 0x4e1   : > { %v18827_v26 = vpop.f32.mrf.mxu0  ;;  %18861 = vmatmul.mubr.bf16.gmra.mxu1 %v27964_v37  ;;  %19240 = vmatprep.subr.bf16.mxu0 %v27615_v15  ;;  %v6819_v17 = vadd.f32 %v24905_v18, %v6630_v46  ;;  %v6638_v18 = vadd.f32 %v25581_v31, %v27968_v7 }
 0x4e2   : > { %v25651_v23 = vpop.f32.mrf.mxu1  ;;  %18864 = vmatprep.mubr.msk.bf16.mxu1 %vm21083_vm1, %v27615_v15  ;;  %18917 = vmatpush3.bf16.msra.mxu1 %v20430_v21 }
 0x4e3   : > { %v25655_v1 = vpop.f32.mrf.mxu0  ;;  %19185 = vmatmul.mubr.bf16.gmra.mxu0 %v20426_v33  ;;  %18918 = vmatprep.subr.bf16.mxu1 %v27615_v15  ;;  %v25688_v33 = vld [vmem:[#allocation2 + $0x48] sm:$0xff]   ;;  %v6821_v27 = vadd.f32 %v24939_v52, %v6638_v18 }
 0x4e4   : > { %v18506_v57 = vpop.f32.mrf.mxu1  ;;  %19188 = vmatprep.mubr.msk.bf16.mxu0 %vm21083_vm1, %v27615_v15  ;;  %19241 = vmatpush3.bf16.msra.mxu0 %v20432_v50  ;;  %v10328_v50 = vrot.slane %v25688_v33, 1 }
 0x4e5   : > { %v18830_v24 = vpop.f32.mrf.mxu0  ;;  %19242 = vmatprep.subr.bf16.mxu0 %v27615_v15 }
 0x4e6   : > { %v6661_v56 = vpop.f32.mrf.mxu1  ;;  %18919 = vmatpush3.bf16.msra.mxu1 %v20433_v16  ;;  %v20437_v16 = vld [vmem:[%s27494_s3 + $0x3f8] sm:$0xff]   ;;  %v27967_v24 = vld [vmem:[#allocation116_spill] sm:$0xff] }
 0x4e7   : > { %v8289_v29 = vpop.f32.mrf.mxu0  ;;  %18976 = vmatprep.subr.bf16.mxu1 %v27615_v15  ;;  %v6820_v56 = vadd.f32 %v24920_v35, %v6635_v40  ;;  %v20438_v35 = vld [vmem:[%s27494_s3 + $0x3f0] sm:$0xff]  }
 0x4e8   : > { %v18507_v47 = vpop.f32.mrf.mxu1  ;;  %19243 = vmatpush3.bf16.msra.mxu0 %v20434_v41  ;;  %v10327_v41 = vrot.slane %v27967_v24, 1  ;;  %v20441_v24 = vld [vmem:[%s27494_s3 + $0x3e8] sm:$0xff]  }
 0x4e9   : > { %v18831_v61 = vpop.f32.mrf.mxu0  ;;  %18865 = vmatmul.mubr.bf16.gmra.mxu1 %v27965_v22  ;;  %19300 = vmatprep.subr.bf16.mxu0 %v27615_v15  ;;  %v20440_v47 = vld [vmem:[%s27494_s3 + $0x638] sm:$0xff]  }
 0x4ea   : > { %v6963_v34 = vpop.f32.mrf.mxu1  ;;  %18920 = vmatprep.mubr.msk.bf16.mxu1 %vm21083_vm1, %v27615_v15  ;;  %v10329_v61 = vsel %vm2076_vm4, %v10327_v41, %v10328_v50  ;;  %v27970_v22 = vld [vmem:[#allocation14_spill] sm:$0xff]  ;;  %v27971_v41 = vld [vmem:[#allocation15_spill] sm:$0xff] }
 0x4eb   : > { %v25677_v36 = vadd.f32 %v6963_v34, %v6818_v12  ;;  %v25679_v10 = vpop.f32.mrf.mxu0  ;;  %19189 = vmatmul.mubr.bf16.gmra.mxu0 %v20431_v42  ;;  %v27969_v12 = vld [vmem:[#allocation101_spill] sm:$0xff]  ;;  %v6646_v7 = vadd.f32 %v25610_v0, %v27971_v41  ;;  %v20445_v0 = vld [vmem:[%s27494_s3 + $0x3e0] sm:$0xff]  }
 0x4ec   : > { %v18562_v5 = vpop.f32.mrf.mxu1  ;;  %19244 = vmatprep.mubr.msk.bf16.mxu0 %vm21083_vm1, %v27615_v15 }
 0x4ed   : > { %v18886_v21 = vpop.f32.mrf.mxu0  ;;  %v6643_v5 = vadd.f32 %v25593_v6, %v27970_v22 }
 0x4ee   : > { %v6966_v26 = vpop.f32.mrf.mxu1 }
 0x4ef   : > { %v25691_v37 = vadd.f32 %v6966_v26, %v6819_v17  ;;  %v25693_v57 = vpop.f32.mrf.mxu0  ;;  %v20442_v17 = vld [vmem:[%s27494_s3 + $0x630] sm:$0xff]   ;;  %v6822_v18 = vadd.f32 %v24955_v45, %v6643_v5  ;;  %v20446_v5 = vld [vmem:[%s27494_s3 + $0x620] sm:$0xff]  }
 0x4f0   : > { %v18563_v54 = vpop.f32.mrf.mxu1  ;;  %v25725_v26 = vld [vmem:[#allocation2 + $0x50] sm:$0xff]  }
 0x4f1   : > { %v18887_v29 = vpop.f32.mrf.mxu0  ;;  %18921 = vmatmul.mubr.bf16.vlgmr.msra.gmra.mxu1 %v27969_v12 }
 0x4f2   : > { %v6971_v46 = vpop.f32.mrf.mxu1  ;;  %18977 = vmatpush3.bf16.msra.mxu1 %v20437_v16  ;;  %18924 = vmatprep.mubr.msk.bf16.mxu1 %vm21083_vm1, %v27615_v15  ;;  %v10330_v16 = vrot.slane %v25725_v26, 1  ;;  %v20444_v29 = vld [vmem:[%s27494_s3 + $0x628] sm:$0xff]  }
 0x4f3   : > { %v25707_v42 = vadd.f32 %v6971_v46, %v6820_v56  ;;  %v25709_v34 = vpop.f32.mrf.mxu0  ;;  %19245 = vmatmul.mubr.bf16.vlgmr.msra.gmra.mxu0 %v10329_v61  ;;  %18978 = vmatprep.subr.bf16.mxu1 %v27615_v15  ;;  %v27972_v46 = vld [vmem:[#allocation103_spill] sm:$0xff] }
 0x4f4   : > { %v18566_v31 = vpop.f32.mrf.mxu1  ;;  %19248 = vmatprep.mubr.msk.bf16.mxu0 %vm21083_vm1, %v27615_v15  ;;  %19301 = vmatpush3.bf16.msra.mxu0 %v20440_v47  ;;  %v10331_v12 = vsel %vm2076_vm4, %v10328_v50, %v10330_v16  ;;  %v6651_v50 = vadd.f32 %v25622_v38, %v24841_v58  ;;  %v20447_v38 = vld [vmem:[%s27494_s3 + $0x3d8] sm:$0xff]  }
 0x4f5   : > { %v18890_v40 = vpop.f32.mrf.mxu0  ;;  %19302 = vmatprep.subr.bf16.mxu0 %v27615_v15  ;;  %v6823_v31 = vadd.f32 %v24974_v4, %v6646_v7  ;;  %v20449_v7 = vld [vmem:[%s27494_s3 + $0x618] sm:$0xff]  }
 0x4f6   : > { %v6974_v21 = vpop.f32.mrf.mxu1  ;;  %18979 = vmatpush3.bf16.msra.mxu1 %v20438_v35  ;;  %v25764_v40 = vld [vmem:[#allocation2 + $0x58] sm:$0xff]  }
 0x4f7   : > { %v25729_v54 = vadd.f32 %v6974_v21, %v6821_v27  ;;  %v25731_v6 = vpop.f32.mrf.mxu0  ;;  %18980 = vmatprep.subr.bf16.mxu1 %v27615_v15 }
 0x4f8   : > { %v18567_v52 = vpop.f32.mrf.mxu1  ;;  %19303 = vmatpush3.bf16.msra.mxu0 %v20442_v17  ;;  %v10332_v17 = vrot.slane %v25764_v40, 1 }
 0x4f9   : > { %v18891_v56 = vpop.f32.mrf.mxu0  ;;  %18925 = vmatmul.mubr.bf16.gmra.mxu1 %v27972_v46  ;;  %19304 = vmatprep.subr.bf16.mxu0 %v27615_v15  ;;  %v6654_v52 = vadd.f32 %v25639_v9, %v24859_v55  ;;  %v20450_v9 = vld [vmem:[%s27494_s3 + $0x3d0] sm:$0xff]  }
 0x4fa   : > { %v6979_v47 = vpop.f32.mrf.mxu1  ;;  %18928 = vmatprep.mubr.msk.bf16.mxu1 %vm21083_vm1, %v27615_v15  ;;  %18981 = vmatpush3.bf16.msra.mxu1 %v20441_v24  ;;  %v6824_v24 = vadd.f32 %v24990_v62, %v6651_v50  ;;  %v27973_v56 = vld [vmem:[#allocation104_spill] sm:$0xff]  ;;  %v27974_v50 = vld [vmem:[#allocation121_spill] sm:$0xff] }
 0x4fb   : > { %v25746_v61 = vadd.f32 %v6979_v47, %v6822_v18  ;;  %v25748_v35 = vpop.f32.mrf.mxu0  ;;  %19249 = vmatmul.mubr.bf16.gmra.mxu0 %v10331_v12  ;;  %18982 = vmatprep.subr.bf16.mxu1 %v27615_v15  ;;  %v6825_v46 = vadd.f32 %v25009_v51, %v6654_v52  ;;  %v20452_v51 = vld [vmem:[%s27494_s3 + $0x3c8] sm:$0xff]   ;;  %v27975_v52 = vld [vmem:[#allocation111_spill] sm:$0xff] }
 0x4fc   : > { %v18570_v45 = vpop.f32.mrf.mxu1  ;;  %19252 = vmatprep.mubr.msk.bf16.mxu0 %vm21083_vm1, %v27615_v15  ;;  %19305 = vmatpush3.bf16.msra.mxu0 %v20444_v29  ;;  %v10333_v29 = vsel %vm2076_vm4, %v10330_v16, %v10332_v17  ;;  %v6659_v16 = vadd.f32 %v25651_v23, %v24874_v44 }
 0x4fd   : > { %v18894_v22 = vpop.f32.mrf.mxu0  ;;  %19306 = vmatprep.subr.bf16.mxu0 %v27615_v15  ;;  %v20451_v45 = vld [vmem:[%s27494_s3 + $0x610] sm:$0xff]  }
 0x4fe   : > { %v6982_v27 = vpop.f32.mrf.mxu1  ;;  %18983 = vmatpush3.bf16.msra.mxu1 %v20445_v0  ;;  %v6826_v23 = vadd.f32 %v25025_v30, %v6659_v16  ;;  %v7164_v16 = vadd.f32 %v25046_v14, %v25677_v36  ;;  %v21019_v14 = vld [vmem:[#allocation2 + $0x44] sm:$0xf] }
 0x4ff   : > { %v25768_v21 = vadd.f32 %v6982_v27, %v6823_v31  ;;  %v25770_v58 = vpop.f32.mrf.mxu0  ;;  %18984 = vmatprep.subr.bf16.mxu1 %v27615_v15  ;;  %v10334_v31 = vrot.slane %v27974_v50, 1 }
 0x500   : > { %v18571_v4 = vpop.f32.mrf.mxu1  ;;  %19307 = vmatpush3.bf16.msra.mxu0 %v20446_v5 }
 0x501   : > { %v18895_v41 = vpop.f32.mrf.mxu0  ;;  %18929 = vmatmul.mubr.bf16.gmra.mxu1 %v27973_v56  ;;  %19308 = vmatprep.subr.bf16.mxu0 %v27615_v15  ;;  %v20453_v4 = vld [vmem:[%s27494_s3 + $0x608] sm:$0xff]   ;;  %v20455_v56 = vld [vmem:[%s27494_s3 + $0x600] sm:$0xff]  }
 0x502   : > { %v6987_v18 = vpop.f32.mrf.mxu1  ;;  %18932 = vmatprep.mubr.msk.bf16.mxu1 %vm21083_vm1, %v27615_v15  ;;  %18985 = vmatpush3.bf16.msra.mxu1 %v20447_v38 }
 0x503   : > { %v25785_v47 = vadd.f32 %v6987_v18, %v6824_v24  ;;  %v25787_v55 = vpop.f32.mrf.mxu0  ;;  %19253 = vmatmul.mubr.bf16.gmra.mxu0 %v10333_v29  ;;  %18986 = vmatprep.subr.bf16.mxu1 %v27615_v15  ;;  %v10335_v24 = vsel %vm2076_vm4, %v10332_v17, %v10334_v31  ;;  %v20454_v18 = vld [vmem:[%s27494_s3 + $0x3c0] sm:$0xff]  }
 0x504   : > { %v18574_v62 = vpop.f32.mrf.mxu1  ;;  %19256 = vmatprep.mubr.msk.bf16.mxu0 %vm21083_vm1, %v27615_v15  ;;  %19309 = vmatpush3.bf16.msra.mxu0 %v20449_v7 }
 0x505   : > { %v18898_v12 = vpop.f32.mrf.mxu0  ;;  %19310 = vmatprep.subr.bf16.mxu0 %v27615_v15 }
 0x506   : > { %v6990_v0 = vpop.f32.mrf.mxu1  ;;  %18987 = vmatpush3.bf16.msra.mxu1 %v20450_v9  ;;  %v10653_v12 = vld [vmem:[#allocation2 + $0x40] sm:$0xc] }
 0x507   : > { %v25805_v22 = vadd.f32 %v6990_v0, %v6825_v46  ;;  %v25807_v5 = vpop.f32.mrf.mxu0  ;;  %18988 = vmatprep.subr.bf16.mxu1 %v27615_v15  ;;  %v27976_v0 = vld [vmem:[#allocation106_spill] sm:$0xff]  ;;  %v15646_v36 = vcombine.low %v10653_v12, %v21019_v14 }
 0x508   : > { %v18575_v44 = vpop.f32.mrf.mxu1  ;;  %19311 = vmatpush3.bf16.msra.mxu0 %v20451_v45 }
 0x509   : > { %v18899_v27 = vpop.f32.mrf.mxu0  ;;  %18933 = vmatmul.mubr.bf16.gmra.mxu1 %v27975_v52  ;;  %19312 = vmatprep.subr.bf16.mxu0 %v27615_v15 }
 0x50a   : > { %v6995_v38 = vpop.f32.mrf.mxu1  ;;  %18936 = vmatprep.mubr.msk.bf16.mxu1 %vm21083_vm1, %v27615_v15  ;;  %18989 = vmatpush3.bf16.msra.mxu1 %v20452_v51  ;;  %v27977_v27 = vld [vmem:[#allocation16_spill] sm:$0xff] }
 0x50b   : > { %v25820_v41 = vadd.f32 %v6995_v38, %v6826_v23  ;;  %v25822_v7 = vpop.f32.mrf.mxu0  ;;  %19257 = vmatmul.mubr.bf16.gmra.mxu0 %v10335_v24  ;;  %18990 = vmatprep.subr.bf16.mxu1 %v27615_v15  ;;  %v10674_v24 = vrot.slane %v25688_v33, 2 }
 0x50c   : > { %v18578_v30 = vpop.f32.mrf.mxu1  ;;  %19260 = vmatprep.mubr.msk.bf16.mxu0 %vm21083_vm1, %v27615_v15  ;;  %19313 = vmatpush3.bf16.msra.mxu0 %v20453_v4  ;;  %v7165_v4 = vadd.f32 %v27977_v27, %v25691_v37  ;;  %v27979_v37 = vld [vmem:[#allocation107_spill] sm:$0xff]  ;;  %v10676_v27 = vrot.slane %v25725_v26, 2 }
 0x50d   : > { %v18902_v17 = vpop.f32.mrf.mxu0  ;;  %19314 = vmatprep.subr.bf16.mxu0 %v27615_v15 }
 0x50e   : > { %v6998_v29 = vpop.f32.mrf.mxu1  ;;  %18991 = vmatpush3.bf16.msra.mxu1 %v20454_v18  ;;  %v10677_v26 = vsel %vm2426_vm6, %v10674_v24, %v10676_v27 }
 0x50f   : > { %v8650_v62 = vpop.f32.mrf.mxu0  ;;  %19048 = vmatprep.subr.bf16.mxu1 %v27615_v15  ;;  %v27978_v29 = vld [vmem:[#allocation17_spill] sm:$0xff] }
 0x510   : > { %v18579_v9 = vpop.f32.mrf.mxu1  ;;  %19315 = vmatpush3.bf16.msra.mxu0 %v20455_v56  ;;  %v10673_v56 = vrot.slane %v15646_v36, 2  ;;  %v7166_v62 = vadd.f32 %v27978_v29, %v25707_v42  ;;  %v27980_v42 = vld [vmem:[#allocation20_spill] sm:$0xff] }
 0x511   : > { %v18903_v46 = vpop.f32.mrf.mxu0  ;;  %18937 = vmatmul.mubr.bf16.gmra.mxu1 %v27976_v0  ;;  %19336 = vmatprep.subr.bf16.mxu0 %v27615_v15 }
 0x512   : > { %v7320_v45 = vpop.f32.mrf.mxu1  ;;  %18992 = vmatprep.mubr.msk.bf16.mxu1 %vm21083_vm1, %v27615_v15  ;;  %v10675_v46 = vsel %vm2426_vm6, %v10673_v56, %v10674_v24 }
 0x513   : > { %v25841_v44 = vadd.f32 %v7320_v45, %v7164_v16  ;;  %v25843_v51 = vpop.f32.mrf.mxu0  ;;  %19261 = vmatmul.mubr.bf16.gmra.mxu0 %v10334_v31  ;;  %v20457_v31 = vld [vmem:[%s27494_s3 + $0x478] sm:$0xff]   ;;  %v20458_v45 = vld [vmem:[%s27494_s3 + $0x470] sm:$0xff]  }
 0x514   : > { %v18634_v23 = vpop.f32.mrf.mxu1  ;;  %19316 = vmatprep.mubr.msk.bf16.mxu0 %vm21083_vm1, %v27615_v15 }
 0x515   : > { %v18958_v38 = vpop.f32.mrf.mxu0  ;;  %v7167_v23 = vadd.f32 %v27980_v42, %v25729_v54  ;;  %v27981_v54 = vld [vmem:[#allocation49_spill] sm:$0xff]  ;;  %v10678_v42 = vrot.slane %v25764_v40, 2 }
 0x516   : > { %v7323_v52 = vpop.f32.mrf.mxu1 }
 0x517   : > { %v25852_v30 = vadd.f32 %v7323_v52, %v7165_v4  ;;  %v25854_v18 = vpop.f32.mrf.mxu0  ;;  %v10679_v40 = vsel %vm2426_vm6, %v10676_v27, %v10678_v42 }
 0x518   : > { %v18635_v17 = vpop.f32.mrf.mxu1 }
 0x519   : > { %v18959_v9 = vpop.f32.mrf.mxu0  ;;  %18993 = vmatmul.mubr.bf16.vlgmr.msra.gmra.mxu1 %v27979_v37  ;;  %v7168_v17 = vadd.f32 %v27981_v54, %v25746_v61  ;;  %v20460_v61 = vld [vmem:[%s27494_s3 + $0x460] sm:$0xff]  }
 0x51a   : > { %v7328_v16 = vpop.f32.mrf.mxu1  ;;  %19049 = vmatpush3.bf16.msra.mxu1 %v20457_v31  ;;  %18996 = vmatprep.mubr.msk.bf16.mxu1 %vm21083_vm1, %v27615_v15  ;;  %v20459_v31 = vld [vmem:[%s27494_s3 + $0x468] sm:$0xff]  }
 0x51b   : > { %v25863_v33 = vadd.f32 %v7328_v16, %v7166_v62  ;;  %v25865_v12 = vpop.f32.mrf.mxu0  ;;  %19317 = vmatmul.mubr.bf16.vlgmr.msra.gmra.mxu0 %v10675_v46  ;;  %19050 = vmatprep.subr.bf16.mxu1 %v27615_v15  ;;  %v27982_v62 = vld [vmem:[#allocation108_spill] sm:$0xff]  ;;  %v27983_v46 = vld [vmem:[#allocation31_spill] sm:$0xff] }
 0x51c   : > { %v18638_v0 = vpop.f32.mrf.mxu1  ;;  %19320 = vmatprep.mubr.msk.bf16.mxu0 %vm21083_vm1, %v27615_v15  ;;  %v7169_v24 = vadd.f32 %v27983_v46, %v25768_v21 }
 0x51d   : > { %v18962_v14 = vpop.f32.mrf.mxu0 }
 0x51e   : > { %v7331_v36 = vpop.f32.mrf.mxu1  ;;  %19051 = vmatpush3.bf16.msra.mxu1 %v20458_v45 }
 0x51f   : > { %v25878_v4 = vadd.f32 %v7331_v36, %v7167_v23  ;;  %v25880_v38 = vpop.f32.mrf.mxu0  ;;  %19052 = vmatprep.subr.bf16.mxu1 %v27615_v15 }
 0x520   : > { %v18639_v52 = vpop.f32.mrf.mxu1 }
 0x521   : > { %v18963_v56 = vpop.f32.mrf.mxu0  ;;  %18997 = vmatmul.mubr.bf16.gmra.mxu1 %v27982_v62  ;;  %v20462_v52 = vld [vmem:[%s27494_s3 + $0x458] sm:$0xff]  }
 0x522   : > { %v7336_v29 = vpop.f32.mrf.mxu1  ;;  %19000 = vmatprep.mubr.msk.bf16.mxu1 %vm21083_vm1, %v27615_v15  ;;  %19053 = vmatpush3.bf16.msra.mxu1 %v20459_v31  ;;  %v27984_v31 = vld [vmem:[#allocation51_spill] sm:$0xff]  ;;  %v27985_v56 = vld [vmem:[#allocation109_spill] sm:$0xff] }
 0x523   : > { %v25890_v9 = vadd.f32 %v7336_v29, %v7168_v17  ;;  %v25892_v16 = vpop.f32.mrf.mxu0  ;;  %19321 = vmatmul.mubr.bf16.gmra.mxu0 %v10677_v26  ;;  %19054 = vmatprep.subr.bf16.mxu1 %v27615_v15  ;;  %v7170_v54 = vadd.f32 %v27984_v31, %v25785_v47  ;;  %v20464_v47 = vld [vmem:[%s27494_s3 + $0x450] sm:$0xff]   ;;  %v20465_v31 = vld [vmem:[%s27494_s3 + $0x448] sm:$0xff]  }
 0x524   : > { %v18642_v37 = vpop.f32.mrf.mxu1  ;;  %19324 = vmatprep.mubr.msk.bf16.mxu0 %vm21083_vm1, %v27615_v15 }
 0x525   : > { %v18966_v45 = vpop.f32.mrf.mxu0  ;;  %v27986_v37 = vld [vmem:[#allocation32_spill] sm:$0xff] }
 0x526   : > { %v7339_v0 = vpop.f32.mrf.mxu1  ;;  %19055 = vmatpush3.bf16.msra.mxu1 %v20460_v61  ;;  %v7171_v27 = vadd.f32 %v27986_v37, %v25805_v22 }
 0x527   : > { %v25905_v23 = vadd.f32 %v7339_v0, %v7169_v24  ;;  %v25907_v14 = vpop.f32.mrf.mxu0  ;;  %19056 = vmatprep.subr.bf16.mxu1 %v27615_v15  ;;  %v27987_v24 = vld [vmem:[#allocation124_spill] sm:$0xff] }
 0x528   : > { %v18643_v36 = vpop.f32.mrf.mxu1  ;;  %v10680_v45 = vrot.slane %v27987_v24, 2  ;;  %v27990_v24 = vld [vmem:[#allocation33_spill] sm:$0xff] }
 0x529   : > { %v18967_v21 = vpop.f32.mrf.mxu0  ;;  %19001 = vmatmul.mubr.bf16.gmra.mxu1 %v27985_v56  ;;  %v27989_v56 = vld [vmem:[#allocation113_spill] sm:$0xff] }
 0x52a   : > { %v7344_v17 = vpop.f32.mrf.mxu1  ;;  %19004 = vmatprep.mubr.msk.bf16.mxu1 %vm21083_vm1, %v27615_v15  ;;  %19057 = vmatpush3.bf16.msra.mxu1 %v20462_v52 }
 0x52b   : > { %v25917_v29 = vadd.f32 %v7344_v17, %v7170_v54  ;;  %v25919_v62 = vpop.f32.mrf.mxu0  ;;  %19325 = vmatmul.mubr.bf16.gmra.mxu0 %v10679_v40  ;;  %19058 = vmatprep.subr.bf16.mxu1 %v27615_v15  ;;  %v27988_v54 = vld [vmem:[#allocation54_spill] sm:$0xff]  ;;  %v10681_v40 = vsel %vm2426_vm6, %v10678_v42, %v10680_v45 }
 0x52c   : > { %v18646_v26 = vpop.f32.mrf.mxu1  ;;  %19328 = vmatprep.mubr.msk.bf16.mxu0 %vm21083_vm1, %v27615_v15  ;;  %v7172_v21 = vadd.f32 %v27988_v54, %v25820_v41  ;;  %v20466_v41 = vld [vmem:[%s27494_s3 + $0x440] sm:$0xff]  }
 0x52d   : > { %v18970_v61 = vpop.f32.mrf.mxu0 }
 0x52e   : > { %v7347_v46 = vpop.f32.mrf.mxu1  ;;  %19059 = vmatpush3.bf16.msra.mxu1 %v20464_v47 }
 0x52f   : > { %v25932_v0 = vadd.f32 %v7347_v46, %v7171_v27  ;;  %v25934_v36 = vpop.f32.mrf.mxu0  ;;  %19060 = vmatprep.subr.bf16.mxu1 %v27615_v15 }
 0x530   : > { %v18647_v52 = vpop.f32.mrf.mxu1 }
 0x531   : > { %v18971_v22 = vpop.f32.mrf.mxu0  ;;  %19005 = vmatmul.mubr.bf16.gmra.mxu1 %v27989_v56  ;;  %v7556_v52 = vadd.f32 %v27990_v24, %v25841_v44  ;;  %v27992_v44 = vld [vmem:[#allocation35_spill] sm:$0xff] }
 0x532   : > { %v7352_v17 = vpop.f32.mrf.mxu1  ;;  %19008 = vmatprep.mubr.msk.bf16.mxu1 %vm21083_vm1, %v27615_v15  ;;  %19061 = vmatpush3.bf16.msra.mxu1 %v20465_v31 }
 0x533   : > { %v25944_v26 = vadd.f32 %v7352_v17, %v7172_v21  ;;  %v25946_v37 = vpop.f32.mrf.mxu0  ;;  %19329 = vmatmul.mubr.bf16.gmra.mxu0 %v10681_v40  ;;  %19062 = vmatprep.subr.bf16.mxu1 %v27615_v15  ;;  %v27991_v21 = vld [vmem:[#allocation112_spill] sm:$0xff]  ;;  %v7557_v40 = vadd.f32 %v27992_v44, %v25852_v30 }
 0x534   : > { %v18650_v47 = vpop.f32.mrf.mxu1  ;;  %19332 = vmatprep.mubr.msk.bf16.mxu0 %vm21083_vm1, %v27615_v15 }
 0x535   : > { %v18974_v27 = vpop.f32.mrf.mxu0 }
 0x536   : > { %v7355_v42 = vpop.f32.mrf.mxu1  ;;  %19063 = vmatpush3.bf16.msra.mxu1 %v20466_v41 }
 0x537   : > { %v8988_v61 = vpop.f32.mrf.mxu0  ;;  %19120 = vmatprep.subr.bf16.mxu1 %v27615_v15 }
 0x538   : > { %v18651_v46 = vpop.f32.mrf.mxu1 }
 0x539   : > { %v18975_v54 = vpop.f32.mrf.mxu0  ;;  %19009 = vmatmul.mubr.bf16.gmra.mxu1 %v27991_v21  ;;  %v27993_v46 = vld [vmem:[#allocation34_spill] sm:$0xff] }
 0x53a   : > { %v7673_v31 = vpop.f32.mrf.mxu1  ;;  %19064 = vmatprep.mubr.msk.bf16.mxu1 %vm21083_vm1, %v27615_v15  ;;  %v7558_v24 = vadd.f32 %v27993_v46, %v25863_v33  ;;  %v27995_v33 = vld [vmem:[#allocation52_spill] sm:$0xff] }
 0x53b   : > { %v25960_v22 = vadd.f32 %v7673_v31, %v7556_v52  ;;  %v25962_v17 = vpop.f32.mrf.mxu0  ;;  %19333 = vmatmul.mubr.bf16.gmra.mxu0 %v10680_v45  ;;  %v20467_v45 = vld [vmem:[%s27494_s3 + $0x4f8] sm:$0xff]  }
 0x53c   : > { %v18706_v56 = vpop.f32.mrf.mxu1  ;;  %19352 = vmatprep.mubr.msk.bf16.mxu0 %vm21083_vm1, %v27615_v15  ;;  %v27994_v31 = vld [vmem:[#allocation114_spill] sm:$0xff] }
 0x53d   : > { %v19030_v47 = vpop.f32.mrf.mxu0  ;;  %v20468_v56 = vld [vmem:[%s27494_s3 + $0x4f0] sm:$0xff]  }
 0x53e   : > { %v7676_v41 = vpop.f32.mrf.mxu1 }
 0x53f   : > { %v25970_v27 = vadd.f32 %v7676_v41, %v7557_v40  ;;  %v25972_v42 = vpop.f32.mrf.mxu0  ;;  %v7559_v40 = vadd.f32 %v27995_v33, %v25878_v4  ;;  %v27998_v4 = vld [vmem:[#allocation115_spill] sm:$0xff] }
 0x540   : > { %v18707_v61 = vpop.f32.mrf.mxu1 }
 0x541   : > { %v19031_v52 = vpop.f32.mrf.mxu0  ;;  %19065 = vmatmul.mubr.bf16.vlgmr.msra.gmra.mxu1 %v27994_v31 }
 0x542   : > { %v7681_v54 = vpop.f32.mrf.mxu1  ;;  %19121 = vmatpush3.bf16.msra.mxu1 %v20467_v45  ;;  %19068 = vmatprep.mubr.msk.bf16.mxu1 %vm21083_vm1, %v27615_v15  ;;  %v20469_v45 = vld [vmem:[%s27494_s3 + $0x4e8] sm:$0xff]  }
 0x543   : > { %v25980_v21 = vadd.f32 %v7681_v54, %v7558_v24  ;;  %v25982_v30 = vpop.f32.mrf.mxu0  ;;  %19122 = vmatprep.subr.bf16.mxu1 %v27615_v15  ;;  %v27997_v52 = vld [vmem:[#allocation36_spill] sm:$0xff] }
 0x544   : > { %v18710_v44 = vpop.f32.mrf.mxu1  ;;  %v7560_v54 = vadd.f32 %v27997_v52, %v25890_v9  ;;  %v28000_v9 = vld [vmem:[#allocation38_spill] sm:$0xff] }
 0x545   : > { %v19034_v47 = vpop.f32.mrf.mxu0 }
 0x546   : > { %v7684_v41 = vpop.f32.mrf.mxu1  ;;  %19123 = vmatpush3.bf16.msra.mxu1 %v20468_v56  ;;  %v20470_v56 = vld [vmem:[%s27494_s3 + $0x4e0] sm:$0xff]  }
 0x547   : > { %v25992_v61 = vadd.f32 %v7684_v41, %v7559_v40  ;;  %v25994_v46 = vpop.f32.mrf.mxu0  ;;  %19124 = vmatprep.subr.bf16.mxu1 %v27615_v15  ;;  %v7561_v41 = vadd.f32 %v28000_v9, %v25905_v23  ;;  %v28003_v23 = vld [vmem:[#allocation117_spill] sm:$0xff] }
 0x548   : > { %27996 = vst [vmem:[#allocation61_spill] sm:$0xff] %v25994_v46  ;;  %v18711_v24 = vpop.f32.mrf.mxu1 }
 0x549   : > { %v19035_v31 = vpop.f32.mrf.mxu0  ;;  %19069 = vmatmul.mubr.bf16.gmra.mxu1 %v27998_v4  ;;  %v28002_v4 = vld [vmem:[#allocation39_spill] sm:$0xff] }
 0x54a   : > { %v7689_v44 = vpop.f32.mrf.mxu1  ;;  %19072 = vmatprep.mubr.msk.bf16.mxu1 %vm21083_vm1, %v27615_v15  ;;  %19125 = vmatpush3.bf16.msra.mxu1 %v20469_v45  ;;  %v20471_v45 = vld [vmem:[%s27494_s3 + $0x4d8] sm:$0xff]  }
 0x54b   : > { %v26003_v33 = vadd.f32 %v7689_v44, %v7560_v54  ;;  %v26005_v40 = vpop.f32.mrf.mxu0  ;;  %19126 = vmatprep.subr.bf16.mxu1 %v27615_v15 }
 0x54c   : > { %27999 = vst [vmem:[#allocation43_spill] sm:$0xff] %v26005_v40  ;;  %v18714_v47 = vpop.f32.mrf.mxu1 }
 0x54d   : > { %v19038_v24 = vpop.f32.mrf.mxu0  ;;  %v7562_v47 = vadd.f32 %v28002_v4, %v25917_v29  ;;  %v28005_v29 = vld [vmem:[#allocation41_spill] sm:$0xff] }
 0x54e   : > { %v7692_v52 = vpop.f32.mrf.mxu1  ;;  %19127 = vmatpush3.bf16.msra.mxu1 %v20470_v56  ;;  %v20472_v56 = vld [vmem:[%s27494_s3 + $0x4d0] sm:$0xff]  }
 0x54f   : > { %v26015_v54 = vadd.f32 %v7692_v52, %v7561_v41  ;;  %v26017_v31 = vpop.f32.mrf.mxu0  ;;  %19128 = vmatprep.subr.bf16.mxu1 %v27615_v15 }
 0x550   : > { %28001 = vst [vmem:[#allocation66_spill] sm:$0xff] %v26017_v31  ;;  %v18715_v44 = vpop.f32.mrf.mxu1 }
 0x551   : > { %v19039_v40 = vpop.f32.mrf.mxu0  ;;  %19073 = vmatmul.mubr.bf16.gmra.mxu1 %v28003_v23  ;;  %v28006_v23 = vld [vmem:[#allocation40_spill] sm:$0xff] }
 0x552   : > { %v7697_v46 = vpop.f32.mrf.mxu1  ;;  %19076 = vmatprep.mubr.msk.bf16.mxu1 %vm21083_vm1, %v27615_v15  ;;  %19129 = vmatpush3.bf16.msra.mxu1 %v20471_v45  ;;  %v7563_v40 = vadd.f32 %v28005_v29, %v25932_v0  ;;  %v20473_v45 = vld [vmem:[%s27494_s3 + $0x4c8] sm:$0xff]   ;;  %v28007_v0 = vld [vmem:[#allocation118_spill] sm:$0xff] }
 0x553   : > { %v26026_v9 = vadd.f32 %v7697_v46, %v7562_v47  ;;  %v26028_v41 = vpop.f32.mrf.mxu0  ;;  %19130 = vmatprep.subr.bf16.mxu1 %v27615_v15 }
 0x554   : > { %28004 = vst [vmem:[#allocation12_spill] sm:$0xff] %v26028_v41  ;;  %v18718_v24 = vpop.f32.mrf.mxu1 }
 0x555   : > { %v19042_v52 = vpop.f32.mrf.mxu0  ;;  %v7564_v24 = vadd.f32 %v28006_v23, %v25944_v26 }
 0x556   : > { %v7700_v44 = vpop.f32.mrf.mxu1  ;;  %19131 = vmatpush3.bf16.msra.mxu1 %v20472_v56  ;;  %v20474_v56 = vld [vmem:[%s27494_s3 + $0x4c0] sm:$0xff]  }
 0x557   : > { %v26038_v46 = vadd.f32 %v7700_v44, %v7563_v40  ;;  %v26040_v4 = vpop.f32.mrf.mxu0  ;;  %19132 = vmatprep.subr.bf16.mxu1 %v27615_v15 }
 0x558   : > { %v18719_v47 = vpop.f32.mrf.mxu1 }
 0x559   : > { %v19043_v41 = vpop.f32.mrf.mxu0  ;;  %19077 = vmatmul.mubr.bf16.gmra.mxu1 %v28007_v0 }
 0x55a   : > { %v7705_v31 = vpop.f32.mrf.mxu1  ;;  %19080 = vmatprep.mubr.msk.bf16.mxu1 %vm21083_vm1, %v27615_v15  ;;  %19133 = vmatpush3.bf16.msra.mxu1 %v20473_v45  ;;  %v28009_v45 = vld [vmem:[#allocation105_spill] sm:$0xff] }
 0x55b   : > { %v26049_v29 = vadd.f32 %v7705_v31, %v7564_v24  ;;  %v26051_v40 = vpop.f32.mrf.mxu0  ;;  %19134 = vmatprep.subr.bf16.mxu1 %v27615_v15  ;;  %v7935_v31 = vadd.f32 %v25381_v19, %v25960_v22  ;;  %v28010_v0 = vrot.slane %v28009_v45, 2  ;;  %v20476_v22 = vld [vmem:[%s27494_s3 + $0x578] sm:$0xff]  }
 0x55c   : > { %28008 = vst [vmem:[#allocation44_spill] sm:$0xff] %v26051_v40  ;;  %v18722_v52 = vpop.f32.mrf.mxu1 }
 0x55d   : > { %v19046_v26 = vpop.f32.mrf.mxu0 }
 0x55e   : > { %v7708_v41 = vpop.f32.mrf.mxu1  ;;  %19135 = vmatpush3.bf16.msra.mxu1 %v20474_v56  ;;  %v7936_v56 = vadd.f32 %v25392_v48, %v25970_v27  ;;  %v20477_v27 = vld [vmem:[%s27494_s3 + $0x570] sm:$0xff]  }
 0x55f   : > { %v9380_v44 = vpop.f32.mrf.mxu0  ;;  %19192 = vmatprep.subr.bf16.mxu1 %v27615_v15 }
 0x560   : > { %v18723_v47 = vpop.f32.mrf.mxu1 }
 0x561   : > { %v19047_v23 = vpop.f32.mrf.mxu0  ;;  %19081 = vmatmul.mubr.bf16.gmra.mxu1 %v28010_v0  ;;  %v28011_v0 = vld [vmem:[#allocation122_spill] sm:$0xff] }
 0x562   : > { %v8060_v24 = vpop.f32.mrf.mxu1  ;;  %19136 = vmatprep.mubr.msk.bf16.mxu1 %vm21083_vm1, %v27615_v15  ;;  %v7937_v23 = vadd.f32 %v25411_v59, %v25980_v21  ;;  %v7938_v59 = vadd.f32 %v25432_v60, %v25992_v61  ;;  %v28012_v60 = vld [vmem:[#allocation119_spill] sm:$0xff] }
 0x563   : > { %v26064_v40 = vadd.f32 %v8060_v24, %v7935_v31  ;;  %v26066_v52 = vpop.f32.mrf.mxu0 }
 0x564   : > { %v18778_v26 = vpop.f32.mrf.mxu1 }
 0x565   : > { %v19102_v41 = vpop.f32.mrf.mxu0 }
 0x566   : > { %v8063_v44 = vpop.f32.mrf.mxu1 }
 0x567   : > { %v26072_v47 = vadd.f32 %v8063_v44, %v7936_v56  ;;  %v26074_v19 = vpop.f32.mrf.mxu0 }
 0x568   : > { %v18779_v31 = vpop.f32.mrf.mxu1 }
 0x569   : > { %v19103_v24 = vpop.f32.mrf.mxu0  ;;  %19137 = vmatmul.mubr.bf16.vlgmr.msra.gmra.mxu1 %v28011_v0 }
 0x56a   : > { %v8068_v45 = vpop.f32.mrf.mxu1  ;;  %19193 = vmatpush3.bf16.msra.mxu1 %v20476_v22  ;;  %19140 = vmatprep.mubr.msk.bf16.mxu1 %vm21083_vm1, %v27615_v15  ;;  %v20478_v22 = vld [vmem:[%s27494_s3 + $0x568] sm:$0xff]   ;;  %v7939_v24 = vadd.f32 %v25454_v43, %v26003_v33  ;;  %v7940_v43 = vadd.f32 %v25477_v2, %v26015_v54 }
 0x56b   : > { %v26082_v26 = vadd.f32 %v8068_v45, %v7937_v23  ;;  %v26084_v48 = vpop.f32.mrf.mxu0  ;;  %19194 = vmatprep.subr.bf16.mxu1 %v27615_v15  ;;  %v28013_v2 = vld [vmem:[#allocation120_spill] sm:$0xff] }
 0x56c   : > { %v18782_v56 = vpop.f32.mrf.mxu1 }
 0x56d   : > { %v19106_v21 = vpop.f32.mrf.mxu0 }
 0x56e   : > { %v8071_v41 = vpop.f32.mrf.mxu1  ;;  %19195 = vmatpush3.bf16.msra.mxu1 %v20477_v27  ;;  %v20479_v27 = vld [vmem:[%s27494_s3 + $0x560] sm:$0xff]  }
 0x56f   : > { %v26094_v44 = vadd.f32 %v8071_v41, %v7938_v59  ;;  %v26096_v31 = vpop.f32.mrf.mxu0  ;;  %19196 = vmatprep.subr.bf16.mxu1 %v27615_v15 }
 0x570   : > { %v18783_v23 = vpop.f32.mrf.mxu1 }
 0x571   : > { %v19107_v45 = vpop.f32.mrf.mxu0  ;;  %19141 = vmatmul.mubr.bf16.gmra.mxu1 %v28012_v60 }
 0x572   : > { %v8076_v0 = vpop.f32.mrf.mxu1  ;;  %19144 = vmatprep.mubr.msk.bf16.mxu1 %vm21083_vm1, %v27615_v15  ;;  %19197 = vmatpush3.bf16.msra.mxu1 %v20478_v22  ;;  %v20480_v22 = vld [vmem:[%s27494_s3 + $0x558] sm:$0xff]   ;;  %v7941_v45 = vadd.f32 %v25496_v39, %v26026_v9  ;;  %v7942_v39 = vadd.f32 %v25513_v32, %v26038_v46 }
 0x573   : > { %v26105_v61 = vadd.f32 %v8076_v0, %v7939_v24  ;;  %v26107_v56 = vpop.f32.mrf.mxu0  ;;  %19198 = vmatprep.subr.bf16.mxu1 %v27615_v15  ;;  %v28014_v32 = vld [vmem:[#allocation123_spill] sm:$0xff] }
 0x574   : > { %v18786_v59 = vpop.f32.mrf.mxu1 }
 0x575   : > { %v19110_v33 = vpop.f32.mrf.mxu0 }
 0x576   : > { %v8079_v21 = vpop.f32.mrf.mxu1  ;;  %19199 = vmatpush3.bf16.msra.mxu1 %v20479_v27  ;;  %v20481_v27 = vld [vmem:[%s27494_s3 + $0x550] sm:$0xff]  }
 0x577   : > { %v26117_v41 = vadd.f32 %v8079_v21, %v7940_v43  ;;  %v26119_v23 = vpop.f32.mrf.mxu0  ;;  %19200 = vmatprep.subr.bf16.mxu1 %v27615_v15 }
 0x578   : > { %v18787_v24 = vpop.f32.mrf.mxu1 }
 0x579   : > { %v19111_v0 = vpop.f32.mrf.mxu0  ;;  %19145 = vmatmul.mubr.bf16.gmra.mxu1 %v28013_v2 }
 0x57a   : > { %v8084_v60 = vpop.f32.mrf.mxu1  ;;  %19148 = vmatprep.mubr.msk.bf16.mxu1 %vm21083_vm1, %v27615_v15  ;;  %19201 = vmatpush3.bf16.msra.mxu1 %v20480_v22  ;;  %v20482_v22 = vld [vmem:[%s27494_s3 + $0x548] sm:$0xff]   ;;  %v7943_v0 = vadd.f32 %v25528_v28, %v26049_v29 }
 0x57b   : > { %v26128_v54 = vadd.f32 %v8084_v60, %v7941_v45  ;;  %v26130_v59 = vpop.f32.mrf.mxu0  ;;  %19202 = vmatprep.subr.bf16.mxu1 %v27615_v15 }
 0x57c   : > { %v18790_v43 = vpop.f32.mrf.mxu1 }
 0x57d   : > { %v19114_v9 = vpop.f32.mrf.mxu0 }
 0x57e   : > { %v8087_v33 = vpop.f32.mrf.mxu1  ;;  %19203 = vmatpush3.bf16.msra.mxu1 %v20481_v27  ;;  %v20483_v27 = vld [vmem:[%s27494_s3 + $0x540] sm:$0xff]  }
 0x57f   : > { %v26140_v21 = vadd.f32 %v8087_v33, %v7942_v39  ;;  %v26142_v24 = vpop.f32.mrf.mxu0  ;;  %19204 = vmatprep.subr.bf16.mxu1 %v27615_v15 }
 0x580   : > { %v18791_v45 = vpop.f32.mrf.mxu1 }
 0x581   : > { %v19115_v60 = vpop.f32.mrf.mxu0  ;;  %19149 = vmatmul.mubr.bf16.gmra.mxu1 %v28014_v32  ;;  %v8292_v45 = vadd.f32 %v25549_v20, %v26064_v40 }
 0x582   : > { %v8092_v2 = vpop.f32.mrf.mxu1  ;;  %19152 = vmatprep.mubr.msk.bf16.mxu1 %vm21083_vm1, %v27615_v15  ;;  %19205 = vmatpush3.bf16.msra.mxu1 %v20482_v22  ;;  %v28015_v22 = vrot.slane %v27953_v8, 3  ;;  %v20485_v8 = vld [vmem:[%s27494_s3 + $0x5f8] sm:$0xff]  }
 0x583   : > { %v26151_v46 = vadd.f32 %v8092_v2, %v7943_v0  ;;  %v26153_v43 = vpop.f32.mrf.mxu0  ;;  %19206 = vmatprep.subr.bf16.mxu1 %v27615_v15 }
 0x584   : > { %v18794_v39 = vpop.f32.mrf.mxu1 }
 0x585   : > { %v19118_v28 = vpop.f32.mrf.mxu0 }
 0x586   : > { %v8095_v29 = vpop.f32.mrf.mxu1  ;;  %19207 = vmatpush3.bf16.msra.mxu1 %v20483_v27  ;;  %v8293_v27 = vadd.f32 %v25557_v63, %v26072_v47  ;;  %v20486_v47 = vld [vmem:[%s27494_s3 + $0x5f0] sm:$0xff]  }
 0x587   : > { %v9726_v9 = vpop.f32.mrf.mxu0  ;;  %19264 = vmatprep.subr.bf16.mxu1 %v27615_v15 }
 0x588   : > { %v18795_v33 = vpop.f32.mrf.mxu1 }
 0x589   : > { %v19119_v0 = vpop.f32.mrf.mxu0  ;;  %19153 = vmatmul.mubr.bf16.gmra.mxu1 %v28015_v22  ;;  %v8294_v33 = vadd.f32 %v25568_v25, %v26082_v26  ;;  %v8295_v25 = vadd.f32 %v25584_v3, %v26094_v44  ;;  %v28017_v3 = vld [vmem:[#allocation126_spill] sm:$0xff] }
 0x58a   : > { %v8452_v60 = vpop.f32.mrf.mxu1  ;;  %19208 = vmatprep.mubr.msk.bf16.mxu1 %vm21083_vm1, %v27615_v15 }
 0x58b   : > { %v26166_v2 = vadd.f32 %v8452_v60, %v8292_v45  ;;  %v26168_v32 = vpop.f32.mrf.mxu0  ;;  %v28016_v60 = vld [vmem:[#allocation127_spill] sm:$0xff] }
 0x58c   : > { %v18850_v39 = vpop.f32.mrf.mxu1 }
 0x58d   : > { %v19174_v28 = vpop.f32.mrf.mxu0 }
 0x58e   : > { %v8455_v29 = vpop.f32.mrf.mxu1 }
 0x58f   : > { %v26174_v9 = vadd.f32 %v8455_v29, %v8293_v27  ;;  %v26176_v20 = vpop.f32.mrf.mxu0 }
 0x590   : > { %v18851_v40 = vpop.f32.mrf.mxu1 }
 0x591   : > { %v19175_v45 = vpop.f32.mrf.mxu0  ;;  %19209 = vmatmul.mubr.bf16.vlgmr.msra.gmra.mxu1 %v28016_v60 }
 0x592   : > { %v8460_v0 = vpop.f32.mrf.mxu1  ;;  %19265 = vmatpush3.bf16.msra.mxu1 %v20485_v8  ;;  %19212 = vmatprep.mubr.msk.bf16.mxu1 %vm21083_vm1, %v27615_v15  ;;  %v20487_v8 = vld [vmem:[%s27494_s3 + $0x5e8] sm:$0xff]  }
 0x593   : > { %v26184_v22 = vadd.f32 %v8460_v0, %v8294_v33  ;;  %v26186_v63 = vpop.f32.mrf.mxu0  ;;  %19266 = vmatprep.subr.bf16.mxu1 %v27615_v15  ;;  %v8296_v33 = vadd.f32 %v25597_v49, %v26105_v61  ;;  %v8297_v49 = vadd.f32 %v25613_v53, %v26117_v41  ;;  %v28018_v53 = vld [vmem:[#allocation128_spill] sm:$0xff] }
 0x594   : > { %v18854_v39 = vpop.f32.mrf.mxu1 }
 0x595   : > { %v19178_v26 = vpop.f32.mrf.mxu0 }
 0x596   : > { %v8463_v27 = vpop.f32.mrf.mxu1  ;;  %19267 = vmatpush3.bf16.msra.mxu1 %v20486_v47  ;;  %v20488_v47 = vld [vmem:[%s27494_s3 + $0x5e0] sm:$0xff]  }
 0x597   : > { %v26196_v28 = vadd.f32 %v8463_v27, %v8295_v25  ;;  %v26198_v29 = vpop.f32.mrf.mxu0  ;;  %19268 = vmatprep.subr.bf16.mxu1 %v27615_v15 }
 0x598   : > { %v18855_v40 = vpop.f32.mrf.mxu1 }
 0x599   : > { %v19179_v45 = vpop.f32.mrf.mxu0  ;;  %19213 = vmatmul.mubr.bf16.gmra.mxu1 %v28017_v3 }
 0x59a   : > { %v8468_v0 = vpop.f32.mrf.mxu1  ;;  %19216 = vmatprep.mubr.msk.bf16.mxu1 %vm21083_vm1, %v27615_v15  ;;  %19269 = vmatpush3.bf16.msra.mxu1 %v20487_v8  ;;  %v20489_v8 = vld [vmem:[%s27494_s3 + $0x5d8] sm:$0xff]  }
 0x59b   : > { %v26207_v44 = vadd.f32 %v8468_v0, %v8296_v33  ;;  %v26209_v60 = vpop.f32.mrf.mxu0  ;;  %19270 = vmatprep.subr.bf16.mxu1 %v27615_v15  ;;  %v8298_v33 = vadd.f32 %v25626_v13, %v26128_v54  ;;  %v8299_v13 = vadd.f32 %v25642_v11, %v26140_v21  ;;  %v28019_v11 = vld [vmem:[#allocation129_spill] sm:$0xff] }
 0x59c   : > { %v18858_v39 = vpop.f32.mrf.mxu1 }
 0x59d   : > { %v19182_v61 = vpop.f32.mrf.mxu0 }
 0x59e   : > { %v8471_v25 = vpop.f32.mrf.mxu1  ;;  %19271 = vmatpush3.bf16.msra.mxu1 %v20488_v47  ;;  %v20490_v47 = vld [vmem:[%s27494_s3 + $0x5d0] sm:$0xff]  }
 0x59f   : > { %v26219_v26 = vadd.f32 %v8471_v25, %v8297_v49  ;;  %v26221_v27 = vpop.f32.mrf.mxu0  ;;  %19272 = vmatprep.subr.bf16.mxu1 %v27615_v15 }
 0x5a0   : > { %v18859_v40 = vpop.f32.mrf.mxu1 }
 0x5a1   : > { %v19183_v45 = vpop.f32.mrf.mxu0  ;;  %19217 = vmatmul.mubr.bf16.gmra.mxu1 %v28018_v53 }
 0x5a2   : > { %v8476_v0 = vpop.f32.mrf.mxu1  ;;  %19220 = vmatprep.mubr.msk.bf16.mxu1 %vm21083_vm1, %v27615_v15  ;;  %19273 = vmatpush3.bf16.msra.mxu1 %v20489_v8  ;;  %v20491_v8 = vld [vmem:[%s27494_s3 + $0x5c8] sm:$0xff]  }
 0x5a3   : > { %v26230_v41 = vadd.f32 %v8476_v0, %v8298_v33  ;;  %v26232_v3 = vpop.f32.mrf.mxu0  ;;  %19274 = vmatprep.subr.bf16.mxu1 %v27615_v15  ;;  %v8300_v33 = vadd.f32 %v25655_v1, %v26151_v46 }
 0x5a4   : > { %v18862_v39 = vpop.f32.mrf.mxu1 }
 0x5a5   : > { %v19186_v54 = vpop.f32.mrf.mxu0 }
 0x5a6   : > { %v8479_v49 = vpop.f32.mrf.mxu1  ;;  %19275 = vmatpush3.bf16.msra.mxu1 %v20490_v47  ;;  %v20492_v47 = vld [vmem:[%s27494_s3 + $0x5c0] sm:$0xff]  }
 0x5a7   : > { %v26242_v61 = vadd.f32 %v8479_v49, %v8299_v13  ;;  %v26244_v25 = vpop.f32.mrf.mxu0  ;;  %19276 = vmatprep.subr.bf16.mxu1 %v27615_v15  ;;  %v10170_v13 = vshrl.u32 %v27974_v50, 16 }
 0x5a8   : > { %v18863_v40 = vpop.f32.mrf.mxu1 }
 0x5a9   : > { %v19187_v45 = vpop.f32.mrf.mxu0  ;;  %19221 = vmatmul.mubr.bf16.gmra.mxu1 %v28019_v11  ;;  %v28021_v40 = vld [vmem:[#allocation125_spill] sm:$0xff] }
 0x5aa   : > { %v8484_v0 = vpop.f32.mrf.mxu1  ;;  %19224 = vmatprep.mubr.msk.bf16.mxu1 %vm21083_vm1, %v27615_v15  ;;  %19277 = vmatpush3.bf16.msra.mxu1 %v20491_v8  ;;  %v28022_v45 = vmov 0   ;;  %v8653_v8 = vadd.f32 %v25679_v10, %v26166_v2  ;;  %v8655_v2 = vadd.f32 %v25709_v34, %v26184_v22  ;;  %v8657_v22 = vadd.f32 %v25748_v35, %v26207_v44 }
 0x5ab   : > { %v26253_v21 = vadd.f32 %v8484_v0, %v8300_v33  ;;  %v26255_v53 = vpop.f32.mrf.mxu0  ;;  %19278 = vmatprep.subr.bf16.mxu1 %v27615_v15  ;;  %v10172_v33 = vor.u32 %v10170_v13, %v28021_v40  ;;  %v8659_v44 = vadd.f32 %v25787_v55, %v26230_v41 }
 0x5ac   : > { %28020 = vst [vmem:[#allocation9_spill] sm:$0xff] %v26255_v53  ;;  %v18866_v39 = vpop.f32.mrf.mxu1 }
 0x5ad   : > { %v19190_v1 = vpop.f32.mrf.mxu0  ;;  %v8661_v41 = vadd.f32 %v25822_v7, %v26253_v21  ;;  %v28028_v21 = vld [vmem:[#allocation133_spill] sm:$0xff] }
 0x5ae   : > { %v8487_v46 = vpop.f32.mrf.mxu1  ;;  %19279 = vmatpush3.bf16.msra.mxu1 %v20492_v47  ;;  %v8654_v47 = vadd.f32 %v25693_v57, %v26174_v9  ;;  %v8656_v9 = vadd.f32 %v25731_v6, %v26196_v28  ;;  %v8658_v28 = vadd.f32 %v25770_v58, %v26219_v26  ;;  %v8660_v26 = vadd.f32 %v25807_v5, %v26242_v61 }
 0x5af   : > { %v10071_v54 = vpop.f32.mrf.mxu0  ;;  %10988 = vmatprep.subr.bf16.mxu1 %v28022_v45 }
 0x5b0   : > { %v18867_v49 = vpop.f32.mrf.mxu1 }
 0x5b1   : > { %v19191_v0 = vpop.f32.mrf.mxu0  ;;  %19225 = vmatmul.mubr.bf16.gmra.mxu1 %v10172_v33  ;;  %v28023_v33 = vld [vmem:[#allocation130_spill] sm:$0xff] }
 0x5b2   : > { %v8798_v11 = vpop.f32.mrf.mxu1  ;;  %19280 = vmatprep.mubr.msk.bf16.mxu1 %vm21083_vm1, %v27615_v15 }
 0x5b3   : > { %v26268_v39 = vadd.f32 %v8798_v11, %v8653_v8  ;;  %v26270_v53 = vpop.f32.mrf.mxu0 }
 0x5b4   : > { %v18922_v50 = vpop.f32.mrf.mxu1 }
 0x5b5   : > { %v19246_v1 = vpop.f32.mrf.mxu0 }
 0x5b6   : > { %v8801_v46 = vpop.f32.mrf.mxu1 }
 0x5b7   : > { %v26276_v13 = vadd.f32 %v8801_v46, %v8654_v47  ;;  %v26278_v54 = vpop.f32.mrf.mxu0 }
 0x5b8   : > { %v18923_v10 = vpop.f32.mrf.mxu1 }
 0x5b9   : > { %v19247_v49 = vpop.f32.mrf.mxu0  ;;  %19281 = vmatmul.mubr.bf16.vlgmr.msra.gmra.mxu1 %v28023_v33 }
 0x5ba   : > { %v8806_v40 = vpop.f32.mrf.mxu1  ;;  %19284 = vmatprep.mubr.msk.bf16.mxu1 %vm21083_vm1, %v27615_v15 }
 0x5bb   : > { %v26283_v8 = vadd.f32 %v8806_v40, %v8655_v2  ;;  %v26285_v0 = vpop.f32.mrf.mxu0  ;;  %v28024_v2 = vld [vmem:[#allocation131_spill] sm:$0xff] }
 0x5bc   : > { %v18926_v57 = vpop.f32.mrf.mxu1 }
 0x5bd   : > { %v19250_v11 = vpop.f32.mrf.mxu0 }
 0x5be   : > { %v8809_v50 = vpop.f32.mrf.mxu1 }
 0x5bf   : > { %v8839_v47 = vadd.f32 %v8809_v50, %v8656_v9  ;;  %v26291_v1 = vpop.f32.mrf.mxu0 }
 0x5c0   : > { %v18927_v34 = vpop.f32.mrf.mxu1 }
 0x5c1   : > { %v19251_v46 = vpop.f32.mrf.mxu0  ;;  %19285 = vmatmul.mubr.bf16.gmra.mxu1 %v28024_v2 }
 0x5c2   : > { %v8814_v10 = vpop.f32.mrf.mxu1  ;;  %19288 = vmatprep.mubr.msk.bf16.mxu1 %vm21083_vm1, %v27615_v15 }
 0x5c3   : > { %v8840_v49 = vadd.f32 %v8814_v10, %v8657_v22  ;;  %v26296_v40 = vpop.f32.mrf.mxu0  ;;  %v28025_v22 = vld [vmem:[#allocation132_spill] sm:$0xff] }
 0x5c4   : > { %v18930_v6 = vpop.f32.mrf.mxu1 }
 0x5c5   : > { %v19254_v33 = vpop.f32.mrf.mxu0 }
 0x5c6   : > { %v8817_v57 = vpop.f32.mrf.mxu1 }
 0x5c7   : > { %v8841_v9 = vadd.f32 %v8817_v57, %v8658_v28  ;;  %v26302_v11 = vpop.f32.mrf.mxu0 }
 0x5c8   : > { %v18931_v35 = vpop.f32.mrf.mxu1 }
 0x5c9   : > { %v19255_v50 = vpop.f32.mrf.mxu0  ;;  %19289 = vmatmul.mubr.bf16.gmra.mxu1 %v28025_v22 }
 0x5ca   : > { %v8822_v34 = vpop.f32.mrf.mxu1  ;;  %19292 = vmatprep.mubr.msk.bf16.mxu1 %vm21083_vm1, %v27615_v15 }
 0x5cb   : > { %v8842_v46 = vadd.f32 %v8822_v34, %v8659_v44  ;;  %v26307_v10 = vpop.f32.mrf.mxu0  ;;  %v28026_v44 = vld [vmem:[#allocation134_spill] sm:$0xff] }
 0x5cc   : > { %v18934_v58 = vpop.f32.mrf.mxu1 }
 0x5cd   : > { %v19258_v2 = vpop.f32.mrf.mxu0 }
 0x5ce   : > { %v8825_v6 = vpop.f32.mrf.mxu1  ;;  %v8991_v2 = vadd.f32 %v25843_v51, %v26268_v39  ;;  %v8993_v51 = vadd.f32 %v25865_v12, %v26283_v8 }
 0x5cf   : > { %v8843_v28 = vadd.f32 %v8825_v6, %v8660_v26  ;;  %v26313_v33 = vpop.f32.mrf.mxu0 }
 0x5d0   : > { %v18935_v55 = vpop.f32.mrf.mxu1 }
 0x5d1   : > { %v19259_v57 = vpop.f32.mrf.mxu0  ;;  %19293 = vmatmul.mubr.bf16.gmra.mxu1 %v28026_v44 }
 0x5d2   : > { %v8830_v35 = vpop.f32.mrf.mxu1  ;;  %19296 = vmatprep.mubr.msk.bf16.mxu1 %vm21083_vm1, %v27615_v15 }
 0x5d3   : > { %v8844_v50 = vadd.f32 %v8830_v35, %v8661_v41  ;;  %v26318_v34 = vpop.f32.mrf.mxu0  ;;  %v8992_v35 = vadd.f32 %v25854_v18, %v26276_v13 }
 0x5d4   : > { %28027 = vst [vmem:[#allocation18_spill] sm:$0xff] %v26318_v34  ;;  %v18938_v5 = vpop.f32.mrf.mxu1 }
 0x5d5   : > { %v19262_v61 = vpop.f32.mrf.mxu0 }
 0x5d6   : > { %v8833_v22 = vpop.f32.mrf.mxu1 }
 0x5d7   : > { %v10458_v58 = vpop.f32.mrf.mxu0 }
 0x5d8   : > { %v18939_v26 = vpop.f32.mrf.mxu1 }
 0x5d9   : > { %v19263_v6 = vpop.f32.mrf.mxu0  ;;  %19297 = vmatmul.mubr.bf16.gmra.mxu1 %v28028_v21 }
 0x5da   : > { %v9147_v7 = vpop.f32.mrf.mxu1 }
 0x5db   : > { %v9185_v55 = vadd.f32 %v9147_v7, %v8991_v2  ;;  %v26325_v57 = vpop.f32.mrf.mxu0  ;;  %v8994_v7 = vadd.f32 %v25880_v38, %v8839_v47 }
 0x5dc   : > { %v18994_v41 = vpop.f32.mrf.mxu1 }
 0x5dd   : > { %v19318_v44 = vpop.f32.mrf.mxu0 }
 0x5de   : > { %v9150_v5 = vpop.f32.mrf.mxu1  ;;  %v8995_v44 = vadd.f32 %v25892_v16, %v8840_v49 }
 0x5df   : > { %v9186_v61 = vadd.f32 %v9150_v5, %v8992_v35  ;;  %v26329_v22 = vpop.f32.mrf.mxu0 }
 0x5e0   : > { %v18995_v58 = vpop.f32.mrf.mxu1 }
 0x5e1   : > { %v19319_v39 = vpop.f32.mrf.mxu0 }
 0x5e2   : > { %v9155_v26 = vpop.f32.mrf.mxu1 }
 0x5e3   : > { %v9187_v6 = vadd.f32 %v9155_v26, %v8993_v51  ;;  %v26333_v21 = vpop.f32.mrf.mxu0  ;;  %v8996_v51 = vadd.f32 %v25907_v14, %v8841_v9 }
 0x5e4   : > { %v18998_v2 = vpop.f32.mrf.mxu1 }
 0x5e5   : > { %v19322_v41 = vpop.f32.mrf.mxu0 }
 0x5e6   : > { %v9158_v45 = vpop.f32.mrf.mxu1 }
 0x5e7   : > { %v9188_v18 = vadd.f32 %v9158_v45, %v8994_v7  ;;  %v26336_v13 = vpop.f32.mrf.mxu0  ;;  %v8997_v45 = vadd.f32 %v25919_v62, %v8842_v46 }
 0x5e8   : > { %v18999_v35 = vpop.f32.mrf.mxu1 }
 0x5e9   : > { %v19323_v5 = vpop.f32.mrf.mxu0 }
 0x5ea   : > { %v9163_v58 = vpop.f32.mrf.mxu1 }
 0x5eb   : > { %v9189_v34 = vadd.f32 %v9163_v58, %v8995_v44  ;;  %v26339_v12 = vpop.f32.mrf.mxu0  ;;  %v8998_v44 = vadd.f32 %v25934_v36, %v8843_v28  ;;  %v9383_v36 = vadd.f32 %v25962_v17, %v9185_v55  ;;  %v28032_v17 = vld [vmem:[#allocation43_spill] sm:$0xff] }
 0x5ec   : > { %v19002_v8 = vpop.f32.mrf.mxu1 }
 0x5ed   : > { %v19326_v39 = vpop.f32.mrf.mxu0  ;;  %v9387_v55 = vadd.f32 %v28032_v17, %v9189_v34 }
 0x5ee   : > { %v9166_v26 = vpop.f32.mrf.mxu1 }
 0x5ef   : > { %v9190_v2 = vadd.f32 %v9166_v26, %v8996_v51  ;;  %v26342_v38 = vpop.f32.mrf.mxu0  ;;  %v8999_v51 = vadd.f32 %v25946_v37, %v8844_v50 }
 0x5f0   : > { %v19003_v47 = vpop.f32.mrf.mxu1 }
 0x5f1   : > { %v19327_v7 = vpop.f32.mrf.mxu0 }
 0x5f2   : > { %v9171_v41 = vpop.f32.mrf.mxu1 }
 0x5f3   : > { %v9191_v35 = vadd.f32 %v9171_v41, %v8997_v45  ;;  %v26345_v16 = vpop.f32.mrf.mxu0 }
 0x5f4   : > { %v19006_v49 = vpop.f32.mrf.mxu1 }
 0x5f5   : > { %v19330_v5 = vpop.f32.mrf.mxu0 }
 0x5f6   : > { %v9174_v58 = vpop.f32.mrf.mxu1 }
 0x5f7   : > { %v9192_v8 = vadd.f32 %v9174_v58, %v8998_v44  ;;  %v26348_v14 = vpop.f32.mrf.mxu0 }
 0x5f8   : > { %28029 = vst [vmem:[#allocation45_spill] sm:$0xff] %v26348_v14  ;;  %v19007_v9 = vpop.f32.mrf.mxu1 }
 0x5f9   : > { %v19331_v39 = vpop.f32.mrf.mxu0  ;;  %v9384_v9 = vadd.f32 %v25972_v42, %v9186_v61 }
 0x5fa   : > { %v9179_v26 = vpop.f32.mrf.mxu1 }
 0x5fb   : > { %v9193_v47 = vadd.f32 %v9179_v26, %v8999_v51  ;;  %v26351_v62 = vpop.f32.mrf.mxu0  ;;  %v9385_v51 = vadd.f32 %v25982_v30, %v9187_v6 }
 0x5fc   : > { %28030 = vst [vmem:[#allocation11_spill] sm:$0xff] %v26351_v62  ;;  %v19010_v46 = vpop.f32.mrf.mxu1 }
 0x5fd   : > { %v19334_v45 = vpop.f32.mrf.mxu0 }
 0x5fe   : > { %v9182_v7 = vpop.f32.mrf.mxu1  ;;  %v28031_v45 = vld [vmem:[#allocation61_spill] sm:$0xff] }
 0x5ff   : > { %v10804_v41 = vpop.f32.mrf.mxu0  ;;  %v9386_v7 = vadd.f32 %v28031_v45, %v9188_v18  ;;  %v9390_v18 = vadd.f32 %v26040_v4, %v9192_v8 }
 0x600   : > { %v19011_v49 = vpop.f32.mrf.mxu1 }
 0x601   : > { %v19335_v28 = vpop.f32.mrf.mxu0 }
 0x602   : > { %v9508_v5 = vpop.f32.mrf.mxu1 }
 0x603   : > { %v9546_v44 = vadd.f32 %v9508_v5, %v9383_v36 }
 0x604   : > { %v19066_v58 = vpop.f32.mrf.mxu1 }
 0x605   : > { %v28033_v58 = vld [vmem:[#allocation66_spill] sm:$0xff] }
 0x606   : > { %v9511_v14 = vpop.f32.mrf.mxu1  ;;  %v9388_v42 = vadd.f32 %v28033_v58, %v9190_v2 }
 0x607   : > { %v9547_v37 = vadd.f32 %v9511_v14, %v9384_v9 }
 0x608   : > { %v19067_v50 = vpop.f32.mrf.mxu1 }
 0x609   : > { %v28034_v50 = vld [vmem:[#allocation12_spill] sm:$0xff] }
 0x60a   : > { %v9516_v39 = vpop.f32.mrf.mxu1  ;;  %v9389_v30 = vadd.f32 %v28034_v50, %v9191_v35 }
 0x60b   : > { %v9548_v26 = vadd.f32 %v9516_v39, %v9385_v51 }
 0x60c   : > { %v19070_v46 = vpop.f32.mrf.mxu1 }
 0x60d   : > { %v9731_v50 = vadd.f32 %v26084_v48, %v9548_v26 }
 0x60e   : > { %v9519_v41 = vpop.f32.mrf.mxu1 }
 0x60f   : > { %v9549_v49 = vadd.f32 %v9519_v41, %v9386_v7  ;;  %v28035_v7 = vld [vmem:[#allocation44_spill] sm:$0xff] }
 0x610   : > { %v19071_v62 = vpop.f32.mrf.mxu1  ;;  %v9391_v34 = vadd.f32 %v28035_v7, %v9193_v47 }
 0x612   : > { %v9524_v28 = vpop.f32.mrf.mxu1 }
 0x613   : > { %v9550_v36 = vadd.f32 %v9524_v28, %v9387_v55 }
 0x614   : > { %v19074_v5 = vpop.f32.mrf.mxu1 }
 0x615   : > { %v9729_v5 = vadd.f32 %v26066_v52, %v9546_v44 }
 0x616   : > { %v9527_v61 = vpop.f32.mrf.mxu1 }
 0x617   : > { %v9551_v14 = vadd.f32 %v9527_v61, %v9388_v42  ;;  %v9730_v61 = vadd.f32 %v26074_v19, %v9547_v37 }
 0x618   : > { %v19075_v9 = vpop.f32.mrf.mxu1 }
 0x619   : > { %v9734_v7 = vadd.f32 %v26119_v23, %v9551_v14 }
 0x61a   : > { %v9532_v6 = vpop.f32.mrf.mxu1 }
 0x61b   : > { %v9552_v51 = vadd.f32 %v9532_v6, %v9389_v30 }
 0x61c   : > { %v19078_v39 = vpop.f32.mrf.mxu1 }
 0x61d   : > { %v9732_v39 = vadd.f32 %v26096_v31, %v9549_v49 }
 0x61e   : > { %v9535_v46 = vpop.f32.mrf.mxu1 }
 0x61f   : > { %v9553_v45 = vadd.f32 %v9535_v46, %v9390_v18  ;;  %v9733_v46 = vadd.f32 %v26107_v56, %v9550_v36 }
 0x620   : > { %v19079_v62 = vpop.f32.mrf.mxu1 }
 0x622   : > { %v9540_v41 = vpop.f32.mrf.mxu1 }
 0x623   : > { %v9554_v17 = vadd.f32 %v9540_v41, %v9391_v34  ;;  %v9735_v41 = vadd.f32 %v26130_v59, %v9552_v51  ;;  %v20504_v59 = vld [vmem:[%s27498_s7 + $0x4] ss:$8 sps:$4 sm:$0xff]  }
 0x624   : > { %v19082_v55 = vpop.f32.mrf.mxu1  ;;  %15678 = vmatprep.mubr.msk.bf16.mxu1 %vm10981_vm9, %v20504_v59 }
 0x626   : > { %v9543_v28 = vpop.f32.mrf.mxu1 }
 0x627   : > { %v9736_v28 = vadd.f32 %v26142_v24, %v9553_v45 }
 0x628   : > { %v19083_v2 = vpop.f32.mrf.mxu1 }
 0x62a   : > { %v9854_v58 = vpop.f32.mrf.mxu1 }
 0x62b   : > { %v26363_v42 = vadd.f32 %v9854_v58, %v9729_v5  ;;  %v9737_v5 = vadd.f32 %v26153_v43, %v9554_v17  ;;  %v20510_v43 = vld [vmem:[%s27496_s5 + $0x78] sm:$0xff]  }
 0x62c   : > { %v19138_v35 = vpop.f32.mrf.mxu1  ;;  %19337 = vmatpush3.bf16.msra.mxu0 %v20510_v43 }
 0x62d   : > { %19338 = vmatprep.subr.bf16.mxu0 %v27615_v15 }
 0x62e   : > { %v9857_v9 = vpop.f32.mrf.mxu1 }
 0x62f   : > { %v26366_v4 = vadd.f32 %v9857_v9, %v9730_v61 }
 0x630   : > { %v19139_v8 = vpop.f32.mrf.mxu1 }
 0x632   : > { %v9862_v47 = vpop.f32.mrf.mxu1 }
 0x633   : > { %v26369_v30 = vadd.f32 %v9862_v47, %v9731_v50  ;;  %v20512_v47 = vld [vmem:[%s27496_s5 + $0x70] sm:$0xff]  }
 0x634   : > { %v19142_v6 = vpop.f32.mrf.mxu1  ;;  %19339 = vmatpush3.bf16.msra.mxu0 %v20512_v47 }
 0x635   : > { %19340 = vmatprep.subr.bf16.mxu0 %v27615_v15 }
 0x636   : > { %v9865_v18 = vpop.f32.mrf.mxu1 }
 0x637   : > { %v26372_v52 = vadd.f32 %v9865_v18, %v9732_v39  ;;  %v20514_v18 = vld [vmem:[%s27496_s5 + $0x68] sm:$0xff]  }
 0x638   : > { %v19143_v44 = vpop.f32.mrf.mxu1  ;;  %19341 = vmatpush3.bf16.msra.mxu0 %v20514_v18 }
 0x639   : > { %19342 = vmatprep.subr.bf16.mxu0 %v27615_v15 }
 0x63a   : > { %v9870_v62 = vpop.f32.mrf.mxu1 }
 0x63b   : > { %v26375_v19 = vadd.f32 %v9870_v62, %v9733_v46 }
 0x63c   : > { %v19146_v37 = vpop.f32.mrf.mxu1 }
 0x63e   : > { %v9873_v34 = vpop.f32.mrf.mxu1 }
 0x63f   : > { %v26378_v48 = vadd.f32 %v9873_v34, %v9734_v7 }
 0x640   : > { %v19147_v26 = vpop.f32.mrf.mxu1 }
 0x642   : > { %v9878_v55 = vpop.f32.mrf.mxu1 }
 0x643   : > { %v26381_v31 = vadd.f32 %v9878_v55, %v9735_v41  ;;  %v10074_v55 = vadd.f32 %v26168_v32, %v26363_v42 }
 0x644   : > { %v19150_v49 = vpop.f32.mrf.mxu1 }
 0x646   : > { %v9881_v2 = vpop.f32.mrf.mxu1 }
 0x647   : > { %v26384_v56 = vadd.f32 %v9881_v2, %v9736_v28 }
 0x648   : > { %v19151_v36 = vpop.f32.mrf.mxu1 }
 0x649   : > { %v10075_v36 = vadd.f32 %v26176_v20, %v26366_v4 }
 0x64a   : > { %v9886_v58 = vpop.f32.mrf.mxu1 }
 0x64b   : > { %v26387_v23 = vadd.f32 %v9886_v58, %v9737_v5 }
 0x64c   : > { %v19154_v14 = vpop.f32.mrf.mxu1 }
 0x64e   : > { %v9889_v35 = vpop.f32.mrf.mxu1 }
 0x650   : > { %v19155_v61 = vpop.f32.mrf.mxu1 }
 0x651   : > { %v10076_v61 = vadd.f32 %v26186_v63, %v26369_v30 }
 0x652   : > { %v10260_v9 = vpop.f32.mrf.mxu1 }
 0x653   : > { %v10298_v28 = vadd.f32 %v10260_v9, %v10074_v55 }
 0x654   : > { %v19210_v51 = vpop.f32.mrf.mxu1 }
 0x655   : > { %v10461_v14 = vadd.f32 %v26270_v53, %v10298_v28  ;;  %v26417_v51 = vld [vmem:[%s27495_s4] ss:$0 sm:$0xff]  ;;  %v10077_v53 = vadd.f32 %v26198_v29, %v26372_v52 }
 0x656   : > { %v10263_v24 = vpop.f32.mrf.mxu1 }
 0x657   : > { %v10299_v58 = vadd.f32 %v10263_v24, %v10075_v36 }
 0x658   : > { %v19211_v45 = vpop.f32.mrf.mxu1 }
 0x659   : > { %v10462_v20 = vadd.f32 %v26278_v54, %v10299_v58 }
 0x65a   : > { %v10268_v8 = vpop.f32.mrf.mxu1 }
 0x65b   : > { %v10300_v42 = vadd.f32 %v10268_v8, %v10076_v61 }
 0x65c   : > { %v19214_v50 = vpop.f32.mrf.mxu1 }
 0x65d   : > { %v10463_v43 = vadd.f32 %v26285_v0, %v10300_v42 }
 0x65e   : > { %v10271_v17 = vpop.f32.mrf.mxu1 }
 0x65f   : > { %v10301_v30 = vadd.f32 %v10271_v17, %v10077_v53  ;;  %v10079_v17 = vadd.f32 %v26221_v27, %v26378_v48  ;;  %v28038_v53 = vld [vmem:[#allocation18_spill] sm:$0xff] }
 0x660   : > { %v19215_v6 = vpop.f32.mrf.mxu1 }
 0x661   : > { %v10464_v52 = vadd.f32 %v26291_v1, %v10301_v30  ;;  %v28039_v30 = vld [vmem:[#allocation11_spill] sm:$0xff] }
 0x662   : > { %v10276_v39 = vpop.f32.mrf.mxu1 }
 0x664   : > { %v19218_v44 = vpop.f32.mrf.mxu1 }
 0x666   : > { %v10279_v46 = vpop.f32.mrf.mxu1 }
 0x668   : > { %v19219_v62 = vpop.f32.mrf.mxu1 }
 0x66a   : > { %v10284_v37 = vpop.f32.mrf.mxu1 }
 0x66c   : > { %v19222_v7 = vpop.f32.mrf.mxu1 }
 0x66d   : > { %v10303_v7 = vadd.f32 %v10279_v46, %v10079_v17 }
 0x66e   : > { %v10287_v34 = vpop.f32.mrf.mxu1 }
 0x670   : > { %v19223_v26 = vpop.f32.mrf.mxu1 }
 0x672   : > { %v26405_v41 = vpop.f32.mrf.mxu1 }
 0x674   : > { %v19226_v49 = vpop.f32.mrf.mxu1 }
 0x675   : > { %v10466_v49 = vadd.f32 %v26302_v11, %v10303_v7  ;;  %v28036_v11 = vld [vmem:[#allocation9_spill] sm:$0xff] }
 0x676   : > { %v10295_v2 = vpop.f32.mrf.mxu1  ;;  %v10082_v58 = vadd.f32 %v28036_v11, %v26387_v23  ;;  %v28037_v23 = vld [vmem:[#allocation45_spill] sm:$0xff] }
 0x678   : > { %v19227_v5 = vpop.f32.mrf.mxu1  ;;  %v10306_v61 = vadd.f32 %v26405_v41, %v10082_v58 }
 0x67a   : > { %v10606_v35 = vpop.f32.mrf.mxu1 }
 0x67b   : > { %v10644_v59 = vadd.f32 %v10606_v35, %v10461_v14 }
 0x67c   : > { %v19282_v32 = vpop.f32.mrf.mxu1 }
 0x67d   : > { %v10807_v9 = vadd.f32 %v26325_v57, %v10644_v59  ;;  %v10078_v57 = vadd.f32 %v26209_v60, %v26375_v19 }
 0x67e   : > { %v10609_v4 = vpop.f32.mrf.mxu1 }
 0x67f   : > { %v10823_v24 = vadd.f32 %v26417_v51, %v10807_v9  ;;  %v10645_v45 = vadd.f32 %v10609_v4, %v10462_v20  ;;  %v10302_v18 = vadd.f32 %v10276_v39, %v10078_v57 }
 0x680   : > { %v19283_v63 = vpop.f32.mrf.mxu1 }
 0x681   : > { %20963 = vtanh.f32 %v10823_v24  ;;  %v10808_v50 = vadd.f32 %v26329_v22, %v10645_v45  ;;  %v10465_v19 = vadd.f32 %v26296_v40, %v10302_v18  ;;  %v10469_v24 = vadd.f32 %v28038_v53, %v10306_v61 }
 0x682   : > { %v10614_v47 = vpop.f32.mrf.mxu1 }
 0x683   : > { %v10646_v8 = vadd.f32 %v10614_v47, %v10463_v43  ;;  %v10824_v54 = vadd.f32 %v26417_v51, %v10808_v50 }
 0x684   : > { %v19286_v6 = vpop.f32.mrf.mxu1 }
 0x685   : > { %v10809_v29 = vadd.f32 %v26333_v21, %v10646_v8  ;;  %20965 = vtanh.f32 %v10824_v54  ;;  %v10080_v21 = vadd.f32 %v26232_v3, %v26381_v31 }
 0x686   : > { %v10617_v44 = vpop.f32.mrf.mxu1 }
 0x687   : > { %v10825_v22 = vadd.f32 %v26417_v51, %v10809_v29  ;;  %v10647_v0 = vadd.f32 %v10617_v44, %v10464_v52  ;;  %v10304_v27 = vadd.f32 %v10284_v37, %v10080_v21  ;;  %v20500_v21 = vld [vmem:[#allocation3] sm:$0xff]  }
 0x688   : > { %v19287_v62 = vpop.f32.mrf.mxu1 }
 0x689   : > { %20967 = vtanh.f32 %v10825_v22  ;;  %v10810_v60 = vadd.f32 %v26336_v13, %v10647_v0  ;;  %v10081_v13 = vadd.f32 %v26244_v25, %v26384_v56  ;;  %v28040_v0 = vmov 0  }
 0x68a   : > { %v10622_v39 = vpop.f32.mrf.mxu1 }
 0x68b   : > { %v10648_v1 = vadd.f32 %v10622_v39, %v10465_v19  ;;  %v10826_v26 = vadd.f32 %v26417_v51, %v10810_v60  ;;  %v10305_v31 = vadd.f32 %v10287_v34, %v10081_v13  ;;  %v20497_v60 = vld [vmem:[#allocation3 + $0x18] sm:$0xff]   ;;  %v20498_v19 = vld [vmem:[#allocation3 + $0x10] sm:$0xff]   ;;  %v20499_v39 = vld [vmem:[#allocation3 + $0x8] sm:$0xff]  }
 0x68c   : > { %v19290_v55 = vpop.f32.mrf.mxu1  ;;  %v20515_v13 = vld [vmem:[%s27496_s5 + $0x18] sm:$0xff]  }
 0x68d   : > { %v10811_v48 = vadd.f32 %v26339_v12, %v10648_v1  ;;  %20969 = vtanh.f32 %v10826_v26  ;;  %v10467_v12 = vadd.f32 %v26307_v10, %v10304_v27  ;;  %v10468_v34 = vadd.f32 %v26313_v33, %v10305_v31  ;;  %v20502_v26 = vld [vmem:[%s27498_s7] ss:$8 sps:$4 sm:$0xff]   ;;  %v20505_v55 = vld [vmem:[%s27498_s7 + $0x14] ss:$8 sps:$4 sm:$0xff]  }
 0x68e   : > { %v20964_v28 = vpop.eup %20963  ;;  %v10625_v46 = vpop.f32.mrf.mxu1  ;;  %v20508_v27 = vld [vmem:[%s27496_s5 + $0x38] sm:$0xff]   ;;  %v20520_v31 = vld [vmem:[%s27496_s5 + $0x50] sm:$0xff]  }
 0x68f   : > { %v16345_v2 = vpack.c.bf16 %v20964_v28, %v20964_v28  ;;  %v10827_v40 = vadd.f32 %v26417_v51, %v10811_v48  ;;  %v10649_v36 = vadd.f32 %v10625_v46, %v10466_v49  ;;  %v20509_v48 = vld [vmem:[%s27496_s5 + $0x30] sm:$0xff]   ;;  %v20511_v28 = vld [vmem:[%s27496_s5 + $0x28] sm:$0xff]   ;;  %v20513_v46 = vld [vmem:[%s27496_s5 + $0x20] sm:$0xff]  }
 0x690   : > { %v19291_v3 = vpop.f32.mrf.mxu1  ;;  %v20507_v49 = vld [vmem:[%s27498_s7 + $0x10] ss:$8 sps:$4 sm:$0xff]  }
 0x691   : > { %10878 = vst [vmem:[#allocation3 + $0x24] sm:$0xf] %v16345_v2  ;;  %20971 = vtanh.f32 %v10827_v40  ;;  %v10812_v37 = vadd.f32 %v26342_v38, %v10649_v36  ;;  %v20516_v2 = vld [vmem:[%s27496_s5 + $0x60] sm:$0xff]   ;;  %v20517_v40 = vld [vmem:[%s27496_s5 + $0x10] sm:$0xff]   ;;  %v20518_v36 = vld [vmem:[%s27496_s5 + $0x58] sm:$0xff]  }
 0x692   : > { %v10630_v5 = vpop.f32.mrf.mxu1  ;;  %v20966_v35 = vpop.eup %20965  ;;  %19343 = vmatpush3.bf16.msra.mxu0 %v20516_v2  ;;  %v20519_v3 = vld [vmem:[%s27496_s5 + $0x8] sm:$0xff]  }
 0x693   : > { %v10650_v14 = vadd.f32 %v10630_v5, %v10467_v12  ;;  %v10828_v25 = vadd.f32 %v26417_v51, %v10812_v37  ;;  %19344 = vmatprep.subr.bf16.mxu0 %v27615_v15  ;;  %v20521_v37 = vld [vmem:[%s27496_s5] sm:$0xff]   ;;  %v20522_v12 = vld [vmem:[%s27496_s5 + $0x48] sm:$0xff]  }
 0x694   : > { %v19294_v56 = vpop.f32.mrf.mxu1  ;;  %v20527_v5 = vld [vmem:[%s27496_s5 + $0x40] sm:$0xff]  }
 0x695   : > { %v10813_v59 = vadd.f32 %v26345_v16, %v10650_v14  ;;  %20973 = vtanh.f32 %v10828_v25 }
 0x696   : > { %v20968_v32 = vpop.eup %20967  ;;  %v10633_v42 = vpop.f32.mrf.mxu1  ;;  %19345 = vmatpush3.bf16.msra.mxu0 %v20518_v36  ;;  %v20554_v36 = vld [vmem:[%s27496_s5 + $0x148] sm:$0xff]  }
 0x697   : > { %v16441_v38 = vpack.c.bf16 %v20968_v32, %v20966_v35  ;;  %v10829_v10 = vadd.f32 %v26417_v51, %v10813_v59  ;;  %v10651_v9 = vadd.f32 %v10633_v42, %v10468_v34  ;;  %19346 = vmatprep.subr.bf16.mxu0 %v27615_v15  ;;  %v20526_v34 = vld [vmem:[%s27496_s5 + $0xf8] sm:$0xff]  }
 0x698   : > { %v19295_v20 = vpop.f32.mrf.mxu1  ;;  %v20496_v7 = vld [vmem:[#allocation3 + $0x20] sm:$0xff]  }
 0x699   : > { %16482 = vst [vmem:[#allocation3 + $0x28] sm:$0xff] %v16441_v38   ;;  %20975 = vtanh.f32 %v10829_v10  ;;  %v10814_v4 = vadd.f32 %v28037_v23, %v10651_v9  ;;  %v20528_v20 = vld [vmem:[%s27496_s5 + $0xf0] sm:$0xff]  }
 0x69a   : > { %v10638_v45 = vpop.f32.mrf.mxu1  ;;  %v20970_v33 = vpop.eup %20969  ;;  %19347 = vmatpush3.bf16.msra.mxu0 %v20520_v31 }
 0x69b   : > { %v10652_v41 = vadd.f32 %v10638_v45, %v10469_v24  ;;  %v10830_v16 = vadd.f32 %v26417_v51, %v10814_v4  ;;  %19348 = vmatprep.subr.bf16.mxu0 %v27615_v15  ;;  %v20529_v24 = vld [vmem:[%s27496_s5 + $0xb8] sm:$0xff]   ;;  %v20530_v45 = vld [vmem:[%s27496_s5 + $0xe8] sm:$0xff]  }
 0x69c   : > { %v19298_v63 = vpop.f32.mrf.mxu1 }
 0x69d   : > { %v10815_v50 = vadd.f32 %v28039_v30, %v10652_v41  ;;  %20977 = vtanh.f32 %v10830_v16  ;;  %v20531_v16 = vld [vmem:[%s27496_s5 + $0xb0] sm:$0xff]   ;;  %v20532_v63 = vld [vmem:[%s27496_s5 + $0xe0] sm:$0xff]   ;;  %v20534_v30 = vld [vmem:[%s27496_s5 + $0xd8] sm:$0xff]  }
 0x69e   : > { %v20972_v43 = vpop.eup %20971  ;;  %v10641_v47 = vpop.f32.mrf.mxu1  ;;  %19349 = vmatpush3.bf16.msra.mxu0 %v20522_v12  ;;  %v20556_v12 = vld [vmem:[%s27496_s5 + $0x140] sm:$0xff]  }
 0x69f   : > { %v16446_v57 = vpack.c.bf16 %v20972_v43, %v20970_v33  ;;  %v10831_v8 = vadd.f32 %v26417_v51, %v10815_v50  ;;  %19350 = vmatprep.subr.bf16.mxu0 %v27615_v15  ;;  %v20533_v33 = vld [vmem:[%s27496_s5 + $0xa8] sm:$0xff]   ;;  %v20535_v47 = vld [vmem:[%s27496_s5 + $0xa0] sm:$0xff]  }
 0x6a0   : > { %v19299_v54 = vpop.f32.mrf.mxu1  ;;  %v20495_v51 = vld [vmem:[#allocation3 + $0x28] sm:$0xff]  }
 0x6a1   : > { %16483 = vst [vmem:[#allocation3 + $0x30] sm:$0xff] %v16446_v57   ;;  %20979 = vtanh.f32 %v10831_v8  ;;  %v20536_v57 = vld [vmem:[%s27496_s5 + $0xd0] sm:$0xff]   ;;  %v20537_v54 = vld [vmem:[%s27496_s5 + $0x98] sm:$0xff]  }
 0x6a2   : > { %v20974_v6 = vpop.eup %20973  ;;  %19351 = vmatpush3.bf16.msra.mxu0 %v20527_v5 }
 0x6a3   : > { %19376 = vmatprep.subr.bf16.mxu0 %v27615_v15 }
 0x6a6   : > { %v20976_v18 = vpop.eup %20975 }
 0x6a7   : > { %v16451_v29 = vpack.c.bf16 %v20976_v18, %v20974_v6  ;;  %v20538_v6 = vld [vmem:[%s27496_s5 + $0xc8] sm:$0xff]  }
 0x6a8   : > { %v20494_v62 = vld [vmem:[#allocation3 + $0x30] sm:$0xff]  }
 0x6a9   : > { %16484 = vst [vmem:[#allocation3 + $0x38] sm:$0xff] %v16451_v29  }
 0x6aa   : > { %v20978_v52 = vpop.eup %20977 }
 0x6ae   : > { %v20980_v44 = vpop.eup %20979 }
 0x6af   : > { %v16456_v17 = vpack.c.bf16 %v20980_v44, %v20978_v52  ;;  %v20539_v52 = vld [vmem:[%s27496_s5 + $0x90] sm:$0xff]   ;;  %v20540_v44 = vld [vmem:[%s27496_s5 + $0xc0] sm:$0xff]  }
 0x6b0   : > { %v20493_v22 = vld [vmem:[#allocation3 + $0x38] sm:$0xff]  }
 0x6b1   : > { %16485 = vst [vmem:[#allocation3 + $0x40] sm:$0xff] %v16456_v17   ;;  %10989 = vmatpush1.bf16.msra.mxu1 %v20493_v22 }
 0x6b2   : > { %10990 = vmatprep.subr.bf16.mxu1 %v28040_v0 }
 0x6b5   : > { %10991 = vmatpush1.bf16.msra.mxu1 %v20494_v62  ;;  %v20542_v62 = vld [vmem:[%s27496_s5 + $0x178] sm:$0xff]  }
 0x6b6   : > { %10992 = vmatprep.subr.bf16.mxu1 %v28040_v0 }
 0x6b8   : > { %v20501_v1 = vld [vmem:[#allocation3 + $0x40] sm:$0xff]  }
 0x6b9   : > { %10993 = vmatpush1.bf16.msra.mxu1 %v20495_v51 }
 0x6ba   : > { %10994 = vmatprep.subr.bf16.mxu1 %v28040_v0 }
 0x6bd   : > { %10995 = vmatpush1.bf16.msra.mxu1 %v20496_v7  ;;  %v20543_v7 = vld [vmem:[%s27496_s5 + $0x80] sm:$0xff]  }
 0x6be   : > { %10996 = vmatprep.subr.bf16.mxu1 %v28040_v0 }
 0x6c1   : > { %10997 = vmatpush1.bf16.msra.mxu1 %v20497_v60  ;;  %v20544_v60 = vld [vmem:[%s27496_s5 + $0x170] sm:$0xff]  }
 0x6c2   : > { %10998 = vmatprep.subr.bf16.mxu1 %v28040_v0 }
 0x6c5   : > { %10999 = vmatpush1.bf16.msra.mxu1 %v20498_v19 }
 0x6c6   : > { %11000 = vmatprep.subr.bf16.mxu1 %v28040_v0 }
 0x6c9   : > { %11001 = vmatpush1.bf16.msra.mxu1 %v20499_v39  ;;  %v20545_v39 = vld [vmem:[%s27496_s5 + $0x138] sm:$0xff]  }
 0x6ca   : > { %11002 = vmatprep.subr.bf16.mxu1 %v28040_v0 }
 0x6cd   : > { %11003 = vmatpush1.bf16.msra.mxu1 %v20500_v21  ;;  %v20546_v21 = vld [vmem:[%s27496_s5 + $0x168] sm:$0xff]  }
 0x6ce   : > { %11018 = vmatprep.subr.bf16.mxu1 %v28040_v0  ;;  %v20541_v0 = vld [vmem:[%s27496_s5 + $0x88] sm:$0xff]  }
 0x6d1   : > { %11019 = vmatpush2.bf16.msra.mxu1 %v20501_v1 }
 0x6d2   : > { %19356 = vmatprep.subr.bf16.mxu1 %v27615_v15 }
 0x6d4   : > { %11021 = vmatmul.mubr.bf16.vlgmr.msra.gmra.mxu1 %v20502_v26  ;;  %v20547_v26 = vld [vmem:[%s27496_s5 + $0x130] sm:$0xff]  }
 0x6d5   : > { %15679 = vmatprep.mubr.msk.bf16.mxu1 %vm10981_vm9, %v20505_v55  ;;  %19357 = vmatpush3.bf16.msra.mxu1 %v20508_v27  ;;  %v20548_v55 = vld [vmem:[%s27496_s5 + $0x160] sm:$0xff]   ;;  %v20549_v27 = vld [vmem:[%s27496_s5 + $0x128] sm:$0xff]  }
 0x6d6   : > { %19358 = vmatprep.subr.bf16.mxu1 %v27615_v15 }
 0x6d9   : > { %19359 = vmatpush3.bf16.msra.mxu1 %v20509_v48  ;;  %v20550_v48 = vld [vmem:[%s27496_s5 + $0x158] sm:$0xff]  }
 0x6da   : > { %19360 = vmatprep.subr.bf16.mxu1 %v27615_v15 }
 0x6dc   : > { %11029 = vmatmul.mubr.bf16.gmra.mxu1 %v20507_v49 }
 0x6dd   : > { %19361 = vmatpush3.bf16.msra.mxu1 %v20511_v28  ;;  %19372 = vmatprep.mubr.msk.bf16.mxu1 %vm21083_vm1, %v27615_v15 }
 0x6de   : > { %19362 = vmatprep.subr.bf16.mxu1 %v27615_v15 }
 0x6e1   : > { %19363 = vmatpush3.bf16.msra.mxu1 %v20513_v46  ;;  %v20551_v46 = vld [vmem:[%s27496_s5 + $0x120] sm:$0xff]  }
 0x6e2   : > { %19364 = vmatprep.subr.bf16.mxu1 %v27615_v15 }
 0x6e5   : > { %19365 = vmatpush3.bf16.msra.mxu1 %v20515_v13  ;;  %v20552_v13 = vld [vmem:[%s27496_s5 + $0x150] sm:$0xff]  }
 0x6e6   : > { %19366 = vmatprep.subr.bf16.mxu1 %v27615_v15 }
 0x6e9   : > { %19367 = vmatpush3.bf16.msra.mxu1 %v20517_v40  ;;  %v20553_v40 = vld [vmem:[%s27496_s5 + $0x118] sm:$0xff]  }
 0x6ea   : > { %19368 = vmatprep.subr.bf16.mxu1 %v27615_v15 }
 0x6ed   : > { %19369 = vmatpush3.bf16.msra.mxu1 %v20519_v3 }
 0x6ee   : > { %19370 = vmatprep.subr.bf16.mxu1 %v27615_v15 }
 0x6f1   : > { %19371 = vmatpush3.bf16.msra.mxu1 %v20521_v37  ;;  %v20555_v37 = vld [vmem:[%s27496_s5 + $0x110] sm:$0xff]  }
 0x6f2   : > { %19396 = vmatprep.subr.bf16.mxu1 %v27615_v15 }
 0x794   : > { %v11022_v11 = vpop.f32.mrf.mxu1 }
 0x796   : > { %v11024_v58 = vpop.f32.mrf.mxu1 }
 0x797   : > { %v20558_v58 = vld [vmem:[%s27496_s5 + $0x108] sm:$0xff]  }
 0x798   : > { %v11025_v14 = vpop.f32.mrf.mxu1 }
 0x799   : > { %v16461_v25 = vpack.c.bf16 %v11025_v14, %v11022_v11  ;;  %v20559_v14 = vld [vmem:[%s27496_s5 + $0x1f8] sm:$0xff]  }
 0x79a   : > { %v11027_v56 = vpop.f32.mrf.mxu1 }
 0x79b   : > { %16462 = vst [vmem:[#allocation4] sm:$0xff] %v16461_v25   ;;  %v20560_v56 = vld [vmem:[%s27496_s5 + $0x100] sm:$0xff]  }
 0x79c   : > { %v11030_v35 = vpop.f32.mrf.mxu1 }
 0x79e   : > { %v11032_v61 = vpop.f32.mrf.mxu1 }
 0x7a0   : > { %v11033_v59 = vpop.f32.mrf.mxu1 }
 0x7a1   : > { %v16466_v32 = vpack.c.bf16 %v11033_v59, %v11030_v35  ;;  %v20561_v35 = vld [vmem:[%s27496_s5 + $0x1f0] sm:$0xff]   ;;  %v20563_v59 = vld [vmem:[%s27496_s5 + $0x1b8] sm:$0xff]  }
 0x7a2   : > { %v11057_v42 = vld [vmem:[#allocation4] sm:$0xf]  ;;  %v26534_v38 = vld [vmem:[#allocation4 + $0x4] sm:$0x1]  ;;  %v11035_v10 = vpop.f32.mrf.mxu1 }
 0x7a3   : > { %16486 = vst [vmem:[#allocation4 + $0x8] sm:$0xff] %v16466_v32   ;;  %v15700_v9 = vcombine.low %v11057_v42, %v26534_v38  ;;  %19373 = vmatmul.mubr.bf16.vlgmr.msra.gmra.mxu1 %v11057_v42  ;;  %v11281_v50 = vld [vmem:[#allocation4] sm:$0xe]  ;;  %v26568_v43 = vld [vmem:[#allocation4 + $0x4] sm:$0x3]  ;;  %v20567_v10 = vld [vmem:[%s27496_s5 + $0x1a8] sm:$0xff]  }
 0x7a4   : > { %19397 = vmatpush3.bf16.msra.mxu1 %v20526_v34  ;;  %19412 = vmatprep.mubr.msk.bf16.mxu1 %vm21083_vm1, %v27615_v15  ;;  %v15758_v8 = vcombine.low %v11281_v50, %v26568_v43  ;;  %v15733_v19 = vcombine.low %v11281_v50, %v26534_v38  ;;  %v11512_v49 = vld [vmem:[#allocation4] sm:$0xc]  ;;  %v26640_v28 = vld [vmem:[#allocation4 + $0x4] sm:$0x7]  ;;  %v20564_v34 = vld [vmem:[%s27496_s5 + $0x1e8] sm:$0xff]  }
 0x7a5   : > { %v11100_v23 = vshll.u32 %v15700_v9, 16  ;;  %19398 = vmatprep.subr.bf16.mxu1 %v27615_v15  ;;  %v11098_v4 = vshrl.u32 %v15700_v9, 16  ;;  %v15808_v2 = vcombine.low %v11512_v49, %v26640_v28  ;;  %v15783_v61 = vcombine.low %v11512_v49, %v26568_v43  ;;  %v20565_v42 = vld [vmem:[%s27496_s5 + $0x1b0] sm:$0xff]   ;;  %v20566_v38 = vld [vmem:[%s27496_s5 + $0x1e0] sm:$0xff]   ;;  %v20568_v9 = vld [vmem:[%s27496_s5 + $0x1d8] sm:$0xff]  }
 0x7a6   : > { %v11415_v18 = vshrl.u32 %v15758_v8, 16  ;;  %v11418_v29 = vshll.u32 %v15758_v8, 16  ;;  %v11302_v1 = vrot.slane %v15733_v19, 1  ;;  %v12080_v19 = vld [vmem:[#allocation4 + $0x4] sm:$0xf] }
 0x7a7   : > { %v11102_v53 = vrot.slane %v11100_v23, 1  ;;  %v11646_v3 = vshrl.u32 %v15808_v2, 16  ;;  %v11649_v31 = vshll.u32 %v15808_v2, 16  ;;  %v11533_v32 = vrot.slane %v15783_v61, 2  ;;  %v26712_v23 = vld [vmem:[#allocation4 + $0x4] sm:$0xf] }
 0x7a8   : > { %19399 = vmatpush3.bf16.msra.mxu1 %v20528_v20  ;;  %v11417_v17 = vrot.slane %v11415_v18, 1  ;;  %v11420_v22 = vrot.slane %v11418_v29, 2  ;;  %v11743_v20 = vld [vmem:[#allocation4] sm:$0x8]  ;;  %v20581_v29 = vld [vmem:[%s27496_s5 + $0x238] sm:$0xff]   ;;  %v20596_v2 = vld [vmem:[%s27496_s5 + $0x200] sm:$0xff]  }
 0x7a9   : > { %v11103_v41 = vor.u32 %v11102_v53, %v11098_v4  ;;  %19400 = vmatprep.subr.bf16.mxu1 %v27615_v15  ;;  %v11648_v5 = vrot.slane %v11646_v3, 2  ;;  %v11651_v11 = vrot.slane %v11649_v31, 3  ;;  %v20569_v4 = vld [vmem:[%s27496_s5 + $0x1a0] sm:$0xff]   ;;  %v20570_v53 = vld [vmem:[%s27496_s5 + $0x1d0] sm:$0xff]   ;;  %v15833_v18 = vcombine.low %v11743_v20, %v26640_v28  ;;  %v20594_v28 = vld [vmem:[%s27496_s5 + $0x208] sm:$0xff]  }
 0x7aa   : > { %v11421_v51 = vor.u32 %v11420_v22, %v11417_v17  ;;  %v20583_v17 = vld [vmem:[%s27496_s5 + $0x230] sm:$0xff]   ;;  %v20584_v22 = vld [vmem:[%s27496_s5 + $0x260] sm:$0xff]   ;;  %v20599_v3 = vld [vmem:[%s27496_s5 + $0x2e8] sm:$0xff]  }
 0x7ab   : > { %19353 = vmatmul.mubr.bf16.vlgmr.msra.gmra.mxu0 %v11103_v41  ;;  %v11652_v25 = vor.u32 %v11651_v11, %v11648_v5  ;;  %v20572_v41 = vld [vmem:[%s27496_s5 + $0x1c8] sm:$0xff]   ;;  %v20600_v31 = vld [vmem:[%s27496_s5 + $0x2b0] sm:$0xff]   ;;  %v20603_v5 = vld [vmem:[%s27496_s5 + $0x2d8] sm:$0xff]  }
 0x7ac   : > { %19377 = vmatpush3.bf16.msra.mxu0 %v20529_v24  ;;  %19401 = vmatpush3.bf16.msra.mxu1 %v20530_v45  ;;  %v15858_v24 = vcombine.low %v11743_v20, %v26712_v23  ;;  %v20571_v45 = vld [vmem:[%s27496_s5 + $0x198] sm:$0xff]   ;;  %v20607_v61 = vld [vmem:[%s27496_s5 + $0x2c8] sm:$0xff]  }
 0x7ad   : > { %19378 = vmatprep.subr.bf16.mxu0 %v27615_v15  ;;  %19402 = vmatprep.subr.bf16.mxu1 %v27615_v15  ;;  %v26856_v11 = vld [vmem:[#allocation4 + $0x8] sm:$0x3] }
 0x7ae   : > { %19392 = vmatprep.mubr.msk.bf16.mxu0 %vm21083_vm1, %v27615_v15  ;;  %v20612_v20 = vld [vmem:[%s27496_s5 + $0x378] sm:$0xff]  }
 0x7b0   : > { %19379 = vmatpush3.bf16.msra.mxu0 %v20531_v16  ;;  %19403 = vmatpush3.bf16.msra.mxu1 %v20532_v63  ;;  %v11877_v16 = vshrl.u32 %v15858_v24, 16  ;;  %v11880_v63 = vshll.u32 %v15858_v24, 16 }
 0x7b1   : > { %19380 = vmatprep.subr.bf16.mxu0 %v27615_v15  ;;  %19404 = vmatprep.subr.bf16.mxu1 %v27615_v15 }
 0x7b2   : > { %v11879_v50 = vrot.slane %v11877_v16, 3  ;;  %v11882_v43 = vrot.slane %v11880_v63, 4  ;;  %v20618_v63 = vld [vmem:[%s27496_s5 + $0x330] sm:$0xff]  }
 0x7b4   : > { %19381 = vmatpush3.bf16.msra.mxu0 %v20533_v33  ;;  %19405 = vmatpush3.bf16.msra.mxu1 %v20534_v30  ;;  %v20573_v33 = vld [vmem:[%s27496_s5 + $0x190] sm:$0xff]   ;;  %v20574_v30 = vld [vmem:[%s27496_s5 + $0x1c0] sm:$0xff]   ;;  %v11883_v8 = vor.u32 %v11882_v43, %v11879_v50  ;;  %v20621_v50 = vld [vmem:[%s27496_s5 + $0x358] sm:$0xff]  }
 0x7b5   : > { %19382 = vmatprep.subr.bf16.mxu0 %v27615_v15  ;;  %19406 = vmatprep.subr.bf16.mxu1 %v27615_v15  ;;  %v26928_v43 = vld [vmem:[#allocation4 + $0x8] sm:$0x7] }
 0x7b8   : > { %19383 = vmatpush3.bf16.msra.mxu0 %v20535_v47  ;;  %19407 = vmatpush3.bf16.msra.mxu1 %v20536_v57  ;;  %v20576_v47 = vld [vmem:[%s27496_s5 + $0x188] sm:$0xff]   ;;  %v20577_v57 = vld [vmem:[%s27496_s5 + $0x278] sm:$0xff]  }
 0x7b9   : > { %19384 = vmatprep.subr.bf16.mxu0 %v27615_v15  ;;  %19408 = vmatprep.subr.bf16.mxu1 %v27615_v15 }
 0x7bc   : > { %19385 = vmatpush3.bf16.msra.mxu0 %v20537_v54  ;;  %19409 = vmatpush3.bf16.msra.mxu1 %v20538_v6  ;;  %v20578_v54 = vld [vmem:[%s27496_s5 + $0x180] sm:$0xff]   ;;  %v20579_v6 = vld [vmem:[%s27496_s5 + $0x270] sm:$0xff]  }
 0x7bd   : > { %19386 = vmatprep.subr.bf16.mxu0 %v27615_v15  ;;  %19410 = vmatprep.subr.bf16.mxu1 %v27615_v15 }
 0x7c0   : > { %19387 = vmatpush3.bf16.msra.mxu0 %v20539_v52  ;;  %19411 = vmatpush3.bf16.msra.mxu1 %v20540_v44  ;;  %v20582_v52 = vld [vmem:[%s27496_s5 + $0x268] sm:$0xff]   ;;  %v11764_v44 = vrot.slane %v15833_v18, 3 }
 0x7c1   : > { %19388 = vmatprep.subr.bf16.mxu0 %v27615_v15  ;;  %19436 = vmatprep.subr.bf16.mxu1 %v27615_v15  ;;  %v20625_v18 = vld [vmem:[%s27496_s5 + $0x348] sm:$0xff]  }
 0x7c3   : > { %19413 = vmatmul.mubr.bf16.vlgmr.msra.gmra.mxu1 %v11421_v51  ;;  %v26784_v51 = vld [vmem:[#allocation4 + $0x8] sm:$0x1] }
 0x7c4   : > { %19389 = vmatpush3.bf16.msra.mxu0 %v20541_v0  ;;  %19437 = vmatpush3.bf16.msra.mxu1 %v20542_v62  ;;  %v20585_v0 = vld [vmem:[%s27496_s5 + $0x228] sm:$0xff]   ;;  %v20586_v62 = vld [vmem:[%s27496_s5 + $0x258] sm:$0xff]  }
 0x7c5   : > { %19390 = vmatprep.subr.bf16.mxu0 %v27615_v15  ;;  %19438 = vmatprep.subr.bf16.mxu1 %v27615_v15 }
 0x7c6   : > { %19452 = vmatprep.mubr.msk.bf16.mxu1 %vm21083_vm1, %v27615_v15 }
 0x7c8   : > { %19391 = vmatpush3.bf16.msra.mxu0 %v20543_v7  ;;  %19439 = vmatpush3.bf16.msra.mxu1 %v20544_v60  ;;  %v20587_v7 = vld [vmem:[%s27496_s5 + $0x220] sm:$0xff]   ;;  %v20588_v60 = vld [vmem:[%s27496_s5 + $0x250] sm:$0xff]  }
 0x7c9   : > { %19416 = vmatprep.subr.bf16.mxu0 %v27615_v15  ;;  %19440 = vmatprep.subr.bf16.mxu1 %v27615_v15 }
 0x7cb   : > { %19393 = vmatmul.mubr.bf16.vlgmr.msra.gmra.mxu0 %v11302_v1  ;;  %v20590_v1 = vld [vmem:[%s27496_s5 + $0x248] sm:$0xff]  }
 0x7cc   : > { %19417 = vmatpush3.bf16.msra.mxu0 %v20545_v39  ;;  %19441 = vmatpush3.bf16.msra.mxu1 %v20546_v21  ;;  %v15907_v39 = vcombine.low %v12080_v19, %v26784_v51  ;;  %v20589_v21 = vld [vmem:[%s27496_s5 + $0x218] sm:$0xff]   ;;  %v20631_v19 = vld [vmem:[%s27496_s5 + $0x300] sm:$0xff]  }
 0x7cd   : > { %19418 = vmatprep.subr.bf16.mxu0 %v27615_v15  ;;  %19442 = vmatprep.subr.bf16.mxu1 %v27615_v15 }
 0x7ce   : > { %19432 = vmatprep.mubr.msk.bf16.mxu0 %vm21083_vm1, %v27615_v15  ;;  %v12105_v49 = vshrl.u32 %v15907_v39, 16 }
 0x7d0   : > { %19419 = vmatpush3.bf16.msra.mxu0 %v20547_v26  ;;  %19443 = vmatpush3.bf16.msra.mxu1 %v20548_v55  ;;  %v12107_v26 = vshll.u32 %v15907_v39, 16  ;;  %v20591_v55 = vld [vmem:[%s27496_s5 + $0x210] sm:$0xff]  }
 0x7d1   : > { %19420 = vmatprep.subr.bf16.mxu0 %v27615_v15  ;;  %19444 = vmatprep.subr.bf16.mxu1 %v27615_v15  ;;  %v20632_v39 = vld [vmem:[%s27496_s5 + $0x3f0] sm:$0xff]  }
 0x7d4   : > { %19421 = vmatpush3.bf16.msra.mxu0 %v20549_v27  ;;  %19445 = vmatpush3.bf16.msra.mxu1 %v20550_v48  ;;  %v20592_v27 = vld [vmem:[%s27496_s5 + $0x240] sm:$0xff]   ;;  %v12109_v48 = vrot.slane %v12107_v26, 1 }
 0x7d5   : > { %19422 = vmatprep.subr.bf16.mxu0 %v27615_v15  ;;  %19446 = vmatprep.subr.bf16.mxu1 %v27615_v15 }
 0x7d8   : > { %19423 = vmatpush3.bf16.msra.mxu0 %v20551_v46  ;;  %19447 = vmatpush3.bf16.msra.mxu1 %v20552_v13  ;;  %v20595_v46 = vld [vmem:[%s27496_s5 + $0x2f8] sm:$0xff]   ;;  %v12110_v13 = vor.u32 %v12109_v48, %v12105_v49 }
 0x7d9   : > { %19424 = vmatprep.subr.bf16.mxu0 %v27615_v15  ;;  %19448 = vmatprep.subr.bf16.mxu1 %v27615_v15 }
 0x7dc   : > { %19425 = vmatpush3.bf16.msra.mxu0 %v20553_v40  ;;  %19449 = vmatpush3.bf16.msra.mxu1 %v20554_v36  ;;  %v20597_v40 = vld [vmem:[%s27496_s5 + $0x2f0] sm:$0xff]   ;;  %v20598_v36 = vld [vmem:[%s27496_s5 + $0x2b8] sm:$0xff]  }
 0x7dd   : > { %19426 = vmatprep.subr.bf16.mxu0 %v27615_v15  ;;  %19450 = vmatprep.subr.bf16.mxu1 %v27615_v15 }
 0x7e0   : > { %19427 = vmatpush3.bf16.msra.mxu0 %v20555_v37  ;;  %19451 = vmatpush3.bf16.msra.mxu1 %v20556_v12  ;;  %v20601_v37 = vld [vmem:[%s27496_s5 + $0x2e0] sm:$0xff]   ;;  %v20602_v12 = vld [vmem:[%s27496_s5 + $0x2a8] sm:$0xff]  }
 0x7e1   : > { %19428 = vmatprep.subr.bf16.mxu0 %v27615_v15  ;;  %19476 = vmatprep.subr.bf16.mxu1 %v27615_v15 }
 0x7e3   : > { %19453 = vmatmul.mubr.bf16.vlgmr.msra.gmra.mxu1 %v11652_v25  ;;  %v12201_v25 = vld [vmem:[#allocation4 + $0x4] sm:$0xe] }
 0x7e4   : > { %19429 = vmatpush3.bf16.msra.mxu0 %v20558_v58  ;;  %19477 = vmatpush3.bf16.msra.mxu1 %v20559_v14  ;;  %v20604_v58 = vld [vmem:[%s27496_s5 + $0x2a0] sm:$0xff]   ;;  %v20605_v14 = vld [vmem:[%s27496_s5 + $0x2d0] sm:$0xff]   ;;  %v15932_v24 = vcombine.low %v12201_v25, %v26784_v51  ;;  %v20630_v51 = vld [vmem:[%s27496_s5 + $0x3f8] sm:$0xff]  }
 0x7e5   : > { %19430 = vmatprep.subr.bf16.mxu0 %v27615_v15  ;;  %19478 = vmatprep.subr.bf16.mxu1 %v27615_v15 }
 0x7e6   : > { %19492 = vmatprep.mubr.msk.bf16.mxu1 %vm21083_vm1, %v27615_v15  ;;  %v12222_v16 = vrot.slane %v15932_v24, 1 }
 0x7e8   : > { %19431 = vmatpush3.bf16.msra.mxu0 %v20560_v56  ;;  %19479 = vmatpush3.bf16.msra.mxu1 %v20561_v35  ;;  %v15957_v56 = vcombine.low %v12201_v25, %v26856_v11  ;;  %v20606_v35 = vld [vmem:[%s27496_s5 + $0x298] sm:$0xff]  }
 0x7e9   : > { %19456 = vmatprep.subr.bf16.mxu0 %v27615_v15  ;;  %19480 = vmatprep.subr.bf16.mxu1 %v27615_v15  ;;  %v20642_v25 = vld [vmem:[%s27496_s5 + $0x398] sm:$0xff]  }
 0x7eb   : > { %19433 = vmatmul.mubr.bf16.vlgmr.msra.gmra.mxu0 %v11533_v32  ;;  %v20608_v32 = vld [vmem:[%s27496_s5 + $0x290] sm:$0xff]  }
 0x7ec   : > { %19457 = vmatpush3.bf16.msra.mxu0 %v20563_v59  ;;  %19481 = vmatpush3.bf16.msra.mxu1 %v20564_v34  ;;  %v12335_v59 = vshrl.u32 %v15957_v56, 16  ;;  %v12338_v34 = vshll.u32 %v15957_v56, 16  ;;  %v20643_v56 = vld [vmem:[%s27496_s5 + $0x3c8] sm:$0xff]  }
 0x7ed   : > { %19458 = vmatprep.subr.bf16.mxu0 %v27615_v15  ;;  %19482 = vmatprep.subr.bf16.mxu1 %v27615_v15 }
 0x7ee   : > { %19472 = vmatprep.mubr.msk.bf16.mxu0 %vm21083_vm1, %v27615_v15 }
 0x7f0   : > { %19459 = vmatpush3.bf16.msra.mxu0 %v20565_v42  ;;  %19483 = vmatpush3.bf16.msra.mxu1 %v20566_v38  ;;  %v20609_v42 = vld [vmem:[%s27496_s5 + $0x2c0] sm:$0xff]   ;;  %v12337_v38 = vrot.slane %v12335_v59, 1  ;;  %v20644_v59 = vld [vmem:[%s27496_s5 + $0x390] sm:$0xff]  }
 0x7f1   : > { %19460 = vmatprep.subr.bf16.mxu0 %v27615_v15  ;;  %19484 = vmatprep.subr.bf16.mxu1 %v27615_v15 }
 0x7f4   : > { %19461 = vmatpush3.bf16.msra.mxu0 %v20567_v10  ;;  %19485 = vmatpush3.bf16.msra.mxu1 %v20568_v9  ;;  %v12340_v10 = vrot.slane %v12338_v34, 2  ;;  %v20611_v9 = vld [vmem:[%s27496_s5 + $0x288] sm:$0xff]   ;;  %v20645_v34 = vld [vmem:[%s27496_s5 + $0x3c0] sm:$0xff]  }
 0x7f5   : > { %19462 = vmatprep.subr.bf16.mxu0 %v27615_v15  ;;  %19486 = vmatprep.subr.bf16.mxu1 %v27615_v15 }
 0x7f8   : > { %19463 = vmatpush3.bf16.msra.mxu0 %v20569_v4  ;;  %19487 = vmatpush3.bf16.msra.mxu1 %v20570_v53  ;;  %v20613_v4 = vld [vmem:[%s27496_s5 + $0x280] sm:$0xff]   ;;  %v20614_v53 = vld [vmem:[%s27496_s5 + $0x370] sm:$0xff]  }
 0x7f9   : > { %19464 = vmatprep.subr.bf16.mxu0 %v27615_v15  ;;  %19488 = vmatprep.subr.bf16.mxu1 %v27615_v15 }
 0x7fc   : > { %19465 = vmatpush3.bf16.msra.mxu0 %v20571_v45  ;;  %19489 = vmatpush3.bf16.msra.mxu1 %v20572_v41  ;;  %v20616_v45 = vld [vmem:[%s27496_s5 + $0x338] sm:$0xff]   ;;  %v20617_v41 = vld [vmem:[%s27496_s5 + $0x368] sm:$0xff]  }
 0x7fd   : > { %19466 = vmatprep.subr.bf16.mxu0 %v27615_v15  ;;  %19490 = vmatprep.subr.bf16.mxu1 %v27615_v15 }
 0x800   : > { %19467 = vmatpush3.bf16.msra.mxu0 %v20573_v33  ;;  %19491 = vmatpush3.bf16.msra.mxu1 %v20574_v30  ;;  %v20619_v33 = vld [vmem:[%s27496_s5 + $0x360] sm:$0xff]   ;;  %v20620_v30 = vld [vmem:[%s27496_s5 + $0x328] sm:$0xff]  }
 0x801   : > { %19468 = vmatprep.subr.bf16.mxu0 %v27615_v15  ;;  %19516 = vmatprep.subr.bf16.mxu1 %v27615_v15 }
 0x803   : > { %19493 = vmatmul.mubr.bf16.vlgmr.msra.gmra.mxu1 %v11883_v8  ;;  %v12432_v8 = vld [vmem:[#allocation4 + $0x4] sm:$0xc] }
 0x804   : > { %19469 = vmatpush3.bf16.msra.mxu0 %v20576_v47  ;;  %19517 = vmatpush3.bf16.msra.mxu1 %v20577_v57  ;;  %v20622_v47 = vld [vmem:[%s27496_s5 + $0x320] sm:$0xff]   ;;  %v20623_v57 = vld [vmem:[%s27496_s5 + $0x350] sm:$0xff]  }
 0x805   : > { %19470 = vmatprep.subr.bf16.mxu0 %v27615_v15  ;;  %19518 = vmatprep.subr.bf16.mxu1 %v27615_v15 }
 0x806   : > { %19532 = vmatprep.mubr.msk.bf16.mxu1 %vm21083_vm1, %v27615_v15 }
 0x808   : > { %19471 = vmatpush3.bf16.msra.mxu0 %v20578_v54  ;;  %19519 = vmatpush3.bf16.msra.mxu1 %v20579_v6  ;;  %v16007_v54 = vcombine.low %v12432_v8, %v26928_v43  ;;  %v20624_v6 = vld [vmem:[%s27496_s5 + $0x318] sm:$0xff]  }
 0x809   : > { %19496 = vmatprep.subr.bf16.mxu0 %v27615_v15  ;;  %19520 = vmatprep.subr.bf16.mxu1 %v27615_v15 }
 0x80b   : > { %19473 = vmatmul.mubr.bf16.vlgmr.msra.gmra.mxu0 %v11764_v44  ;;  %v20626_v44 = vld [vmem:[%s27496_s5 + $0x310] sm:$0xff]  }
 0x80c   : > { %19497 = vmatpush3.bf16.msra.mxu0 %v20581_v29  ;;  %19521 = vmatpush3.bf16.msra.mxu1 %v20582_v52  ;;  %v12566_v29 = vshrl.u32 %v16007_v54, 16  ;;  %v12569_v52 = vshll.u32 %v16007_v54, 16 }
 0x80d   : > { %19498 = vmatprep.subr.bf16.mxu0 %v27615_v15  ;;  %19522 = vmatprep.subr.bf16.mxu1 %v27615_v15 }
 0x80e   : > { %19512 = vmatprep.mubr.msk.bf16.mxu0 %vm21083_vm1, %v27615_v15 }
 0x810   : > { %19499 = vmatpush3.bf16.msra.mxu0 %v20583_v17  ;;  %19523 = vmatpush3.bf16.msra.mxu1 %v20584_v22  ;;  %v20627_v17 = vld [vmem:[%s27496_s5 + $0x340] sm:$0xff]   ;;  %v12568_v22 = vrot.slane %v12566_v29, 2 }
 0x811   : > { %19500 = vmatprep.subr.bf16.mxu0 %v27615_v15  ;;  %19524 = vmatprep.subr.bf16.mxu1 %v27615_v15 }
 0x814   : > { %19501 = vmatpush3.bf16.msra.mxu0 %v20585_v0  ;;  %19525 = vmatpush3.bf16.msra.mxu1 %v20586_v62  ;;  %v12571_v0 = vrot.slane %v12569_v52, 3  ;;  %v20629_v62 = vld [vmem:[%s27496_s5 + $0x308] sm:$0xff]   ;;  %v13000_v52 = vld [vmem:[#allocation4 + $0x8] sm:$0xf] }
 0x815   : > { %19502 = vmatprep.subr.bf16.mxu0 %v27615_v15  ;;  %19526 = vmatprep.subr.bf16.mxu1 %v27615_v15 }
 0x818   : > { %19503 = vmatpush3.bf16.msra.mxu0 %v20587_v7  ;;  %19527 = vmatpush3.bf16.msra.mxu1 %v20588_v60  ;;  %v12572_v7 = vor.u32 %v12571_v0, %v12568_v22  ;;  %v20659_v22 = vld [vmem:[%s27496_s5 + $0x450] sm:$0xff]  }
 0x819   : > { %19504 = vmatprep.subr.bf16.mxu0 %v27615_v15  ;;  %19528 = vmatprep.subr.bf16.mxu1 %v27615_v15 }
 0x81c   : > { %19505 = vmatpush3.bf16.msra.mxu0 %v20589_v21  ;;  %19529 = vmatpush3.bf16.msra.mxu1 %v20590_v1  ;;  %v15982_v1 = vcombine.low %v12432_v8, %v26856_v11  ;;  %v20641_v11 = vld [vmem:[%s27496_s5 + $0x3d0] sm:$0xff]  }
 0x81d   : > { %19506 = vmatprep.subr.bf16.mxu0 %v27615_v15  ;;  %19530 = vmatprep.subr.bf16.mxu1 %v27615_v15 }
 0x81e   : > { %v12453_v49 = vrot.slane %v15982_v1, 2  ;;  %v20665_v1 = vld [vmem:[%s27496_s5 + $0x408] sm:$0xff]  }
 0x820   : > { %19507 = vmatpush3.bf16.msra.mxu0 %v20591_v55  ;;  %19531 = vmatpush3.bf16.msra.mxu1 %v20592_v27  ;;  %v20634_v55 = vld [vmem:[%s27496_s5 + $0x3b8] sm:$0xff]   ;;  %v20635_v27 = vld [vmem:[%s27496_s5 + $0x3e8] sm:$0xff]  }
 0x821   : > { %19508 = vmatprep.subr.bf16.mxu0 %v27615_v15  ;;  %19556 = vmatprep.subr.bf16.mxu1 %v27615_v15 }
 0x823   : > { %19533 = vmatmul.mubr.bf16.vlgmr.msra.gmra.mxu1 %v12110_v13  ;;  %v20636_v13 = vld [vmem:[%s27496_s5 + $0x3b0] sm:$0xff]  }
 0x824   : > { %19509 = vmatpush3.bf16.msra.mxu0 %v20594_v28  ;;  %19557 = vmatpush3.bf16.msra.mxu1 %v20595_v46 }
 0x825   : > { %19510 = vmatprep.subr.bf16.mxu0 %v27615_v15  ;;  %19558 = vmatprep.subr.bf16.mxu1 %v27615_v15 }
 0x826   : > { %19572 = vmatprep.mubr.msk.bf16.mxu1 %vm21083_vm1, %v27615_v15 }
 0x828   : > { %19511 = vmatpush3.bf16.msra.mxu0 %v20596_v2  ;;  %19559 = vmatpush3.bf16.msra.mxu1 %v20597_v40  ;;  %v20637_v2 = vld [vmem:[%s27496_s5 + $0x3e0] sm:$0xff]  }
 0x829   : > { %19536 = vmatprep.subr.bf16.mxu0 %v27615_v15  ;;  %19560 = vmatprep.subr.bf16.mxu1 %v27615_v15 }
 0x82b   : > { %19513 = vmatmul.mubr.bf16.vlgmr.msra.gmra.mxu0 %v26712_v23  ;;  %v12341_v23 = vor.u32 %v12340_v10, %v12337_v38  ;;  %v20647_v38 = vld [vmem:[%s27496_s5 + $0x388] sm:$0xff]   ;;  %v20648_v10 = vld [vmem:[%s27496_s5 + $0x478] sm:$0xff]  }
 0x82c   : > { %19537 = vmatpush3.bf16.msra.mxu0 %v20598_v36  ;;  %19561 = vmatpush3.bf16.msra.mxu1 %v20599_v3  ;;  %v20638_v3 = vld [vmem:[%s27496_s5 + $0x3a8] sm:$0xff]  }
 0x82d   : > { %19538 = vmatprep.subr.bf16.mxu0 %v27615_v15  ;;  %19562 = vmatprep.subr.bf16.mxu1 %v27615_v15 }
 0x82e   : > { %19552 = vmatprep.mubr.msk.bf16.mxu0 %vm21083_vm1, %v27615_v15 }
 0x830   : > { %19539 = vmatpush3.bf16.msra.mxu0 %v20600_v31  ;;  %19563 = vmatpush3.bf16.msra.mxu1 %v20601_v37  ;;  %v20639_v31 = vld [vmem:[%s27496_s5 + $0x3d8] sm:$0xff]  }
 0x831   : > { %19540 = vmatprep.subr.bf16.mxu0 %v27615_v15  ;;  %19564 = vmatprep.subr.bf16.mxu1 %v27615_v15 }
 0x834   : > { %19541 = vmatpush3.bf16.msra.mxu0 %v20602_v12  ;;  %19565 = vmatpush3.bf16.msra.mxu1 %v20603_v5  ;;  %v27002_v12 = vld [vmem:[#allocation4 + $0x8] sm:$0xf]  ;;  %v20640_v5 = vld [vmem:[%s27496_s5 + $0x3a0] sm:$0xff]  }
 0x835   : > { %19542 = vmatprep.subr.bf16.mxu0 %v27615_v15  ;;  %19566 = vmatprep.subr.bf16.mxu1 %v27615_v15 }
 0x838   : > { %19543 = vmatpush3.bf16.msra.mxu0 %v20604_v58  ;;  %19567 = vmatpush3.bf16.msra.mxu1 %v20605_v14  ;;  %v12663_v58 = vld [vmem:[#allocation4 + $0x4] sm:$0x8] }
 0x839   : > { %19544 = vmatprep.subr.bf16.mxu0 %v27615_v15  ;;  %19568 = vmatprep.subr.bf16.mxu1 %v27615_v15  ;;  %v16057_v14 = vcombine.low %v12663_v58, %v27002_v12  ;;  %v16032_v24 = vcombine.low %v12663_v58, %v26928_v43  ;;  %v20654_v43 = vld [vmem:[%s27496_s5 + $0x430] sm:$0xff]   ;;  %v20673_v58 = vld [vmem:[%s27496_s5 + $0x4a8] sm:$0xff]  }
 0x83c   : > { %19545 = vmatpush3.bf16.msra.mxu0 %v20606_v35  ;;  %19569 = vmatpush3.bf16.msra.mxu1 %v20607_v61  ;;  %v12797_v35 = vshrl.u32 %v16057_v14, 16  ;;  %v12800_v61 = vshll.u32 %v16057_v14, 16  ;;  %v20674_v14 = vld [vmem:[%s27496_s5 + $0x4d8] sm:$0xff]  }
 0x83d   : > { %19546 = vmatprep.subr.bf16.mxu0 %v27615_v15  ;;  %19570 = vmatprep.subr.bf16.mxu1 %v27615_v15 }
 0x840   : > { %19547 = vmatpush3.bf16.msra.mxu0 %v20608_v32  ;;  %19571 = vmatpush3.bf16.msra.mxu1 %v20609_v42  ;;  %v12799_v32 = vrot.slane %v12797_v35, 3  ;;  %v12802_v42 = vrot.slane %v12800_v61, 4  ;;  %v27149_v35 = vld [vmem:[#allocation4 + $0xc] sm:$0x3]  ;;  %v20675_v61 = vld [vmem:[%s27496_s5 + $0x4a0] sm:$0xff]  }
 0x841   : > { %19548 = vmatprep.subr.bf16.mxu0 %v27615_v15  ;;  %19596 = vmatprep.subr.bf16.mxu1 %v27615_v15 }
 0x843   : > { %19573 = vmatmul.mubr.bf16.vlgmr.msra.gmra.mxu1 %v12341_v23  ;;  %v20649_v23 = vld [vmem:[%s27496_s5 + $0x380] sm:$0xff]  }
 0x844   : > { %19549 = vmatpush3.bf16.msra.mxu0 %v20611_v9  ;;  %19597 = vmatpush3.bf16.msra.mxu1 %v20612_v20  ;;  %v12803_v9 = vor.u32 %v12802_v42, %v12799_v32  ;;  %v20677_v32 = vld [vmem:[%s27496_s5 + $0x498] sm:$0xff]   ;;  %v20678_v42 = vld [vmem:[%s27496_s5 + $0x4c8] sm:$0xff]  }
 0x845   : > { %19550 = vmatprep.subr.bf16.mxu0 %v27615_v15  ;;  %19598 = vmatprep.subr.bf16.mxu1 %v27615_v15 }
 0x846   : > { %19612 = vmatprep.mubr.msk.bf16.mxu1 %vm21083_vm1, %v27615_v15 }
 0x848   : > { %19551 = vmatpush3.bf16.msra.mxu0 %v20613_v4  ;;  %19599 = vmatpush3.bf16.msra.mxu1 %v20614_v53  ;;  %v20650_v4 = vld [vmem:[%s27496_s5 + $0x470] sm:$0xff]  }
 0x849   : > { %19576 = vmatprep.subr.bf16.mxu0 %v27615_v15  ;;  %19600 = vmatprep.subr.bf16.mxu1 %v27615_v15 }
 0x84b   : > { %19553 = vmatmul.mubr.bf16.vlgmr.msra.gmra.mxu0 %v12222_v16  ;;  %v20653_v16 = vld [vmem:[%s27496_s5 + $0x468] sm:$0xff]  }
 0x84c   : > { %19577 = vmatpush3.bf16.msra.mxu0 %v20616_v45  ;;  %19601 = vmatpush3.bf16.msra.mxu1 %v20617_v41  ;;  %v20652_v41 = vld [vmem:[%s27496_s5 + $0x438] sm:$0xff]  }
 0x84d   : > { %19578 = vmatprep.subr.bf16.mxu0 %v27615_v15  ;;  %19602 = vmatprep.subr.bf16.mxu1 %v27615_v15 }
 0x84e   : > { %19592 = vmatprep.mubr.msk.bf16.mxu0 %vm21083_vm1, %v27615_v15 }
 0x850   : > { %19579 = vmatpush3.bf16.msra.mxu0 %v20618_v63  ;;  %19603 = vmatpush3.bf16.msra.mxu1 %v20619_v33  ;;  %v12684_v33 = vrot.slane %v16032_v24, 3  ;;  %v20683_v24 = vld [vmem:[%s27496_s5 + $0x578] sm:$0xff]  }
 0x851   : > { %19580 = vmatprep.subr.bf16.mxu0 %v27615_v15  ;;  %19604 = vmatprep.subr.bf16.mxu1 %v27615_v15 }
 0x854   : > { %19581 = vmatpush3.bf16.msra.mxu0 %v20620_v30  ;;  %19605 = vmatpush3.bf16.msra.mxu1 %v20621_v50 }
 0x855   : > { %19582 = vmatprep.subr.bf16.mxu0 %v27615_v15  ;;  %19606 = vmatprep.subr.bf16.mxu1 %v27615_v15 }
 0x858   : > { %19583 = vmatpush3.bf16.msra.mxu0 %v20622_v47  ;;  %19607 = vmatpush3.bf16.msra.mxu1 %v20623_v57  ;;  %v20655_v47 = vld [vmem:[%s27496_s5 + $0x460] sm:$0xff]  }
 0x859   : > { %19584 = vmatprep.subr.bf16.mxu0 %v27615_v15  ;;  %19608 = vmatprep.subr.bf16.mxu1 %v27615_v15 }
 0x85c   : > { %19585 = vmatpush3.bf16.msra.mxu0 %v20624_v6  ;;  %19609 = vmatpush3.bf16.msra.mxu1 %v20625_v18  ;;  %v20656_v6 = vld [vmem:[%s27496_s5 + $0x428] sm:$0xff]   ;;  %v20657_v18 = vld [vmem:[%s27496_s5 + $0x458] sm:$0xff]  }
 0x85d   : > { %19586 = vmatprep.subr.bf16.mxu0 %v27615_v15  ;;  %19610 = vmatprep.subr.bf16.mxu1 %v27615_v15 }
 0x860   : > { %19587 = vmatpush3.bf16.msra.mxu0 %v20626_v44  ;;  %19611 = vmatpush3.bf16.msra.mxu1 %v20627_v17  ;;  %v27075_v44 = vld [vmem:[#allocation4 + $0xc] sm:$0x1]  ;;  %v20658_v17 = vld [vmem:[%s27496_s5 + $0x420] sm:$0xff]  }
 0x861   : > { %19588 = vmatprep.subr.bf16.mxu0 %v27615_v15  ;;  %19636 = vmatprep.subr.bf16.mxu1 %v27615_v15  ;;  %v16106_v0 = vcombine.low %v13000_v52, %v27075_v44 }
 0x863   : > { %19613 = vmatmul.mubr.bf16.vlgmr.msra.gmra.mxu1 %v12572_v7  ;;  %v11275_v60 = vpop.f32.mrf.mxu1  ;;  %v13027_v7 = vshll.u32 %v16106_v0, 16 }
 0x864   : > { %19589 = vmatpush3.bf16.msra.mxu0 %v20629_v62  ;;  %19637 = vmatpush3.bf16.msra.mxu1 %v20630_v51  ;;  %v20660_v62 = vld [vmem:[%s27496_s5 + $0x418] sm:$0xff]   ;;  %v20661_v51 = vld [vmem:[%s27496_s5 + $0x448] sm:$0xff]  }
 0x865   : > { %v19374_v21 = vpop.f32.mrf.mxu1  ;;  %19590 = vmatprep.subr.bf16.mxu0 %v27615_v15  ;;  %19638 = vmatprep.subr.bf16.mxu1 %v27615_v15 }
 0x866   : > { %19652 = vmatprep.mubr.msk.bf16.mxu1 %vm21083_vm1, %v27615_v15  ;;  %v13029_v21 = vrot.slane %v13027_v7, 1  ;;  %v27224_v7 = vld [vmem:[#allocation4 + $0xc] sm:$0x7] }
 0x867   : > { %v11278_v26 = vpop.f32.mrf.mxu1 }
 0x868   : > { %19591 = vmatpush3.bf16.msra.mxu0 %v20631_v19  ;;  %19639 = vmatpush3.bf16.msra.mxu1 %v20632_v39  ;;  %v20663_v19 = vld [vmem:[%s27496_s5 + $0x440] sm:$0xff]   ;;  %v13025_v39 = vshrl.u32 %v16106_v0, 16  ;;  %v20666_v26 = vld [vmem:[%s27496_s5 + $0x4f8] sm:$0xff]  }
 0x869   : > { %v19375_v48 = vpop.f32.mrf.mxu1  ;;  %19616 = vmatprep.subr.bf16.mxu0 %v27615_v15  ;;  %19640 = vmatprep.subr.bf16.mxu1 %v27615_v15  ;;  %v20692_v0 = vld [vmem:[%s27496_s5 + $0x558] sm:$0xff]  }
 0x86a   : > { %v20667_v48 = vld [vmem:[%s27496_s5 + $0x400] sm:$0xff]  }
 0x86b   : > { %19593 = vmatmul.mubr.bf16.vlgmr.msra.gmra.mxu0 %v12453_v49  ;;  %v11187_v28 = vpop.f32.mrf.mxu0  ;;  %v20668_v49 = vld [vmem:[%s27496_s5 + $0x4f0] sm:$0xff]  }
 0x86c   : > { %v26982_v46 = vadd.f32 %v11275_v60, %v11187_v28  ;;  %19617 = vmatpush3.bf16.msra.mxu0 %v20634_v55  ;;  %19641 = vmatpush3.bf16.msra.mxu1 %v20635_v27  ;;  %v20662_v60 = vld [vmem:[%s27496_s5 + $0x410] sm:$0xff]   ;;  %v13030_v55 = vor.u32 %v13029_v21, %v13025_v39  ;;  %v20695_v21 = vld [vmem:[%s27496_s5 + $0x518] sm:$0xff]  }
 0x86d   : > { %v19354_v40 = vpop.f32.mrf.mxu0  ;;  %19618 = vmatprep.subr.bf16.mxu0 %v27615_v15  ;;  %19642 = vmatprep.subr.bf16.mxu1 %v27615_v15 }
 0x86e   : > { %19632 = vmatprep.mubr.msk.bf16.mxu0 %vm21083_vm1, %v27615_v15 }
 0x86f   : > { %v11190_v36 = vpop.f32.mrf.mxu0 }
 0x870   : > { %19619 = vmatpush3.bf16.msra.mxu0 %v20636_v13  ;;  %19643 = vmatpush3.bf16.msra.mxu1 %v20637_v2  ;;  %v20669_v13 = vld [vmem:[%s27496_s5 + $0x4b8] sm:$0xff]   ;;  %v20670_v2 = vld [vmem:[%s27496_s5 + $0x4e8] sm:$0xff]  }
 0x871   : > { %v19355_v37 = vpop.f32.mrf.mxu0  ;;  %19620 = vmatprep.subr.bf16.mxu0 %v27615_v15  ;;  %19644 = vmatprep.subr.bf16.mxu1 %v27615_v15 }
 0x872   : > { %v20672_v37 = vld [vmem:[%s27496_s5 + $0x4e0] sm:$0xff]  }
 0x874   : > { %19621 = vmatpush3.bf16.msra.mxu0 %v20638_v3  ;;  %19645 = vmatpush3.bf16.msra.mxu1 %v20639_v31  ;;  %v20671_v31 = vld [vmem:[%s27496_s5 + $0x4b0] sm:$0xff]  }
 0x875   : > { %19622 = vmatprep.subr.bf16.mxu0 %v27615_v15  ;;  %19646 = vmatprep.subr.bf16.mxu1 %v27615_v15 }
 0x878   : > { %19623 = vmatpush3.bf16.msra.mxu0 %v20640_v5  ;;  %19647 = vmatpush3.bf16.msra.mxu1 %v20641_v11 }
 0x879   : > { %19624 = vmatprep.subr.bf16.mxu0 %v27615_v15  ;;  %19648 = vmatprep.subr.bf16.mxu1 %v27615_v15 }
 0x87c   : > { %19625 = vmatpush3.bf16.msra.mxu0 %v20642_v25  ;;  %19649 = vmatpush3.bf16.msra.mxu1 %v20643_v56  ;;  %v13121_v56 = vld [vmem:[#allocation4 + $0x8] sm:$0xe] }
 0x87d   : > { %19626 = vmatprep.subr.bf16.mxu0 %v27615_v15  ;;  %19650 = vmatprep.subr.bf16.mxu1 %v27615_v15 }
 0x880   : > { %19627 = vmatpush3.bf16.msra.mxu0 %v20644_v59  ;;  %19651 = vmatpush3.bf16.msra.mxu1 %v20645_v34  ;;  %v20676_v59 = vld [vmem:[%s27496_s5 + $0x4d0] sm:$0xff]   ;;  %v16156_v34 = vcombine.low %v13121_v56, %v27149_v35 }
 0x881   : > { %19628 = vmatprep.subr.bf16.mxu0 %v27615_v15  ;;  %19676 = vmatprep.subr.bf16.mxu1 %v27615_v15 }
 0x883   : > { %v11505_v20 = vpop.f32.mrf.mxu1  ;;  %19653 = vmatmul.mubr.bf16.vlgmr.msra.gmra.mxu1 %v12803_v9  ;;  %v20679_v9 = vld [vmem:[%s27496_s5 + $0x490] sm:$0xff]  }
 0x884   : > { %19629 = vmatpush3.bf16.msra.mxu0 %v20647_v38  ;;  %19677 = vmatpush3.bf16.msra.mxu1 %v20648_v10  ;;  %v13255_v38 = vshrl.u32 %v16156_v34, 16  ;;  %v13258_v10 = vshll.u32 %v16156_v34, 16 }
 0x885   : > { %v19414_v53 = vpop.f32.mrf.mxu1  ;;  %19630 = vmatprep.subr.bf16.mxu0 %v27615_v15  ;;  %19678 = vmatprep.subr.bf16.mxu1 %v27615_v15 }
 0x886   : > { %19692 = vmatprep.mubr.msk.bf16.mxu1 %vm21083_vm1, %v27615_v15  ;;  %v20682_v53 = vld [vmem:[%s27496_s5 + $0x488] sm:$0xff]  }
 0x887   : > { %v11508_v45 = vpop.f32.mrf.mxu1 }
 0x888   : > { %19631 = vmatpush3.bf16.msra.mxu0 %v20649_v23  ;;  %19679 = vmatpush3.bf16.msra.mxu1 %v20650_v4  ;;  %v13257_v23 = vrot.slane %v13255_v38, 1  ;;  %v13260_v4 = vrot.slane %v13258_v10, 2  ;;  %v20710_v38 = vld [vmem:[%s27496_s5 + $0x5d8] sm:$0xff]  }
 0x889   : > { %v19415_v63 = vpop.f32.mrf.mxu1  ;;  %19656 = vmatprep.subr.bf16.mxu0 %v27615_v15  ;;  %19680 = vmatprep.subr.bf16.mxu1 %v27615_v15 }
 0x88a   : > { %v13261_v45 = vor.u32 %v13260_v4, %v13257_v23  ;;  %v20685_v63 = vld [vmem:[%s27496_s5 + $0x570] sm:$0xff]   ;;  %v20711_v23 = vld [vmem:[%s27496_s5 + $0x5a0] sm:$0xff]  }
 0x88b   : > { %v11386_v30 = vpop.f32.mrf.mxu0  ;;  %19633 = vmatmul.mubr.bf16.vlgmr.msra.gmra.mxu0 %v12684_v33  ;;  %v20712_v4 = vld [vmem:[%s27496_s5 + $0x5d0] sm:$0xff]  }
 0x88c   : > { %v11392_v50 = vadd.f32 %v11386_v30, %v26982_v46  ;;  %19657 = vmatpush3.bf16.msra.mxu0 %v20652_v41  ;;  %19681 = vmatpush3.bf16.msra.mxu1 %v20653_v16  ;;  %v20684_v16 = vld [vmem:[%s27496_s5 + $0x480] sm:$0xff]   ;;  %v16131_v30 = vcombine.low %v13121_v56, %v27075_v44 }
 0x88d   : > { %v19394_v57 = vpop.f32.mrf.mxu0  ;;  %19658 = vmatprep.subr.bf16.mxu0 %v27615_v15  ;;  %19682 = vmatprep.subr.bf16.mxu1 %v27615_v15 }
 0x88e   : > { %19672 = vmatprep.mubr.msk.bf16.mxu0 %vm21083_vm1, %v27615_v15  ;;  %v11511_v8 = vadd.f32 %v11505_v20, %v11392_v50  ;;  %v20680_v20 = vld [vmem:[%s27496_s5 + $0x4c0] sm:$0xff]  }
 0x88f   : > { %v11389_v54 = vpop.f32.mrf.mxu0 }
 0x890   : > { %19659 = vmatpush3.bf16.msra.mxu0 %v20654_v43  ;;  %19683 = vmatpush3.bf16.msra.mxu1 %v20655_v47  ;;  %v20687_v43 = vld [vmem:[%s27496_s5 + $0x538] sm:$0xff]   ;;  %v20688_v47 = vld [vmem:[%s27496_s5 + $0x568] sm:$0xff]  }
 0x891   : > { %v19395_v29 = vpop.f32.mrf.mxu0  ;;  %19660 = vmatprep.subr.bf16.mxu0 %v27615_v15  ;;  %19684 = vmatprep.subr.bf16.mxu1 %v27615_v15 }
 0x892   : > { %v20690_v29 = vld [vmem:[%s27496_s5 + $0x560] sm:$0xff]  }
 0x894   : > { %19661 = vmatpush3.bf16.msra.mxu0 %v20656_v6  ;;  %19685 = vmatpush3.bf16.msra.mxu1 %v20657_v18  ;;  %v20689_v18 = vld [vmem:[%s27496_s5 + $0x530] sm:$0xff]  }
 0x895   : > { %19662 = vmatprep.subr.bf16.mxu0 %v27615_v15  ;;  %19686 = vmatprep.subr.bf16.mxu1 %v27615_v15 }
 0x898   : > { %19663 = vmatpush3.bf16.msra.mxu0 %v20658_v17  ;;  %19687 = vmatpush3.bf16.msra.mxu1 %v20659_v22  ;;  %v20691_v22 = vld [vmem:[%s27496_s5 + $0x528] sm:$0xff]  }
 0x899   : > { %19664 = vmatprep.subr.bf16.mxu0 %v27615_v15  ;;  %19688 = vmatprep.subr.bf16.mxu1 %v27615_v15 }
 0x89c   : > { %19665 = vmatpush3.bf16.msra.mxu0 %v20660_v62  ;;  %19689 = vmatpush3.bf16.msra.mxu1 %v20661_v51  ;;  %v13352_v51 = vld [vmem:[#allocation4 + $0x8] sm:$0xc] }
 0x89d   : > { %19666 = vmatprep.subr.bf16.mxu0 %v27615_v15  ;;  %19690 = vmatprep.subr.bf16.mxu1 %v27615_v15  ;;  %v16206_v39 = vcombine.low %v13352_v51, %v27224_v7 }
 0x8a0   : > { %19667 = vmatpush3.bf16.msra.mxu0 %v20662_v60  ;;  %19691 = vmatpush3.bf16.msra.mxu1 %v20663_v19  ;;  %v20693_v60 = vld [vmem:[%s27496_s5 + $0x520] sm:$0xff]   ;;  %v20694_v19 = vld [vmem:[%s27496_s5 + $0x550] sm:$0xff]  }
 0x8a1   : > { %19668 = vmatprep.subr.bf16.mxu0 %v27615_v15  ;;  %19716 = vmatprep.subr.bf16.mxu1 %v27615_v15 }
 0x8a3   : > { %v11736_v27 = vpop.f32.mrf.mxu1  ;;  %19693 = vmatmul.mubr.bf16.vlgmr.msra.gmra.mxu1 %v13030_v55  ;;  %v13489_v55 = vshll.u32 %v16206_v39, 16 }
 0x8a4   : > { %19669 = vmatpush3.bf16.msra.mxu0 %v20665_v1  ;;  %19717 = vmatpush3.bf16.msra.mxu1 %v20666_v26  ;;  %v20696_v1 = vld [vmem:[%s27496_s5 + $0x548] sm:$0xff]   ;;  %v13486_v26 = vshrl.u32 %v16206_v39, 16  ;;  %v20724_v39 = vld [vmem:[%s27496_s5 + $0x620] sm:$0xff]  }
 0x8a5   : > { %v19454_v28 = vpop.f32.mrf.mxu1  ;;  %19670 = vmatprep.subr.bf16.mxu0 %v27615_v15  ;;  %19718 = vmatprep.subr.bf16.mxu1 %v27615_v15 }
 0x8a6   : > { %19732 = vmatprep.mubr.msk.bf16.mxu1 %vm21083_vm1, %v27615_v15  ;;  %v13491_v28 = vrot.slane %v13489_v55, 3 }
 0x8a7   : > { %v11739_v46 = vpop.f32.mrf.mxu1 }
 0x8a8   : > { %19671 = vmatpush3.bf16.msra.mxu0 %v20667_v48  ;;  %19719 = vmatpush3.bf16.msra.mxu1 %v20668_v49  ;;  %v20698_v48 = vld [vmem:[%s27496_s5 + $0x540] sm:$0xff]   ;;  %v13488_v49 = vrot.slane %v13486_v26, 2  ;;  %v20700_v46 = vld [vmem:[%s27496_s5 + $0x508] sm:$0xff]  }
 0x8a9   : > { %v19455_v40 = vpop.f32.mrf.mxu1  ;;  %19696 = vmatprep.subr.bf16.mxu0 %v27615_v15  ;;  %19720 = vmatprep.subr.bf16.mxu1 %v27615_v15  ;;  %v20727_v26 = vld [vmem:[%s27496_s5 + $0x608] sm:$0xff]  }
 0x8ab   : > { %v11617_v36 = vpop.f32.mrf.mxu0  ;;  %19673 = vmatmul.mubr.bf16.vlgmr.msra.gmra.mxu0 %v27002_v12 }
 0x8ac   : > { %v11623_v3 = vadd.f32 %v11617_v36, %v11511_v8  ;;  %19697 = vmatpush3.bf16.msra.mxu0 %v20669_v13  ;;  %19721 = vmatpush3.bf16.msra.mxu1 %v20670_v2  ;;  %v13142_v8 = vrot.slane %v16131_v30, 1  ;;  %v20701_v13 = vld [vmem:[%s27496_s5 + $0x5f8] sm:$0xff]   ;;  %v13492_v2 = vor.u32 %v13491_v28, %v13488_v49  ;;  %v20702_v36 = vld [vmem:[%s27496_s5 + $0x500] sm:$0xff]  }
 0x8ad   : > { %v19434_v5 = vpop.f32.mrf.mxu0  ;;  %19698 = vmatprep.subr.bf16.mxu0 %v27615_v15  ;;  %19722 = vmatprep.subr.bf16.mxu1 %v27615_v15 }
 0x8ae   : > { %19712 = vmatprep.mubr.msk.bf16.mxu0 %vm21083_vm1, %v27615_v15  ;;  %v27139_v12 = vadd.f32 %v11736_v27, %v11623_v3  ;;  %v20697_v27 = vld [vmem:[%s27496_s5 + $0x510] sm:$0xff]  }
 0x8af   : > { %v11620_v11 = vpop.f32.mrf.mxu0  ;;  %v20703_v3 = vld [vmem:[%s27496_s5 + $0x5f0] sm:$0xff]  }
 0x8b0   : > { %19699 = vmatpush3.bf16.msra.mxu0 %v20671_v31  ;;  %19723 = vmatpush3.bf16.msra.mxu1 %v20672_v37  ;;  %v16181_v37 = vcombine.low %v13352_v51, %v27149_v35  ;;  %v20706_v11 = vld [vmem:[%s27496_s5 + $0x5e8] sm:$0xff]   ;;  %v20707_v35 = vld [vmem:[%s27496_s5 + $0x5b0] sm:$0xff]  }
 0x8b1   : > { %v19435_v25 = vpop.f32.mrf.mxu0  ;;  %19700 = vmatprep.subr.bf16.mxu0 %v27615_v15  ;;  %19724 = vmatprep.subr.bf16.mxu1 %v27615_v15 }
 0x8b4   : > { %19701 = vmatpush3.bf16.msra.mxu0 %v20673_v58  ;;  %19725 = vmatpush3.bf16.msra.mxu1 %v20674_v14  ;;  %v13373_v14 = vrot.slane %v16181_v37, 2 }
 0x8b5   : > { %19702 = vmatprep.subr.bf16.mxu0 %v27615_v15  ;;  %19726 = vmatprep.subr.bf16.mxu1 %v27615_v15 }
 0x8b8   : > { %19703 = vmatpush3.bf16.msra.mxu0 %v20675_v61  ;;  %19727 = vmatpush3.bf16.msra.mxu1 %v20676_v59  ;;  %v20708_v61 = vld [vmem:[%s27496_s5 + $0x5e0] sm:$0xff]  }
 0x8b9   : > { %19704 = vmatprep.subr.bf16.mxu0 %v27615_v15  ;;  %19728 = vmatprep.subr.bf16.mxu1 %v27615_v15 }
 0x8bc   : > { %19705 = vmatpush3.bf16.msra.mxu0 %v20677_v32  ;;  %19729 = vmatpush3.bf16.msra.mxu1 %v20678_v42  ;;  %v20709_v42 = vld [vmem:[%s27496_s5 + $0x5a8] sm:$0xff]  }
 0x8bd   : > { %19706 = vmatprep.subr.bf16.mxu0 %v27615_v15  ;;  %19730 = vmatprep.subr.bf16.mxu1 %v27615_v15 }
 0x8c0   : > { %19707 = vmatpush3.bf16.msra.mxu0 %v20679_v9  ;;  %19731 = vmatpush3.bf16.msra.mxu1 %v20680_v20  ;;  %v13583_v9 = vld [vmem:[#allocation4 + $0x8] sm:$0x8]  ;;  %v27297_v20 = vld [vmem:[#allocation4 + $0xc] sm:$0xf] }
 0x8c1   : > { %19708 = vmatprep.subr.bf16.mxu0 %v27615_v15  ;;  %19756 = vmatprep.subr.bf16.mxu1 %v27615_v15 }
 0x8c3   : > { %v11967_v41 = vpop.f32.mrf.mxu1  ;;  %19733 = vmatmul.mubr.bf16.vlgmr.msra.gmra.mxu1 %v13261_v45  ;;  %v20714_v45 = vld [vmem:[%s27496_s5 + $0x5c8] sm:$0xff]  }
 0x8c4   : > { %19709 = vmatpush3.bf16.msra.mxu0 %v20682_v53  ;;  %19757 = vmatpush3.bf16.msra.mxu1 %v20683_v24  ;;  %v16256_v53 = vcombine.low %v13583_v9, %v27297_v20  ;;  %v20713_v24 = vld [vmem:[%s27496_s5 + $0x598] sm:$0xff]  }
 0x8c5   : > { %v19494_v33 = vpop.f32.mrf.mxu1  ;;  %19710 = vmatprep.subr.bf16.mxu0 %v27615_v15  ;;  %19758 = vmatprep.subr.bf16.mxu1 %v27615_v15 }
 0x8c6   : > { %19772 = vmatprep.mubr.msk.bf16.mxu1 %vm21083_vm1, %v27615_v15  ;;  %v20716_v33 = vld [vmem:[%s27496_s5 + $0x5c0] sm:$0xff]  }
 0x8c7   : > { %v11970_v50 = vpop.f32.mrf.mxu1 }
 0x8c8   : > { %19711 = vmatpush3.bf16.msra.mxu0 %v20684_v16  ;;  %19759 = vmatpush3.bf16.msra.mxu1 %v20685_v63  ;;  %v13720_v16 = vshll.u32 %v16256_v53, 16  ;;  %v20715_v63 = vld [vmem:[%s27496_s5 + $0x590] sm:$0xff]  }
 0x8c9   : > { %v19495_v57 = vpop.f32.mrf.mxu1  ;;  %19736 = vmatprep.subr.bf16.mxu0 %v27615_v15  ;;  %19760 = vmatprep.subr.bf16.mxu1 %v27615_v15 }
 0x8ca   : > { %v13722_v50 = vrot.slane %v13720_v16, 4  ;;  %v20737_v16 = vld [vmem:[%s27501_s10 + $0x38] sm:$0xff]  }
 0x8cb   : > { %v11848_v54 = vpop.f32.mrf.mxu0  ;;  %19713 = vmatmul.mubr.bf16.vlgmr.msra.gmra.mxu0 %v13142_v8  ;;  %v20719_v8 = vld [vmem:[%s27496_s5 + $0x580] sm:$0xff]  }
 0x8cc   : > { %v11854_v6 = vadd.f32 %v11848_v54, %v27139_v12  ;;  %19737 = vmatpush3.bf16.msra.mxu0 %v20687_v43  ;;  %19761 = vmatpush3.bf16.msra.mxu1 %v20688_v47  ;;  %v20705_v12 = vld [vmem:[%s27496_s5 + $0x5b8] sm:$0xff]   ;;  %v20718_v43 = vld [vmem:[%s27496_s5 + $0x588] sm:$0xff]  }
 0x8cd   : > { %v19474_v52 = vpop.f32.mrf.mxu0  ;;  %19738 = vmatprep.subr.bf16.mxu0 %v27615_v15  ;;  %19762 = vmatprep.subr.bf16.mxu1 %v27615_v15 }
 0x8ce   : > { %19752 = vmatprep.mubr.msk.bf16.mxu0 %vm21083_vm1, %v27615_v15  ;;  %v27214_v44 = vadd.f32 %v11967_v41, %v11854_v6  ;;  %v13717_v41 = vshrl.u32 %v16256_v53, 16  ;;  %v16231_v6 = vcombine.low %v13583_v9, %v27224_v7 }
 0x8cf   : > { %v11851_v17 = vpop.f32.mrf.mxu0 }
 0x8d0   : > { %19739 = vmatpush3.bf16.msra.mxu0 %v20689_v18  ;;  %19763 = vmatpush3.bf16.msra.mxu1 %v20690_v29  ;;  %v13719_v30 = vrot.slane %v13717_v41, 3  ;;  %v20721_v29 = vld [vmem:[%s27496_s5 + $0x638] sm:$0xff]  }
 0x8d1   : > { %v19475_v62 = vpop.f32.mrf.mxu0  ;;  %19740 = vmatprep.subr.bf16.mxu0 %v27615_v15  ;;  %19764 = vmatprep.subr.bf16.mxu1 %v27615_v15  ;;  %v20733_v41 = vld [vmem:[%s27499_s8 + $0x18] sm:$0xff]  }
 0x8d2   : > { %v13723_v47 = vor.u32 %v13722_v50, %v13719_v30  ;;  %v20734_v30 = vld [vmem:[%s27499_s8 + $0x10] sm:$0xff]  }
 0x8d4   : > { %19741 = vmatpush3.bf16.msra.mxu0 %v20691_v22  ;;  %19765 = vmatpush3.bf16.msra.mxu1 %v20692_v0  ;;  %v20722_v0 = vld [vmem:[%s27496_s5 + $0x630] sm:$0xff]  }
 0x8d5   : > { %19742 = vmatprep.subr.bf16.mxu0 %v27615_v15  ;;  %19766 = vmatprep.subr.bf16.mxu1 %v27615_v15 }
 0x8d8   : > { %19743 = vmatpush3.bf16.msra.mxu0 %v20693_v60  ;;  %19767 = vmatpush3.bf16.msra.mxu1 %v20694_v19  ;;  %v20723_v60 = vld [vmem:[%s27496_s5 + $0x628] sm:$0xff]  }
 0x8d9   : > { %19744 = vmatprep.subr.bf16.mxu0 %v27615_v15  ;;  %19768 = vmatprep.subr.bf16.mxu1 %v27615_v15 }
 0x8dc   : > { %19745 = vmatpush3.bf16.msra.mxu0 %v20695_v21  ;;  %19769 = vmatpush3.bf16.msra.mxu1 %v20696_v1  ;;  %v20725_v21 = vld [vmem:[%s27496_s5 + $0x618] sm:$0xff]   ;;  %v20726_v1 = vld [vmem:[%s27496_s5 + $0x610] sm:$0xff]  }
 0x8dd   : > { %19746 = vmatprep.subr.bf16.mxu0 %v27615_v15  ;;  %19770 = vmatprep.subr.bf16.mxu1 %v27615_v15 }
 0x8e0   : > { %19747 = vmatpush3.bf16.msra.mxu0 %v20697_v27  ;;  %19771 = vmatpush3.bf16.msra.mxu1 %v20698_v48  ;;  %v20728_v27 = vld [vmem:[%s27496_s5 + $0x600] sm:$0xff]  }
 0x8e1   : > { %19748 = vmatprep.subr.bf16.mxu0 %v27615_v15  ;;  %19796 = vmatprep.subr.bf16.mxu1 %v27615_v15 }
 0x8e3   : > { %v12194_v40 = vpop.f32.mrf.mxu1  ;;  %19773 = vmatmul.mubr.bf16.vlgmr.msra.gmra.mxu1 %v13492_v2 }
 0x8e4   : > { %19749 = vmatpush3.bf16.msra.mxu0 %v20700_v46  ;;  %19797 = vmatpush3.bf16.msra.mxu1 %v20701_v13 }
 0x8e5   : > { %v19534_v31 = vpop.f32.mrf.mxu1  ;;  %19750 = vmatprep.subr.bf16.mxu0 %v27615_v15  ;;  %19798 = vmatprep.subr.bf16.mxu1 %v27615_v15 }
 0x8e6   : > { %19812 = vmatprep.mubr.msk.bf16.mxu1 %vm21083_vm1, %v27615_v15 }
 0x8e7   : > { %v12197_v5 = vpop.f32.mrf.mxu1 }
 0x8e8   : > { %19751 = vmatpush3.bf16.msra.mxu0 %v20702_v36  ;;  %19799 = vmatpush3.bf16.msra.mxu1 %v20703_v3 }
 0x8e9   : > { %v19535_v58 = vpop.f32.mrf.mxu1  ;;  %19776 = vmatprep.subr.bf16.mxu0 %v27615_v15  ;;  %19800 = vmatprep.subr.bf16.mxu1 %v27615_v15 }
 0x8eb   : > { %v12073_v25 = vpop.f32.mrf.mxu0  ;;  %19753 = vmatmul.mubr.bf16.vlgmr.msra.gmra.mxu0 %v13373_v14 }
 0x8ec   : > { %v12079_v56 = vadd.f32 %v12073_v25, %v27214_v44  ;;  %19777 = vmatpush3.bf16.msra.mxu0 %v20705_v12  ;;  %19801 = vmatpush3.bf16.msra.mxu1 %v20706_v11  ;;  %v13604_v44 = vrot.slane %v16231_v6, 3 }
 0x8ed   : > { %v19514_v59 = vpop.f32.mrf.mxu0  ;;  %19778 = vmatprep.subr.bf16.mxu0 %v27615_v15  ;;  %19802 = vmatprep.subr.bf16.mxu1 %v27615_v15 }
 0x8ee   : > { %19792 = vmatprep.mubr.msk.bf16.mxu0 %vm21083_vm1, %v27615_v15  ;;  %v12200_v34 = vadd.f32 %v12194_v40, %v12079_v56  ;;  %v20730_v59 = vld [vmem:[%s27499_s8 + $0x30] sm:$0xff]  }
 0x8ef   : > { %v12076_v32 = vpop.f32.mrf.mxu0 }
 0x8f0   : > { %19779 = vmatpush3.bf16.msra.mxu0 %v20707_v35  ;;  %19803 = vmatpush3.bf16.msra.mxu1 %v20708_v61  ;;  %v20729_v61 = vld [vmem:[%s27499_s8 + $0x38] sm:$0xff]  }
 0x8f1   : > { %v19515_v10 = vpop.f32.mrf.mxu0  ;;  %19780 = vmatprep.subr.bf16.mxu0 %v27615_v15  ;;  %19804 = vmatprep.subr.bf16.mxu1 %v27615_v15 }
 0x8f4   : > { %19781 = vmatpush3.bf16.msra.mxu0 %v20709_v42  ;;  %19805 = vmatpush3.bf16.msra.mxu1 %v20710_v38 }
 0x8f5   : > { %19782 = vmatprep.subr.bf16.mxu0 %v27615_v15  ;;  %19806 = vmatprep.subr.bf16.mxu1 %v27615_v15 }
 0x8f8   : > { %19783 = vmatpush3.bf16.msra.mxu0 %v20711_v23  ;;  %19807 = vmatpush3.bf16.msra.mxu1 %v20712_v4 }
 0x8f9   : > { %19784 = vmatprep.subr.bf16.mxu0 %v27615_v15  ;;  %19808 = vmatprep.subr.bf16.mxu1 %v27615_v15 }
 0x8fc   : > { %19785 = vmatpush3.bf16.msra.mxu0 %v20713_v24  ;;  %19809 = vmatpush3.bf16.msra.mxu1 %v20714_v45  ;;  %v20732_v45 = vld [vmem:[%s27499_s8 + $0x20] sm:$0xff]  }
 0x8fd   : > { %19786 = vmatprep.subr.bf16.mxu0 %v27615_v15  ;;  %19810 = vmatprep.subr.bf16.mxu1 %v27615_v15 }
 0x900   : > { %19787 = vmatpush3.bf16.msra.mxu0 %v20715_v63  ;;  %19811 = vmatpush3.bf16.msra.mxu1 %v20716_v33  ;;  %v20738_v63 = vld [vmem:[%s27501_s10 + $0x30] sm:$0xff]  }
 0x901   : > { %19788 = vmatprep.subr.bf16.mxu0 %v27615_v15  ;;  %19836 = vmatprep.subr.bf16.mxu1 %v27615_v15 }
 0x903   : > { %v12425_v57 = vpop.f32.mrf.mxu1  ;;  %19813 = vmatmul.mubr.bf16.vlgmr.msra.gmra.mxu1 %v13723_v47 }
 0x904   : > { %19789 = vmatpush3.bf16.msra.mxu0 %v20718_v43  ;;  %19852 = vmatprep.mubr.msk.bf16.mxu1 %vm21083_vm1, %v27615_v15  ;;  %v20739_v43 = vld [vmem:[%s27501_s10 + $0x28] sm:$0xff]  }
 0x905   : > { %v19574_v54 = vpop.f32.mrf.mxu1  ;;  %19790 = vmatprep.subr.bf16.mxu0 %v27615_v15  ;;  %19837 = vmatpush3.bf16.msra.mxu1 %v20729_v61  ;;  %v20744_v61 = vld [vmem:[%s27501_s10] sm:$0xff]  }
 0x906   : > { %19838 = vmatprep.subr.bf16.mxu1 %v27615_v15  ;;  %v20740_v54 = vld [vmem:[%s27501_s10 + $0x20] sm:$0xff]  }
 0x907   : > { %v12428_v18 = vpop.f32.mrf.mxu1 }
 0x908   : > { %19791 = vmatpush3.bf16.msra.mxu0 %v20719_v8 }
 0x909   : > { %v19575_v52 = vpop.f32.mrf.mxu1  ;;  %19816 = vmatprep.subr.bf16.mxu0 %v27615_v15  ;;  %19839 = vmatpush3.bf16.msra.mxu1 %v20730_v59  ;;  %v16290_v59 = vld [vmem:[%s27500_s9] ss:$0 sm:$0xff] }
 0x90a   : > { %19840 = vmatprep.subr.bf16.mxu1 %v27615_v15 }
 0x90b   : > { %v12306_v17 = vpop.f32.mrf.mxu0  ;;  %19793 = vmatmul.mubr.bf16.vlgmr.msra.gmra.mxu0 %v13604_v44 }
 0x90c   : > { %v12312_v22 = vadd.f32 %v12306_v17, %v12200_v34  ;;  %19817 = vmatpush3.bf16.msra.mxu0 %v20721_v29  ;;  %19832 = vmatprep.mubr.msk.bf16.mxu0 %vm21083_vm1, %v27615_v15  ;;  %v20731_v34 = vld [vmem:[%s27499_s8 + $0x28] sm:$0xff]   ;;  %v20736_v29 = vld [vmem:[%s27499_s8] sm:$0xff]   ;;  %v20741_v17 = vld [vmem:[%s27501_s10 + $0x18] sm:$0xff]  }
 0x90d   : > { %v19554_v62 = vpop.f32.mrf.mxu0  ;;  %19818 = vmatprep.subr.bf16.mxu0 %v27615_v15  ;;  %19841 = vmatpush3.bf16.msra.mxu1 %v20731_v34 }
 0x90e   : > { %v12431_v51 = vadd.f32 %v12425_v57, %v12312_v22  ;;  %19842 = vmatprep.subr.bf16.mxu1 %v27615_v15  ;;  %v20735_v57 = vld [vmem:[%s27499_s8 + $0x8] sm:$0xff]   ;;  %v20742_v62 = vld [vmem:[%s27501_s10 + $0x10] sm:$0xff]  }
 0x90f   : > { %v12309_v7 = vpop.f32.mrf.mxu0 }
 0x910   : > { %19819 = vmatpush3.bf16.msra.mxu0 %v20722_v0 }
 0x911   : > { %v19555_v19 = vpop.f32.mrf.mxu0  ;;  %19820 = vmatprep.subr.bf16.mxu0 %v27615_v15  ;;  %19843 = vmatpush3.bf16.msra.mxu1 %v20732_v45 }
 0x912   : > { %19844 = vmatprep.subr.bf16.mxu1 %v27615_v15 }
 0x914   : > { %19821 = vmatpush3.bf16.msra.mxu0 %v20723_v60 }
 0x915   : > { %19822 = vmatprep.subr.bf16.mxu0 %v27615_v15  ;;  %19845 = vmatpush3.bf16.msra.mxu1 %v20733_v41 }
 0x916   : > { %19846 = vmatprep.subr.bf16.mxu1 %v27615_v15 }
 0x918   : > { %19823 = vmatpush3.bf16.msra.mxu0 %v20724_v39 }
 0x919   : > { %19824 = vmatprep.subr.bf16.mxu0 %v27615_v15  ;;  %19847 = vmatpush3.bf16.msra.mxu1 %v20734_v30 }
 0x91a   : > { %19848 = vmatprep.subr.bf16.mxu1 %v27615_v15 }
 0x91c   : > { %19825 = vmatpush3.bf16.msra.mxu0 %v20725_v21 }
 0x91d   : > { %19826 = vmatprep.subr.bf16.mxu0 %v27615_v15  ;;  %19849 = vmatpush3.bf16.msra.mxu1 %v20735_v57 }
 0x91e   : > { %19850 = vmatprep.subr.bf16.mxu1 %v27615_v15 }
 0x920   : > { %19827 = vmatpush3.bf16.msra.mxu0 %v20726_v1 }
 0x921   : > { %19828 = vmatprep.subr.bf16.mxu0 %v27615_v15  ;;  %19851 = vmatpush3.bf16.msra.mxu1 %v20736_v29 }
 0x923   : > { %v12656_v55 = vpop.f32.mrf.mxu1 }
 0x924   : > { %19829 = vmatpush3.bf16.msra.mxu0 %v20727_v26 }
 0x925   : > { %v19614_v48 = vpop.f32.mrf.mxu1  ;;  %19830 = vmatprep.subr.bf16.mxu0 %v27615_v15 }
 0x927   : > { %v12659_v49 = vpop.f32.mrf.mxu1 }
 0x928   : > { %19831 = vmatpush3.bf16.msra.mxu0 %v20728_v27 }
 0x929   : > { %v19615_v28 = vpop.f32.mrf.mxu1  ;;  %19856 = vmatprep.subr.bf16.mxu0 %v27615_v15 }
 0x92b   : > { %v12537_v46 = vpop.f32.mrf.mxu0  ;;  %19833 = vmatmul.mubr.bf16.vlgmr.msra.gmra.mxu0 %v27297_v20 }
 0x92c   : > { %v12543_v13 = vadd.f32 %v12537_v46, %v12431_v51  ;;  %19872 = vmatprep.mubr.msk.bf16.mxu0 %vm21083_vm1, %v27615_v15  ;;  %19857 = vmatpush3.bf16.msra.mxu0 %v20737_v16  ;;  %v20743_v51 = vld [vmem:[%s27501_s10 + $0x8] sm:$0xff]  }
 0x92d   : > { %v19594_v2 = vpop.f32.mrf.mxu0  ;;  %19858 = vmatprep.subr.bf16.mxu0 %v27615_v15 }
 0x92e   : > { %v12662_v40 = vadd.f32 %v12656_v55, %v12543_v13 }
 0x92f   : > { %v12540_v36 = vpop.f32.mrf.mxu0 }
 0x930   : > { %19859 = vmatpush3.bf16.msra.mxu0 %v20738_v63 }
 0x931   : > { %v19595_v3 = vpop.f32.mrf.mxu0  ;;  %19860 = vmatprep.subr.bf16.mxu0 %v27615_v15 }
 0x934   : > { %19861 = vmatpush3.bf16.msra.mxu0 %v20739_v43 }
 0x935   : > { %19862 = vmatprep.subr.bf16.mxu0 %v27615_v15 }
 0x938   : > { %19863 = vmatpush3.bf16.msra.mxu0 %v20740_v54 }
 0x939   : > { %19864 = vmatprep.subr.bf16.mxu0 %v27615_v15 }
 0x93c   : > { %19865 = vmatpush3.bf16.msra.mxu0 %v20741_v17 }
 0x93d   : > { %19866 = vmatprep.subr.bf16.mxu0 %v27615_v15 }
 0x940   : > { %19867 = vmatpush3.bf16.msra.mxu0 %v20742_v62 }
 0x941   : > { %19868 = vmatprep.subr.bf16.mxu0 %v27615_v15 }
 0x943   : > { %v12887_v31 = vpop.f32.mrf.mxu1 }
 0x944   : > { %19869 = vmatpush3.bf16.msra.mxu0 %v20743_v51 }
 0x945   : > { %v19654_v37 = vpop.f32.mrf.mxu1  ;;  %19870 = vmatprep.subr.bf16.mxu0 %v27615_v15 }
 0x947   : > { %v12890_v5 = vpop.f32.mrf.mxu1 }
 0x948   : > { %v16289_v5 = vld [vmem:[%s27497_s6] ss:$0 sm:$0xff]  ;;  %19871 = vmatpush3.bf16.msra.mxu0 %v20744_v61 }
 0x949   : > { %v19655_v12 = vpop.f32.mrf.mxu1 }
 0x94b   : > { %v12768_v11 = vpop.f32.mrf.mxu0 }
 0x94c   : > { %v12774_v58 = vadd.f32 %v12768_v11, %v12662_v40 }
 0x94d   : > { %v19634_v14 = vpop.f32.mrf.mxu0 }
 0x94e   : > { %v12893_v25 = vadd.f32 %v12887_v31, %v12774_v58 }
 0x94f   : > { %v12771_v56 = vpop.f32.mrf.mxu0 }
 0x951   : > { %v19635_v35 = vpop.f32.mrf.mxu0 }
 0x963   : > { %v13114_v32 = vpop.f32.mrf.mxu1 }
 0x965   : > { %v19694_v42 = vpop.f32.mrf.mxu1 }
 0x967   : > { %v13117_v38 = vpop.f32.mrf.mxu1 }
 0x969   : > { %v19695_v10 = vpop.f32.mrf.mxu1 }
 0x96b   : > { %v12993_v9 = vpop.f32.mrf.mxu0 }
 0x96c   : > { %v12999_v20 = vadd.f32 %v12993_v9, %v12893_v25 }
 0x96d   : > { %v19674_v23 = vpop.f32.mrf.mxu0 }
 0x96e   : > { %v13120_v4 = vadd.f32 %v13114_v32, %v12999_v20  ;;  %v16299_v20 = vld [vmem:[%s27502_s11] ss:$0 sm:$0xff] }
 0x96f   : > { %v12996_v53 = vpop.f32.mrf.mxu0 }
 0x971   : > { %v19675_v24 = vpop.f32.mrf.mxu0 }
 0x983   : > { %v13345_v33 = vpop.f32.mrf.mxu1 }
 0x985   : > { %v19734_v50 = vpop.f32.mrf.mxu1 }
 0x987   : > { %v13348_v47 = vpop.f32.mrf.mxu1 }
 0x989   : > { %v19735_v8 = vpop.f32.mrf.mxu1 }
 0x98b   : > { %v13226_v6 = vpop.f32.mrf.mxu0 }
 0x98c   : > { %v13232_v18 = vadd.f32 %v13226_v6, %v13120_v4 }
 0x98d   : > { %v19714_v52 = vpop.f32.mrf.mxu0 }
 0x98e   : > { %v13351_v44 = vadd.f32 %v13345_v33, %v13232_v18 }
 0x98f   : > { %v13229_v22 = vpop.f32.mrf.mxu0 }
 0x991   : > { %v19715_v0 = vpop.f32.mrf.mxu0 }
 0x9a3   : > { %v13576_v7 = vpop.f32.mrf.mxu1 }
 0x9a5   : > { %v19774_v60 = vpop.f32.mrf.mxu1 }
 0x9a7   : > { %v13579_v19 = vpop.f32.mrf.mxu1 }
 0x9a9   : > { %v19775_v39 = vpop.f32.mrf.mxu1 }
 0x9ab   : > { %v13457_v21 = vpop.f32.mrf.mxu0 }
 0x9ac   : > { %v13463_v1 = vadd.f32 %v13457_v21, %v13351_v44 }
 0x9ad   : > { %v19754_v26 = vpop.f32.mrf.mxu0 }
 0x9ae   : > { %v13582_v55 = vadd.f32 %v13576_v7, %v13463_v1 }
 0x9af   : > { %v13460_v27 = vpop.f32.mrf.mxu0 }
 0x9b1   : > { %v19755_v48 = vpop.f32.mrf.mxu0 }
 0x9c3   : > { %v13807_v49 = vpop.f32.mrf.mxu1 }
 0x9c5   : > { %v19814_v28 = vpop.f32.mrf.mxu1 }
 0x9c7   : > { %v13810_v46 = vpop.f32.mrf.mxu1 }
 0x9c9   : > { %v19815_v13 = vpop.f32.mrf.mxu1 }
 0x9cb   : > { %v13688_v2 = vpop.f32.mrf.mxu0 }
 0x9cc   : > { %v13694_v31 = vadd.f32 %v13688_v2, %v13582_v55 }
 0x9cd   : > { %v19794_v40 = vpop.f32.mrf.mxu0 }
 0x9ce   : > { %v13813_v15 = vadd.f32 %v13807_v49, %v13694_v31 }
 0x9cf   : > { %v13691_v36 = vpop.f32.mrf.mxu0 }
 0x9d1   : > { %v19795_v3 = vpop.f32.mrf.mxu0 }
 0x9eb   : > { %v13913_v37 = vpop.f32.mrf.mxu0 }
 0x9ec   : > { %v13919_v12 = vadd.f32 %v13913_v37, %v13813_v15 }
 0x9ed   : > { %v19834_v11 = vpop.f32.mrf.mxu0 }
 0x9ee   : > { %v13927_v58 = vadd.f32 %v16289_v5, %v13919_v12 }
 0x9ef   : > { %v13916_v14 = vpop.f32.mrf.mxu0 }
 0x9f0   : > { %20981 = vtanh.f32 %v13927_v58 }
 0x9f1   : > { %v19835_v25 = vpop.f32.mrf.mxu0 }
 0x9fd   : > { %v20982_v56 = vpop.eup %20981 }
 0x9fe   : > { %v13929_v35 = vpack.c.bf16 %v20982_v56, %v20982_v56 }
 0xa00   : > { %19853 = vmatmul.mubr.bf16.vlgmr.msra.gmra.mxu1 %v13929_v35 }
 0xac0   : > { %v14035_v34 = vpop.f32.mrf.mxu1 }
 0xac1   : > { %v14036_v32 = vadd.f32 %v16290_v59, %v14035_v34 }
 0xac2   : > { %v19854_v42 = vpop.f32.mrf.mxu1 }
 0xac3   : > { %v14041_v38 = vpack.c.bf16 %v14036_v32, %v14036_v32 }
 0xac4   : > { %v14038_v10 = vpop.f32.mrf.mxu1 }
 0xac5   : > { %19873 = vmatmul.mubr.bf16.vlgmr.msra.gmra.mxu0 %v14041_v38 }
 0xac6   : > { %v19855_v9 = vpop.f32.mrf.mxu1 }
 0xb85   : > { %v14147_v23 = vpop.f32.mrf.mxu0 }
 0xb86   : > { %v14148_v4 = vadd.f32 %v16299_v20, %v14147_v23 }
 0xb87   : > { %v19874_v53 = vpop.f32.mrf.mxu0 }
 0xb88   : > { %14153 = vst [vmem:[%s405_s20] sm:$0x1] %v14148_v4 }
 0xb89   : > { %v14150_v24 = vpop.f32.mrf.mxu0 }
 0xb8a   : > { %21033 = shalt.err (!%p21030_p3)
}
 0xb8b   : > { %s21034_s19 = scalar_lea.hbm %s27450_s15, 16  ;;  %s21038_s29 = scalar_lea.hbm %s27503_s12, 32 }
 0xb8c   : > { %p21035_p4 = scmp.ne.s32.totalorder %s27450_s15, %s21034_s19  ;;  %p21039_p9 = scmp.lt.s32.totalorder %s27450_s15, %s27503_s12 }
 0xb8d   : > { %p21040_p10 = scmp.lt.s32.totalorder %s21038_s29, %s21034_s19 }
 0xb8e   : > { %p21036_p7 = pnand %p21035_p4, %p21189_p5 }
 0xb8f   : > { %p21041_p11 = por %p21040_p10, %p21039_p9 }
 0xb90   : > { %p21037_p8 = pneg %p21036_p7 }
 0xb92   : > { %p21042_p12 = pnand %p21041_p11, %p21037_p8 }
 0xb94   : > { %21045 = shalt.err (!%p21042_p12)
}
 0xb95   : > { %19877 = dma.vmem_to_hbm [thread:$0]  (%p21189_p5), %s27452_s26, 16, %s27450_s15, %s14155_s17   ;;  %v19875_v45 = vpop.f32.mrf.mxu0 }
 0xb96 PF: > { %p19883_p13 = scmp.ge.s32.totalorder %s21080_s24, 2  ;;  %s14179_s0 = sand.u32 1, %s21068_s21  }
 0xb97   : > { %s14180_s1 = scalar_lea.sflag [#allocation6], %s14179_s0 }
 0xb98   : > { %p19880_p0 = pnand %p19883_p13, %p21193_p6 }
 0xb9a   : > { %p19881_p1 = pneg %p19880_p0 }
 0xb9c   : > { %21063 = dma.done.wait (%p19881_p1), %s14180_s1, 16  }
 0xb9d   : > { %21065 = vsyncadd (%p19881_p1), %s14180_s1, 4294967280  ;;  %p22_p2 = scmp.ge.s32.totalorder %s21176_s27, 4   ;;  %s28041_s21 = smov %s21072_s22 }
 0xb9e   : > { %s28042_s22 = smov %s21076_s23  ;;  %s28043_s23 = smov %s21187_s30 }
 0xb9f   : > { %s28044_s24 = smov %s21176_s27  ;;  %24 = sbr.rel (!%p22_p2) target bundleno = 6 (0x6), region = 151 }
 0xba4   :  { %14184 = vsyncpa [#allocation6], 1 }
 0xba5   :  { %14186 = vsyncpa [#allocation6 + $0x1], 1 }

</bundles_post_ra>
